<compile_context>
chip_gen: v7x
topology: tpu7x:2x2x1
jax: 0.10.0
libtpu: 0.0.40
codegen_flags: <defaults>
</compile_context>

<pallas_src>
import functools

import jax
import jax.numpy as jnp
from jax.experimental import pallas as pl
from jax.experimental.pallas import tpu as pltpu

HIDDEN = 32
NUM_LAYERS = 8
INPUT_SIZE = 3
I_OUT = 3
OUTPUT_DIM = 2
FC_SIZES = [2 * I_OUT * HIDDEN, 400, 400, 200, 200, 100, 50, 30, OUTPUT_DIM]
LANE = 128
SUBLANE = 8


def _round_up(n, m):
    return ((n + m - 1) // m) * m


# --------------------------------------------------------------------------
# Fused kernel: 8-layer bidirectional ReLU RNN + fc1 MLP chain, all in VMEM.
# --------------------------------------------------------------------------
def _fused_kernel(x_ref, wcat_ref, whh_ref, bias_ref, h0_ref, *rest,
                  nt, nb, num_layers, n_fc):
    """x_ref:   (nt*nb, 2H)  time-major, zero-padded input (real feats in [:3]).
    wcat_ref: (L, 2H, 2H)   [W_ih_fwd^T | W_ih_bwd^T] per layer (layer-0 rows>=3 zero).
    whh_ref:  (L, 2H, 2H)   blockdiag(W_hh_fwd^T, W_hh_bwd^T) per layer.
    bias_ref: (L, 1, 2H)    [b_ih+b_hh fwd | bwd].
    h0_ref:   (L, nb, 2H)   initial hidden states, [fwd | bwd] along lanes.
    rest: n_fc x (fc_w, fc_b) refs, then out_ref (nb_pad, out_pad)."""
    H = HIDDEN
    H2 = 2 * H
    fc_refs = rest[:2 * n_fc]
    out_ref = rest[2 * n_fc]

    # Lane mask selecting the forward-direction half ([:H]) of a (nb, 2H) tile.
    lane = jax.lax.broadcasted_iota(jnp.int32, (nb, H2), 1)
    fwd_mask = lane < H

    # Layer-0 input projection + bias: one hoisted matmul over all timesteps.
    proj0 = (jnp.dot(x_ref[...], wcat_ref[0], preferred_element_type=jnp.float32)
             + bias_ref[0])                                   # (nt*nb, 2H)
    projs = [proj0[t * nb:(t + 1) * nb, :] for t in range(nt)]

    feats = None
    for l in range(num_layers):
        whh_blk = whh_ref[l]          # (2H, 2H) block-diagonal
        h_cat = h0_ref[l]             # (nb, 2H) = [h0_fwd | h0_bwd]
        hc = []
        for i in range(nt):
            # Merge operands: fwd half needs proj[t=i], bwd half proj[t=nt-1-i].
            pf, pb = projs[i], projs[nt - 1 - i]
            p = pf if i == nt - 1 - i else jnp.where(fwd_mask, pf, pb)
            # ONE block-diagonal matmul steps BOTH recurrences (nonlinearity='relu').
            h_cat = jnp.maximum(
                p + jnp.dot(h_cat, whh_blk, preferred_element_type=jnp.float32),
                0.0)
            hc.append(h_cat)

        if l < num_layers - 1:
            # Layer output at timestep t: fwd state from step t, bwd from step nt-1-t.
            ys = [jnp.where(fwd_mask, hc[t], hc[nt - 1 - t]) for t in range(nt)]
            # Next layer's input projections, issued per timestep so each depends
            # only on hc[t]/hc[nt-1-t] and can overlap the remaining recurrence.
            projs = [jnp.dot(y, wcat_ref[l + 1],
                             preferred_element_type=jnp.float32) + bias_ref[l + 1]
                     for y in ys]
        else:
            # output[:, -3:, :] -> the 3 last timesteps' [fwd|bwd] tiles, oldest first.
            feats = [jnp.where(fwd_mask, hc[t], hc[nt - 1 - t])
                     for t in range(nt - I_OUT, nt)]

    # fc0: split-accumulated along fan-in (one (2H, fout) chunk per timestep);
    # replaces the lane concatenation of six 32-lane pieces.
    w0_ref, b0_ref = fc_refs[0], fc_refs[1]
    h = b0_ref[...]                                           # (1, fout0_pad)
    for j in range(I_OUT):
        h = h + jnp.dot(feats[j], w0_ref[j * H2:(j + 1) * H2, :],
                        preferred_element_type=jnp.float32)
    h = jnp.where(h > 0, h, 0.01 * h)                         # LeakyReLU(0.01)

    # Remaining fc1 chain: Linear + LeakyReLU between layers, none after the last.
    for i in range(1, n_fc):
        w = fc_refs[2 * i][...]       # (fan_in_pad, fan_out_pad), pre-transposed
        b = fc_refs[2 * i + 1][...]   # (1, fan_out_pad)
        h = jnp.dot(h, w, preferred_element_type=jnp.float32) + b
        if i < n_fc - 1:
            h = jnp.where(h > 0, h, 0.01 * h)
    out_ref[...] = h                  # lane-dense (nb_pad, 128) store


def run_fused(x2d, wcat, whh, bias, h0, fc_w, fc_b, *, nt, nb_pad):
    n_fc = len(fc_w)
    num_layers = wcat.shape[0]
    out_dim_pad = fc_b[-1].shape[1]
    H2 = 2 * HIDDEN

    kernel = functools.partial(_fused_kernel, nt=nt, nb=nb_pad,
                               num_layers=num_layers, n_fc=n_fc)
    vmem = pl.BlockSpec(memory_space=pltpu.MemorySpace.VMEM)
    args = [x2d, wcat, whh, bias, h0]
    for w, b in zip(fc_w, fc_b):
        args += [w, b]

    # Advisory cost hint so XLA can schedule surrounding work around this call.
    flops = 2 * nt * nb_pad * H2 * H2                          # layer-0 proj
    flops += num_layers * nt * 2 * nb_pad * H2 * H2            # recurrence
    flops += (num_layers - 1) * nt * 2 * nb_pad * H2 * H2      # inter-layer projs
    for w in fc_w:
        flops += 2 * nb_pad * int(w.shape[0]) * int(w.shape[1])
    bytes_accessed = sum(int(a.size) * 4 for a in args) + nb_pad * out_dim_pad * 4
    cost = pl.CostEstimate(flops=int(flops), transcendentals=0,
                           bytes_accessed=int(bytes_accessed))

    return pl.pallas_call(
        kernel,
        out_shape=jax.ShapeDtypeStruct((nb_pad, out_dim_pad), jnp.float32),
        in_specs=[vmem] * len(args),
        out_specs=vmem,
        cost_estimate=cost,
    )(*args)


# --------------------------------------------------------------------------
# Deterministic parameter construction (mirrors nn.RNN / nn.Linear shapes),
# stored in the packed / padded layouts the kernel expects.
# --------------------------------------------------------------------------
def init_params(key):
    k_rnn, k_fc = jax.random.split(key)
    in2 = 2 * HIDDEN
    scale = 1.0 / float(jnp.sqrt(HIDDEN))

    wcat_list, whh_list, b_list = [], [], []
    kk = k_rnn
    for l in range(NUM_LAYERS):
        in_dim = INPUT_SIZE if l == 0 else in2
        wih_dirs, bias_dirs = [], []
        whh_blk = jnp.zeros((in2, in2), jnp.float32)
        for d in range(2):
            kk, k1, k2, k3, k4 = jax.random.split(kk, 5)
            w_ih = jax.random.uniform(k1, (HIDDEN, in_dim), jnp.float32, -scale, scale)
            w_hh = jax.random.uniform(k2, (HIDDEN, HIDDEN), jnp.float32, -scale, scale)
            b_ih = jax.random.uniform(k3, (HIDDEN,), jnp.float32, -scale, scale)
            b_hh = jax.random.uniform(k4, (HIDDEN,), jnp.float32, -scale, scale)
            w_ihT = jnp.zeros((in2, HIDDEN), jnp.float32).at[:in_dim, :].set(w_ih.T)
            wih_dirs.append(w_ihT)
            s0 = d * HIDDEN
            whh_blk = whh_blk.at[s0:s0 + HIDDEN, s0:s0 + HIDDEN].set(w_hh.T)
            bias_dirs.append(b_ih + b_hh)
        wcat_list.append(jnp.concatenate(wih_dirs, axis=1))          # (2H, 2H)
        whh_list.append(whh_blk)                                      # (2H, 2H)
        b_list.append(jnp.concatenate(bias_dirs).reshape(1, in2))     # (1, 2H)

    params = {
        "wcat": jnp.stack(wcat_list),          # (L, 2H, 2H)
        "whh": jnp.stack(whh_list),            # (L, 2H, 2H) block-diagonal
        "bias": jnp.stack(b_list),             # (L, 1, 2H)
        # self.h0 = nn.Parameter(torch.zeros((2*num_layers, 1, hidden_size)))
        "h0": jnp.zeros((2 * NUM_LAYERS, 1, HIDDEN), jnp.float32),
    }

    # fc1 weights, pre-transposed and zero-padded so every fan-out is a multiple
    # of 128 lanes (padded columns/bias are zero -> exact semantics).  fc_w[0]
    # keeps its natural 192-row fan-in: the kernel consumes it in 64-row chunks.
    fc_w, fc_b = [], []
    kk = k_fc
    for i in range(len(FC_SIZES) - 1):
        fin, fout = FC_SIZES[i], FC_SIZES[i + 1]
        fin_pad = fin if i == 0 else _round_up(fin, LANE)
        fout_pad = _round_up(fout, LANE)
        kk, k1, k2 = jax.random.split(kk, 3)
        s = 1.0 / float(jnp.sqrt(fin))
        w = jax.random.uniform(k1, (fin, fout), jnp.float32, -s, s)
        b = jax.random.uniform(k2, (1, fout), jnp.float32, -s, s)
        fc_w.append(jnp.zeros((fin_pad, fout_pad), jnp.float32).at[:fin, :fout].set(w))
        fc_b.append(jnp.zeros((1, fout_pad), jnp.float32).at[:, :fout].set(b))
    params["fc_w"] = fc_w
    params["fc_b"] = fc_b
    return params


# --------------------------------------------------------------------------
# Forward pass (matches DeepFittingNet.forward: returns ABTx = fc1(last-3 rnn out))
# --------------------------------------------------------------------------
def deep_fitting_net_forward(x, params):
    nb, nt, ch = x.shape
    assert nt >= I_OUT, "sequence must have at least iOut=3 timesteps"
    nb_pad = _round_up(nb, SUBLANE)
    # batch_first -> time-major; pad batch to sublane width, features to 2H,
    # then flatten to (nt*nb_pad, 2H) so each timestep is one aligned 8-row group.
    x_tm = jnp.transpose(x, (1, 0, 2))
    x_tm = jnp.pad(x_tm, ((0, 0), (0, nb_pad - nb), (0, 2 * HIDDEN - ch)))
    x2d = x_tm.reshape(nt * nb_pad, 2 * HIDDEN)
    # h0.repeat((1, nb, 1)) -> (2L, nb, H); PyTorch ordering = (layer, direction).
    # Pack per layer as (nb, 2H) with fwd in lanes [:H], bwd in lanes [H:].
    h0 = jnp.broadcast_to(params["h0"], (2 * NUM_LAYERS, nb_pad, HIDDEN))
    h0 = h0.reshape(NUM_LAYERS, 2, nb_pad, HIDDEN)
    h0 = jnp.transpose(h0, (0, 2, 1, 3)).reshape(NUM_LAYERS, nb_pad, 2 * HIDDEN)

    out = run_fused(x2d, params["wcat"], params["whh"], params["bias"], h0,
                    params["fc_w"], params["fc_b"], nt=nt, nb_pad=nb_pad)
    # Slice away batch/lane padding outside the kernel.
    return out[:nb, :OUTPUT_DIM]


if __name__ == "__main__":
    key = jax.random.PRNGKey(0)
    k_params, k_x = jax.random.split(key)
    params = init_params(k_params)

    nb, nt = 2, 8
    x = jax.random.normal(k_x, (nb, nt, INPUT_SIZE), jnp.float32)

    out = deep_fitting_net_forward(x, params)
    out = jax.block_until_ready(out)
    assert out.shape == (nb, OUTPUT_DIM)
    assert bool(jnp.all(jnp.isfinite(out)))
    print("KERNEL_OK")
</pallas_src>

<mosaic_0001>
module attributes {stable_mosaic.version = 11 : i64} {
  func.func @_fused_kernel(%arg0: memref<64x64xf32, #tpu.memory_space<vmem>>, %arg1: memref<8x64x64xf32, #tpu.memory_space<vmem>>, %arg2: memref<8x64x64xf32, #tpu.memory_space<vmem>>, %arg3: memref<8x1x64xf32, #tpu.memory_space<vmem>>, %arg4: memref<8x8x64xf32, #tpu.memory_space<vmem>>, %arg5: memref<192x512xf32, #tpu.memory_space<vmem>>, %arg6: memref<1x512xf32, #tpu.memory_space<vmem>>, %arg7: memref<512x512xf32, #tpu.memory_space<vmem>>, %arg8: memref<1x512xf32, #tpu.memory_space<vmem>>, %arg9: memref<512x256xf32, #tpu.memory_space<vmem>>, %arg10: memref<1x256xf32, #tpu.memory_space<vmem>>, %arg11: memref<256x256xf32, #tpu.memory_space<vmem>>, %arg12: memref<1x256xf32, #tpu.memory_space<vmem>>, %arg13: memref<256x128xf32, #tpu.memory_space<vmem>>, %arg14: memref<1x128xf32, #tpu.memory_space<vmem>>, %arg15: memref<128x128xf32, #tpu.memory_space<vmem>>, %arg16: memref<1x128xf32, #tpu.memory_space<vmem>>, %arg17: memref<128x128xf32, #tpu.memory_space<vmem>>, %arg18: memref<1x128xf32, #tpu.memory_space<vmem>>, %arg19: memref<128x128xf32, #tpu.memory_space<vmem>>, %arg20: memref<1x128xf32, #tpu.memory_space<vmem>>, %arg21: memref<8x128xf32, #tpu.memory_space<vmem>>) attributes {dimension_semantics = [], scalar_prefetch = 0 : i64, scratch_operands = 0 : i64, tpu.core_type = #tpu.core_type<tc>} {
    %0 = tpu.iota {dimensions = array<i32: 1>} : vector<8x64xi32>
    %c32_i32 = arith.constant 32 : i32
    %1 = vector.broadcast %c32_i32 : i32 to vector<8x64xi32>
    %2 = arith.cmpi slt, %0, %1 : vector<8x64xi32>
    %c0 = arith.constant 0 : index
    %c0_0 = arith.constant 0 : index
    %3 = vector.load %arg0[%c0, %c0_0] : memref<64x64xf32, #tpu.memory_space<vmem>>, vector<64x64xf32>
    %c0_1 = arith.constant 0 : index
    %c0_2 = arith.constant 0 : index
    %c0_3 = arith.constant 0 : index
    %4 = vector.load %arg1[%c0_1, %c0_2, %c0_3] : memref<8x64x64xf32, #tpu.memory_space<vmem>>, vector<1x64x64xf32>
    %5 = vector.shape_cast %4 : vector<1x64x64xf32> to vector<64x64xf32>
    %cst = arith.constant dense<0.000000e+00> : vector<64x64xf32>
    %6 = tpu.matmul %3, %5, %cst {dimension_numbers = #tpu.dot_dimension_numbers<[1], [0], [0], [1], [0, 0, 1, 1], [], []>} : vector<64x64xf32>, vector<64x64xf32>, vector<64x64xf32> -> vector<64x64xf32>
    %c0_4 = arith.constant 0 : index
    %c0_5 = arith.constant 0 : index
    %c0_6 = arith.constant 0 : index
    %7 = vector.load %arg3[%c0_4, %c0_5, %c0_6] : memref<8x1x64xf32, #tpu.memory_space<vmem>>, vector<1x1x64xf32>
    %8 = vector.shape_cast %7 : vector<1x1x64xf32> to vector<1x64xf32>
    %9 = vector.broadcast %8 : vector<1x64xf32> to vector<64x64xf32>
    %10 = arith.addf %6, %9 : vector<64x64xf32>
    %11 = vector.extract_strided_slice %10 {offsets = [0, 0], sizes = [8, 64], strides = [1, 1]} : vector<64x64xf32> to vector<8x64xf32>
    %12 = vector.extract_strided_slice %10 {offsets = [8, 0], sizes = [8, 64], strides = [1, 1]} : vector<64x64xf32> to vector<8x64xf32>
    %13 = vector.extract_strided_slice %10 {offsets = [16, 0], sizes = [8, 64], strides = [1, 1]} : vector<64x64xf32> to vector<8x64xf32>
    %14 = vector.extract_strided_slice %10 {offsets = [24, 0], sizes = [8, 64], strides = [1, 1]} : vector<64x64xf32> to vector<8x64xf32>
    %15 = vector.extract_strided_slice %10 {offsets = [32, 0], sizes = [8, 64], strides = [1, 1]} : vector<64x64xf32> to vector<8x64xf32>
    %16 = vector.extract_strided_slice %10 {offsets = [40, 0], sizes = [8, 64], strides = [1, 1]} : vector<64x64xf32> to vector<8x64xf32>
    %17 = vector.extract_strided_slice %10 {offsets = [48, 0], sizes = [8, 64], strides = [1, 1]} : vector<64x64xf32> to vector<8x64xf32>
    %18 = vector.extract_strided_slice %10 {offsets = [56, 0], sizes = [8, 64], strides = [1, 1]} : vector<64x64xf32> to vector<8x64xf32>
    %c0_7 = arith.constant 0 : index
    %c0_8 = arith.constant 0 : index
    %c0_9 = arith.constant 0 : index
    %19 = vector.load %arg2[%c0_7, %c0_8, %c0_9] : memref<8x64x64xf32, #tpu.memory_space<vmem>>, vector<1x64x64xf32>
    %20 = vector.shape_cast %19 : vector<1x64x64xf32> to vector<64x64xf32>
    %c0_10 = arith.constant 0 : index
    %c0_11 = arith.constant 0 : index
    %c0_12 = arith.constant 0 : index
    %21 = vector.load %arg4[%c0_10, %c0_11, %c0_12] : memref<8x8x64xf32, #tpu.memory_space<vmem>>, vector<1x8x64xf32>
    %22 = vector.shape_cast %21 : vector<1x8x64xf32> to vector<8x64xf32>
    %23 = arith.select %2, %11, %18 : vector<8x64xi1>, vector<8x64xf32>
    %cst_13 = arith.constant dense<0.000000e+00> : vector<8x64xf32>
    %24 = tpu.matmul %22, %20, %cst_13 {dimension_numbers = #tpu.dot_dimension_numbers<[1], [0], [0], [1], [0, 0, 1, 1], [], []>} : vector<8x64xf32>, vector<64x64xf32>, vector<8x64xf32> -> vector<8x64xf32>
    %25 = arith.addf %23, %24 : vector<8x64xf32>
    %cst_14 = arith.constant 0.000000e+00 : f32
    %26 = vector.broadcast %cst_14 : f32 to vector<8x64xf32>
    %27 = arith.maximumf %25, %26 : vector<8x64xf32>
    %28 = arith.select %2, %12, %17 : vector<8x64xi1>, vector<8x64xf32>
    %cst_15 = arith.constant dense<0.000000e+00> : vector<8x64xf32>
    %29 = tpu.matmul %27, %20, %cst_15 {dimension_numbers = #tpu.dot_dimension_numbers<[1], [0], [0], [1], [0, 0, 1, 1], [], []>} : vector<8x64xf32>, vector<64x64xf32>, vector<8x64xf32> -> vector<8x64xf32>
    %30 = arith.addf %28, %29 : vector<8x64xf32>
    %cst_16 = arith.constant 0.000000e+00 : f32
    %31 = vector.broadcast %cst_16 : f32 to vector<8x64xf32>
    %32 = arith.maximumf %30, %31 : vector<8x64xf32>
    %33 = arith.select %2, %13, %16 : vector<8x64xi1>, vector<8x64xf32>
    %cst_17 = arith.constant dense<0.000000e+00> : vector<8x64xf32>
    %34 = tpu.matmul %32, %20, %cst_17 {dimension_numbers = #tpu.dot_dimension_numbers<[1], [0], [0], [1], [0, 0, 1, 1], [], []>} : vector<8x64xf32>, vector<64x64xf32>, vector<8x64xf32> -> vector<8x64xf32>
    %35 = arith.addf %33, %34 : vector<8x64xf32>
    %cst_18 = arith.constant 0.000000e+00 : f32
    %36 = vector.broadcast %cst_18 : f32 to vector<8x64xf32>
    %37 = arith.maximumf %35, %36 : vector<8x64xf32>
    %38 = arith.select %2, %14, %15 : vector<8x64xi1>, vector<8x64xf32>
    %cst_19 = arith.constant dense<0.000000e+00> : vector<8x64xf32>
    %39 = tpu.matmul %37, %20, %cst_19 {dimension_numbers = #tpu.dot_dimension_numbers<[1], [0], [0], [1], [0, 0, 1, 1], [], []>} : vector<8x64xf32>, vector<64x64xf32>, vector<8x64xf32> -> vector<8x64xf32>
    %40 = arith.addf %38, %39 : vector<8x64xf32>
    %cst_20 = arith.constant 0.000000e+00 : f32
    %41 = vector.broadcast %cst_20 : f32 to vector<8x64xf32>
    %42 = arith.maximumf %40, %41 : vector<8x64xf32>
    %43 = arith.select %2, %15, %14 : vector<8x64xi1>, vector<8x64xf32>
    %cst_21 = arith.constant dense<0.000000e+00> : vector<8x64xf32>
    %44 = tpu.matmul %42, %20, %cst_21 {dimension_numbers = #tpu.dot_dimension_numbers<[1], [0], [0], [1], [0, 0, 1, 1], [], []>} : vector<8x64xf32>, vector<64x64xf32>, vector<8x64xf32> -> vector<8x64xf32>
    %45 = arith.addf %43, %44 : vector<8x64xf32>
    %cst_22 = arith.constant 0.000000e+00 : f32
    %46 = vector.broadcast %cst_22 : f32 to vector<8x64xf32>
    %47 = arith.maximumf %45, %46 : vector<8x64xf32>
    %48 = arith.select %2, %16, %13 : vector<8x64xi1>, vector<8x64xf32>
    %cst_23 = arith.constant dense<0.000000e+00> : vector<8x64xf32>
    %49 = tpu.matmul %47, %20, %cst_23 {dimension_numbers = #tpu.dot_dimension_numbers<[1], [0], [0], [1], [0, 0, 1, 1], [], []>} : vector<8x64xf32>, vector<64x64xf32>, vector<8x64xf32> -> vector<8x64xf32>
    %50 = arith.addf %48, %49 : vector<8x64xf32>
    %cst_24 = arith.constant 0.000000e+00 : f32
    %51 = vector.broadcast %cst_24 : f32 to vector<8x64xf32>
    %52 = arith.maximumf %50, %51 : vector<8x64xf32>
    %53 = arith.select %2, %17, %12 : vector<8x64xi1>, vector<8x64xf32>
    %cst_25 = arith.constant dense<0.000000e+00> : vector<8x64xf32>
    %54 = tpu.matmul %52, %20, %cst_25 {dimension_numbers = #tpu.dot_dimension_numbers<[1], [0], [0], [1], [0, 0, 1, 1], [], []>} : vector<8x64xf32>, vector<64x64xf32>, vector<8x64xf32> -> vector<8x64xf32>
    %55 = arith.addf %53, %54 : vector<8x64xf32>
    %cst_26 = arith.constant 0.000000e+00 : f32
    %56 = vector.broadcast %cst_26 : f32 to vector<8x64xf32>
    %57 = arith.maximumf %55, %56 : vector<8x64xf32>
    %58 = arith.select %2, %18, %11 : vector<8x64xi1>, vector<8x64xf32>
    %cst_27 = arith.constant dense<0.000000e+00> : vector<8x64xf32>
    %59 = tpu.matmul %57, %20, %cst_27 {dimension_numbers = #tpu.dot_dimension_numbers<[1], [0], [0], [1], [0, 0, 1, 1], [], []>} : vector<8x64xf32>, vector<64x64xf32>, vector<8x64xf32> -> vector<8x64xf32>
    %60 = arith.addf %58, %59 : vector<8x64xf32>
    %cst_28 = arith.constant 0.000000e+00 : f32
    %61 = vector.broadcast %cst_28 : f32 to vector<8x64xf32>
    %62 = arith.maximumf %60, %61 : vector<8x64xf32>
    %63 = arith.select %2, %27, %62 : vector<8x64xi1>, vector<8x64xf32>
    %64 = arith.select %2, %32, %57 : vector<8x64xi1>, vector<8x64xf32>
    %65 = arith.select %2, %37, %52 : vector<8x64xi1>, vector<8x64xf32>
    %66 = arith.select %2, %42, %47 : vector<8x64xi1>, vector<8x64xf32>
    %67 = arith.select %2, %47, %42 : vector<8x64xi1>, vector<8x64xf32>
    %68 = arith.select %2, %52, %37 : vector<8x64xi1>, vector<8x64xf32>
    %69 = arith.select %2, %57, %32 : vector<8x64xi1>, vector<8x64xf32>
    %70 = arith.select %2, %62, %27 : vector<8x64xi1>, vector<8x64xf32>
    %c1 = arith.constant 1 : index
    %c0_29 = arith.constant 0 : index
    %c0_30 = arith.constant 0 : index
    %71 = vector.load %arg1[%c1, %c0_29, %c0_30] : memref<8x64x64xf32, #tpu.memory_space<vmem>>, vector<1x64x64xf32>
    %72 = vector.shape_cast %71 : vector<1x64x64xf32> to vector<64x64xf32>
    %cst_31 = arith.constant dense<0.000000e+00> : vector<8x64xf32>
    %73 = tpu.matmul %63, %72, %cst_31 {dimension_numbers = #tpu.dot_dimension_numbers<[1], [0], [0], [1], [0, 0, 1, 1], [], []>} : vector<8x64xf32>, vector<64x64xf32>, vector<8x64xf32> -> vector<8x64xf32>
    %c1_32 = arith.constant 1 : index
    %c0_33 = arith.constant 0 : index
    %c0_34 = arith.constant 0 : index
    %74 = vector.load %arg3[%c1_32, %c0_33, %c0_34] : memref<8x1x64xf32, #tpu.memory_space<vmem>>, vector<1x1x64xf32>
    %75 = vector.shape_cast %74 : vector<1x1x64xf32> to vector<1x64xf32>
    %76 = vector.broadcast %75 : vector<1x64xf32> to vector<8x64xf32>
    %77 = arith.addf %73, %76 : vector<8x64xf32>
    %c1_35 = arith.constant 1 : index
    %c0_36 = arith.constant 0 : index
    %c0_37 = arith.constant 0 : index
    %78 = vector.load %arg1[%c1_35, %c0_36, %c0_37] : memref<8x64x64xf32, #tpu.memory_space<vmem>>, vector<1x64x64xf32>
    %79 = vector.shape_cast %78 : vector<1x64x64xf32> to vector<64x64xf32>
    %cst_38 = arith.constant dense<0.000000e+00> : vector<8x64xf32>
    %80 = tpu.matmul %64, %79, %cst_38 {dimension_numbers = #tpu.dot_dimension_numbers<[1], [0], [0], [1], [0, 0, 1, 1], [], []>} : vector<8x64xf32>, vector<64x64xf32>, vector<8x64xf32> -> vector<8x64xf32>
    %c1_39 = arith.constant 1 : index
    %c0_40 = arith.constant 0 : index
    %c0_41 = arith.constant 0 : index
    %81 = vector.load %arg3[%c1_39, %c0_40, %c0_41] : memref<8x1x64xf32, #tpu.memory_space<vmem>>, vector<1x1x64xf32>
    %82 = vector.shape_cast %81 : vector<1x1x64xf32> to vector<1x64xf32>
    %83 = vector.broadcast %82 : vector<1x64xf32> to vector<8x64xf32>
    %84 = arith.addf %80, %83 : vector<8x64xf32>
    %c1_42 = arith.constant 1 : index
    %c0_43 = arith.constant 0 : index
    %c0_44 = arith.constant 0 : index
    %85 = vector.load %arg1[%c1_42, %c0_43, %c0_44] : memref<8x64x64xf32, #tpu.memory_space<vmem>>, vector<1x64x64xf32>
    %86 = vector.shape_cast %85 : vector<1x64x64xf32> to vector<64x64xf32>
    %cst_45 = arith.constant dense<0.000000e+00> : vector<8x64xf32>
    %87 = tpu.matmul %65, %86, %cst_45 {dimension_numbers = #tpu.dot_dimension_numbers<[1], [0], [0], [1], [0, 0, 1, 1], [], []>} : vector<8x64xf32>, vector<64x64xf32>, vector<8x64xf32> -> vector<8x64xf32>
    %c1_46 = arith.constant 1 : index
    %c0_47 = arith.constant 0 : index
    %c0_48 = arith.constant 0 : index
    %88 = vector.load %arg3[%c1_46, %c0_47, %c0_48] : memref<8x1x64xf32, #tpu.memory_space<vmem>>, vector<1x1x64xf32>
    %89 = vector.shape_cast %88 : vector<1x1x64xf32> to vector<1x64xf32>
    %90 = vector.broadcast %89 : vector<1x64xf32> to vector<8x64xf32>
    %91 = arith.addf %87, %90 : vector<8x64xf32>
    %c1_49 = arith.constant 1 : index
    %c0_50 = arith.constant 0 : index
    %c0_51 = arith.constant 0 : index
    %92 = vector.load %arg1[%c1_49, %c0_50, %c0_51] : memref<8x64x64xf32, #tpu.memory_space<vmem>>, vector<1x64x64xf32>
    %93 = vector.shape_cast %92 : vector<1x64x64xf32> to vector<64x64xf32>
    %cst_52 = arith.constant dense<0.000000e+00> : vector<8x64xf32>
    %94 = tpu.matmul %66, %93, %cst_52 {dimension_numbers = #tpu.dot_dimension_numbers<[1], [0], [0], [1], [0, 0, 1, 1], [], []>} : vector<8x64xf32>, vector<64x64xf32>, vector<8x64xf32> -> vector<8x64xf32>
    %c1_53 = arith.constant 1 : index
    %c0_54 = arith.constant 0 : index
    %c0_55 = arith.constant 0 : index
    %95 = vector.load %arg3[%c1_53, %c0_54, %c0_55] : memref<8x1x64xf32, #tpu.memory_space<vmem>>, vector<1x1x64xf32>
    %96 = vector.shape_cast %95 : vector<1x1x64xf32> to vector<1x64xf32>
    %97 = vector.broadcast %96 : vector<1x64xf32> to vector<8x64xf32>
    %98 = arith.addf %94, %97 : vector<8x64xf32>
    %c1_56 = arith.constant 1 : index
    %c0_57 = arith.constant 0 : index
    %c0_58 = arith.constant 0 : index
    %99 = vector.load %arg1[%c1_56, %c0_57, %c0_58] : memref<8x64x64xf32, #tpu.memory_space<vmem>>, vector<1x64x64xf32>
    %100 = vector.shape_cast %99 : vector<1x64x64xf32> to vector<64x64xf32>
    %cst_59 = arith.constant dense<0.000000e+00> : vector<8x64xf32>
    %101 = tpu.matmul %67, %100, %cst_59 {dimension_numbers = #tpu.dot_dimension_numbers<[1], [0], [0], [1], [0, 0, 1, 1], [], []>} : vector<8x64xf32>, vector<64x64xf32>, vector<8x64xf32> -> vector<8x64xf32>
    %c1_60 = arith.constant 1 : index
    %c0_61 = arith.constant 0 : index
    %c0_62 = arith.constant 0 : index
    %102 = vector.load %arg3[%c1_60, %c0_61, %c0_62] : memref<8x1x64xf32, #tpu.memory_space<vmem>>, vector<1x1x64xf32>
    %103 = vector.shape_cast %102 : vector<1x1x64xf32> to vector<1x64xf32>
    %104 = vector.broadcast %103 : vector<1x64xf32> to vector<8x64xf32>
    %105 = arith.addf %101, %104 : vector<8x64xf32>
    %c1_63 = arith.constant 1 : index
    %c0_64 = arith.constant 0 : index
    %c0_65 = arith.constant 0 : index
    %106 = vector.load %arg1[%c1_63, %c0_64, %c0_65] : memref<8x64x64xf32, #tpu.memory_space<vmem>>, vector<1x64x64xf32>
    %107 = vector.shape_cast %106 : vector<1x64x64xf32> to vector<64x64xf32>
    %cst_66 = arith.constant dense<0.000000e+00> : vector<8x64xf32>
    %108 = tpu.matmul %68, %107, %cst_66 {dimension_numbers = #tpu.dot_dimension_numbers<[1], [0], [0], [1], [0, 0, 1, 1], [], []>} : vector<8x64xf32>, vector<64x64xf32>, vector<8x64xf32> -> vector<8x64xf32>
    %c1_67 = arith.constant 1 : index
    %c0_68 = arith.constant 0 : index
    %c0_69 = arith.constant 0 : index
    %109 = vector.load %arg3[%c1_67, %c0_68, %c0_69] : memref<8x1x64xf32, #tpu.memory_space<vmem>>, vector<1x1x64xf32>
    %110 = vector.shape_cast %109 : vector<1x1x64xf32> to vector<1x64xf32>
    %111 = vector.broadcast %110 : vector<1x64xf32> to vector<8x64xf32>
    %112 = arith.addf %108, %111 : vector<8x64xf32>
    %c1_70 = arith.constant 1 : index
    %c0_71 = arith.constant 0 : index
    %c0_72 = arith.constant 0 : index
    %113 = vector.load %arg1[%c1_70, %c0_71, %c0_72] : memref<8x64x64xf32, #tpu.memory_space<vmem>>, vector<1x64x64xf32>
    %114 = vector.shape_cast %113 : vector<1x64x64xf32> to vector<64x64xf32>
    %cst_73 = arith.constant dense<0.000000e+00> : vector<8x64xf32>
    %115 = tpu.matmul %69, %114, %cst_73 {dimension_numbers = #tpu.dot_dimension_numbers<[1], [0], [0], [1], [0, 0, 1, 1], [], []>} : vector<8x64xf32>, vector<64x64xf32>, vector<8x64xf32> -> vector<8x64xf32>
    %c1_74 = arith.constant 1 : index
    %c0_75 = arith.constant 0 : index
    %c0_76 = arith.constant 0 : index
    %116 = vector.load %arg3[%c1_74, %c0_75, %c0_76] : memref<8x1x64xf32, #tpu.memory_space<vmem>>, vector<1x1x64xf32>
    %117 = vector.shape_cast %116 : vector<1x1x64xf32> to vector<1x64xf32>
    %118 = vector.broadcast %117 : vector<1x64xf32> to vector<8x64xf32>
    %119 = arith.addf %115, %118 : vector<8x64xf32>
    %c1_77 = arith.constant 1 : index
    %c0_78 = arith.constant 0 : index
    %c0_79 = arith.constant 0 : index
    %120 = vector.load %arg1[%c1_77, %c0_78, %c0_79] : memref<8x64x64xf32, #tpu.memory_space<vmem>>, vector<1x64x64xf32>
    %121 = vector.shape_cast %120 : vector<1x64x64xf32> to vector<64x64xf32>
    %cst_80 = arith.constant dense<0.000000e+00> : vector<8x64xf32>
    %122 = tpu.matmul %70, %121, %cst_80 {dimension_numbers = #tpu.dot_dimension_numbers<[1], [0], [0], [1], [0, 0, 1, 1], [], []>} : vector<8x64xf32>, vector<64x64xf32>, vector<8x64xf32> -> vector<8x64xf32>
    %c1_81 = arith.constant 1 : index
    %c0_82 = arith.constant 0 : index
    %c0_83 = arith.constant 0 : index
    %123 = vector.load %arg3[%c1_81, %c0_82, %c0_83] : memref<8x1x64xf32, #tpu.memory_space<vmem>>, vector<1x1x64xf32>
    %124 = vector.shape_cast %123 : vector<1x1x64xf32> to vector<1x64xf32>
    %125 = vector.broadcast %124 : vector<1x64xf32> to vector<8x64xf32>
    %126 = arith.addf %122, %125 : vector<8x64xf32>
    %c1_84 = arith.constant 1 : index
    %c0_85 = arith.constant 0 : index
    %c0_86 = arith.constant 0 : index
    %127 = vector.load %arg2[%c1_84, %c0_85, %c0_86] : memref<8x64x64xf32, #tpu.memory_space<vmem>>, vector<1x64x64xf32>
    %128 = vector.shape_cast %127 : vector<1x64x64xf32> to vector<64x64xf32>
    %c1_87 = arith.constant 1 : index
    %c0_88 = arith.constant 0 : index
    %c0_89 = arith.constant 0 : index
    %129 = vector.load %arg4[%c1_87, %c0_88, %c0_89] : memref<8x8x64xf32, #tpu.memory_space<vmem>>, vector<1x8x64xf32>
    %130 = vector.shape_cast %129 : vector<1x8x64xf32> to vector<8x64xf32>
    %131 = arith.select %2, %77, %126 : vector<8x64xi1>, vector<8x64xf32>
    %cst_90 = arith.constant dense<0.000000e+00> : vector<8x64xf32>
    %132 = tpu.matmul %130, %128, %cst_90 {dimension_numbers = #tpu.dot_dimension_numbers<[1], [0], [0], [1], [0, 0, 1, 1], [], []>} : vector<8x64xf32>, vector<64x64xf32>, vector<8x64xf32> -> vector<8x64xf32>
    %133 = arith.addf %131, %132 : vector<8x64xf32>
    %cst_91 = arith.constant 0.000000e+00 : f32
    %134 = vector.broadcast %cst_91 : f32 to vector<8x64xf32>
    %135 = arith.maximumf %133, %134 : vector<8x64xf32>
    %136 = arith.select %2, %84, %119 : vector<8x64xi1>, vector<8x64xf32>
    %cst_92 = arith.constant dense<0.000000e+00> : vector<8x64xf32>
    %137 = tpu.matmul %135, %128, %cst_92 {dimension_numbers = #tpu.dot_dimension_numbers<[1], [0], [0], [1], [0, 0, 1, 1], [], []>} : vector<8x64xf32>, vector<64x64xf32>, vector<8x64xf32> -> vector<8x64xf32>
    %138 = arith.addf %136, %137 : vector<8x64xf32>
    %cst_93 = arith.constant 0.000000e+00 : f32
    %139 = vector.broadcast %cst_93 : f32 to vector<8x64xf32>
    %140 = arith.maximumf %138, %139 : vector<8x64xf32>
    %141 = arith.select %2, %91, %112 : vector<8x64xi1>, vector<8x64xf32>
    %cst_94 = arith.constant dense<0.000000e+00> : vector<8x64xf32>
    %142 = tpu.matmul %140, %128, %cst_94 {dimension_numbers = #tpu.dot_dimension_numbers<[1], [0], [0], [1], [0, 0, 1, 1], [], []>} : vector<8x64xf32>, vector<64x64xf32>, vector<8x64xf32> -> vector<8x64xf32>
    %143 = arith.addf %141, %142 : vector<8x64xf32>
    %cst_95 = arith.constant 0.000000e+00 : f32
    %144 = vector.broadcast %cst_95 : f32 to vector<8x64xf32>
    %145 = arith.maximumf %143, %144 : vector<8x64xf32>
    %146 = arith.select %2, %98, %105 : vector<8x64xi1>, vector<8x64xf32>
    %cst_96 = arith.constant dense<0.000000e+00> : vector<8x64xf32>
    %147 = tpu.matmul %145, %128, %cst_96 {dimension_numbers = #tpu.dot_dimension_numbers<[1], [0], [0], [1], [0, 0, 1, 1], [], []>} : vector<8x64xf32>, vector<64x64xf32>, vector<8x64xf32> -> vector<8x64xf32>
    %148 = arith.addf %146, %147 : vector<8x64xf32>
    %cst_97 = arith.constant 0.000000e+00 : f32
    %149 = vector.broadcast %cst_97 : f32 to vector<8x64xf32>
    %150 = arith.maximumf %148, %149 : vector<8x64xf32>
    %151 = arith.select %2, %105, %98 : vector<8x64xi1>, vector<8x64xf32>
    %cst_98 = arith.constant dense<0.000000e+00> : vector<8x64xf32>
    %152 = tpu.matmul %150, %128, %cst_98 {dimension_numbers = #tpu.dot_dimension_numbers<[1], [0], [0], [1], [0, 0, 1, 1], [], []>} : vector<8x64xf32>, vector<64x64xf32>, vector<8x64xf32> -> vector<8x64xf32>
    %153 = arith.addf %151, %152 : vector<8x64xf32>
    %cst_99 = arith.constant 0.000000e+00 : f32
    %154 = vector.broadcast %cst_99 : f32 to vector<8x64xf32>
    %155 = arith.maximumf %153, %154 : vector<8x64xf32>
    %156 = arith.select %2, %112, %91 : vector<8x64xi1>, vector<8x64xf32>
    %cst_100 = arith.constant dense<0.000000e+00> : vector<8x64xf32>
    %157 = tpu.matmul %155, %128, %cst_100 {dimension_numbers = #tpu.dot_dimension_numbers<[1], [0], [0], [1], [0, 0, 1, 1], [], []>} : vector<8x64xf32>, vector<64x64xf32>, vector<8x64xf32> -> vector<8x64xf32>
    %158 = arith.addf %156, %157 : vector<8x64xf32>
    %cst_101 = arith.constant 0.000000e+00 : f32
    %159 = vector.broadcast %cst_101 : f32 to vector<8x64xf32>
    %160 = arith.maximumf %158, %159 : vector<8x64xf32>
    %161 = arith.select %2, %119, %84 : vector<8x64xi1>, vector<8x64xf32>
    %cst_102 = arith.constant dense<0.000000e+00> : vector<8x64xf32>
    %162 = tpu.matmul %160, %128, %cst_102 {dimension_numbers = #tpu.dot_dimension_numbers<[1], [0], [0], [1], [0, 0, 1, 1], [], []>} : vector<8x64xf32>, vector<64x64xf32>, vector<8x64xf32> -> vector<8x64xf32>
    %163 = arith.addf %161, %162 : vector<8x64xf32>
    %cst_103 = arith.constant 0.000000e+00 : f32
    %164 = vector.broadcast %cst_103 : f32 to vector<8x64xf32>
    %165 = arith.maximumf %163, %164 : vector<8x64xf32>
    %166 = arith.select %2, %126, %77 : vector<8x64xi1>, vector<8x64xf32>
    %cst_104 = arith.constant dense<0.000000e+00> : vector<8x64xf32>
    %167 = tpu.matmul %165, %128, %cst_104 {dimension_numbers = #tpu.dot_dimension_numbers<[1], [0], [0], [1], [0, 0, 1, 1], [], []>} : vector<8x64xf32>, vector<64x64xf32>, vector<8x64xf32> -> vector<8x64xf32>
    %168 = arith.addf %166, %167 : vector<8x64xf32>
    %cst_105 = arith.constant 0.000000e+00 : f32
    %169 = vector.broadcast %cst_105 : f32 to vector<8x64xf32>
    %170 = arith.maximumf %168, %169 : vector<8x64xf32>
    %171 = arith.select %2, %135, %170 : vector<8x64xi1>, vector<8x64xf32>
    %172 = arith.select %2, %140, %165 : vector<8x64xi1>, vector<8x64xf32>
    %173 = arith.select %2, %145, %160 : vector<8x64xi1>, vector<8x64xf32>
    %174 = arith.select %2, %150, %155 : vector<8x64xi1>, vector<8x64xf32>
    %175 = arith.select %2, %155, %150 : vector<8x64xi1>, vector<8x64xf32>
    %176 = arith.select %2, %160, %145 : vector<8x64xi1>, vector<8x64xf32>
    %177 = arith.select %2, %165, %140 : vector<8x64xi1>, vector<8x64xf32>
    %178 = arith.select %2, %170, %135 : vector<8x64xi1>, vector<8x64xf32>
    %c2 = arith.constant 2 : index
    %c0_106 = arith.constant 0 : index
    %c0_107 = arith.constant 0 : index
    %179 = vector.load %arg1[%c2, %c0_106, %c0_107] : memref<8x64x64xf32, #tpu.memory_space<vmem>>, vector<1x64x64xf32>
    %180 = vector.shape_cast %179 : vector<1x64x64xf32> to vector<64x64xf32>
    %cst_108 = arith.constant dense<0.000000e+00> : vector<8x64xf32>
    %181 = tpu.matmul %171, %180, %cst_108 {dimension_numbers = #tpu.dot_dimension_numbers<[1], [0], [0], [1], [0, 0, 1, 1], [], []>} : vector<8x64xf32>, vector<64x64xf32>, vector<8x64xf32> -> vector<8x64xf32>
    %c2_109 = arith.constant 2 : index
    %c0_110 = arith.constant 0 : index
    %c0_111 = arith.constant 0 : index
    %182 = vector.load %arg3[%c2_109, %c0_110, %c0_111] : memref<8x1x64xf32, #tpu.memory_space<vmem>>, vector<1x1x64xf32>
    %183 = vector.shape_cast %182 : vector<1x1x64xf32> to vector<1x64xf32>
    %184 = vector.broadcast %183 : vector<1x64xf32> to vector<8x64xf32>
    %185 = arith.addf %181, %184 : vector<8x64xf32>
    %c2_112 = arith.constant 2 : index
    %c0_113 = arith.constant 0 : index
    %c0_114 = arith.constant 0 : index
    %186 = vector.load %arg1[%c2_112, %c0_113, %c0_114] : memref<8x64x64xf32, #tpu.memory_space<vmem>>, vector<1x64x64xf32>
    %187 = vector.shape_cast %186 : vector<1x64x64xf32> to vector<64x64xf32>
    %cst_115 = arith.constant dense<0.000000e+00> : vector<8x64xf32>
    %188 = tpu.matmul %172, %187, %cst_115 {dimension_numbers = #tpu.dot_dimension_numbers<[1], [0], [0], [1], [0, 0, 1, 1], [], []>} : vector<8x64xf32>, vector<64x64xf32>, vector<8x64xf32> -> vector<8x64xf32>
    %c2_116 = arith.constant 2 : index
    %c0_117 = arith.constant 0 : index
    %c0_118 = arith.constant 0 : index
    %189 = vector.load %arg3[%c2_116, %c0_117, %c0_118] : memref<8x1x64xf32, #tpu.memory_space<vmem>>, vector<1x1x64xf32>
    %190 = vector.shape_cast %189 : vector<1x1x64xf32> to vector<1x64xf32>
    %191 = vector.broadcast %190 : vector<1x64xf32> to vector<8x64xf32>
    %192 = arith.addf %188, %191 : vector<8x64xf32>
    %c2_119 = arith.constant 2 : index
    %c0_120 = arith.constant 0 : index
    %c0_121 = arith.constant 0 : index
    %193 = vector.load %arg1[%c2_119, %c0_120, %c0_121] : memref<8x64x64xf32, #tpu.memory_space<vmem>>, vector<1x64x64xf32>
    %194 = vector.shape_cast %193 : vector<1x64x64xf32> to vector<64x64xf32>
    %cst_122 = arith.constant dense<0.000000e+00> : vector<8x64xf32>
    %195 = tpu.matmul %173, %194, %cst_122 {dimension_numbers = #tpu.dot_dimension_numbers<[1], [0], [0], [1], [0, 0, 1, 1], [], []>} : vector<8x64xf32>, vector<64x64xf32>, vector<8x64xf32> -> vector<8x64xf32>
    %c2_123 = arith.constant 2 : index
    %c0_124 = arith.constant 0 : index
    %c0_125 = arith.constant 0 : index
    %196 = vector.load %arg3[%c2_123, %c0_124, %c0_125] : memref<8x1x64xf32, #tpu.memory_space<vmem>>, vector<1x1x64xf32>
    %197 = vector.shape_cast %196 : vector<1x1x64xf32> to vector<1x64xf32>
    %198 = vector.broadcast %197 : vector<1x64xf32> to vector<8x64xf32>
    %199 = arith.addf %195, %198 : vector<8x64xf32>
    %c2_126 = arith.constant 2 : index
    %c0_127 = arith.constant 0 : index
    %c0_128 = arith.constant 0 : index
    %200 = vector.load %arg1[%c2_126, %c0_127, %c0_128] : memref<8x64x64xf32, #tpu.memory_space<vmem>>, vector<1x64x64xf32>
    %201 = vector.shape_cast %200 : vector<1x64x64xf32> to vector<64x64xf32>
    %cst_129 = arith.constant dense<0.000000e+00> : vector<8x64xf32>
    %202 = tpu.matmul %174, %201, %cst_129 {dimension_numbers = #tpu.dot_dimension_numbers<[1], [0], [0], [1], [0, 0, 1, 1], [], []>} : vector<8x64xf32>, vector<64x64xf32>, vector<8x64xf32> -> vector<8x64xf32>
    %c2_130 = arith.constant 2 : index
    %c0_131 = arith.constant 0 : index
    %c0_132 = arith.constant 0 : index
    %203 = vector.load %arg3[%c2_130, %c0_131, %c0_132] : memref<8x1x64xf32, #tpu.memory_space<vmem>>, vector<1x1x64xf32>
    %204 = vector.shape_cast %203 : vector<1x1x64xf32> to vector<1x64xf32>
    %205 = vector.broadcast %204 : vector<1x64xf32> to vector<8x64xf32>
    %206 = arith.addf %202, %205 : vector<8x64xf32>
    %c2_133 = arith.constant 2 : index
    %c0_134 = arith.constant 0 : index
    %c0_135 = arith.constant 0 : index
    %207 = vector.load %arg1[%c2_133, %c0_134, %c0_135] : memref<8x64x64xf32, #tpu.memory_space<vmem>>, vector<1x64x64xf32>
    %208 = vector.shape_cast %207 : vector<1x64x64xf32> to vector<64x64xf32>
    %cst_136 = arith.constant dense<0.000000e+00> : vector<8x64xf32>
    %209 = tpu.matmul %175, %208, %cst_136 {dimension_numbers = #tpu.dot_dimension_numbers<[1], [0], [0], [1], [0, 0, 1, 1], [], []>} : vector<8x64xf32>, vector<64x64xf32>, vector<8x64xf32> -> vector<8x64xf32>
    %c2_137 = arith.constant 2 : index
    %c0_138 = arith.constant 0 : index
    %c0_139 = arith.constant 0 : index
    %210 = vector.load %arg3[%c2_137, %c0_138, %c0_139] : memref<8x1x64xf32, #tpu.memory_space<vmem>>, vector<1x1x64xf32>
    %211 = vector.shape_cast %210 : vector<1x1x64xf32> to vector<1x64xf32>
    %212 = vector.broadcast %211 : vector<1x64xf32> to vector<8x64xf32>
    %213 = arith.addf %209, %212 : vector<8x64xf32>
    %c2_140 = arith.constant 2 : index
    %c0_141 = arith.constant 0 : index
    %c0_142 = arith.constant 0 : index
    %214 = vector.load %arg1[%c2_140, %c0_141, %c0_142] : memref<8x64x64xf32, #tpu.memory_space<vmem>>, vector<1x64x64xf32>
    %215 = vector.shape_cast %214 : vector<1x64x64xf32> to vector<64x64xf32>
    %cst_143 = arith.constant dense<0.000000e+00> : vector<8x64xf32>
    %216 = tpu.matmul %176, %215, %cst_143 {dimension_numbers = #tpu.dot_dimension_numbers<[1], [0], [0], [1], [0, 0, 1, 1], [], []>} : vector<8x64xf32>, vector<64x64xf32>, vector<8x64xf32> -> vector<8x64xf32>
    %c2_144 = arith.constant 2 : index
    %c0_145 = arith.constant 0 : index
    %c0_146 = arith.constant 0 : index
    %217 = vector.load %arg3[%c2_144, %c0_145, %c0_146] : memref<8x1x64xf32, #tpu.memory_space<vmem>>, vector<1x1x64xf32>
    %218 = vector.shape_cast %217 : vector<1x1x64xf32> to vector<1x64xf32>
    %219 = vector.broadcast %218 : vector<1x64xf32> to vector<8x64xf32>
    %220 = arith.addf %216, %219 : vector<8x64xf32>
    %c2_147 = arith.constant 2 : index
    %c0_148 = arith.constant 0 : index
    %c0_149 = arith.constant 0 : index
    %221 = vector.load %arg1[%c2_147, %c0_148, %c0_149] : memref<8x64x64xf32, #tpu.memory_space<vmem>>, vector<1x64x64xf32>
    %222 = vector.shape_cast %221 : vector<1x64x64xf32> to vector<64x64xf32>
    %cst_150 = arith.constant dense<0.000000e+00> : vector<8x64xf32>
    %223 = tpu.matmul %177, %222, %cst_150 {dimension_numbers = #tpu.dot_dimension_numbers<[1], [0], [0], [1], [0, 0, 1, 1], [], []>} : vector<8x64xf32>, vector<64x64xf32>, vector<8x64xf32> -> vector<8x64xf32>
    %c2_151 = arith.constant 2 : index
    %c0_152 = arith.constant 0 : index
    %c0_153 = arith.constant 0 : index
    %224 = vector.load %arg3[%c2_151, %c0_152, %c0_153] : memref<8x1x64xf32, #tpu.memory_space<vmem>>, vector<1x1x64xf32>
    %225 = vector.shape_cast %224 : vector<1x1x64xf32> to vector<1x64xf32>
    %226 = vector.broadcast %225 : vector<1x64xf32> to vector<8x64xf32>
    %227 = arith.addf %223, %226 : vector<8x64xf32>
    %c2_154 = arith.constant 2 : index
    %c0_155 = arith.constant 0 : index
    %c0_156 = arith.constant 0 : index
    %228 = vector.load %arg1[%c2_154, %c0_155, %c0_156] : memref<8x64x64xf32, #tpu.memory_space<vmem>>, vector<1x64x64xf32>
    %229 = vector.shape_cast %228 : vector<1x64x64xf32> to vector<64x64xf32>
    %cst_157 = arith.constant dense<0.000000e+00> : vector<8x64xf32>
    %230 = tpu.matmul %178, %229, %cst_157 {dimension_numbers = #tpu.dot_dimension_numbers<[1], [0], [0], [1], [0, 0, 1, 1], [], []>} : vector<8x64xf32>, vector<64x64xf32>, vector<8x64xf32> -> vector<8x64xf32>
    %c2_158 = arith.constant 2 : index
    %c0_159 = arith.constant 0 : index
    %c0_160 = arith.constant 0 : index
    %231 = vector.load %arg3[%c2_158, %c0_159, %c0_160] : memref<8x1x64xf32, #tpu.memory_space<vmem>>, vector<1x1x64xf32>
    %232 = vector.shape_cast %231 : vector<1x1x64xf32> to vector<1x64xf32>
    %233 = vector.broadcast %232 : vector<1x64xf32> to vector<8x64xf32>
    %234 = arith.addf %230, %233 : vector<8x64xf32>
    %c2_161 = arith.constant 2 : index
    %c0_162 = arith.constant 0 : index
    %c0_163 = arith.constant 0 : index
    %235 = vector.load %arg2[%c2_161, %c0_162, %c0_163] : memref<8x64x64xf32, #tpu.memory_space<vmem>>, vector<1x64x64xf32>
    %236 = vector.shape_cast %235 : vector<1x64x64xf32> to vector<64x64xf32>
    %c2_164 = arith.constant 2 : index
    %c0_165 = arith.constant 0 : index
    %c0_166 = arith.constant 0 : index
    %237 = vector.load %arg4[%c2_164, %c0_165, %c0_166] : memref<8x8x64xf32, #tpu.memory_space<vmem>>, vector<1x8x64xf32>
    %238 = vector.shape_cast %237 : vector<1x8x64xf32> to vector<8x64xf32>
    %239 = arith.select %2, %185, %234 : vector<8x64xi1>, vector<8x64xf32>
    %cst_167 = arith.constant dense<0.000000e+00> : vector<8x64xf32>
    %240 = tpu.matmul %238, %236, %cst_167 {dimension_numbers = #tpu.dot_dimension_numbers<[1], [0], [0], [1], [0, 0, 1, 1], [], []>} : vector<8x64xf32>, vector<64x64xf32>, vector<8x64xf32> -> vector<8x64xf32>
    %241 = arith.addf %239, %240 : vector<8x64xf32>
    %cst_168 = arith.constant 0.000000e+00 : f32
    %242 = vector.broadcast %cst_168 : f32 to vector<8x64xf32>
    %243 = arith.maximumf %241, %242 : vector<8x64xf32>
    %244 = arith.select %2, %192, %227 : vector<8x64xi1>, vector<8x64xf32>
    %cst_169 = arith.constant dense<0.000000e+00> : vector<8x64xf32>
    %245 = tpu.matmul %243, %236, %cst_169 {dimension_numbers = #tpu.dot_dimension_numbers<[1], [0], [0], [1], [0, 0, 1, 1], [], []>} : vector<8x64xf32>, vector<64x64xf32>, vector<8x64xf32> -> vector<8x64xf32>
    %246 = arith.addf %244, %245 : vector<8x64xf32>
    %cst_170 = arith.constant 0.000000e+00 : f32
    %247 = vector.broadcast %cst_170 : f32 to vector<8x64xf32>
    %248 = arith.maximumf %246, %247 : vector<8x64xf32>
    %249 = arith.select %2, %199, %220 : vector<8x64xi1>, vector<8x64xf32>
    %cst_171 = arith.constant dense<0.000000e+00> : vector<8x64xf32>
    %250 = tpu.matmul %248, %236, %cst_171 {dimension_numbers = #tpu.dot_dimension_numbers<[1], [0], [0], [1], [0, 0, 1, 1], [], []>} : vector<8x64xf32>, vector<64x64xf32>, vector<8x64xf32> -> vector<8x64xf32>
    %251 = arith.addf %249, %250 : vector<8x64xf32>
    %cst_172 = arith.constant 0.000000e+00 : f32
    %252 = vector.broadcast %cst_172 : f32 to vector<8x64xf32>
    %253 = arith.maximumf %251, %252 : vector<8x64xf32>
    %254 = arith.select %2, %206, %213 : vector<8x64xi1>, vector<8x64xf32>
    %cst_173 = arith.constant dense<0.000000e+00> : vector<8x64xf32>
    %255 = tpu.matmul %253, %236, %cst_173 {dimension_numbers = #tpu.dot_dimension_numbers<[1], [0], [0], [1], [0, 0, 1, 1], [], []>} : vector<8x64xf32>, vector<64x64xf32>, vector<8x64xf32> -> vector<8x64xf32>
    %256 = arith.addf %254, %255 : vector<8x64xf32>
    %cst_174 = arith.constant 0.000000e+00 : f32
    %257 = vector.broadcast %cst_174 : f32 to vector<8x64xf32>
    %258 = arith.maximumf %256, %257 : vector<8x64xf32>
    %259 = arith.select %2, %213, %206 : vector<8x64xi1>, vector<8x64xf32>
    %cst_175 = arith.constant dense<0.000000e+00> : vector<8x64xf32>
    %260 = tpu.matmul %258, %236, %cst_175 {dimension_numbers = #tpu.dot_dimension_numbers<[1], [0], [0], [1], [0, 0, 1, 1], [], []>} : vector<8x64xf32>, vector<64x64xf32>, vector<8x64xf32> -> vector<8x64xf32>
    %261 = arith.addf %259, %260 : vector<8x64xf32>
    %cst_176 = arith.constant 0.000000e+00 : f32
    %262 = vector.broadcast %cst_176 : f32 to vector<8x64xf32>
    %263 = arith.maximumf %261, %262 : vector<8x64xf32>
    %264 = arith.select %2, %220, %199 : vector<8x64xi1>, vector<8x64xf32>
    %cst_177 = arith.constant dense<0.000000e+00> : vector<8x64xf32>
    %265 = tpu.matmul %263, %236, %cst_177 {dimension_numbers = #tpu.dot_dimension_numbers<[1], [0], [0], [1], [0, 0, 1, 1], [], []>} : vector<8x64xf32>, vector<64x64xf32>, vector<8x64xf32> -> vector<8x64xf32>
    %266 = arith.addf %264, %265 : vector<8x64xf32>
    %cst_178 = arith.constant 0.000000e+00 : f32
    %267 = vector.broadcast %cst_178 : f32 to vector<8x64xf32>
    %268 = arith.maximumf %266, %267 : vector<8x64xf32>
    %269 = arith.select %2, %227, %192 : vector<8x64xi1>, vector<8x64xf32>
    %cst_179 = arith.constant dense<0.000000e+00> : vector<8x64xf32>
    %270 = tpu.matmul %268, %236, %cst_179 {dimension_numbers = #tpu.dot_dimension_numbers<[1], [0], [0], [1], [0, 0, 1, 1], [], []>} : vector<8x64xf32>, vector<64x64xf32>, vector<8x64xf32> -> vector<8x64xf32>
    %271 = arith.addf %269, %270 : vector<8x64xf32>
    %cst_180 = arith.constant 0.000000e+00 : f32
    %272 = vector.broadcast %cst_180 : f32 to vector<8x64xf32>
    %273 = arith.maximumf %271, %272 : vector<8x64xf32>
    %274 = arith.select %2, %234, %185 : vector<8x64xi1>, vector<8x64xf32>
    %cst_181 = arith.constant dense<0.000000e+00> : vector<8x64xf32>
    %275 = tpu.matmul %273, %236, %cst_181 {dimension_numbers = #tpu.dot_dimension_numbers<[1], [0], [0], [1], [0, 0, 1, 1], [], []>} : vector<8x64xf32>, vector<64x64xf32>, vector<8x64xf32> -> vector<8x64xf32>
    %276 = arith.addf %274, %275 : vector<8x64xf32>
    %cst_182 = arith.constant 0.000000e+00 : f32
    %277 = vector.broadcast %cst_182 : f32 to vector<8x64xf32>
    %278 = arith.maximumf %276, %277 : vector<8x64xf32>
    %279 = arith.select %2, %243, %278 : vector<8x64xi1>, vector<8x64xf32>
    %280 = arith.select %2, %248, %273 : vector<8x64xi1>, vector<8x64xf32>
    %281 = arith.select %2, %253, %268 : vector<8x64xi1>, vector<8x64xf32>
    %282 = arith.select %2, %258, %263 : vector<8x64xi1>, vector<8x64xf32>
    %283 = arith.select %2, %263, %258 : vector<8x64xi1>, vector<8x64xf32>
    %284 = arith.select %2, %268, %253 : vector<8x64xi1>, vector<8x64xf32>
    %285 = arith.select %2, %273, %248 : vector<8x64xi1>, vector<8x64xf32>
    %286 = arith.select %2, %278, %243 : vector<8x64xi1>, vector<8x64xf32>
    %c3 = arith.constant 3 : index
    %c0_183 = arith.constant 0 : index
    %c0_184 = arith.constant 0 : index
    %287 = vector.load %arg1[%c3, %c0_183, %c0_184] : memref<8x64x64xf32, #tpu.memory_space<vmem>>, vector<1x64x64xf32>
    %288 = vector.shape_cast %287 : vector<1x64x64xf32> to vector<64x64xf32>
    %cst_185 = arith.constant dense<0.000000e+00> : vector<8x64xf32>
    %289 = tpu.matmul %279, %288, %cst_185 {dimension_numbers = #tpu.dot_dimension_numbers<[1], [0], [0], [1], [0, 0, 1, 1], [], []>} : vector<8x64xf32>, vector<64x64xf32>, vector<8x64xf32> -> vector<8x64xf32>
    %c3_186 = arith.constant 3 : index
    %c0_187 = arith.constant 0 : index
    %c0_188 = arith.constant 0 : index
    %290 = vector.load %arg3[%c3_186, %c0_187, %c0_188] : memref<8x1x64xf32, #tpu.memory_space<vmem>>, vector<1x1x64xf32>
    %291 = vector.shape_cast %290 : vector<1x1x64xf32> to vector<1x64xf32>
    %292 = vector.broadcast %291 : vector<1x64xf32> to vector<8x64xf32>
    %293 = arith.addf %289, %292 : vector<8x64xf32>
    %c3_189 = arith.constant 3 : index
    %c0_190 = arith.constant 0 : index
    %c0_191 = arith.constant 0 : index
    %294 = vector.load %arg1[%c3_189, %c0_190, %c0_191] : memref<8x64x64xf32, #tpu.memory_space<vmem>>, vector<1x64x64xf32>
    %295 = vector.shape_cast %294 : vector<1x64x64xf32> to vector<64x64xf32>
    %cst_192 = arith.constant dense<0.000000e+00> : vector<8x64xf32>
    %296 = tpu.matmul %280, %295, %cst_192 {dimension_numbers = #tpu.dot_dimension_numbers<[1], [0], [0], [1], [0, 0, 1, 1], [], []>} : vector<8x64xf32>, vector<64x64xf32>, vector<8x64xf32> -> vector<8x64xf32>
    %c3_193 = arith.constant 3 : index
    %c0_194 = arith.constant 0 : index
    %c0_195 = arith.constant 0 : index
    %297 = vector.load %arg3[%c3_193, %c0_194, %c0_195] : memref<8x1x64xf32, #tpu.memory_space<vmem>>, vector<1x1x64xf32>
    %298 = vector.shape_cast %297 : vector<1x1x64xf32> to vector<1x64xf32>
    %299 = vector.broadcast %298 : vector<1x64xf32> to vector<8x64xf32>
    %300 = arith.addf %296, %299 : vector<8x64xf32>
    %c3_196 = arith.constant 3 : index
    %c0_197 = arith.constant 0 : index
    %c0_198 = arith.constant 0 : index
    %301 = vector.load %arg1[%c3_196, %c0_197, %c0_198] : memref<8x64x64xf32, #tpu.memory_space<vmem>>, vector<1x64x64xf32>
    %302 = vector.shape_cast %301 : vector<1x64x64xf32> to vector<64x64xf32>
    %cst_199 = arith.constant dense<0.000000e+00> : vector<8x64xf32>
    %303 = tpu.matmul %281, %302, %cst_199 {dimension_numbers = #tpu.dot_dimension_numbers<[1], [0], [0], [1], [0, 0, 1, 1], [], []>} : vector<8x64xf32>, vector<64x64xf32>, vector<8x64xf32> -> vector<8x64xf32>
    %c3_200 = arith.constant 3 : index
    %c0_201 = arith.constant 0 : index
    %c0_202 = arith.constant 0 : index
    %304 = vector.load %arg3[%c3_200, %c0_201, %c0_202] : memref<8x1x64xf32, #tpu.memory_space<vmem>>, vector<1x1x64xf32>
    %305 = vector.shape_cast %304 : vector<1x1x64xf32> to vector<1x64xf32>
    %306 = vector.broadcast %305 : vector<1x64xf32> to vector<8x64xf32>
    %307 = arith.addf %303, %306 : vector<8x64xf32>
    %c3_203 = arith.constant 3 : index
    %c0_204 = arith.constant 0 : index
    %c0_205 = arith.constant 0 : index
    %308 = vector.load %arg1[%c3_203, %c0_204, %c0_205] : memref<8x64x64xf32, #tpu.memory_space<vmem>>, vector<1x64x64xf32>
    %309 = vector.shape_cast %308 : vector<1x64x64xf32> to vector<64x64xf32>
    %cst_206 = arith.constant dense<0.000000e+00> : vector<8x64xf32>
    %310 = tpu.matmul %282, %309, %cst_206 {dimension_numbers = #tpu.dot_dimension_numbers<[1], [0], [0], [1], [0, 0, 1, 1], [], []>} : vector<8x64xf32>, vector<64x64xf32>, vector<8x64xf32> -> vector<8x64xf32>
    %c3_207 = arith.constant 3 : index
    %c0_208 = arith.constant 0 : index
    %c0_209 = arith.constant 0 : index
    %311 = vector.load %arg3[%c3_207, %c0_208, %c0_209] : memref<8x1x64xf32, #tpu.memory_space<vmem>>, vector<1x1x64xf32>
    %312 = vector.shape_cast %311 : vector<1x1x64xf32> to vector<1x64xf32>
    %313 = vector.broadcast %312 : vector<1x64xf32> to vector<8x64xf32>
    %314 = arith.addf %310, %313 : vector<8x64xf32>
    %c3_210 = arith.constant 3 : index
    %c0_211 = arith.constant 0 : index
    %c0_212 = arith.constant 0 : index
    %315 = vector.load %arg1[%c3_210, %c0_211, %c0_212] : memref<8x64x64xf32, #tpu.memory_space<vmem>>, vector<1x64x64xf32>
    %316 = vector.shape_cast %315 : vector<1x64x64xf32> to vector<64x64xf32>
    %cst_213 = arith.constant dense<0.000000e+00> : vector<8x64xf32>
    %317 = tpu.matmul %283, %316, %cst_213 {dimension_numbers = #tpu.dot_dimension_numbers<[1], [0], [0], [1], [0, 0, 1, 1], [], []>} : vector<8x64xf32>, vector<64x64xf32>, vector<8x64xf32> -> vector<8x64xf32>
    %c3_214 = arith.constant 3 : index
    %c0_215 = arith.constant 0 : index
    %c0_216 = arith.constant 0 : index
    %318 = vector.load %arg3[%c3_214, %c0_215, %c0_216] : memref<8x1x64xf32, #tpu.memory_space<vmem>>, vector<1x1x64xf32>
    %319 = vector.shape_cast %318 : vector<1x1x64xf32> to vector<1x64xf32>
    %320 = vector.broadcast %319 : vector<1x64xf32> to vector<8x64xf32>
    %321 = arith.addf %317, %320 : vector<8x64xf32>
    %c3_217 = arith.constant 3 : index
    %c0_218 = arith.constant 0 : index
    %c0_219 = arith.constant 0 : index
    %322 = vector.load %arg1[%c3_217, %c0_218, %c0_219] : memref<8x64x64xf32, #tpu.memory_space<vmem>>, vector<1x64x64xf32>
    %323 = vector.shape_cast %322 : vector<1x64x64xf32> to vector<64x64xf32>
    %cst_220 = arith.constant dense<0.000000e+00> : vector<8x64xf32>
    %324 = tpu.matmul %284, %323, %cst_220 {dimension_numbers = #tpu.dot_dimension_numbers<[1], [0], [0], [1], [0, 0, 1, 1], [], []>} : vector<8x64xf32>, vector<64x64xf32>, vector<8x64xf32> -> vector<8x64xf32>
    %c3_221 = arith.constant 3 : index
    %c0_222 = arith.constant 0 : index
    %c0_223 = arith.constant 0 : index
    %325 = vector.load %arg3[%c3_221, %c0_222, %c0_223] : memref<8x1x64xf32, #tpu.memory_space<vmem>>, vector<1x1x64xf32>
    %326 = vector.shape_cast %325 : vector<1x1x64xf32> to vector<1x64xf32>
    %327 = vector.broadcast %326 : vector<1x64xf32> to vector<8x64xf32>
    %328 = arith.addf %324, %327 : vector<8x64xf32>
    %c3_224 = arith.constant 3 : index
    %c0_225 = arith.constant 0 : index
    %c0_226 = arith.constant 0 : index
    %329 = vector.load %arg1[%c3_224, %c0_225, %c0_226] : memref<8x64x64xf32, #tpu.memory_space<vmem>>, vector<1x64x64xf32>
    %330 = vector.shape_cast %329 : vector<1x64x64xf32> to vector<64x64xf32>
    %cst_227 = arith.constant dense<0.000000e+00> : vector<8x64xf32>
    %331 = tpu.matmul %285, %330, %cst_227 {dimension_numbers = #tpu.dot_dimension_numbers<[1], [0], [0], [1], [0, 0, 1, 1], [], []>} : vector<8x64xf32>, vector<64x64xf32>, vector<8x64xf32> -> vector<8x64xf32>
    %c3_228 = arith.constant 3 : index
    %c0_229 = arith.constant 0 : index
    %c0_230 = arith.constant 0 : index
    %332 = vector.load %arg3[%c3_228, %c0_229, %c0_230] : memref<8x1x64xf32, #tpu.memory_space<vmem>>, vector<1x1x64xf32>
    %333 = vector.shape_cast %332 : vector<1x1x64xf32> to vector<1x64xf32>
    %334 = vector.broadcast %333 : vector<1x64xf32> to vector<8x64xf32>
    %335 = arith.addf %331, %334 : vector<8x64xf32>
    %c3_231 = arith.constant 3 : index
    %c0_232 = arith.constant 0 : index
    %c0_233 = arith.constant 0 : index
    %336 = vector.load %arg1[%c3_231, %c0_232, %c0_233] : memref<8x64x64xf32, #tpu.memory_space<vmem>>, vector<1x64x64xf32>
    %337 = vector.shape_cast %336 : vector<1x64x64xf32> to vector<64x64xf32>
    %cst_234 = arith.constant dense<0.000000e+00> : vector<8x64xf32>
    %338 = tpu.matmul %286, %337, %cst_234 {dimension_numbers = #tpu.dot_dimension_numbers<[1], [0], [0], [1], [0, 0, 1, 1], [], []>} : vector<8x64xf32>, vector<64x64xf32>, vector<8x64xf32> -> vector<8x64xf32>
    %c3_235 = arith.constant 3 : index
    %c0_236 = arith.constant 0 : index
    %c0_237 = arith.constant 0 : index
    %339 = vector.load %arg3[%c3_235, %c0_236, %c0_237] : memref<8x1x64xf32, #tpu.memory_space<vmem>>, vector<1x1x64xf32>
    %340 = vector.shape_cast %339 : vector<1x1x64xf32> to vector<1x64xf32>
    %341 = vector.broadcast %340 : vector<1x64xf32> to vector<8x64xf32>
    %342 = arith.addf %338, %341 : vector<8x64xf32>
    %c3_238 = arith.constant 3 : index
    %c0_239 = arith.constant 0 : index
    %c0_240 = arith.constant 0 : index
    %343 = vector.load %arg2[%c3_238, %c0_239, %c0_240] : memref<8x64x64xf32, #tpu.memory_space<vmem>>, vector<1x64x64xf32>
    %344 = vector.shape_cast %343 : vector<1x64x64xf32> to vector<64x64xf32>
    %c3_241 = arith.constant 3 : index
    %c0_242 = arith.constant 0 : index
    %c0_243 = arith.constant 0 : index
    %345 = vector.load %arg4[%c3_241, %c0_242, %c0_243] : memref<8x8x64xf32, #tpu.memory_space<vmem>>, vector<1x8x64xf32>
    %346 = vector.shape_cast %345 : vector<1x8x64xf32> to vector<8x64xf32>
    %347 = arith.select %2, %293, %342 : vector<8x64xi1>, vector<8x64xf32>
    %cst_244 = arith.constant dense<0.000000e+00> : vector<8x64xf32>
    %348 = tpu.matmul %346, %344, %cst_244 {dimension_numbers = #tpu.dot_dimension_numbers<[1], [0], [0], [1], [0, 0, 1, 1], [], []>} : vector<8x64xf32>, vector<64x64xf32>, vector<8x64xf32> -> vector<8x64xf32>
    %349 = arith.addf %347, %348 : vector<8x64xf32>
    %cst_245 = arith.constant 0.000000e+00 : f32
    %350 = vector.broadcast %cst_245 : f32 to vector<8x64xf32>
    %351 = arith.maximumf %349, %350 : vector<8x64xf32>
    %352 = arith.select %2, %300, %335 : vector<8x64xi1>, vector<8x64xf32>
    %cst_246 = arith.constant dense<0.000000e+00> : vector<8x64xf32>
    %353 = tpu.matmul %351, %344, %cst_246 {dimension_numbers = #tpu.dot_dimension_numbers<[1], [0], [0], [1], [0, 0, 1, 1], [], []>} : vector<8x64xf32>, vector<64x64xf32>, vector<8x64xf32> -> vector<8x64xf32>
    %354 = arith.addf %352, %353 : vector<8x64xf32>
    %cst_247 = arith.constant 0.000000e+00 : f32
    %355 = vector.broadcast %cst_247 : f32 to vector<8x64xf32>
    %356 = arith.maximumf %354, %355 : vector<8x64xf32>
    %357 = arith.select %2, %307, %328 : vector<8x64xi1>, vector<8x64xf32>
    %cst_248 = arith.constant dense<0.000000e+00> : vector<8x64xf32>
    %358 = tpu.matmul %356, %344, %cst_248 {dimension_numbers = #tpu.dot_dimension_numbers<[1], [0], [0], [1], [0, 0, 1, 1], [], []>} : vector<8x64xf32>, vector<64x64xf32>, vector<8x64xf32> -> vector<8x64xf32>
    %359 = arith.addf %357, %358 : vector<8x64xf32>
    %cst_249 = arith.constant 0.000000e+00 : f32
    %360 = vector.broadcast %cst_249 : f32 to vector<8x64xf32>
    %361 = arith.maximumf %359, %360 : vector<8x64xf32>
    %362 = arith.select %2, %314, %321 : vector<8x64xi1>, vector<8x64xf32>
    %cst_250 = arith.constant dense<0.000000e+00> : vector<8x64xf32>
    %363 = tpu.matmul %361, %344, %cst_250 {dimension_numbers = #tpu.dot_dimension_numbers<[1], [0], [0], [1], [0, 0, 1, 1], [], []>} : vector<8x64xf32>, vector<64x64xf32>, vector<8x64xf32> -> vector<8x64xf32>
    %364 = arith.addf %362, %363 : vector<8x64xf32>
    %cst_251 = arith.constant 0.000000e+00 : f32
    %365 = vector.broadcast %cst_251 : f32 to vector<8x64xf32>
    %366 = arith.maximumf %364, %365 : vector<8x64xf32>
    %367 = arith.select %2, %321, %314 : vector<8x64xi1>, vector<8x64xf32>
    %cst_252 = arith.constant dense<0.000000e+00> : vector<8x64xf32>
    %368 = tpu.matmul %366, %344, %cst_252 {dimension_numbers = #tpu.dot_dimension_numbers<[1], [0], [0], [1], [0, 0, 1, 1], [], []>} : vector<8x64xf32>, vector<64x64xf32>, vector<8x64xf32> -> vector<8x64xf32>
    %369 = arith.addf %367, %368 : vector<8x64xf32>
    %cst_253 = arith.constant 0.000000e+00 : f32
    %370 = vector.broadcast %cst_253 : f32 to vector<8x64xf32>
    %371 = arith.maximumf %369, %370 : vector<8x64xf32>
    %372 = arith.select %2, %328, %307 : vector<8x64xi1>, vector<8x64xf32>
    %cst_254 = arith.constant dense<0.000000e+00> : vector<8x64xf32>
    %373 = tpu.matmul %371, %344, %cst_254 {dimension_numbers = #tpu.dot_dimension_numbers<[1], [0], [0], [1], [0, 0, 1, 1], [], []>} : vector<8x64xf32>, vector<64x64xf32>, vector<8x64xf32> -> vector<8x64xf32>
    %374 = arith.addf %372, %373 : vector<8x64xf32>
    %cst_255 = arith.constant 0.000000e+00 : f32
    %375 = vector.broadcast %cst_255 : f32 to vector<8x64xf32>
    %376 = arith.maximumf %374, %375 : vector<8x64xf32>
    %377 = arith.select %2, %335, %300 : vector<8x64xi1>, vector<8x64xf32>
    %cst_256 = arith.constant dense<0.000000e+00> : vector<8x64xf32>
    %378 = tpu.matmul %376, %344, %cst_256 {dimension_numbers = #tpu.dot_dimension_numbers<[1], [0], [0], [1], [0, 0, 1, 1], [], []>} : vector<8x64xf32>, vector<64x64xf32>, vector<8x64xf32> -> vector<8x64xf32>
    %379 = arith.addf %377, %378 : vector<8x64xf32>
    %cst_257 = arith.constant 0.000000e+00 : f32
    %380 = vector.broadcast %cst_257 : f32 to vector<8x64xf32>
    %381 = arith.maximumf %379, %380 : vector<8x64xf32>
    %382 = arith.select %2, %342, %293 : vector<8x64xi1>, vector<8x64xf32>
    %cst_258 = arith.constant dense<0.000000e+00> : vector<8x64xf32>
    %383 = tpu.matmul %381, %344, %cst_258 {dimension_numbers = #tpu.dot_dimension_numbers<[1], [0], [0], [1], [0, 0, 1, 1], [], []>} : vector<8x64xf32>, vector<64x64xf32>, vector<8x64xf32> -> vector<8x64xf32>
    %384 = arith.addf %382, %383 : vector<8x64xf32>
    %cst_259 = arith.constant 0.000000e+00 : f32
    %385 = vector.broadcast %cst_259 : f32 to vector<8x64xf32>
    %386 = arith.maximumf %384, %385 : vector<8x64xf32>
    %387 = arith.select %2, %351, %386 : vector<8x64xi1>, vector<8x64xf32>
    %388 = arith.select %2, %356, %381 : vector<8x64xi1>, vector<8x64xf32>
    %389 = arith.select %2, %361, %376 : vector<8x64xi1>, vector<8x64xf32>
    %390 = arith.select %2, %366, %371 : vector<8x64xi1>, vector<8x64xf32>
    %391 = arith.select %2, %371, %366 : vector<8x64xi1>, vector<8x64xf32>
    %392 = arith.select %2, %376, %361 : vector<8x64xi1>, vector<8x64xf32>
    %393 = arith.select %2, %381, %356 : vector<8x64xi1>, vector<8x64xf32>
    %394 = arith.select %2, %386, %351 : vector<8x64xi1>, vector<8x64xf32>
    %c4 = arith.constant 4 : index
    %c0_260 = arith.constant 0 : index
    %c0_261 = arith.constant 0 : index
    %395 = vector.load %arg1[%c4, %c0_260, %c0_261] : memref<8x64x64xf32, #tpu.memory_space<vmem>>, vector<1x64x64xf32>
    %396 = vector.shape_cast %395 : vector<1x64x64xf32> to vector<64x64xf32>
    %cst_262 = arith.constant dense<0.000000e+00> : vector<8x64xf32>
    %397 = tpu.matmul %387, %396, %cst_262 {dimension_numbers = #tpu.dot_dimension_numbers<[1], [0], [0], [1], [0, 0, 1, 1], [], []>} : vector<8x64xf32>, vector<64x64xf32>, vector<8x64xf32> -> vector<8x64xf32>
    %c4_263 = arith.constant 4 : index
    %c0_264 = arith.constant 0 : index
    %c0_265 = arith.constant 0 : index
    %398 = vector.load %arg3[%c4_263, %c0_264, %c0_265] : memref<8x1x64xf32, #tpu.memory_space<vmem>>, vector<1x1x64xf32>
    %399 = vector.shape_cast %398 : vector<1x1x64xf32> to vector<1x64xf32>
    %400 = vector.broadcast %399 : vector<1x64xf32> to vector<8x64xf32>
    %401 = arith.addf %397, %400 : vector<8x64xf32>
    %c4_266 = arith.constant 4 : index
    %c0_267 = arith.constant 0 : index
    %c0_268 = arith.constant 0 : index
    %402 = vector.load %arg1[%c4_266, %c0_267, %c0_268] : memref<8x64x64xf32, #tpu.memory_space<vmem>>, vector<1x64x64xf32>
    %403 = vector.shape_cast %402 : vector<1x64x64xf32> to vector<64x64xf32>
    %cst_269 = arith.constant dense<0.000000e+00> : vector<8x64xf32>
    %404 = tpu.matmul %388, %403, %cst_269 {dimension_numbers = #tpu.dot_dimension_numbers<[1], [0], [0], [1], [0, 0, 1, 1], [], []>} : vector<8x64xf32>, vector<64x64xf32>, vector<8x64xf32> -> vector<8x64xf32>
    %c4_270 = arith.constant 4 : index
    %c0_271 = arith.constant 0 : index
    %c0_272 = arith.constant 0 : index
    %405 = vector.load %arg3[%c4_270, %c0_271, %c0_272] : memref<8x1x64xf32, #tpu.memory_space<vmem>>, vector<1x1x64xf32>
    %406 = vector.shape_cast %405 : vector<1x1x64xf32> to vector<1x64xf32>
    %407 = vector.broadcast %406 : vector<1x64xf32> to vector<8x64xf32>
    %408 = arith.addf %404, %407 : vector<8x64xf32>
    %c4_273 = arith.constant 4 : index
    %c0_274 = arith.constant 0 : index
    %c0_275 = arith.constant 0 : index
    %409 = vector.load %arg1[%c4_273, %c0_274, %c0_275] : memref<8x64x64xf32, #tpu.memory_space<vmem>>, vector<1x64x64xf32>
    %410 = vector.shape_cast %409 : vector<1x64x64xf32> to vector<64x64xf32>
    %cst_276 = arith.constant dense<0.000000e+00> : vector<8x64xf32>
    %411 = tpu.matmul %389, %410, %cst_276 {dimension_numbers = #tpu.dot_dimension_numbers<[1], [0], [0], [1], [0, 0, 1, 1], [], []>} : vector<8x64xf32>, vector<64x64xf32>, vector<8x64xf32> -> vector<8x64xf32>
    %c4_277 = arith.constant 4 : index
    %c0_278 = arith.constant 0 : index
    %c0_279 = arith.constant 0 : index
    %412 = vector.load %arg3[%c4_277, %c0_278, %c0_279] : memref<8x1x64xf32, #tpu.memory_space<vmem>>, vector<1x1x64xf32>
    %413 = vector.shape_cast %412 : vector<1x1x64xf32> to vector<1x64xf32>
    %414 = vector.broadcast %413 : vector<1x64xf32> to vector<8x64xf32>
    %415 = arith.addf %411, %414 : vector<8x64xf32>
    %c4_280 = arith.constant 4 : index
    %c0_281 = arith.constant 0 : index
    %c0_282 = arith.constant 0 : index
    %416 = vector.load %arg1[%c4_280, %c0_281, %c0_282] : memref<8x64x64xf32, #tpu.memory_space<vmem>>, vector<1x64x64xf32>
    %417 = vector.shape_cast %416 : vector<1x64x64xf32> to vector<64x64xf32>
    %cst_283 = arith.constant dense<0.000000e+00> : vector<8x64xf32>
    %418 = tpu.matmul %390, %417, %cst_283 {dimension_numbers = #tpu.dot_dimension_numbers<[1], [0], [0], [1], [0, 0, 1, 1], [], []>} : vector<8x64xf32>, vector<64x64xf32>, vector<8x64xf32> -> vector<8x64xf32>
    %c4_284 = arith.constant 4 : index
    %c0_285 = arith.constant 0 : index
    %c0_286 = arith.constant 0 : index
    %419 = vector.load %arg3[%c4_284, %c0_285, %c0_286] : memref<8x1x64xf32, #tpu.memory_space<vmem>>, vector<1x1x64xf32>
    %420 = vector.shape_cast %419 : vector<1x1x64xf32> to vector<1x64xf32>
    %421 = vector.broadcast %420 : vector<1x64xf32> to vector<8x64xf32>
    %422 = arith.addf %418, %421 : vector<8x64xf32>
    %c4_287 = arith.constant 4 : index
    %c0_288 = arith.constant 0 : index
    %c0_289 = arith.constant 0 : index
    %423 = vector.load %arg1[%c4_287, %c0_288, %c0_289] : memref<8x64x64xf32, #tpu.memory_space<vmem>>, vector<1x64x64xf32>
    %424 = vector.shape_cast %423 : vector<1x64x64xf32> to vector<64x64xf32>
    %cst_290 = arith.constant dense<0.000000e+00> : vector<8x64xf32>
    %425 = tpu.matmul %391, %424, %cst_290 {dimension_numbers = #tpu.dot_dimension_numbers<[1], [0], [0], [1], [0, 0, 1, 1], [], []>} : vector<8x64xf32>, vector<64x64xf32>, vector<8x64xf32> -> vector<8x64xf32>
    %c4_291 = arith.constant 4 : index
    %c0_292 = arith.constant 0 : index
    %c0_293 = arith.constant 0 : index
    %426 = vector.load %arg3[%c4_291, %c0_292, %c0_293] : memref<8x1x64xf32, #tpu.memory_space<vmem>>, vector<1x1x64xf32>
    %427 = vector.shape_cast %426 : vector<1x1x64xf32> to vector<1x64xf32>
    %428 = vector.broadcast %427 : vector<1x64xf32> to vector<8x64xf32>
    %429 = arith.addf %425, %428 : vector<8x64xf32>
    %c4_294 = arith.constant 4 : index
    %c0_295 = arith.constant 0 : index
    %c0_296 = arith.constant 0 : index
    %430 = vector.load %arg1[%c4_294, %c0_295, %c0_296] : memref<8x64x64xf32, #tpu.memory_space<vmem>>, vector<1x64x64xf32>
    %431 = vector.shape_cast %430 : vector<1x64x64xf32> to vector<64x64xf32>
    %cst_297 = arith.constant dense<0.000000e+00> : vector<8x64xf32>
    %432 = tpu.matmul %392, %431, %cst_297 {dimension_numbers = #tpu.dot_dimension_numbers<[1], [0], [0], [1], [0, 0, 1, 1], [], []>} : vector<8x64xf32>, vector<64x64xf32>, vector<8x64xf32> -> vector<8x64xf32>
    %c4_298 = arith.constant 4 : index
    %c0_299 = arith.constant 0 : index
    %c0_300 = arith.constant 0 : index
    %433 = vector.load %arg3[%c4_298, %c0_299, %c0_300] : memref<8x1x64xf32, #tpu.memory_space<vmem>>, vector<1x1x64xf32>
    %434 = vector.shape_cast %433 : vector<1x1x64xf32> to vector<1x64xf32>
    %435 = vector.broadcast %434 : vector<1x64xf32> to vector<8x64xf32>
    %436 = arith.addf %432, %435 : vector<8x64xf32>
    %c4_301 = arith.constant 4 : index
    %c0_302 = arith.constant 0 : index
    %c0_303 = arith.constant 0 : index
    %437 = vector.load %arg1[%c4_301, %c0_302, %c0_303] : memref<8x64x64xf32, #tpu.memory_space<vmem>>, vector<1x64x64xf32>
    %438 = vector.shape_cast %437 : vector<1x64x64xf32> to vector<64x64xf32>
    %cst_304 = arith.constant dense<0.000000e+00> : vector<8x64xf32>
    %439 = tpu.matmul %393, %438, %cst_304 {dimension_numbers = #tpu.dot_dimension_numbers<[1], [0], [0], [1], [0, 0, 1, 1], [], []>} : vector<8x64xf32>, vector<64x64xf32>, vector<8x64xf32> -> vector<8x64xf32>
    %c4_305 = arith.constant 4 : index
    %c0_306 = arith.constant 0 : index
    %c0_307 = arith.constant 0 : index
    %440 = vector.load %arg3[%c4_305, %c0_306, %c0_307] : memref<8x1x64xf32, #tpu.memory_space<vmem>>, vector<1x1x64xf32>
    %441 = vector.shape_cast %440 : vector<1x1x64xf32> to vector<1x64xf32>
    %442 = vector.broadcast %441 : vector<1x64xf32> to vector<8x64xf32>
    %443 = arith.addf %439, %442 : vector<8x64xf32>
    %c4_308 = arith.constant 4 : index
    %c0_309 = arith.constant 0 : index
    %c0_310 = arith.constant 0 : index
    %444 = vector.load %arg1[%c4_308, %c0_309, %c0_310] : memref<8x64x64xf32, #tpu.memory_space<vmem>>, vector<1x64x64xf32>
    %445 = vector.shape_cast %444 : vector<1x64x64xf32> to vector<64x64xf32>
    %cst_311 = arith.constant dense<0.000000e+00> : vector<8x64xf32>
    %446 = tpu.matmul %394, %445, %cst_311 {dimension_numbers = #tpu.dot_dimension_numbers<[1], [0], [0], [1], [0, 0, 1, 1], [], []>} : vector<8x64xf32>, vector<64x64xf32>, vector<8x64xf32> -> vector<8x64xf32>
    %c4_312 = arith.constant 4 : index
    %c0_313 = arith.constant 0 : index
    %c0_314 = arith.constant 0 : index
    %447 = vector.load %arg3[%c4_312, %c0_313, %c0_314] : memref<8x1x64xf32, #tpu.memory_space<vmem>>, vector<1x1x64xf32>
    %448 = vector.shape_cast %447 : vector<1x1x64xf32> to vector<1x64xf32>
    %449 = vector.broadcast %448 : vector<1x64xf32> to vector<8x64xf32>
    %450 = arith.addf %446, %449 : vector<8x64xf32>
    %c4_315 = arith.constant 4 : index
    %c0_316 = arith.constant 0 : index
    %c0_317 = arith.constant 0 : index
    %451 = vector.load %arg2[%c4_315, %c0_316, %c0_317] : memref<8x64x64xf32, #tpu.memory_space<vmem>>, vector<1x64x64xf32>
    %452 = vector.shape_cast %451 : vector<1x64x64xf32> to vector<64x64xf32>
    %c4_318 = arith.constant 4 : index
    %c0_319 = arith.constant 0 : index
    %c0_320 = arith.constant 0 : index
    %453 = vector.load %arg4[%c4_318, %c0_319, %c0_320] : memref<8x8x64xf32, #tpu.memory_space<vmem>>, vector<1x8x64xf32>
    %454 = vector.shape_cast %453 : vector<1x8x64xf32> to vector<8x64xf32>
    %455 = arith.select %2, %401, %450 : vector<8x64xi1>, vector<8x64xf32>
    %cst_321 = arith.constant dense<0.000000e+00> : vector<8x64xf32>
    %456 = tpu.matmul %454, %452, %cst_321 {dimension_numbers = #tpu.dot_dimension_numbers<[1], [0], [0], [1], [0, 0, 1, 1], [], []>} : vector<8x64xf32>, vector<64x64xf32>, vector<8x64xf32> -> vector<8x64xf32>
    %457 = arith.addf %455, %456 : vector<8x64xf32>
    %cst_322 = arith.constant 0.000000e+00 : f32
    %458 = vector.broadcast %cst_322 : f32 to vector<8x64xf32>
    %459 = arith.maximumf %457, %458 : vector<8x64xf32>
    %460 = arith.select %2, %408, %443 : vector<8x64xi1>, vector<8x64xf32>
    %cst_323 = arith.constant dense<0.000000e+00> : vector<8x64xf32>
    %461 = tpu.matmul %459, %452, %cst_323 {dimension_numbers = #tpu.dot_dimension_numbers<[1], [0], [0], [1], [0, 0, 1, 1], [], []>} : vector<8x64xf32>, vector<64x64xf32>, vector<8x64xf32> -> vector<8x64xf32>
    %462 = arith.addf %460, %461 : vector<8x64xf32>
    %cst_324 = arith.constant 0.000000e+00 : f32
    %463 = vector.broadcast %cst_324 : f32 to vector<8x64xf32>
    %464 = arith.maximumf %462, %463 : vector<8x64xf32>
    %465 = arith.select %2, %415, %436 : vector<8x64xi1>, vector<8x64xf32>
    %cst_325 = arith.constant dense<0.000000e+00> : vector<8x64xf32>
    %466 = tpu.matmul %464, %452, %cst_325 {dimension_numbers = #tpu.dot_dimension_numbers<[1], [0], [0], [1], [0, 0, 1, 1], [], []>} : vector<8x64xf32>, vector<64x64xf32>, vector<8x64xf32> -> vector<8x64xf32>
    %467 = arith.addf %465, %466 : vector<8x64xf32>
    %cst_326 = arith.constant 0.000000e+00 : f32
    %468 = vector.broadcast %cst_326 : f32 to vector<8x64xf32>
    %469 = arith.maximumf %467, %468 : vector<8x64xf32>
    %470 = arith.select %2, %422, %429 : vector<8x64xi1>, vector<8x64xf32>
    %cst_327 = arith.constant dense<0.000000e+00> : vector<8x64xf32>
    %471 = tpu.matmul %469, %452, %cst_327 {dimension_numbers = #tpu.dot_dimension_numbers<[1], [0], [0], [1], [0, 0, 1, 1], [], []>} : vector<8x64xf32>, vector<64x64xf32>, vector<8x64xf32> -> vector<8x64xf32>
    %472 = arith.addf %470, %471 : vector<8x64xf32>
    %cst_328 = arith.constant 0.000000e+00 : f32
    %473 = vector.broadcast %cst_328 : f32 to vector<8x64xf32>
    %474 = arith.maximumf %472, %473 : vector<8x64xf32>
    %475 = arith.select %2, %429, %422 : vector<8x64xi1>, vector<8x64xf32>
    %cst_329 = arith.constant dense<0.000000e+00> : vector<8x64xf32>
    %476 = tpu.matmul %474, %452, %cst_329 {dimension_numbers = #tpu.dot_dimension_numbers<[1], [0], [0], [1], [0, 0, 1, 1], [], []>} : vector<8x64xf32>, vector<64x64xf32>, vector<8x64xf32> -> vector<8x64xf32>
    %477 = arith.addf %475, %476 : vector<8x64xf32>
    %cst_330 = arith.constant 0.000000e+00 : f32
    %478 = vector.broadcast %cst_330 : f32 to vector<8x64xf32>
    %479 = arith.maximumf %477, %478 : vector<8x64xf32>
    %480 = arith.select %2, %436, %415 : vector<8x64xi1>, vector<8x64xf32>
    %cst_331 = arith.constant dense<0.000000e+00> : vector<8x64xf32>
    %481 = tpu.matmul %479, %452, %cst_331 {dimension_numbers = #tpu.dot_dimension_numbers<[1], [0], [0], [1], [0, 0, 1, 1], [], []>} : vector<8x64xf32>, vector<64x64xf32>, vector<8x64xf32> -> vector<8x64xf32>
    %482 = arith.addf %480, %481 : vector<8x64xf32>
    %cst_332 = arith.constant 0.000000e+00 : f32
    %483 = vector.broadcast %cst_332 : f32 to vector<8x64xf32>
    %484 = arith.maximumf %482, %483 : vector<8x64xf32>
    %485 = arith.select %2, %443, %408 : vector<8x64xi1>, vector<8x64xf32>
    %cst_333 = arith.constant dense<0.000000e+00> : vector<8x64xf32>
    %486 = tpu.matmul %484, %452, %cst_333 {dimension_numbers = #tpu.dot_dimension_numbers<[1], [0], [0], [1], [0, 0, 1, 1], [], []>} : vector<8x64xf32>, vector<64x64xf32>, vector<8x64xf32> -> vector<8x64xf32>
    %487 = arith.addf %485, %486 : vector<8x64xf32>
    %cst_334 = arith.constant 0.000000e+00 : f32
    %488 = vector.broadcast %cst_334 : f32 to vector<8x64xf32>
    %489 = arith.maximumf %487, %488 : vector<8x64xf32>
    %490 = arith.select %2, %450, %401 : vector<8x64xi1>, vector<8x64xf32>
    %cst_335 = arith.constant dense<0.000000e+00> : vector<8x64xf32>
    %491 = tpu.matmul %489, %452, %cst_335 {dimension_numbers = #tpu.dot_dimension_numbers<[1], [0], [0], [1], [0, 0, 1, 1], [], []>} : vector<8x64xf32>, vector<64x64xf32>, vector<8x64xf32> -> vector<8x64xf32>
    %492 = arith.addf %490, %491 : vector<8x64xf32>
    %cst_336 = arith.constant 0.000000e+00 : f32
    %493 = vector.broadcast %cst_336 : f32 to vector<8x64xf32>
    %494 = arith.maximumf %492, %493 : vector<8x64xf32>
    %495 = arith.select %2, %459, %494 : vector<8x64xi1>, vector<8x64xf32>
    %496 = arith.select %2, %464, %489 : vector<8x64xi1>, vector<8x64xf32>
    %497 = arith.select %2, %469, %484 : vector<8x64xi1>, vector<8x64xf32>
    %498 = arith.select %2, %474, %479 : vector<8x64xi1>, vector<8x64xf32>
    %499 = arith.select %2, %479, %474 : vector<8x64xi1>, vector<8x64xf32>
    %500 = arith.select %2, %484, %469 : vector<8x64xi1>, vector<8x64xf32>
    %501 = arith.select %2, %489, %464 : vector<8x64xi1>, vector<8x64xf32>
    %502 = arith.select %2, %494, %459 : vector<8x64xi1>, vector<8x64xf32>
    %c5 = arith.constant 5 : index
    %c0_337 = arith.constant 0 : index
    %c0_338 = arith.constant 0 : index
    %503 = vector.load %arg1[%c5, %c0_337, %c0_338] : memref<8x64x64xf32, #tpu.memory_space<vmem>>, vector<1x64x64xf32>
    %504 = vector.shape_cast %503 : vector<1x64x64xf32> to vector<64x64xf32>
    %cst_339 = arith.constant dense<0.000000e+00> : vector<8x64xf32>
    %505 = tpu.matmul %495, %504, %cst_339 {dimension_numbers = #tpu.dot_dimension_numbers<[1], [0], [0], [1], [0, 0, 1, 1], [], []>} : vector<8x64xf32>, vector<64x64xf32>, vector<8x64xf32> -> vector<8x64xf32>
    %c5_340 = arith.constant 5 : index
    %c0_341 = arith.constant 0 : index
    %c0_342 = arith.constant 0 : index
    %506 = vector.load %arg3[%c5_340, %c0_341, %c0_342] : memref<8x1x64xf32, #tpu.memory_space<vmem>>, vector<1x1x64xf32>
    %507 = vector.shape_cast %506 : vector<1x1x64xf32> to vector<1x64xf32>
    %508 = vector.broadcast %507 : vector<1x64xf32> to vector<8x64xf32>
    %509 = arith.addf %505, %508 : vector<8x64xf32>
    %c5_343 = arith.constant 5 : index
    %c0_344 = arith.constant 0 : index
    %c0_345 = arith.constant 0 : index
    %510 = vector.load %arg1[%c5_343, %c0_344, %c0_345] : memref<8x64x64xf32, #tpu.memory_space<vmem>>, vector<1x64x64xf32>
    %511 = vector.shape_cast %510 : vector<1x64x64xf32> to vector<64x64xf32>
    %cst_346 = arith.constant dense<0.000000e+00> : vector<8x64xf32>
    %512 = tpu.matmul %496, %511, %cst_346 {dimension_numbers = #tpu.dot_dimension_numbers<[1], [0], [0], [1], [0, 0, 1, 1], [], []>} : vector<8x64xf32>, vector<64x64xf32>, vector<8x64xf32> -> vector<8x64xf32>
    %c5_347 = arith.constant 5 : index
    %c0_348 = arith.constant 0 : index
    %c0_349 = arith.constant 0 : index
    %513 = vector.load %arg3[%c5_347, %c0_348, %c0_349] : memref<8x1x64xf32, #tpu.memory_space<vmem>>, vector<1x1x64xf32>
    %514 = vector.shape_cast %513 : vector<1x1x64xf32> to vector<1x64xf32>
    %515 = vector.broadcast %514 : vector<1x64xf32> to vector<8x64xf32>
    %516 = arith.addf %512, %515 : vector<8x64xf32>
    %c5_350 = arith.constant 5 : index
    %c0_351 = arith.constant 0 : index
    %c0_352 = arith.constant 0 : index
    %517 = vector.load %arg1[%c5_350, %c0_351, %c0_352] : memref<8x64x64xf32, #tpu.memory_space<vmem>>, vector<1x64x64xf32>
    %518 = vector.shape_cast %517 : vector<1x64x64xf32> to vector<64x64xf32>
    %cst_353 = arith.constant dense<0.000000e+00> : vector<8x64xf32>
    %519 = tpu.matmul %497, %518, %cst_353 {dimension_numbers = #tpu.dot_dimension_numbers<[1], [0], [0], [1], [0, 0, 1, 1], [], []>} : vector<8x64xf32>, vector<64x64xf32>, vector<8x64xf32> -> vector<8x64xf32>
    %c5_354 = arith.constant 5 : index
    %c0_355 = arith.constant 0 : index
    %c0_356 = arith.constant 0 : index
    %520 = vector.load %arg3[%c5_354, %c0_355, %c0_356] : memref<8x1x64xf32, #tpu.memory_space<vmem>>, vector<1x1x64xf32>
    %521 = vector.shape_cast %520 : vector<1x1x64xf32> to vector<1x64xf32>
    %522 = vector.broadcast %521 : vector<1x64xf32> to vector<8x64xf32>
    %523 = arith.addf %519, %522 : vector<8x64xf32>
    %c5_357 = arith.constant 5 : index
    %c0_358 = arith.constant 0 : index
    %c0_359 = arith.constant 0 : index
    %524 = vector.load %arg1[%c5_357, %c0_358, %c0_359] : memref<8x64x64xf32, #tpu.memory_space<vmem>>, vector<1x64x64xf32>
    %525 = vector.shape_cast %524 : vector<1x64x64xf32> to vector<64x64xf32>
    %cst_360 = arith.constant dense<0.000000e+00> : vector<8x64xf32>
    %526 = tpu.matmul %498, %525, %cst_360 {dimension_numbers = #tpu.dot_dimension_numbers<[1], [0], [0], [1], [0, 0, 1, 1], [], []>} : vector<8x64xf32>, vector<64x64xf32>, vector<8x64xf32> -> vector<8x64xf32>
    %c5_361 = arith.constant 5 : index
    %c0_362 = arith.constant 0 : index
    %c0_363 = arith.constant 0 : index
    %527 = vector.load %arg3[%c5_361, %c0_362, %c0_363] : memref<8x1x64xf32, #tpu.memory_space<vmem>>, vector<1x1x64xf32>
    %528 = vector.shape_cast %527 : vector<1x1x64xf32> to vector<1x64xf32>
    %529 = vector.broadcast %528 : vector<1x64xf32> to vector<8x64xf32>
    %530 = arith.addf %526, %529 : vector<8x64xf32>
    %c5_364 = arith.constant 5 : index
    %c0_365 = arith.constant 0 : index
    %c0_366 = arith.constant 0 : index
    %531 = vector.load %arg1[%c5_364, %c0_365, %c0_366] : memref<8x64x64xf32, #tpu.memory_space<vmem>>, vector<1x64x64xf32>
    %532 = vector.shape_cast %531 : vector<1x64x64xf32> to vector<64x64xf32>
    %cst_367 = arith.constant dense<0.000000e+00> : vector<8x64xf32>
    %533 = tpu.matmul %499, %532, %cst_367 {dimension_numbers = #tpu.dot_dimension_numbers<[1], [0], [0], [1], [0, 0, 1, 1], [], []>} : vector<8x64xf32>, vector<64x64xf32>, vector<8x64xf32> -> vector<8x64xf32>
    %c5_368 = arith.constant 5 : index
    %c0_369 = arith.constant 0 : index
    %c0_370 = arith.constant 0 : index
    %534 = vector.load %arg3[%c5_368, %c0_369, %c0_370] : memref<8x1x64xf32, #tpu.memory_space<vmem>>, vector<1x1x64xf32>
    %535 = vector.shape_cast %534 : vector<1x1x64xf32> to vector<1x64xf32>
    %536 = vector.broadcast %535 : vector<1x64xf32> to vector<8x64xf32>
    %537 = arith.addf %533, %536 : vector<8x64xf32>
    %c5_371 = arith.constant 5 : index
    %c0_372 = arith.constant 0 : index
    %c0_373 = arith.constant 0 : index
    %538 = vector.load %arg1[%c5_371, %c0_372, %c0_373] : memref<8x64x64xf32, #tpu.memory_space<vmem>>, vector<1x64x64xf32>
    %539 = vector.shape_cast %538 : vector<1x64x64xf32> to vector<64x64xf32>
    %cst_374 = arith.constant dense<0.000000e+00> : vector<8x64xf32>
    %540 = tpu.matmul %500, %539, %cst_374 {dimension_numbers = #tpu.dot_dimension_numbers<[1], [0], [0], [1], [0, 0, 1, 1], [], []>} : vector<8x64xf32>, vector<64x64xf32>, vector<8x64xf32> -> vector<8x64xf32>
    %c5_375 = arith.constant 5 : index
    %c0_376 = arith.constant 0 : index
    %c0_377 = arith.constant 0 : index
    %541 = vector.load %arg3[%c5_375, %c0_376, %c0_377] : memref<8x1x64xf32, #tpu.memory_space<vmem>>, vector<1x1x64xf32>
    %542 = vector.shape_cast %541 : vector<1x1x64xf32> to vector<1x64xf32>
    %543 = vector.broadcast %542 : vector<1x64xf32> to vector<8x64xf32>
    %544 = arith.addf %540, %543 : vector<8x64xf32>
    %c5_378 = arith.constant 5 : index
    %c0_379 = arith.constant 0 : index
    %c0_380 = arith.constant 0 : index
    %545 = vector.load %arg1[%c5_378, %c0_379, %c0_380] : memref<8x64x64xf32, #tpu.memory_space<vmem>>, vector<1x64x64xf32>
    %546 = vector.shape_cast %545 : vector<1x64x64xf32> to vector<64x64xf32>
    %cst_381 = arith.constant dense<0.000000e+00> : vector<8x64xf32>
    %547 = tpu.matmul %501, %546, %cst_381 {dimension_numbers = #tpu.dot_dimension_numbers<[1], [0], [0], [1], [0, 0, 1, 1], [], []>} : vector<8x64xf32>, vector<64x64xf32>, vector<8x64xf32> -> vector<8x64xf32>
    %c5_382 = arith.constant 5 : index
    %c0_383 = arith.constant 0 : index
    %c0_384 = arith.constant 0 : index
    %548 = vector.load %arg3[%c5_382, %c0_383, %c0_384] : memref<8x1x64xf32, #tpu.memory_space<vmem>>, vector<1x1x64xf32>
    %549 = vector.shape_cast %548 : vector<1x1x64xf32> to vector<1x64xf32>
    %550 = vector.broadcast %549 : vector<1x64xf32> to vector<8x64xf32>
    %551 = arith.addf %547, %550 : vector<8x64xf32>
    %c5_385 = arith.constant 5 : index
    %c0_386 = arith.constant 0 : index
    %c0_387 = arith.constant 0 : index
    %552 = vector.load %arg1[%c5_385, %c0_386, %c0_387] : memref<8x64x64xf32, #tpu.memory_space<vmem>>, vector<1x64x64xf32>
    %553 = vector.shape_cast %552 : vector<1x64x64xf32> to vector<64x64xf32>
    %cst_388 = arith.constant dense<0.000000e+00> : vector<8x64xf32>
    %554 = tpu.matmul %502, %553, %cst_388 {dimension_numbers = #tpu.dot_dimension_numbers<[1], [0], [0], [1], [0, 0, 1, 1], [], []>} : vector<8x64xf32>, vector<64x64xf32>, vector<8x64xf32> -> vector<8x64xf32>
    %c5_389 = arith.constant 5 : index
    %c0_390 = arith.constant 0 : index
    %c0_391 = arith.constant 0 : index
    %555 = vector.load %arg3[%c5_389, %c0_390, %c0_391] : memref<8x1x64xf32, #tpu.memory_space<vmem>>, vector<1x1x64xf32>
    %556 = vector.shape_cast %555 : vector<1x1x64xf32> to vector<1x64xf32>
    %557 = vector.broadcast %556 : vector<1x64xf32> to vector<8x64xf32>
    %558 = arith.addf %554, %557 : vector<8x64xf32>
    %c5_392 = arith.constant 5 : index
    %c0_393 = arith.constant 0 : index
    %c0_394 = arith.constant 0 : index
    %559 = vector.load %arg2[%c5_392, %c0_393, %c0_394] : memref<8x64x64xf32, #tpu.memory_space<vmem>>, vector<1x64x64xf32>
    %560 = vector.shape_cast %559 : vector<1x64x64xf32> to vector<64x64xf32>
    %c5_395 = arith.constant 5 : index
    %c0_396 = arith.constant 0 : index
    %c0_397 = arith.constant 0 : index
    %561 = vector.load %arg4[%c5_395, %c0_396, %c0_397] : memref<8x8x64xf32, #tpu.memory_space<vmem>>, vector<1x8x64xf32>
    %562 = vector.shape_cast %561 : vector<1x8x64xf32> to vector<8x64xf32>
    %563 = arith.select %2, %509, %558 : vector<8x64xi1>, vector<8x64xf32>
    %cst_398 = arith.constant dense<0.000000e+00> : vector<8x64xf32>
    %564 = tpu.matmul %562, %560, %cst_398 {dimension_numbers = #tpu.dot_dimension_numbers<[1], [0], [0], [1], [0, 0, 1, 1], [], []>} : vector<8x64xf32>, vector<64x64xf32>, vector<8x64xf32> -> vector<8x64xf32>
    %565 = arith.addf %563, %564 : vector<8x64xf32>
    %cst_399 = arith.constant 0.000000e+00 : f32
    %566 = vector.broadcast %cst_399 : f32 to vector<8x64xf32>
    %567 = arith.maximumf %565, %566 : vector<8x64xf32>
    %568 = arith.select %2, %516, %551 : vector<8x64xi1>, vector<8x64xf32>
    %cst_400 = arith.constant dense<0.000000e+00> : vector<8x64xf32>
    %569 = tpu.matmul %567, %560, %cst_400 {dimension_numbers = #tpu.dot_dimension_numbers<[1], [0], [0], [1], [0, 0, 1, 1], [], []>} : vector<8x64xf32>, vector<64x64xf32>, vector<8x64xf32> -> vector<8x64xf32>
    %570 = arith.addf %568, %569 : vector<8x64xf32>
    %cst_401 = arith.constant 0.000000e+00 : f32
    %571 = vector.broadcast %cst_401 : f32 to vector<8x64xf32>
    %572 = arith.maximumf %570, %571 : vector<8x64xf32>
    %573 = arith.select %2, %523, %544 : vector<8x64xi1>, vector<8x64xf32>
    %cst_402 = arith.constant dense<0.000000e+00> : vector<8x64xf32>
    %574 = tpu.matmul %572, %560, %cst_402 {dimension_numbers = #tpu.dot_dimension_numbers<[1], [0], [0], [1], [0, 0, 1, 1], [], []>} : vector<8x64xf32>, vector<64x64xf32>, vector<8x64xf32> -> vector<8x64xf32>
    %575 = arith.addf %573, %574 : vector<8x64xf32>
    %cst_403 = arith.constant 0.000000e+00 : f32
    %576 = vector.broadcast %cst_403 : f32 to vector<8x64xf32>
    %577 = arith.maximumf %575, %576 : vector<8x64xf32>
    %578 = arith.select %2, %530, %537 : vector<8x64xi1>, vector<8x64xf32>
    %cst_404 = arith.constant dense<0.000000e+00> : vector<8x64xf32>
    %579 = tpu.matmul %577, %560, %cst_404 {dimension_numbers = #tpu.dot_dimension_numbers<[1], [0], [0], [1], [0, 0, 1, 1], [], []>} : vector<8x64xf32>, vector<64x64xf32>, vector<8x64xf32> -> vector<8x64xf32>
    %580 = arith.addf %578, %579 : vector<8x64xf32>
    %cst_405 = arith.constant 0.000000e+00 : f32
    %581 = vector.broadcast %cst_405 : f32 to vector<8x64xf32>
    %582 = arith.maximumf %580, %581 : vector<8x64xf32>
    %583 = arith.select %2, %537, %530 : vector<8x64xi1>, vector<8x64xf32>
    %cst_406 = arith.constant dense<0.000000e+00> : vector<8x64xf32>
    %584 = tpu.matmul %582, %560, %cst_406 {dimension_numbers = #tpu.dot_dimension_numbers<[1], [0], [0], [1], [0, 0, 1, 1], [], []>} : vector<8x64xf32>, vector<64x64xf32>, vector<8x64xf32> -> vector<8x64xf32>
    %585 = arith.addf %583, %584 : vector<8x64xf32>
    %cst_407 = arith.constant 0.000000e+00 : f32
    %586 = vector.broadcast %cst_407 : f32 to vector<8x64xf32>
    %587 = arith.maximumf %585, %586 : vector<8x64xf32>
    %588 = arith.select %2, %544, %523 : vector<8x64xi1>, vector<8x64xf32>
    %cst_408 = arith.constant dense<0.000000e+00> : vector<8x64xf32>
    %589 = tpu.matmul %587, %560, %cst_408 {dimension_numbers = #tpu.dot_dimension_numbers<[1], [0], [0], [1], [0, 0, 1, 1], [], []>} : vector<8x64xf32>, vector<64x64xf32>, vector<8x64xf32> -> vector<8x64xf32>
    %590 = arith.addf %588, %589 : vector<8x64xf32>
    %cst_409 = arith.constant 0.000000e+00 : f32
    %591 = vector.broadcast %cst_409 : f32 to vector<8x64xf32>
    %592 = arith.maximumf %590, %591 : vector<8x64xf32>
    %593 = arith.select %2, %551, %516 : vector<8x64xi1>, vector<8x64xf32>
    %cst_410 = arith.constant dense<0.000000e+00> : vector<8x64xf32>
    %594 = tpu.matmul %592, %560, %cst_410 {dimension_numbers = #tpu.dot_dimension_numbers<[1], [0], [0], [1], [0, 0, 1, 1], [], []>} : vector<8x64xf32>, vector<64x64xf32>, vector<8x64xf32> -> vector<8x64xf32>
    %595 = arith.addf %593, %594 : vector<8x64xf32>
    %cst_411 = arith.constant 0.000000e+00 : f32
    %596 = vector.broadcast %cst_411 : f32 to vector<8x64xf32>
    %597 = arith.maximumf %595, %596 : vector<8x64xf32>
    %598 = arith.select %2, %558, %509 : vector<8x64xi1>, vector<8x64xf32>
    %cst_412 = arith.constant dense<0.000000e+00> : vector<8x64xf32>
    %599 = tpu.matmul %597, %560, %cst_412 {dimension_numbers = #tpu.dot_dimension_numbers<[1], [0], [0], [1], [0, 0, 1, 1], [], []>} : vector<8x64xf32>, vector<64x64xf32>, vector<8x64xf32> -> vector<8x64xf32>
    %600 = arith.addf %598, %599 : vector<8x64xf32>
    %cst_413 = arith.constant 0.000000e+00 : f32
    %601 = vector.broadcast %cst_413 : f32 to vector<8x64xf32>
    %602 = arith.maximumf %600, %601 : vector<8x64xf32>
    %603 = arith.select %2, %567, %602 : vector<8x64xi1>, vector<8x64xf32>
    %604 = arith.select %2, %572, %597 : vector<8x64xi1>, vector<8x64xf32>
    %605 = arith.select %2, %577, %592 : vector<8x64xi1>, vector<8x64xf32>
    %606 = arith.select %2, %582, %587 : vector<8x64xi1>, vector<8x64xf32>
    %607 = arith.select %2, %587, %582 : vector<8x64xi1>, vector<8x64xf32>
    %608 = arith.select %2, %592, %577 : vector<8x64xi1>, vector<8x64xf32>
    %609 = arith.select %2, %597, %572 : vector<8x64xi1>, vector<8x64xf32>
    %610 = arith.select %2, %602, %567 : vector<8x64xi1>, vector<8x64xf32>
    %c6 = arith.constant 6 : index
    %c0_414 = arith.constant 0 : index
    %c0_415 = arith.constant 0 : index
    %611 = vector.load %arg1[%c6, %c0_414, %c0_415] : memref<8x64x64xf32, #tpu.memory_space<vmem>>, vector<1x64x64xf32>
    %612 = vector.shape_cast %611 : vector<1x64x64xf32> to vector<64x64xf32>
    %cst_416 = arith.constant dense<0.000000e+00> : vector<8x64xf32>
    %613 = tpu.matmul %603, %612, %cst_416 {dimension_numbers = #tpu.dot_dimension_numbers<[1], [0], [0], [1], [0, 0, 1, 1], [], []>} : vector<8x64xf32>, vector<64x64xf32>, vector<8x64xf32> -> vector<8x64xf32>
    %c6_417 = arith.constant 6 : index
    %c0_418 = arith.constant 0 : index
    %c0_419 = arith.constant 0 : index
    %614 = vector.load %arg3[%c6_417, %c0_418, %c0_419] : memref<8x1x64xf32, #tpu.memory_space<vmem>>, vector<1x1x64xf32>
    %615 = vector.shape_cast %614 : vector<1x1x64xf32> to vector<1x64xf32>
    %616 = vector.broadcast %615 : vector<1x64xf32> to vector<8x64xf32>
    %617 = arith.addf %613, %616 : vector<8x64xf32>
    %c6_420 = arith.constant 6 : index
    %c0_421 = arith.constant 0 : index
    %c0_422 = arith.constant 0 : index
    %618 = vector.load %arg1[%c6_420, %c0_421, %c0_422] : memref<8x64x64xf32, #tpu.memory_space<vmem>>, vector<1x64x64xf32>
    %619 = vector.shape_cast %618 : vector<1x64x64xf32> to vector<64x64xf32>
    %cst_423 = arith.constant dense<0.000000e+00> : vector<8x64xf32>
    %620 = tpu.matmul %604, %619, %cst_423 {dimension_numbers = #tpu.dot_dimension_numbers<[1], [0], [0], [1], [0, 0, 1, 1], [], []>} : vector<8x64xf32>, vector<64x64xf32>, vector<8x64xf32> -> vector<8x64xf32>
    %c6_424 = arith.constant 6 : index
    %c0_425 = arith.constant 0 : index
    %c0_426 = arith.constant 0 : index
    %621 = vector.load %arg3[%c6_424, %c0_425, %c0_426] : memref<8x1x64xf32, #tpu.memory_space<vmem>>, vector<1x1x64xf32>
    %622 = vector.shape_cast %621 : vector<1x1x64xf32> to vector<1x64xf32>
    %623 = vector.broadcast %622 : vector<1x64xf32> to vector<8x64xf32>
    %624 = arith.addf %620, %623 : vector<8x64xf32>
    %c6_427 = arith.constant 6 : index
    %c0_428 = arith.constant 0 : index
    %c0_429 = arith.constant 0 : index
    %625 = vector.load %arg1[%c6_427, %c0_428, %c0_429] : memref<8x64x64xf32, #tpu.memory_space<vmem>>, vector<1x64x64xf32>
    %626 = vector.shape_cast %625 : vector<1x64x64xf32> to vector<64x64xf32>
    %cst_430 = arith.constant dense<0.000000e+00> : vector<8x64xf32>
    %627 = tpu.matmul %605, %626, %cst_430 {dimension_numbers = #tpu.dot_dimension_numbers<[1], [0], [0], [1], [0, 0, 1, 1], [], []>} : vector<8x64xf32>, vector<64x64xf32>, vector<8x64xf32> -> vector<8x64xf32>
    %c6_431 = arith.constant 6 : index
    %c0_432 = arith.constant 0 : index
    %c0_433 = arith.constant 0 : index
    %628 = vector.load %arg3[%c6_431, %c0_432, %c0_433] : memref<8x1x64xf32, #tpu.memory_space<vmem>>, vector<1x1x64xf32>
    %629 = vector.shape_cast %628 : vector<1x1x64xf32> to vector<1x64xf32>
    %630 = vector.broadcast %629 : vector<1x64xf32> to vector<8x64xf32>
    %631 = arith.addf %627, %630 : vector<8x64xf32>
    %c6_434 = arith.constant 6 : index
    %c0_435 = arith.constant 0 : index
    %c0_436 = arith.constant 0 : index
    %632 = vector.load %arg1[%c6_434, %c0_435, %c0_436] : memref<8x64x64xf32, #tpu.memory_space<vmem>>, vector<1x64x64xf32>
    %633 = vector.shape_cast %632 : vector<1x64x64xf32> to vector<64x64xf32>
    %cst_437 = arith.constant dense<0.000000e+00> : vector<8x64xf32>
    %634 = tpu.matmul %606, %633, %cst_437 {dimension_numbers = #tpu.dot_dimension_numbers<[1], [0], [0], [1], [0, 0, 1, 1], [], []>} : vector<8x64xf32>, vector<64x64xf32>, vector<8x64xf32> -> vector<8x64xf32>
    %c6_438 = arith.constant 6 : index
    %c0_439 = arith.constant 0 : index
    %c0_440 = arith.constant 0 : index
    %635 = vector.load %arg3[%c6_438, %c0_439, %c0_440] : memref<8x1x64xf32, #tpu.memory_space<vmem>>, vector<1x1x64xf32>
    %636 = vector.shape_cast %635 : vector<1x1x64xf32> to vector<1x64xf32>
    %637 = vector.broadcast %636 : vector<1x64xf32> to vector<8x64xf32>
    %638 = arith.addf %634, %637 : vector<8x64xf32>
    %c6_441 = arith.constant 6 : index
    %c0_442 = arith.constant 0 : index
    %c0_443 = arith.constant 0 : index
    %639 = vector.load %arg1[%c6_441, %c0_442, %c0_443] : memref<8x64x64xf32, #tpu.memory_space<vmem>>, vector<1x64x64xf32>
    %640 = vector.shape_cast %639 : vector<1x64x64xf32> to vector<64x64xf32>
    %cst_444 = arith.constant dense<0.000000e+00> : vector<8x64xf32>
    %641 = tpu.matmul %607, %640, %cst_444 {dimension_numbers = #tpu.dot_dimension_numbers<[1], [0], [0], [1], [0, 0, 1, 1], [], []>} : vector<8x64xf32>, vector<64x64xf32>, vector<8x64xf32> -> vector<8x64xf32>
    %c6_445 = arith.constant 6 : index
    %c0_446 = arith.constant 0 : index
    %c0_447 = arith.constant 0 : index
    %642 = vector.load %arg3[%c6_445, %c0_446, %c0_447] : memref<8x1x64xf32, #tpu.memory_space<vmem>>, vector<1x1x64xf32>
    %643 = vector.shape_cast %642 : vector<1x1x64xf32> to vector<1x64xf32>
    %644 = vector.broadcast %643 : vector<1x64xf32> to vector<8x64xf32>
    %645 = arith.addf %641, %644 : vector<8x64xf32>
    %c6_448 = arith.constant 6 : index
    %c0_449 = arith.constant 0 : index
    %c0_450 = arith.constant 0 : index
    %646 = vector.load %arg1[%c6_448, %c0_449, %c0_450] : memref<8x64x64xf32, #tpu.memory_space<vmem>>, vector<1x64x64xf32>
    %647 = vector.shape_cast %646 : vector<1x64x64xf32> to vector<64x64xf32>
    %cst_451 = arith.constant dense<0.000000e+00> : vector<8x64xf32>
    %648 = tpu.matmul %608, %647, %cst_451 {dimension_numbers = #tpu.dot_dimension_numbers<[1], [0], [0], [1], [0, 0, 1, 1], [], []>} : vector<8x64xf32>, vector<64x64xf32>, vector<8x64xf32> -> vector<8x64xf32>
    %c6_452 = arith.constant 6 : index
    %c0_453 = arith.constant 0 : index
    %c0_454 = arith.constant 0 : index
    %649 = vector.load %arg3[%c6_452, %c0_453, %c0_454] : memref<8x1x64xf32, #tpu.memory_space<vmem>>, vector<1x1x64xf32>
    %650 = vector.shape_cast %649 : vector<1x1x64xf32> to vector<1x64xf32>
    %651 = vector.broadcast %650 : vector<1x64xf32> to vector<8x64xf32>
    %652 = arith.addf %648, %651 : vector<8x64xf32>
    %c6_455 = arith.constant 6 : index
    %c0_456 = arith.constant 0 : index
    %c0_457 = arith.constant 0 : index
    %653 = vector.load %arg1[%c6_455, %c0_456, %c0_457] : memref<8x64x64xf32, #tpu.memory_space<vmem>>, vector<1x64x64xf32>
    %654 = vector.shape_cast %653 : vector<1x64x64xf32> to vector<64x64xf32>
    %cst_458 = arith.constant dense<0.000000e+00> : vector<8x64xf32>
    %655 = tpu.matmul %609, %654, %cst_458 {dimension_numbers = #tpu.dot_dimension_numbers<[1], [0], [0], [1], [0, 0, 1, 1], [], []>} : vector<8x64xf32>, vector<64x64xf32>, vector<8x64xf32> -> vector<8x64xf32>
    %c6_459 = arith.constant 6 : index
    %c0_460 = arith.constant 0 : index
    %c0_461 = arith.constant 0 : index
    %656 = vector.load %arg3[%c6_459, %c0_460, %c0_461] : memref<8x1x64xf32, #tpu.memory_space<vmem>>, vector<1x1x64xf32>
    %657 = vector.shape_cast %656 : vector<1x1x64xf32> to vector<1x64xf32>
    %658 = vector.broadcast %657 : vector<1x64xf32> to vector<8x64xf32>
    %659 = arith.addf %655, %658 : vector<8x64xf32>
    %c6_462 = arith.constant 6 : index
    %c0_463 = arith.constant 0 : index
    %c0_464 = arith.constant 0 : index
    %660 = vector.load %arg1[%c6_462, %c0_463, %c0_464] : memref<8x64x64xf32, #tpu.memory_space<vmem>>, vector<1x64x64xf32>
    %661 = vector.shape_cast %660 : vector<1x64x64xf32> to vector<64x64xf32>
    %cst_465 = arith.constant dense<0.000000e+00> : vector<8x64xf32>
    %662 = tpu.matmul %610, %661, %cst_465 {dimension_numbers = #tpu.dot_dimension_numbers<[1], [0], [0], [1], [0, 0, 1, 1], [], []>} : vector<8x64xf32>, vector<64x64xf32>, vector<8x64xf32> -> vector<8x64xf32>
    %c6_466 = arith.constant 6 : index
    %c0_467 = arith.constant 0 : index
    %c0_468 = arith.constant 0 : index
    %663 = vector.load %arg3[%c6_466, %c0_467, %c0_468] : memref<8x1x64xf32, #tpu.memory_space<vmem>>, vector<1x1x64xf32>
    %664 = vector.shape_cast %663 : vector<1x1x64xf32> to vector<1x64xf32>
    %665 = vector.broadcast %664 : vector<1x64xf32> to vector<8x64xf32>
    %666 = arith.addf %662, %665 : vector<8x64xf32>
    %c6_469 = arith.constant 6 : index
    %c0_470 = arith.constant 0 : index
    %c0_471 = arith.constant 0 : index
    %667 = vector.load %arg2[%c6_469, %c0_470, %c0_471] : memref<8x64x64xf32, #tpu.memory_space<vmem>>, vector<1x64x64xf32>
    %668 = vector.shape_cast %667 : vector<1x64x64xf32> to vector<64x64xf32>
    %c6_472 = arith.constant 6 : index
    %c0_473 = arith.constant 0 : index
    %c0_474 = arith.constant 0 : index
    %669 = vector.load %arg4[%c6_472, %c0_473, %c0_474] : memref<8x8x64xf32, #tpu.memory_space<vmem>>, vector<1x8x64xf32>
    %670 = vector.shape_cast %669 : vector<1x8x64xf32> to vector<8x64xf32>
    %671 = arith.select %2, %617, %666 : vector<8x64xi1>, vector<8x64xf32>
    %cst_475 = arith.constant dense<0.000000e+00> : vector<8x64xf32>
    %672 = tpu.matmul %670, %668, %cst_475 {dimension_numbers = #tpu.dot_dimension_numbers<[1], [0], [0], [1], [0, 0, 1, 1], [], []>} : vector<8x64xf32>, vector<64x64xf32>, vector<8x64xf32> -> vector<8x64xf32>
    %673 = arith.addf %671, %672 : vector<8x64xf32>
    %cst_476 = arith.constant 0.000000e+00 : f32
    %674 = vector.broadcast %cst_476 : f32 to vector<8x64xf32>
    %675 = arith.maximumf %673, %674 : vector<8x64xf32>
    %676 = arith.select %2, %624, %659 : vector<8x64xi1>, vector<8x64xf32>
    %cst_477 = arith.constant dense<0.000000e+00> : vector<8x64xf32>
    %677 = tpu.matmul %675, %668, %cst_477 {dimension_numbers = #tpu.dot_dimension_numbers<[1], [0], [0], [1], [0, 0, 1, 1], [], []>} : vector<8x64xf32>, vector<64x64xf32>, vector<8x64xf32> -> vector<8x64xf32>
    %678 = arith.addf %676, %677 : vector<8x64xf32>
    %cst_478 = arith.constant 0.000000e+00 : f32
    %679 = vector.broadcast %cst_478 : f32 to vector<8x64xf32>
    %680 = arith.maximumf %678, %679 : vector<8x64xf32>
    %681 = arith.select %2, %631, %652 : vector<8x64xi1>, vector<8x64xf32>
    %cst_479 = arith.constant dense<0.000000e+00> : vector<8x64xf32>
    %682 = tpu.matmul %680, %668, %cst_479 {dimension_numbers = #tpu.dot_dimension_numbers<[1], [0], [0], [1], [0, 0, 1, 1], [], []>} : vector<8x64xf32>, vector<64x64xf32>, vector<8x64xf32> -> vector<8x64xf32>
    %683 = arith.addf %681, %682 : vector<8x64xf32>
    %cst_480 = arith.constant 0.000000e+00 : f32
    %684 = vector.broadcast %cst_480 : f32 to vector<8x64xf32>
    %685 = arith.maximumf %683, %684 : vector<8x64xf32>
    %686 = arith.select %2, %638, %645 : vector<8x64xi1>, vector<8x64xf32>
    %cst_481 = arith.constant dense<0.000000e+00> : vector<8x64xf32>
    %687 = tpu.matmul %685, %668, %cst_481 {dimension_numbers = #tpu.dot_dimension_numbers<[1], [0], [0], [1], [0, 0, 1, 1], [], []>} : vector<8x64xf32>, vector<64x64xf32>, vector<8x64xf32> -> vector<8x64xf32>
    %688 = arith.addf %686, %687 : vector<8x64xf32>
    %cst_482 = arith.constant 0.000000e+00 : f32
    %689 = vector.broadcast %cst_482 : f32 to vector<8x64xf32>
    %690 = arith.maximumf %688, %689 : vector<8x64xf32>
    %691 = arith.select %2, %645, %638 : vector<8x64xi1>, vector<8x64xf32>
    %cst_483 = arith.constant dense<0.000000e+00> : vector<8x64xf32>
    %692 = tpu.matmul %690, %668, %cst_483 {dimension_numbers = #tpu.dot_dimension_numbers<[1], [0], [0], [1], [0, 0, 1, 1], [], []>} : vector<8x64xf32>, vector<64x64xf32>, vector<8x64xf32> -> vector<8x64xf32>
    %693 = arith.addf %691, %692 : vector<8x64xf32>
    %cst_484 = arith.constant 0.000000e+00 : f32
    %694 = vector.broadcast %cst_484 : f32 to vector<8x64xf32>
    %695 = arith.maximumf %693, %694 : vector<8x64xf32>
    %696 = arith.select %2, %652, %631 : vector<8x64xi1>, vector<8x64xf32>
    %cst_485 = arith.constant dense<0.000000e+00> : vector<8x64xf32>
    %697 = tpu.matmul %695, %668, %cst_485 {dimension_numbers = #tpu.dot_dimension_numbers<[1], [0], [0], [1], [0, 0, 1, 1], [], []>} : vector<8x64xf32>, vector<64x64xf32>, vector<8x64xf32> -> vector<8x64xf32>
    %698 = arith.addf %696, %697 : vector<8x64xf32>
    %cst_486 = arith.constant 0.000000e+00 : f32
    %699 = vector.broadcast %cst_486 : f32 to vector<8x64xf32>
    %700 = arith.maximumf %698, %699 : vector<8x64xf32>
    %701 = arith.select %2, %659, %624 : vector<8x64xi1>, vector<8x64xf32>
    %cst_487 = arith.constant dense<0.000000e+00> : vector<8x64xf32>
    %702 = tpu.matmul %700, %668, %cst_487 {dimension_numbers = #tpu.dot_dimension_numbers<[1], [0], [0], [1], [0, 0, 1, 1], [], []>} : vector<8x64xf32>, vector<64x64xf32>, vector<8x64xf32> -> vector<8x64xf32>
    %703 = arith.addf %701, %702 : vector<8x64xf32>
    %cst_488 = arith.constant 0.000000e+00 : f32
    %704 = vector.broadcast %cst_488 : f32 to vector<8x64xf32>
    %705 = arith.maximumf %703, %704 : vector<8x64xf32>
    %706 = arith.select %2, %666, %617 : vector<8x64xi1>, vector<8x64xf32>
    %cst_489 = arith.constant dense<0.000000e+00> : vector<8x64xf32>
    %707 = tpu.matmul %705, %668, %cst_489 {dimension_numbers = #tpu.dot_dimension_numbers<[1], [0], [0], [1], [0, 0, 1, 1], [], []>} : vector<8x64xf32>, vector<64x64xf32>, vector<8x64xf32> -> vector<8x64xf32>
    %708 = arith.addf %706, %707 : vector<8x64xf32>
    %cst_490 = arith.constant 0.000000e+00 : f32
    %709 = vector.broadcast %cst_490 : f32 to vector<8x64xf32>
    %710 = arith.maximumf %708, %709 : vector<8x64xf32>
    %711 = arith.select %2, %675, %710 : vector<8x64xi1>, vector<8x64xf32>
    %712 = arith.select %2, %680, %705 : vector<8x64xi1>, vector<8x64xf32>
    %713 = arith.select %2, %685, %700 : vector<8x64xi1>, vector<8x64xf32>
    %714 = arith.select %2, %690, %695 : vector<8x64xi1>, vector<8x64xf32>
    %715 = arith.select %2, %695, %690 : vector<8x64xi1>, vector<8x64xf32>
    %716 = arith.select %2, %700, %685 : vector<8x64xi1>, vector<8x64xf32>
    %717 = arith.select %2, %705, %680 : vector<8x64xi1>, vector<8x64xf32>
    %718 = arith.select %2, %710, %675 : vector<8x64xi1>, vector<8x64xf32>
    %c7 = arith.constant 7 : index
    %c0_491 = arith.constant 0 : index
    %c0_492 = arith.constant 0 : index
    %719 = vector.load %arg1[%c7, %c0_491, %c0_492] : memref<8x64x64xf32, #tpu.memory_space<vmem>>, vector<1x64x64xf32>
    %720 = vector.shape_cast %719 : vector<1x64x64xf32> to vector<64x64xf32>
    %cst_493 = arith.constant dense<0.000000e+00> : vector<8x64xf32>
    %721 = tpu.matmul %711, %720, %cst_493 {dimension_numbers = #tpu.dot_dimension_numbers<[1], [0], [0], [1], [0, 0, 1, 1], [], []>} : vector<8x64xf32>, vector<64x64xf32>, vector<8x64xf32> -> vector<8x64xf32>
    %c7_494 = arith.constant 7 : index
    %c0_495 = arith.constant 0 : index
    %c0_496 = arith.constant 0 : index
    %722 = vector.load %arg3[%c7_494, %c0_495, %c0_496] : memref<8x1x64xf32, #tpu.memory_space<vmem>>, vector<1x1x64xf32>
    %723 = vector.shape_cast %722 : vector<1x1x64xf32> to vector<1x64xf32>
    %724 = vector.broadcast %723 : vector<1x64xf32> to vector<8x64xf32>
    %725 = arith.addf %721, %724 : vector<8x64xf32>
    %c7_497 = arith.constant 7 : index
    %c0_498 = arith.constant 0 : index
    %c0_499 = arith.constant 0 : index
    %726 = vector.load %arg1[%c7_497, %c0_498, %c0_499] : memref<8x64x64xf32, #tpu.memory_space<vmem>>, vector<1x64x64xf32>
    %727 = vector.shape_cast %726 : vector<1x64x64xf32> to vector<64x64xf32>
    %cst_500 = arith.constant dense<0.000000e+00> : vector<8x64xf32>
    %728 = tpu.matmul %712, %727, %cst_500 {dimension_numbers = #tpu.dot_dimension_numbers<[1], [0], [0], [1], [0, 0, 1, 1], [], []>} : vector<8x64xf32>, vector<64x64xf32>, vector<8x64xf32> -> vector<8x64xf32>
    %c7_501 = arith.constant 7 : index
    %c0_502 = arith.constant 0 : index
    %c0_503 = arith.constant 0 : index
    %729 = vector.load %arg3[%c7_501, %c0_502, %c0_503] : memref<8x1x64xf32, #tpu.memory_space<vmem>>, vector<1x1x64xf32>
    %730 = vector.shape_cast %729 : vector<1x1x64xf32> to vector<1x64xf32>
    %731 = vector.broadcast %730 : vector<1x64xf32> to vector<8x64xf32>
    %732 = arith.addf %728, %731 : vector<8x64xf32>
    %c7_504 = arith.constant 7 : index
    %c0_505 = arith.constant 0 : index
    %c0_506 = arith.constant 0 : index
    %733 = vector.load %arg1[%c7_504, %c0_505, %c0_506] : memref<8x64x64xf32, #tpu.memory_space<vmem>>, vector<1x64x64xf32>
    %734 = vector.shape_cast %733 : vector<1x64x64xf32> to vector<64x64xf32>
    %cst_507 = arith.constant dense<0.000000e+00> : vector<8x64xf32>
    %735 = tpu.matmul %713, %734, %cst_507 {dimension_numbers = #tpu.dot_dimension_numbers<[1], [0], [0], [1], [0, 0, 1, 1], [], []>} : vector<8x64xf32>, vector<64x64xf32>, vector<8x64xf32> -> vector<8x64xf32>
    %c7_508 = arith.constant 7 : index
    %c0_509 = arith.constant 0 : index
    %c0_510 = arith.constant 0 : index
    %736 = vector.load %arg3[%c7_508, %c0_509, %c0_510] : memref<8x1x64xf32, #tpu.memory_space<vmem>>, vector<1x1x64xf32>
    %737 = vector.shape_cast %736 : vector<1x1x64xf32> to vector<1x64xf32>
    %738 = vector.broadcast %737 : vector<1x64xf32> to vector<8x64xf32>
    %739 = arith.addf %735, %738 : vector<8x64xf32>
    %c7_511 = arith.constant 7 : index
    %c0_512 = arith.constant 0 : index
    %c0_513 = arith.constant 0 : index
    %740 = vector.load %arg1[%c7_511, %c0_512, %c0_513] : memref<8x64x64xf32, #tpu.memory_space<vmem>>, vector<1x64x64xf32>
    %741 = vector.shape_cast %740 : vector<1x64x64xf32> to vector<64x64xf32>
    %cst_514 = arith.constant dense<0.000000e+00> : vector<8x64xf32>
    %742 = tpu.matmul %714, %741, %cst_514 {dimension_numbers = #tpu.dot_dimension_numbers<[1], [0], [0], [1], [0, 0, 1, 1], [], []>} : vector<8x64xf32>, vector<64x64xf32>, vector<8x64xf32> -> vector<8x64xf32>
    %c7_515 = arith.constant 7 : index
    %c0_516 = arith.constant 0 : index
    %c0_517 = arith.constant 0 : index
    %743 = vector.load %arg3[%c7_515, %c0_516, %c0_517] : memref<8x1x64xf32, #tpu.memory_space<vmem>>, vector<1x1x64xf32>
    %744 = vector.shape_cast %743 : vector<1x1x64xf32> to vector<1x64xf32>
    %745 = vector.broadcast %744 : vector<1x64xf32> to vector<8x64xf32>
    %746 = arith.addf %742, %745 : vector<8x64xf32>
    %c7_518 = arith.constant 7 : index
    %c0_519 = arith.constant 0 : index
    %c0_520 = arith.constant 0 : index
    %747 = vector.load %arg1[%c7_518, %c0_519, %c0_520] : memref<8x64x64xf32, #tpu.memory_space<vmem>>, vector<1x64x64xf32>
    %748 = vector.shape_cast %747 : vector<1x64x64xf32> to vector<64x64xf32>
    %cst_521 = arith.constant dense<0.000000e+00> : vector<8x64xf32>
    %749 = tpu.matmul %715, %748, %cst_521 {dimension_numbers = #tpu.dot_dimension_numbers<[1], [0], [0], [1], [0, 0, 1, 1], [], []>} : vector<8x64xf32>, vector<64x64xf32>, vector<8x64xf32> -> vector<8x64xf32>
    %c7_522 = arith.constant 7 : index
    %c0_523 = arith.constant 0 : index
    %c0_524 = arith.constant 0 : index
    %750 = vector.load %arg3[%c7_522, %c0_523, %c0_524] : memref<8x1x64xf32, #tpu.memory_space<vmem>>, vector<1x1x64xf32>
    %751 = vector.shape_cast %750 : vector<1x1x64xf32> to vector<1x64xf32>
    %752 = vector.broadcast %751 : vector<1x64xf32> to vector<8x64xf32>
    %753 = arith.addf %749, %752 : vector<8x64xf32>
    %c7_525 = arith.constant 7 : index
    %c0_526 = arith.constant 0 : index
    %c0_527 = arith.constant 0 : index
    %754 = vector.load %arg1[%c7_525, %c0_526, %c0_527] : memref<8x64x64xf32, #tpu.memory_space<vmem>>, vector<1x64x64xf32>
    %755 = vector.shape_cast %754 : vector<1x64x64xf32> to vector<64x64xf32>
    %cst_528 = arith.constant dense<0.000000e+00> : vector<8x64xf32>
    %756 = tpu.matmul %716, %755, %cst_528 {dimension_numbers = #tpu.dot_dimension_numbers<[1], [0], [0], [1], [0, 0, 1, 1], [], []>} : vector<8x64xf32>, vector<64x64xf32>, vector<8x64xf32> -> vector<8x64xf32>
    %c7_529 = arith.constant 7 : index
    %c0_530 = arith.constant 0 : index
    %c0_531 = arith.constant 0 : index
    %757 = vector.load %arg3[%c7_529, %c0_530, %c0_531] : memref<8x1x64xf32, #tpu.memory_space<vmem>>, vector<1x1x64xf32>
    %758 = vector.shape_cast %757 : vector<1x1x64xf32> to vector<1x64xf32>
    %759 = vector.broadcast %758 : vector<1x64xf32> to vector<8x64xf32>
    %760 = arith.addf %756, %759 : vector<8x64xf32>
    %c7_532 = arith.constant 7 : index
    %c0_533 = arith.constant 0 : index
    %c0_534 = arith.constant 0 : index
    %761 = vector.load %arg1[%c7_532, %c0_533, %c0_534] : memref<8x64x64xf32, #tpu.memory_space<vmem>>, vector<1x64x64xf32>
    %762 = vector.shape_cast %761 : vector<1x64x64xf32> to vector<64x64xf32>
    %cst_535 = arith.constant dense<0.000000e+00> : vector<8x64xf32>
    %763 = tpu.matmul %717, %762, %cst_535 {dimension_numbers = #tpu.dot_dimension_numbers<[1], [0], [0], [1], [0, 0, 1, 1], [], []>} : vector<8x64xf32>, vector<64x64xf32>, vector<8x64xf32> -> vector<8x64xf32>
    %c7_536 = arith.constant 7 : index
    %c0_537 = arith.constant 0 : index
    %c0_538 = arith.constant 0 : index
    %764 = vector.load %arg3[%c7_536, %c0_537, %c0_538] : memref<8x1x64xf32, #tpu.memory_space<vmem>>, vector<1x1x64xf32>
    %765 = vector.shape_cast %764 : vector<1x1x64xf32> to vector<1x64xf32>
    %766 = vector.broadcast %765 : vector<1x64xf32> to vector<8x64xf32>
    %767 = arith.addf %763, %766 : vector<8x64xf32>
    %c7_539 = arith.constant 7 : index
    %c0_540 = arith.constant 0 : index
    %c0_541 = arith.constant 0 : index
    %768 = vector.load %arg1[%c7_539, %c0_540, %c0_541] : memref<8x64x64xf32, #tpu.memory_space<vmem>>, vector<1x64x64xf32>
    %769 = vector.shape_cast %768 : vector<1x64x64xf32> to vector<64x64xf32>
    %cst_542 = arith.constant dense<0.000000e+00> : vector<8x64xf32>
    %770 = tpu.matmul %718, %769, %cst_542 {dimension_numbers = #tpu.dot_dimension_numbers<[1], [0], [0], [1], [0, 0, 1, 1], [], []>} : vector<8x64xf32>, vector<64x64xf32>, vector<8x64xf32> -> vector<8x64xf32>
    %c7_543 = arith.constant 7 : index
    %c0_544 = arith.constant 0 : index
    %c0_545 = arith.constant 0 : index
    %771 = vector.load %arg3[%c7_543, %c0_544, %c0_545] : memref<8x1x64xf32, #tpu.memory_space<vmem>>, vector<1x1x64xf32>
    %772 = vector.shape_cast %771 : vector<1x1x64xf32> to vector<1x64xf32>
    %773 = vector.broadcast %772 : vector<1x64xf32> to vector<8x64xf32>
    %774 = arith.addf %770, %773 : vector<8x64xf32>
    %c7_546 = arith.constant 7 : index
    %c0_547 = arith.constant 0 : index
    %c0_548 = arith.constant 0 : index
    %775 = vector.load %arg2[%c7_546, %c0_547, %c0_548] : memref<8x64x64xf32, #tpu.memory_space<vmem>>, vector<1x64x64xf32>
    %776 = vector.shape_cast %775 : vector<1x64x64xf32> to vector<64x64xf32>
    %c7_549 = arith.constant 7 : index
    %c0_550 = arith.constant 0 : index
    %c0_551 = arith.constant 0 : index
    %777 = vector.load %arg4[%c7_549, %c0_550, %c0_551] : memref<8x8x64xf32, #tpu.memory_space<vmem>>, vector<1x8x64xf32>
    %778 = vector.shape_cast %777 : vector<1x8x64xf32> to vector<8x64xf32>
    %779 = arith.select %2, %725, %774 : vector<8x64xi1>, vector<8x64xf32>
    %cst_552 = arith.constant dense<0.000000e+00> : vector<8x64xf32>
    %780 = tpu.matmul %778, %776, %cst_552 {dimension_numbers = #tpu.dot_dimension_numbers<[1], [0], [0], [1], [0, 0, 1, 1], [], []>} : vector<8x64xf32>, vector<64x64xf32>, vector<8x64xf32> -> vector<8x64xf32>
    %781 = arith.addf %779, %780 : vector<8x64xf32>
    %cst_553 = arith.constant 0.000000e+00 : f32
    %782 = vector.broadcast %cst_553 : f32 to vector<8x64xf32>
    %783 = arith.maximumf %781, %782 : vector<8x64xf32>
    %784 = arith.select %2, %732, %767 : vector<8x64xi1>, vector<8x64xf32>
    %cst_554 = arith.constant dense<0.000000e+00> : vector<8x64xf32>
    %785 = tpu.matmul %783, %776, %cst_554 {dimension_numbers = #tpu.dot_dimension_numbers<[1], [0], [0], [1], [0, 0, 1, 1], [], []>} : vector<8x64xf32>, vector<64x64xf32>, vector<8x64xf32> -> vector<8x64xf32>
    %786 = arith.addf %784, %785 : vector<8x64xf32>
    %cst_555 = arith.constant 0.000000e+00 : f32
    %787 = vector.broadcast %cst_555 : f32 to vector<8x64xf32>
    %788 = arith.maximumf %786, %787 : vector<8x64xf32>
    %789 = arith.select %2, %739, %760 : vector<8x64xi1>, vector<8x64xf32>
    %cst_556 = arith.constant dense<0.000000e+00> : vector<8x64xf32>
    %790 = tpu.matmul %788, %776, %cst_556 {dimension_numbers = #tpu.dot_dimension_numbers<[1], [0], [0], [1], [0, 0, 1, 1], [], []>} : vector<8x64xf32>, vector<64x64xf32>, vector<8x64xf32> -> vector<8x64xf32>
    %791 = arith.addf %789, %790 : vector<8x64xf32>
    %cst_557 = arith.constant 0.000000e+00 : f32
    %792 = vector.broadcast %cst_557 : f32 to vector<8x64xf32>
    %793 = arith.maximumf %791, %792 : vector<8x64xf32>
    %794 = arith.select %2, %746, %753 : vector<8x64xi1>, vector<8x64xf32>
    %cst_558 = arith.constant dense<0.000000e+00> : vector<8x64xf32>
    %795 = tpu.matmul %793, %776, %cst_558 {dimension_numbers = #tpu.dot_dimension_numbers<[1], [0], [0], [1], [0, 0, 1, 1], [], []>} : vector<8x64xf32>, vector<64x64xf32>, vector<8x64xf32> -> vector<8x64xf32>
    %796 = arith.addf %794, %795 : vector<8x64xf32>
    %cst_559 = arith.constant 0.000000e+00 : f32
    %797 = vector.broadcast %cst_559 : f32 to vector<8x64xf32>
    %798 = arith.maximumf %796, %797 : vector<8x64xf32>
    %799 = arith.select %2, %753, %746 : vector<8x64xi1>, vector<8x64xf32>
    %cst_560 = arith.constant dense<0.000000e+00> : vector<8x64xf32>
    %800 = tpu.matmul %798, %776, %cst_560 {dimension_numbers = #tpu.dot_dimension_numbers<[1], [0], [0], [1], [0, 0, 1, 1], [], []>} : vector<8x64xf32>, vector<64x64xf32>, vector<8x64xf32> -> vector<8x64xf32>
    %801 = arith.addf %799, %800 : vector<8x64xf32>
    %cst_561 = arith.constant 0.000000e+00 : f32
    %802 = vector.broadcast %cst_561 : f32 to vector<8x64xf32>
    %803 = arith.maximumf %801, %802 : vector<8x64xf32>
    %804 = arith.select %2, %760, %739 : vector<8x64xi1>, vector<8x64xf32>
    %cst_562 = arith.constant dense<0.000000e+00> : vector<8x64xf32>
    %805 = tpu.matmul %803, %776, %cst_562 {dimension_numbers = #tpu.dot_dimension_numbers<[1], [0], [0], [1], [0, 0, 1, 1], [], []>} : vector<8x64xf32>, vector<64x64xf32>, vector<8x64xf32> -> vector<8x64xf32>
    %806 = arith.addf %804, %805 : vector<8x64xf32>
    %cst_563 = arith.constant 0.000000e+00 : f32
    %807 = vector.broadcast %cst_563 : f32 to vector<8x64xf32>
    %808 = arith.maximumf %806, %807 : vector<8x64xf32>
    %809 = arith.select %2, %767, %732 : vector<8x64xi1>, vector<8x64xf32>
    %cst_564 = arith.constant dense<0.000000e+00> : vector<8x64xf32>
    %810 = tpu.matmul %808, %776, %cst_564 {dimension_numbers = #tpu.dot_dimension_numbers<[1], [0], [0], [1], [0, 0, 1, 1], [], []>} : vector<8x64xf32>, vector<64x64xf32>, vector<8x64xf32> -> vector<8x64xf32>
    %811 = arith.addf %809, %810 : vector<8x64xf32>
    %cst_565 = arith.constant 0.000000e+00 : f32
    %812 = vector.broadcast %cst_565 : f32 to vector<8x64xf32>
    %813 = arith.maximumf %811, %812 : vector<8x64xf32>
    %814 = arith.select %2, %774, %725 : vector<8x64xi1>, vector<8x64xf32>
    %cst_566 = arith.constant dense<0.000000e+00> : vector<8x64xf32>
    %815 = tpu.matmul %813, %776, %cst_566 {dimension_numbers = #tpu.dot_dimension_numbers<[1], [0], [0], [1], [0, 0, 1, 1], [], []>} : vector<8x64xf32>, vector<64x64xf32>, vector<8x64xf32> -> vector<8x64xf32>
    %816 = arith.addf %814, %815 : vector<8x64xf32>
    %cst_567 = arith.constant 0.000000e+00 : f32
    %817 = vector.broadcast %cst_567 : f32 to vector<8x64xf32>
    %818 = arith.maximumf %816, %817 : vector<8x64xf32>
    %819 = arith.select %2, %808, %793 : vector<8x64xi1>, vector<8x64xf32>
    %820 = arith.select %2, %813, %788 : vector<8x64xi1>, vector<8x64xf32>
    %821 = arith.select %2, %818, %783 : vector<8x64xi1>, vector<8x64xf32>
    %c0_568 = arith.constant 0 : index
    %c0_569 = arith.constant 0 : index
    %822 = vector.load %arg6[%c0_568, %c0_569] : memref<1x512xf32, #tpu.memory_space<vmem>>, vector<1x512xf32>
    %c0_570 = arith.constant 0 : index
    %c0_571 = arith.constant 0 : index
    %823 = vector.load %arg5[%c0_570, %c0_571] : memref<192x512xf32, #tpu.memory_space<vmem>>, vector<64x512xf32>
    %cst_572 = arith.constant dense<0.000000e+00> : vector<8x512xf32>
    %824 = tpu.matmul %819, %823, %cst_572 {dimension_numbers = #tpu.dot_dimension_numbers<[1], [0], [0], [1], [0, 0, 1, 1], [], []>} : vector<8x64xf32>, vector<64x512xf32>, vector<8x512xf32> -> vector<8x512xf32>
    %825 = vector.broadcast %822 : vector<1x512xf32> to vector<8x512xf32>
    %826 = arith.addf %825, %824 : vector<8x512xf32>
    %c64 = arith.constant 64 : index
    %c0_573 = arith.constant 0 : index
    %827 = vector.load %arg5[%c64, %c0_573] : memref<192x512xf32, #tpu.memory_space<vmem>>, vector<64x512xf32>
    %cst_574 = arith.constant dense<0.000000e+00> : vector<8x512xf32>
    %828 = tpu.matmul %820, %827, %cst_574 {dimension_numbers = #tpu.dot_dimension_numbers<[1], [0], [0], [1], [0, 0, 1, 1], [], []>} : vector<8x64xf32>, vector<64x512xf32>, vector<8x512xf32> -> vector<8x512xf32>
    %829 = arith.addf %826, %828 : vector<8x512xf32>
    %c128 = arith.constant 128 : index
    %c0_575 = arith.constant 0 : index
    %830 = vector.load %arg5[%c128, %c0_575] : memref<192x512xf32, #tpu.memory_space<vmem>>, vector<64x512xf32>
    %cst_576 = arith.constant dense<0.000000e+00> : vector<8x512xf32>
    %831 = tpu.matmul %821, %830, %cst_576 {dimension_numbers = #tpu.dot_dimension_numbers<[1], [0], [0], [1], [0, 0, 1, 1], [], []>} : vector<8x64xf32>, vector<64x512xf32>, vector<8x512xf32> -> vector<8x512xf32>
    %832 = arith.addf %829, %831 : vector<8x512xf32>
    %cst_577 = arith.constant 0.000000e+00 : f32
    %833 = vector.broadcast %cst_577 : f32 to vector<8x512xf32>
    %834 = arith.cmpf ogt, %832, %833 : vector<8x512xf32>
    %cst_578 = arith.constant 0.00999999977 : f32
    %835 = vector.broadcast %cst_578 : f32 to vector<8x512xf32>
    %836 = arith.mulf %835, %832 : vector<8x512xf32>
    %837 = arith.select %834, %832, %836 : vector<8x512xi1>, vector<8x512xf32>
    %c0_579 = arith.constant 0 : index
    %c0_580 = arith.constant 0 : index
    %838 = vector.load %arg7[%c0_579, %c0_580] : memref<512x512xf32, #tpu.memory_space<vmem>>, vector<512x512xf32>
    %c0_581 = arith.constant 0 : index
    %c0_582 = arith.constant 0 : index
    %839 = vector.load %arg8[%c0_581, %c0_582] : memref<1x512xf32, #tpu.memory_space<vmem>>, vector<1x512xf32>
    %cst_583 = arith.constant dense<0.000000e+00> : vector<8x512xf32>
    %840 = tpu.matmul %837, %838, %cst_583 {dimension_numbers = #tpu.dot_dimension_numbers<[1], [0], [0], [1], [0, 0, 1, 1], [], []>} : vector<8x512xf32>, vector<512x512xf32>, vector<8x512xf32> -> vector<8x512xf32>
    %841 = vector.broadcast %839 : vector<1x512xf32> to vector<8x512xf32>
    %842 = arith.addf %840, %841 : vector<8x512xf32>
    %cst_584 = arith.constant 0.000000e+00 : f32
    %843 = vector.broadcast %cst_584 : f32 to vector<8x512xf32>
    %844 = arith.cmpf ogt, %842, %843 : vector<8x512xf32>
    %cst_585 = arith.constant 0.00999999977 : f32
    %845 = vector.broadcast %cst_585 : f32 to vector<8x512xf32>
    %846 = arith.mulf %845, %842 : vector<8x512xf32>
    %847 = arith.select %844, %842, %846 : vector<8x512xi1>, vector<8x512xf32>
    %c0_586 = arith.constant 0 : index
    %c0_587 = arith.constant 0 : index
    %848 = vector.load %arg9[%c0_586, %c0_587] : memref<512x256xf32, #tpu.memory_space<vmem>>, vector<512x256xf32>
    %c0_588 = arith.constant 0 : index
    %c0_589 = arith.constant 0 : index
    %849 = vector.load %arg10[%c0_588, %c0_589] : memref<1x256xf32, #tpu.memory_space<vmem>>, vector<1x256xf32>
    %cst_590 = arith.constant dense<0.000000e+00> : vector<8x256xf32>
    %850 = tpu.matmul %847, %848, %cst_590 {dimension_numbers = #tpu.dot_dimension_numbers<[1], [0], [0], [1], [0, 0, 1, 1], [], []>} : vector<8x512xf32>, vector<512x256xf32>, vector<8x256xf32> -> vector<8x256xf32>
    %851 = vector.broadcast %849 : vector<1x256xf32> to vector<8x256xf32>
    %852 = arith.addf %850, %851 : vector<8x256xf32>
    %cst_591 = arith.constant 0.000000e+00 : f32
    %853 = vector.broadcast %cst_591 : f32 to vector<8x256xf32>
    %854 = arith.cmpf ogt, %852, %853 : vector<8x256xf32>
    %cst_592 = arith.constant 0.00999999977 : f32
    %855 = vector.broadcast %cst_592 : f32 to vector<8x256xf32>
    %856 = arith.mulf %855, %852 : vector<8x256xf32>
    %857 = arith.select %854, %852, %856 : vector<8x256xi1>, vector<8x256xf32>
    %c0_593 = arith.constant 0 : index
    %c0_594 = arith.constant 0 : index
    %858 = vector.load %arg11[%c0_593, %c0_594] : memref<256x256xf32, #tpu.memory_space<vmem>>, vector<256x256xf32>
    %c0_595 = arith.constant 0 : index
    %c0_596 = arith.constant 0 : index
    %859 = vector.load %arg12[%c0_595, %c0_596] : memref<1x256xf32, #tpu.memory_space<vmem>>, vector<1x256xf32>
    %cst_597 = arith.constant dense<0.000000e+00> : vector<8x256xf32>
    %860 = tpu.matmul %857, %858, %cst_597 {dimension_numbers = #tpu.dot_dimension_numbers<[1], [0], [0], [1], [0, 0, 1, 1], [], []>} : vector<8x256xf32>, vector<256x256xf32>, vector<8x256xf32> -> vector<8x256xf32>
    %861 = vector.broadcast %859 : vector<1x256xf32> to vector<8x256xf32>
    %862 = arith.addf %860, %861 : vector<8x256xf32>
    %cst_598 = arith.constant 0.000000e+00 : f32
    %863 = vector.broadcast %cst_598 : f32 to vector<8x256xf32>
    %864 = arith.cmpf ogt, %862, %863 : vector<8x256xf32>
    %cst_599 = arith.constant 0.00999999977 : f32
    %865 = vector.broadcast %cst_599 : f32 to vector<8x256xf32>
    %866 = arith.mulf %865, %862 : vector<8x256xf32>
    %867 = arith.select %864, %862, %866 : vector<8x256xi1>, vector<8x256xf32>
    %c0_600 = arith.constant 0 : index
    %c0_601 = arith.constant 0 : index
    %868 = vector.load %arg13[%c0_600, %c0_601] : memref<256x128xf32, #tpu.memory_space<vmem>>, vector<256x128xf32>
    %c0_602 = arith.constant 0 : index
    %c0_603 = arith.constant 0 : index
    %869 = vector.load %arg14[%c0_602, %c0_603] : memref<1x128xf32, #tpu.memory_space<vmem>>, vector<1x128xf32>
    %cst_604 = arith.constant dense<0.000000e+00> : vector<8x128xf32>
    %870 = tpu.matmul %867, %868, %cst_604 {dimension_numbers = #tpu.dot_dimension_numbers<[1], [0], [0], [1], [0, 0, 1, 1], [], []>} : vector<8x256xf32>, vector<256x128xf32>, vector<8x128xf32> -> vector<8x128xf32>
    %871 = vector.broadcast %869 : vector<1x128xf32> to vector<8x128xf32>
    %872 = arith.addf %870, %871 : vector<8x128xf32>
    %cst_605 = arith.constant 0.000000e+00 : f32
    %873 = vector.broadcast %cst_605 : f32 to vector<8x128xf32>
    %874 = arith.cmpf ogt, %872, %873 : vector<8x128xf32>
    %cst_606 = arith.constant 0.00999999977 : f32
    %875 = vector.broadcast %cst_606 : f32 to vector<8x128xf32>
    %876 = arith.mulf %875, %872 : vector<8x128xf32>
    %877 = arith.select %874, %872, %876 : vector<8x128xi1>, vector<8x128xf32>
    %c0_607 = arith.constant 0 : index
    %c0_608 = arith.constant 0 : index
    %878 = vector.load %arg15[%c0_607, %c0_608] : memref<128x128xf32, #tpu.memory_space<vmem>>, vector<128x128xf32>
    %c0_609 = arith.constant 0 : index
    %c0_610 = arith.constant 0 : index
    %879 = vector.load %arg16[%c0_609, %c0_610] : memref<1x128xf32, #tpu.memory_space<vmem>>, vector<1x128xf32>
    %cst_611 = arith.constant dense<0.000000e+00> : vector<8x128xf32>
    %880 = tpu.matmul %877, %878, %cst_611 {dimension_numbers = #tpu.dot_dimension_numbers<[1], [0], [0], [1], [0, 0, 1, 1], [], []>} : vector<8x128xf32>, vector<128x128xf32>, vector<8x128xf32> -> vector<8x128xf32>
    %881 = vector.broadcast %879 : vector<1x128xf32> to vector<8x128xf32>
    %882 = arith.addf %880, %881 : vector<8x128xf32>
    %cst_612 = arith.constant 0.000000e+00 : f32
    %883 = vector.broadcast %cst_612 : f32 to vector<8x128xf32>
    %884 = arith.cmpf ogt, %882, %883 : vector<8x128xf32>
    %cst_613 = arith.constant 0.00999999977 : f32
    %885 = vector.broadcast %cst_613 : f32 to vector<8x128xf32>
    %886 = arith.mulf %885, %882 : vector<8x128xf32>
    %887 = arith.select %884, %882, %886 : vector<8x128xi1>, vector<8x128xf32>
    %c0_614 = arith.constant 0 : index
    %c0_615 = arith.constant 0 : index
    %888 = vector.load %arg17[%c0_614, %c0_615] : memref<128x128xf32, #tpu.memory_space<vmem>>, vector<128x128xf32>
    %c0_616 = arith.constant 0 : index
    %c0_617 = arith.constant 0 : index
    %889 = vector.load %arg18[%c0_616, %c0_617] : memref<1x128xf32, #tpu.memory_space<vmem>>, vector<1x128xf32>
    %cst_618 = arith.constant dense<0.000000e+00> : vector<8x128xf32>
    %890 = tpu.matmul %887, %888, %cst_618 {dimension_numbers = #tpu.dot_dimension_numbers<[1], [0], [0], [1], [0, 0, 1, 1], [], []>} : vector<8x128xf32>, vector<128x128xf32>, vector<8x128xf32> -> vector<8x128xf32>
    %891 = vector.broadcast %889 : vector<1x128xf32> to vector<8x128xf32>
    %892 = arith.addf %890, %891 : vector<8x128xf32>
    %cst_619 = arith.constant 0.000000e+00 : f32
    %893 = vector.broadcast %cst_619 : f32 to vector<8x128xf32>
    %894 = arith.cmpf ogt, %892, %893 : vector<8x128xf32>
    %cst_620 = arith.constant 0.00999999977 : f32
    %895 = vector.broadcast %cst_620 : f32 to vector<8x128xf32>
    %896 = arith.mulf %895, %892 : vector<8x128xf32>
    %897 = arith.select %894, %892, %896 : vector<8x128xi1>, vector<8x128xf32>
    %c0_621 = arith.constant 0 : index
    %c0_622 = arith.constant 0 : index
    %898 = vector.load %arg19[%c0_621, %c0_622] : memref<128x128xf32, #tpu.memory_space<vmem>>, vector<128x128xf32>
    %c0_623 = arith.constant 0 : index
    %c0_624 = arith.constant 0 : index
    %899 = vector.load %arg20[%c0_623, %c0_624] : memref<1x128xf32, #tpu.memory_space<vmem>>, vector<1x128xf32>
    %cst_625 = arith.constant dense<0.000000e+00> : vector<8x128xf32>
    %900 = tpu.matmul %897, %898, %cst_625 {dimension_numbers = #tpu.dot_dimension_numbers<[1], [0], [0], [1], [0, 0, 1, 1], [], []>} : vector<8x128xf32>, vector<128x128xf32>, vector<8x128xf32> -> vector<8x128xf32>
    %901 = vector.broadcast %899 : vector<1x128xf32> to vector<8x128xf32>
    %902 = arith.addf %900, %901 : vector<8x128xf32>
    %c0_626 = arith.constant 0 : index
    %c0_627 = arith.constant 0 : index
    %903 = vector.load %arg21[%c0_626, %c0_627] : memref<8x128xf32, #tpu.memory_space<vmem>>, vector<8x128xf32>
    tpu.vector_store %arg21[%c0_626, %c0_627], %902 {strides = array<i32>} : memref<8x128xf32, #tpu.memory_space<vmem>>, vector<8x128xf32>,
    return
  }
}

</mosaic_0001>

<bundles_post_ra>
// kernel: tpu_custom_call.1
= control target key start
LH: loop header
LB: loop body
LE: loop exit
PB: predicated region body
PF: predicated region fallthrough
CT: control target
= control target key end

     0   :  { %s20372_s0 = inlined_call_operand.hbm [shape: f32[64,64], index: 0, kind: input, shape index: {}]   ;;  %s20373_s1 = inlined_call_operand.hbm [shape: f32[8,64,64], index: 1, kind: input, shape index: {}]   ;;  %s20374_s2 = inlined_call_operand.hbm [shape: f32[8,64,64], index: 2, kind: input, shape index: {}]   ;;  %s20375_s3 = inlined_call_operand.vmem [shape: f32[8,1,64], index: 3, kind: input, shape index: {}]   ;;  %s20376_s4 = inlined_call_operand.hbm [shape: f32[8,8,64], index: 4, kind: input, shape index: {}]   ;;  %s20377_s5 = inlined_call_operand.hbm [shape: f32[192,512], index: 5, kind: input, shape index: {}]   ;;  %s20378_s6 = inlined_call_operand.vmem [shape: f32[1,512], index: 6, kind: input, shape index: {}]   ;;  %s20379_s7 = inlined_call_operand.hbm [shape: f32[512,512], index: 7, kind: input, shape index: {}]   ;;  %s20380_s8 = inlined_call_operand.vmem [shape: f32[1,512], index: 8, kind: input, shape index: {}]   ;;  %s20381_s9 = inlined_call_operand.hbm [shape: f32[512,256], index: 9, kind: input, shape index: {}]   ;;  %s20382_s10 = inlined_call_operand.vmem [shape: f32[1,256], index: 10, kind: input, shape index: {}]   ;;  %s20383_s11 = inlined_call_operand.hbm [shape: f32[256,256], index: 11, kind: input, shape index: {}]   ;;  %s20384_s12 = inlined_call_operand.vmem [shape: f32[1,256], index: 12, kind: input, shape index: {}]   ;;  %s20385_s13 = inlined_call_operand.hbm [shape: f32[256,128], index: 13, kind: input, shape index: {}]   ;;  %s20386_s14 = inlined_call_operand.vmem [shape: f32[1,128], index: 14, kind: input, shape index: {}]   ;;  %s20387_s15 = inlined_call_operand.hbm [shape: f32[128,128], index: 15, kind: input, shape index: {}]   ;;  %s20388_s16 = inlined_call_operand.vmem [shape: f32[1,128], index: 16, kind: input, shape index: {}]   ;;  %s20389_s17 = inlined_call_operand.hbm [shape: f32[128,128], index: 17, kind: input, shape index: {}]   ;;  %s20390_s18 = inlined_call_operand.vmem [shape: f32[1,128], index: 18, kind: input, shape index: {}]   ;;  %s20391_s19 = inlined_call_operand.hbm [shape: f32[128,128], index: 19, kind: input, shape index: {}]   ;;  %s20392_s20 = inlined_call_operand.vmem [shape: f32[1,128], index: 20, kind: input, shape index: {}]   ;;  %s20393_s21 = inlined_call_operand.hbm [shape: f32[8,128], index: 21, kind: output, shape index: {}]  }
   0x1   :  { %20408 = sst [smem:[#allocation31_spill]] %s20372_s0 }
   0x2   :  { %20409 = sst [smem:[#allocation32_spill]] %s20373_s1 }
   0x3   :  { %20410 = sst [smem:[#allocation33_spill]] %s20374_s2 }
   0x4   :  { %20411 = sst [smem:[#allocation34_spill]] %s20375_s3 }
   0x5   :  { %20412 = sst [smem:[#allocation35_spill]] %s20376_s4 }
   0x6   :  { %20413 = sst [smem:[#allocation36_spill]] %s20377_s5 }
   0x7   :  { %20414 = sst [smem:[#allocation37_spill]] %s20393_s21 }
   0x8   :  { %26 = vsyncpa [#allocation3], 0 }
   0x9   :  { %27 = vsyncpa [#allocation6], 0 }
   0xa   :  { %28 = vsyncpa [#allocation9], 0 }
   0xb   :  { %29 = vsyncpa [#allocation12], 0 }
   0xc   :  { %30 = vsyncpa [#allocation15], 0 }
   0xd   :  { %31 = vsyncpa [#allocation18], 0 }
   0xe   :  { %32 = vsyncpa [#allocation21], 0 }
   0xf   :  { %33 = vsyncpa [#allocation4], 0  ;;  %s17815_s2 = smov [#allocation5]   ;;  %s17816_s26 = smov [#allocation8]  }
  0x10   :  { %s51_s25 = sshll.u32 %s17815_s2, 4  ;;  %s77_s27 = sshll.u32 %s17816_s26, 4  ;;  %s52_s25 = int_to_ptr.vmem [resolvable:$true] %s51_s25  ;;  %s17947_s27 = int_to_ptr.vmem [resolvable:$true] %s77_s27 }
  0x11   :  { %s20415_s29 = sld [smem:[#allocation32_spill]] }
  0x17   :  { %s17513_s0 = scalar_lea.hbm %s20415_s29, 8192 }
  0x18   :  { %p17514_p0 = scmp.ne.s32.totalorder %s20415_s29, %s17513_s0  ;;  %p17517_p1 = scmp.lt.u32.totalorder %s17513_s0, %s20415_s29 }
  0x1a   :  { %p17519_p2 = pnand %p17517_p1, %p17514_p0 }
  0x1c   :  { %17522 = shalt.err (!%p17519_p2)
}
  0x1d   :  { %s17523_s23 = scalar_lea.vmem %s52_s25, 8192  ;;  %p17528_p4 = scmp.lt.s32.totalorder %s52_s25, %s52_s25 }
  0x1e   :  { %p17524_p3 = scmp.ne.s32.totalorder %s52_s25, %s17523_s23  ;;  %p17529_p5 = scmp.lt.s32.totalorder %s17523_s23, %s17523_s23 }
  0x20   :  { %p17530_p6 = por %p17529_p5, %p17528_p4 }
  0x22   :  { %p17531_p7 = pnand %p17530_p6, %p17524_p3 }
  0x24   :  { %17534 = shalt.err (!%p17531_p7)
}
  0x25   :  { %s20401_s1 = smov 128   ;;  %s20403_s24 = smov 8  }
  0x26   :  { %57 = dma.hbm_to_vmem [thread:$0]  %s20415_s29, 8192, %s52_s25, [#allocation6], %s20401_s1, %s20401_s1, %s20403_s24  }
  0x27   :  { %s20416_s0 = sld [smem:[#allocation35_spill]] }
  0x2d   :  { %s17535_s4 = scalar_lea.hbm %s20416_s0, 1024 }
  0x2e   :  { %p17536_p8 = scmp.ne.s32.totalorder %s20416_s0, %s17535_s4  ;;  %p17539_p9 = scmp.lt.u32.totalorder %s17535_s4, %s20416_s0 }
  0x30   :  { %p17541_p10 = pnand %p17539_p9, %p17536_p8 }
  0x32   :  { %17544 = shalt.err (!%p17541_p10)
}
  0x33   :  { %s17545_s21 = scalar_lea.vmem %s17947_s27, 1024  ;;  %p17550_p12 = scmp.lt.s32.totalorder %s17947_s27, %s17947_s27 }
  0x34   :  { %p17546_p11 = scmp.ne.s32.totalorder %s17947_s27, %s17545_s21  ;;  %p17551_p13 = scmp.lt.s32.totalorder %s17545_s21, %s17545_s21 }
  0x36   :  { %p17552_p0 = por %p17551_p13, %p17550_p12 }
  0x38   :  { %p17553_p1 = pnand %p17552_p0, %p17546_p11 }
  0x3a   :  { %17556 = shalt.err (!%p17553_p1)
}
  0x3b   :  { %83 = dma.hbm_to_vmem [thread:$0]  %s20416_s0, 1024, %s17947_s27, [#allocation9], %s20401_s1, %s20401_s1, %s20403_s24  }
  0x3c   :  { %s17819_s2 = smov [#allocation11]   ;;  %s17557_s4 = scalar_lea.hbm %s20379_s7, 32768 }
  0x3d   :  { %s103_s26 = sshll.u32 %s17819_s2, 4  ;;  %p17558_p2 = scmp.ne.s32.totalorder %s20379_s7, %s17557_s4  ;;  %s104_s26 = int_to_ptr.vmem [resolvable:$true] %s103_s26 }
  0x3e   :  { %p17561_p3 = scmp.lt.u32.totalorder %s17557_s4, %s20379_s7 }
  0x40   :  { %p17563_p4 = pnand %p17561_p3, %p17558_p2 }
  0x42   :  { %17566 = shalt.err (!%p17563_p4)
}
  0x43   :  { %s17567_s23 = scalar_lea.vmem %s104_s26, 32768  ;;  %p17572_p6 = scmp.lt.s32.totalorder %s104_s26, %s104_s26 }
  0x44   :  { %p17568_p5 = scmp.ne.s32.totalorder %s104_s26, %s17567_s23  ;;  %p17573_p7 = scmp.lt.s32.totalorder %s17567_s23, %s17567_s23 }
  0x46   :  { %p17574_p8 = por %p17573_p7, %p17572_p6 }
  0x48   :  { %p17575_p9 = pnand %p17574_p8, %p17568_p5 }
  0x4a   :  { %17578 = shalt.err (!%p17575_p9)
}
  0x4b   :  { %s20407_s27 = smov 512   ;;  %s17821_s0 = smov 32  }
  0x4c   :  { %109 = dma.hbm_to_vmem [thread:$0]  %s20379_s7, 32768, %s104_s26, [#allocation12], %s20407_s27, %s20407_s27, %s17821_s0  }
  0x4d   :  { %s17822_s2 = smov [#allocation14]   ;;  %s17823_s28 = smov [#allocation17]  }
  0x4e   :  { %s131_s3 = sshll.u32 %s17822_s2, 4  ;;  %s159_s4 = sshll.u32 %s17823_s28, 4  ;;  %s132_s3 = int_to_ptr.vmem [resolvable:$true] %s131_s3  ;;  %s160_s4 = int_to_ptr.vmem [resolvable:$true] %s159_s4 }
  0x4f   :  { %s17579_s5 = scalar_lea.hbm %s20383_s11, 8192 }
  0x50   :  { %p17580_p10 = scmp.ne.s32.totalorder %s20383_s11, %s17579_s5  ;;  %p17583_p11 = scmp.lt.u32.totalorder %s17579_s5, %s20383_s11 }
  0x52   :  { %p17585_p12 = pnand %p17583_p11, %p17580_p10 }
  0x54   :  { %17588 = shalt.err (!%p17585_p12)
}
  0x55   :  { %s17589_s7 = scalar_lea.vmem %s132_s3, 8192  ;;  %p17594_p0 = scmp.lt.s32.totalorder %s132_s3, %s132_s3 }
  0x56   :  { %p17590_p13 = scmp.ne.s32.totalorder %s132_s3, %s17589_s7  ;;  %p17595_p1 = scmp.lt.s32.totalorder %s17589_s7, %s17589_s7 }
  0x58   :  { %p17596_p2 = por %p17595_p1, %p17594_p0 }
  0x5a   :  { %p17597_p3 = pnand %p17596_p2, %p17590_p13 }
  0x5c   :  { %17600 = shalt.err (!%p17597_p3)
}
  0x5d   :  { %s20405_s26 = smov 256   ;;  %s20406_s25 = smov 16  }
  0x5e   :  { %137 = dma.hbm_to_vmem [thread:$0]  %s20383_s11, 8192, %s132_s3, [#allocation15], %s20405_s26, %s20405_s26, %s20406_s25  }
  0x5f   :  { %s17601_s28 = scalar_lea.hbm %s20387_s15, 2048 }
  0x60   :  { %p17602_p4 = scmp.ne.s32.totalorder %s20387_s15, %s17601_s28  ;;  %p17605_p5 = scmp.lt.u32.totalorder %s17601_s28, %s20387_s15 }
  0x62   :  { %p17607_p6 = pnand %p17605_p5, %p17602_p4 }
  0x64   :  { %17610 = shalt.err (!%p17607_p6)
}
  0x65   :  { %s17611_s23 = scalar_lea.vmem %s160_s4, 2048  ;;  %p17616_p8 = scmp.lt.s32.totalorder %s160_s4, %s160_s4 }
  0x66   :  { %p17612_p7 = scmp.ne.s32.totalorder %s160_s4, %s17611_s23  ;;  %p17617_p9 = scmp.lt.s32.totalorder %s17611_s23, %s17611_s23 }
  0x68   :  { %p17618_p10 = por %p17617_p9, %p17616_p8 }
  0x6a   :  { %p17619_p11 = pnand %p17618_p10, %p17612_p7 }
  0x6c   :  { %17622 = shalt.err (!%p17619_p11)
}
  0x6d   :  { %s20417_s11 = smov 8   ;;  %s20418_s3 = smov 128  }
  0x6e   :  { %165 = dma.hbm_to_vmem [thread:$0]  %s20387_s15, 2048, %s160_s4, [#allocation18], %s20418_s3, %s20418_s3, %s20417_s11  }
  0x6f   :  { %s17826_s2 = smov [#allocation2]   ;;  %s17827_s24 = smov [#allocation7]  }
  0x70   :  { %s39_s1 = sshll.u32 %s17826_s2, 4  ;;  %s63_s28 = sshll.u32 %s17827_s24, 4  ;;  %s40_s1 = int_to_ptr.vmem [resolvable:$true] %s39_s1  ;;  %s64_s28 = int_to_ptr.vmem [resolvable:$true] %s63_s28 }
  0x71   :  { %s20419_s5 = sld [smem:[#allocation31_spill]] }
  0x77   :  { %s17623_s22 = scalar_lea.hbm %s20419_s5, 1024 }
  0x78   :  { %p17624_p12 = scmp.ne.s32.totalorder %s20419_s5, %s17623_s22  ;;  %p17627_p13 = scmp.lt.u32.totalorder %s17623_s22, %s20419_s5 }
  0x7a   :  { %p17629_p0 = pnand %p17627_p13, %p17624_p12 }
  0x7c   :  { %17632 = shalt.err (!%p17629_p0)
}
  0x7d   :  { %s17633_s15 = scalar_lea.vmem %s40_s1, 1024  ;;  %p17638_p2 = scmp.lt.s32.totalorder %s40_s1, %s40_s1 }
  0x7e   :  { %p17634_p1 = scmp.ne.s32.totalorder %s40_s1, %s17633_s15  ;;  %p17639_p3 = scmp.lt.s32.totalorder %s17633_s15, %s17633_s15 }
  0x80   :  { %p17640_p4 = por %p17639_p3, %p17638_p2 }
  0x82   :  { %p17641_p5 = pnand %p17640_p4, %p17634_p1 }
  0x84   :  { %17644 = shalt.err (!%p17641_p5)
}
  0x85   :  { %45 = dma.hbm_to_vmem [thread:$0]  %s20419_s5, 1024, %s40_s1, [#allocation3], %s20418_s3, %s20418_s3, %s20417_s11  }
  0x86   :  { %s20420_s25 = sld [smem:[#allocation33_spill]] }
  0x8c   :  { %s17645_s29 = scalar_lea.hbm %s20420_s25, 8192 }
  0x8d   :  { %p17646_p6 = scmp.ne.s32.totalorder %s20420_s25, %s17645_s29  ;;  %p17649_p7 = scmp.lt.u32.totalorder %s17645_s29, %s20420_s25 }
  0x8f   :  { %p17651_p8 = pnand %p17649_p7, %p17646_p6 }
  0x91   :  { %17654 = shalt.err (!%p17651_p8)
}
  0x92   :  { %s17655_s22 = scalar_lea.vmem %s64_s28, 8192  ;;  %p17660_p10 = scmp.lt.s32.totalorder %s64_s28, %s64_s28 }
  0x93   :  { %p17656_p9 = scmp.ne.s32.totalorder %s64_s28, %s17655_s22  ;;  %p17661_p11 = scmp.lt.s32.totalorder %s17655_s22, %s17655_s22 }
  0x95   :  { %p17662_p12 = por %p17661_p11, %p17660_p10 }
  0x97   :  { %p17663_p13 = pnand %p17662_p12, %p17656_p9 }
  0x99   :  { %17666 = shalt.err (!%p17663_p13)
}
  0x9a   :  { %69 = dma.hbm_to_vmem [thread:$0]  %s20420_s25, 8192, %s64_s28, [#allocation6], %s20418_s3, %s20418_s3, %s20417_s11  }
  0x9b   :  { %s17828_s23 = smov [#allocation10]   ;;  %s17829_s4 = smov [#allocation13]  }
  0x9c   :  { %s89_s15 = sshll.u32 %s17828_s23, 4  ;;  %s117_s7 = sshll.u32 %s17829_s4, 4  ;;  %s90_s15 = int_to_ptr.vmem [resolvable:$true] %s89_s15  ;;  %s118_s7 = int_to_ptr.vmem [resolvable:$true] %s117_s7 }
  0x9d   :  { %s20421_s29 = sld [smem:[#allocation36_spill]] }
  0xa3   :  { %s17667_s2 = scalar_lea.hbm %s20421_s29, 12288 }
  0xa4   :  { %p17668_p0 = scmp.ne.s32.totalorder %s20421_s29, %s17667_s2  ;;  %p17671_p1 = scmp.lt.u32.totalorder %s17667_s2, %s20421_s29 }
  0xa6   :  { %p17673_p2 = pnand %p17671_p1, %p17668_p0 }
  0xa8   :  { %17676 = shalt.err (!%p17673_p2)
}
  0xa9   :  { %s17677_s28 = scalar_lea.vmem %s90_s15, 12288  ;;  %p17682_p4 = scmp.lt.s32.totalorder %s90_s15, %s90_s15 }
  0xaa   :  { %p17678_p3 = scmp.ne.s32.totalorder %s90_s15, %s17677_s28  ;;  %p17683_p5 = scmp.lt.s32.totalorder %s17677_s28, %s17677_s28 }
  0xac   :  { %p17684_p6 = por %p17683_p5, %p17682_p4 }
  0xae   :  { %p17685_p7 = pnand %p17684_p6, %p17678_p3 }
  0xb0   :  { %17688 = shalt.err (!%p17685_p7)
}
  0xb1   :  { %s20422_s25 = smov 512   ;;  %s17689_s26 = scalar_lea.hbm %s20381_s9, 16384 }
  0xb2   :  { %95 = dma.hbm_to_vmem [thread:$0]  %s20421_s29, 12288, %s90_s15, [#allocation9], %s20422_s25, %s20422_s25, %s17821_s0  }
  0xb3   :  { %p17690_p8 = scmp.ne.s32.totalorder %s20381_s9, %s17689_s26  ;;  %p17693_p9 = scmp.lt.u32.totalorder %s17689_s26, %s20381_s9 }
  0xb5   :  { %p17695_p10 = pnand %p17693_p9, %p17690_p8 }
  0xb7   :  { %17698 = shalt.err (!%p17695_p10)
}
  0xb8   :  { %s17699_s21 = scalar_lea.vmem %s118_s7, 16384  ;;  %p17704_p12 = scmp.lt.s32.totalorder %s118_s7, %s118_s7 }
  0xb9   :  { %p17700_p11 = scmp.ne.s32.totalorder %s118_s7, %s17699_s21  ;;  %p17705_p13 = scmp.lt.s32.totalorder %s17699_s21, %s17699_s21 }
  0xbb   :  { %p17706_p0 = por %p17705_p13, %p17704_p12 }
  0xbd   :  { %p17707_p1 = pnand %p17706_p0, %p17700_p11 }
  0xbf   :  { %17710 = shalt.err (!%p17707_p1)
}
  0xc0   :  { %s20423_s0 = smov 16   ;;  %s20424_s15 = smov 256  }
  0xc1   :  { %123 = dma.hbm_to_vmem [thread:$0]  %s20381_s9, 16384, %s118_s7, [#allocation12], %s20424_s15, %s20424_s15, %s20423_s0  }
  0xc2   :  { %s17830_s28 = smov [#allocation16]   ;;  %s17831_s1 = smov [#allocation19]  }
  0xc3   :  { %s145_s25 = sshll.u32 %s17830_s28, 4  ;;  %s173_s5 = sshll.u32 %s17831_s1, 4  ;;  %s146_s25 = int_to_ptr.vmem [resolvable:$true] %s145_s25  ;;  %s174_s5 = int_to_ptr.vmem [resolvable:$true] %s173_s5 }
  0xc4   :  { %s17711_s26 = scalar_lea.hbm %s20385_s13, 4096 }
  0xc5   :  { %p17712_p2 = scmp.ne.s32.totalorder %s20385_s13, %s17711_s26  ;;  %p17715_p3 = scmp.lt.u32.totalorder %s17711_s26, %s20385_s13 }
  0xc7   :  { %p17717_p4 = pnand %p17715_p3, %p17712_p2 }
  0xc9   :  { %17720 = shalt.err (!%p17717_p4)
}
  0xca   :  { %s17721_s9 = scalar_lea.vmem %s146_s25, 4096  ;;  %p17726_p6 = scmp.lt.s32.totalorder %s146_s25, %s146_s25 }
  0xcb   :  { %p17722_p5 = scmp.ne.s32.totalorder %s146_s25, %s17721_s9  ;;  %p17727_p7 = scmp.lt.s32.totalorder %s17721_s9, %s17721_s9 }
  0xcd   :  { %p17728_p8 = por %p17727_p7, %p17726_p6 }
  0xcf   :  { %p17729_p9 = pnand %p17728_p8, %p17722_p5 }
  0xd1   :  { %17732 = shalt.err (!%p17729_p9)
}
  0xd2   :  { %151 = dma.hbm_to_vmem [thread:$0]  %s20385_s13, 4096, %s146_s25, [#allocation15], %s20418_s3, %s20418_s3, %s20417_s11  }
  0xd3   :  { %s17733_s29 = scalar_lea.hbm %s20389_s17, 2048 }
  0xd4   :  { %p17734_p10 = scmp.ne.s32.totalorder %s20389_s17, %s17733_s29  ;;  %p17737_p11 = scmp.lt.u32.totalorder %s17733_s29, %s20389_s17 }
  0xd6   :  { %p17739_p12 = pnand %p17737_p11, %p17734_p10 }
  0xd8   :  { %17742 = shalt.err (!%p17739_p12)
}
  0xd9   :  { %s17743_s4 = scalar_lea.vmem %s174_s5, 2048  ;;  %p17748_p0 = scmp.lt.s32.totalorder %s174_s5, %s174_s5 }
  0xda   :  { %p17744_p13 = scmp.ne.s32.totalorder %s174_s5, %s17743_s4  ;;  %p17749_p1 = scmp.lt.s32.totalorder %s17743_s4, %s17743_s4 }
  0xdc   :  { %p17750_p2 = por %p17749_p1, %p17748_p0 }
  0xde   :  { %p17751_p3 = pnand %p17750_p2, %p17744_p13 }
  0xe0   :  { %17754 = shalt.err (!%p17751_p3)
}
  0xe1   :  { %179 = dma.hbm_to_vmem [thread:$0]  %s20389_s17, 2048, %s174_s5, [#allocation18], %s20418_s3, %s20418_s3, %s20417_s11  }
  0xe2   :  { %s17832_s26 = smov [#allocation20]   ;;  %s17755_s30 = scalar_lea.hbm %s20391_s19, 2048 }
  0xe3   :  { %s187_s27 = sshll.u32 %s17832_s26, 4  ;;  %p17756_p4 = scmp.ne.s32.totalorder %s20391_s19, %s17755_s30  ;;  %s188_s27 = int_to_ptr.vmem [resolvable:$true] %s187_s27 }
  0xe4   :  { %p17759_p5 = scmp.lt.u32.totalorder %s17755_s30, %s20391_s19 }
  0xe6   :  { %p17761_p6 = pnand %p17759_p5, %p17756_p4 }
  0xe8   :  { %17764 = shalt.err (!%p17761_p6)
}
  0xe9   :  { %s17765_s15 = scalar_lea.vmem %s188_s27, 2048  ;;  %p17770_p8 = scmp.lt.s32.totalorder %s188_s27, %s188_s27 }
  0xea   :  { %p17766_p7 = scmp.ne.s32.totalorder %s188_s27, %s17765_s15  ;;  %p17771_p9 = scmp.lt.s32.totalorder %s17765_s15, %s17765_s15 }
  0xec   :  { %p17772_p10 = por %p17771_p9, %p17770_p8 }
  0xee   :  { %p17773_p11 = pnand %p17772_p10, %p17766_p7 }
  0xf0   :  { %17776 = shalt.err (!%p17773_p11)
}
  0xf1   :  { %193 = dma.hbm_to_vmem [thread:$0]  %s20391_s19, 2048, %s188_s27, [#allocation21], %s20418_s3, %s20418_s3, %s20417_s11  }
  0xf2   :  { %17799 = dma.done.wait [#allocation3], 1024  }
  0xf3   :  { %17800 = vsyncadd [#allocation3], 4294966272 }
  0xf4   :  { %17801 = dma.done.wait [#allocation6], 16384  }
  0xf5   :  { %17802 = vsyncadd [#allocation6], 4294950912 }
  0xf6   :  { %17803 = dma.done.wait [#allocation9], 13312  }
  0xf7   :  { %17804 = vsyncadd [#allocation9], 4294953984 }
  0xf8   :  { %17805 = dma.done.wait [#allocation12], 49152  }
  0xf9   :  { %17806 = vsyncadd [#allocation12], 4294918144 }
  0xfa   :  { %17807 = dma.done.wait [#allocation15], 12288  }
  0xfb   :  { %17808 = vsyncadd [#allocation15], 4294955008 }
  0xfc   :  { %17809 = dma.done.wait [#allocation18], 4096  }
  0xfd   :  { %17810 = vsyncadd [#allocation18], 4294963200 }
  0xfe   :  { %17811 = dma.done.wait [#allocation21], 2048  }
  0xff   :  { %17812 = vsyncadd [#allocation21], 4294965248  ;;  %v17833_v0 = vmov 0.0|0.0   ;;  %vm17834_vm0 = vmmov 0   ;;  %v17835_v1 = vmov 0.0   ;;  %v243_v2 = vld [vmem:[#allocation5] sm:$0xff]  ;;  %v232_v37 = vlaneseq }
 0x100   :  { %15379 = vmatprep.subr.bf16.mxu1 %v17833_v0  ;;  %12994 = vmatprep.mubr.msk.f32.mxu1 %vm17834_vm0, %v17835_v1  ;;  %v244_v3 = vld [vmem:[#allocation5 + $0x8] sm:$0xff]  ;;  %v245_v4 = vld [vmem:[#allocation5 + $0x10] sm:$0xff]  ;;  %vm258_vm1 = vcmask 523264   ;;  %v246_v6 = vld [vmem:[#allocation5 + $0x18] sm:$0xff]  ;;  %s20425_s3 = sld [smem:[#allocation34_spill]]  ;;  %s17836_s22 = smov [#allocation22]  }
 0x101   :  { %v15363_v5 = vpack.c.bf16 %v244_v3, %v243_v2  ;;  %v15367_v7 = vpack.c.bf16 %v246_v6, %v245_v4  ;;  %v247_v8 = vld [vmem:[#allocation5 + $0x20] sm:$0xff]  ;;  %v248_v9 = vld [vmem:[#allocation5 + $0x28] sm:$0xff]  ;;  %v390_v14 = vld [vmem:[#allocation7 + $0x10] sm:$0xff]  ;;  %v18187_v43 = vand.u32 127, %v232_v37  ;;  %s11600_s28 = sshll.u32 %s17836_s22, 4  ;;  %s11601_s28 = int_to_ptr.vmem [resolvable:$true] %s11600_s28 }
 0x102   :  { %v235_v10 = vld [vmem:[#allocation2] sm:$0xff]  ;;  %v389_v12 = vld [vmem:[#allocation7 + $0x8] sm:$0xff]  ;;  %v391_v15 = vld [vmem:[#allocation7 + $0x18] sm:$0xff]  ;;  %v15371_v16 = vpack.c.bf16 %v248_v9, %v247_v8  ;;  %s17777_s1 = scalar_lea.vmem %s11601_s28, 128  ;;  %p17782_p13 = scmp.lt.s32.totalorder %s11601_s28, %s11601_s28 }
 0x103   :  { %15364 = vmatprep.subr.bf16.mxu0 %v15363_v5  ;;  %12966 = vmatprep.mubr.msk.f32.mxu0 %vm258_vm1, %v235_v10  ;;  %v388_v11 = vld [vmem:[#allocation7] sm:$0xff]  ;;  %v249_v17 = vld [vmem:[#allocation5 + $0x30] sm:$0xff]  ;;  %v250_v18 = vld [vmem:[#allocation5 + $0x38] sm:$0xff]  ;;  %v18141_v19 = vpack.c.bf16 %v391_v15, %v390_v14  ;;  %vm234_vm2 = vcmp.lt.s32.totalorder %v18187_v43, 32  ;;  %p17778_p12 = scmp.ne.s32.totalorder %s11601_s28, %s17777_s1  ;;  %p17783_p0 = scmp.lt.s32.totalorder %s17777_s1, %s17777_s1 }
 0x104   :  { %15366 = vmatpush3.bf16.msra.mxu0 %v15363_v5  ;;  %v18138_v13 = vpack.c.bf16 %v389_v12, %v388_v11  ;;  %v392_v20 = vld [vmem:[#allocation7 + $0x20] sm:$0xff]  ;;  %v393_v21 = vld [vmem:[#allocation7 + $0x28] sm:$0xff]  ;;  %v15375_v22 = vpack.c.bf16 %v250_v18, %v249_v17  ;;  %v394_v24 = vld [vmem:[#allocation7 + $0x30] sm:$0xff] }
 0x105   :  { %15368 = vmatprep.subr.bf16.mxu0 %v15367_v7  ;;  %v18145_v23 = vpack.c.bf16 %v393_v21, %v392_v20  ;;  %v395_v25 = vld [vmem:[#allocation7 + $0x38] sm:$0xff]  ;;  %v236_v27 = vld [vmem:[#allocation2 + $0x8] sm:$0xff]  ;;  %v237_v28 = vld [vmem:[#allocation2 + $0x10] sm:$0xff]  ;;  %p17784_p1 = por %p17783_p0, %p17782_p13 }
 0x106   :  { %15381 = vmatpush3.bf16.msra.mxu1 %v18138_v13  ;;  %v18149_v26 = vpack.c.bf16 %v395_v25, %v394_v24  ;;  %v396_v29 = vld [vmem:[#allocation8] sm:$0xff]  ;;  %v238_v30 = vld [vmem:[#allocation2 + $0x18] sm:$0xff]  ;;  %v240_v32 = vld [vmem:[#allocation2 + $0x28] sm:$0xff] }
 0x107   :  { %15382 = vmatprep.subr.bf16.mxu1 %v17833_v0  ;;  %v239_v31 = vld [vmem:[#allocation2 + $0x20] sm:$0xff]  ;;  %v241_v33 = vld [vmem:[#allocation2 + $0x30] sm:$0xff]  ;;  %v242_v34 = vld [vmem:[#allocation2 + $0x38] sm:$0xff]  ;;  %p17785_p2 = pnand %p17784_p1, %p17778_p12 }
 0x108   :  { %15370 = vmatpush3.bf16.msra.mxu0 %v15367_v7  ;;  %v11615_v35 = vld [vmem:[%s20425_s3] ss:$0 sm:$0xff]  ;;  %v10203_v43 = vld [vmem:[#allocation11 + $0xb0] sm:$0xff] }
 0x109   :  { %15372 = vmatprep.subr.bf16.mxu0 %v15371_v16 }
 0x10a   :  { %15384 = vmatpush3.bf16.msra.mxu1 %v18141_v19 }
 0x10b   :  { %15385 = vmatprep.subr.bf16.mxu1 %v17833_v0 }
 0x10c   :  { %15374 = vmatpush3.bf16.msra.mxu0 %v15371_v16 }
 0x10d   :  { %15376 = vmatprep.subr.bf16.mxu0 %v15375_v22 }
 0x10e   :  { %15387 = vmatpush3.bf16.msra.mxu1 %v18145_v23 }
 0x10f   :  { %15388 = vmatprep.subr.bf16.mxu1 %v17833_v0 }
 0x110   :  { %15378 = vmatpush3.bf16.msra.mxu0 %v15375_v22 }
 0x111   :  { %15391 = vmatprep.subr.bf16.mxu0 %v17833_v0 }
 0x112   :  { %15390 = vmatpush3.bf16.msra.mxu1 %v18149_v26 }
 0x113   :  { %12967 = vmatmul.mubr.msk.f32.vlgmr.msra.gmra.mrb[0].mxu0 %vm258_vm1, %v236_v27  ;;  %15403 = vmatprep.subr.bf16.mxu1 %v17833_v0 }
 0x114   :  { %12969 = vmatprep.mubr.msk.f32.mxu0 %vm258_vm1, %v237_v28  ;;  %15393 = vmatpush3.bf16.msra.mxu0 %v18138_v13  ;;  %v1017_v28 = vld [vmem:[#allocation5 + $0x58] sm:$0xff] }
 0x115   :  { %12995 = vmatmul.mubr.msk.f32.vlgmr.msra.gmra.mrb[0].mxu1 %vm258_vm1, %v396_v29  ;;  %15394 = vmatprep.subr.bf16.mxu0 %v17833_v0 }
 0x116   :  { %15405 = vmatpush3.bf16.msra.mxu1 %v18138_v13  ;;  %13032 = vmatprep.mubr.msk.f32.mxu1 %vm17834_vm0, %v17835_v1 }
 0x117   :  { %12970 = vmatmul.mubr.msk.f32.gmra.mrb[2].mxu0 %vm258_vm1, %v238_v30  ;;  %15406 = vmatprep.subr.bf16.mxu1 %v17833_v0  ;;  %v1018_v30 = vld [vmem:[#allocation5 + $0x60] sm:$0xff] }
 0x118   :  { %12972 = vmatprep.mubr.msk.f32.mxu0 %vm258_vm1, %v239_v31  ;;  %15396 = vmatpush3.bf16.msra.mxu0 %v18141_v19  ;;  %v1019_v31 = vld [vmem:[#allocation5 + $0x68] sm:$0xff] }
 0x119   :  { %15397 = vmatprep.subr.bf16.mxu0 %v17833_v0 }
 0x11a   :  { %15408 = vmatpush3.bf16.msra.mxu1 %v18141_v19 }
 0x11b   :  { %12973 = vmatmul.mubr.msk.f32.gmra.mrb[4].mxu0 %vm258_vm1, %v240_v32  ;;  %15409 = vmatprep.subr.bf16.mxu1 %v17833_v0  ;;  %v18300_v32 = vpack.c.bf16 %v1019_v31, %v1018_v30 }
 0x11c   :  { %12975 = vmatprep.mubr.msk.f32.mxu0 %vm258_vm1, %v241_v33  ;;  %15399 = vmatpush3.bf16.msra.mxu0 %v18145_v23  ;;  %v1020_v33 = vld [vmem:[#allocation5 + $0x70] sm:$0xff] }
 0x11d   :  { %15400 = vmatprep.subr.bf16.mxu0 %v17833_v0 }
 0x11e   :  { %15411 = vmatpush3.bf16.msra.mxu1 %v18145_v23 }
 0x11f   :  { %12976 = vmatmul.mubr.msk.f32.gmra.mrb[6].mxu0 %vm258_vm1, %v242_v34  ;;  %15412 = vmatprep.subr.bf16.mxu1 %v17833_v0  ;;  %v1021_v34 = vld [vmem:[#allocation5 + $0x78] sm:$0xff] }
 0x120   :  { %15402 = vmatpush3.bf16.msra.mxu0 %v18149_v26  ;;  %13013 = vmatprep.mubr.msk.f32.mxu0 %vm17834_vm0, %v17835_v1 }
 0x121   :  { %15415 = vmatprep.subr.bf16.mxu0 %v17833_v0 }
 0x122   :  { %15414 = vmatpush3.bf16.msra.mxu1 %v18149_v26 }
 0x123   :  { %15427 = vmatprep.subr.bf16.mxu1 %v17833_v0 }
 0x1e6   :  { %v12968_v36 = vpop.f32.mrb[0].mxu0 }
 0x1e7   :  { %v355_v38 = vadd.f32 %v12968_v36, %v11615_v35  ;;  %v349_v39 = vpop.f32.mrb[1].mxu0 }
 0x1e8   :  { %v467_v40 = vpop.f32.mrb[0].mxu1  ;;  %v350_v56 = vadd.f32 %v11615_v35, %v349_v39 }
 0x1e9   :  { %v12996_v41 = vpop.f32.mrb[1].mxu1 }
 0x1ea   :  { %v12971_v42 = vpop.f32.mrb[2].mxu0 }
 0x1eb   :  { %v365_v44 = vadd.f32 %v12971_v42, %v11615_v35  ;;  %v359_v45 = vpop.f32.mrb[3].mxu0 }
 0x1ec   :  { %v360_v46 = vadd.f32 %v11615_v35, %v359_v45 }
 0x1ee   :  { %v12974_v47 = vpop.f32.mrb[4].mxu0 }
 0x1ef   :  { %v375_v48 = vadd.f32 %v12974_v47, %v11615_v35  ;;  %v369_v49 = vpop.f32.mrb[5].mxu0 }
 0x1f0   :  { %v370_v50 = vadd.f32 %v11615_v35, %v369_v49  ;;  %v1615_v49 = vld [vmem:[#allocation7 + $0x40] sm:$0xff] }
 0x1f1   :  { %v549_v51 = vsel %vm234_vm2, %v360_v46, %v375_v48  ;;  %v18194_v52 = vsel %vm234_vm2, %v375_v48, %v360_v46 }
 0x1f2   :  { %v12977_v53 = vpop.f32.mrb[6].mxu0  ;;  %v625_v54 = vsel %vm234_vm2, %v365_v44, %v370_v50  ;;  %v18200_v55 = vsel %vm234_vm2, %v370_v50, %v365_v44  ;;  %v1616_v50 = vld [vmem:[#allocation7 + $0x48] sm:$0xff] }
 0x1f3   :  { %v385_v57 = vadd.f32 %v12977_v53, %v11615_v35  ;;  %v379_v58 = vpop.f32.mrb[7].mxu0  ;;  %v18377_v53 = vpack.c.bf16 %v1616_v50, %v1615_v49 }
 0x1f4   :  { %v380_v59 = vadd.f32 %v11615_v35, %v379_v58  ;;  %v18304_v35 = vpack.c.bf16 %v1021_v34, %v1020_v33  ;;  %v1620_v58 = vld [vmem:[#allocation7 + $0x68] sm:$0xff] }
 0x1f5   :  { %v397_v60 = vsel %vm234_vm2, %v350_v56, %v385_v57  ;;  %v18206_v61 = vsel %vm234_vm2, %v385_v57, %v350_v56  ;;  %v1619_v57 = vld [vmem:[#allocation7 + $0x60] sm:$0xff] }
 0x1f6   :  { %v471_v62 = vadd.f32 %v467_v40, %v397_v60  ;;  %v473_v63 = vsel %vm234_vm2, %v355_v38, %v380_v59  ;;  %v18212_v2 = vsel %vm234_vm2, %v380_v59, %v355_v38  ;;  %v18393_v59 = vpack.c.bf16 %v1620_v58, %v1619_v57  ;;  %v1621_v60 = vld [vmem:[#allocation7 + $0x70] sm:$0xff] }
 0x1f8   :  { %v18214_v3 = vmax.f32 %v471_v62, 0.0 }
 0x1fa   :  { %13014 = vmatmul.mubr.msk.f32.vlgmr.msra.gmra.mrb[8].mxu0 %vm258_vm1, %v18214_v3 }
 0x1fb   :  { %15417 = vmatpush3.bf16.msra.mxu0 %v18138_v13  ;;  %13051 = vmatprep.mubr.msk.f32.mxu0 %vm17834_vm0, %v17835_v1 }
 0x1fc   :  { %15418 = vmatprep.subr.bf16.mxu0 %v17833_v0 }
 0x1ff   :  { %15420 = vmatpush3.bf16.msra.mxu0 %v18141_v19 }
 0x200   :  { %15421 = vmatprep.subr.bf16.mxu0 %v17833_v0 }
 0x203   :  { %15423 = vmatpush3.bf16.msra.mxu0 %v18145_v23 }
 0x204   :  { %15424 = vmatprep.subr.bf16.mxu0 %v17833_v0 }
 0x207   :  { %15426 = vmatpush3.bf16.msra.mxu0 %v18149_v26 }
 0x208   :  { %15439 = vmatprep.subr.bf16.mxu0 %v17833_v0 }
 0x2cd   :  { %v543_v4 = vpop.f32.mrb[8].mxu0 }
 0x2ce   :  { %v547_v5 = vadd.f32 %v543_v4, %v473_v63  ;;  %v13015_v6 = vpop.f32.mrb[9].mxu0 }
 0x2d0   :  { %v18228_v7 = vmax.f32 %v547_v5, 0.0 }
 0x2d2   :  { %13033 = vmatmul.mubr.msk.f32.vlgmr.msra.gmra.mrb[2].mxu1 %vm258_vm1, %v18228_v7 }
 0x2d3   :  { %15429 = vmatpush3.bf16.msra.mxu1 %v18138_v13  ;;  %13070 = vmatprep.mubr.msk.f32.mxu1 %vm17834_vm0, %v17835_v1 }
 0x2d4   :  { %15430 = vmatprep.subr.bf16.mxu1 %v17833_v0 }
 0x2d7   :  { %15432 = vmatpush3.bf16.msra.mxu1 %v18141_v19 }
 0x2d8   :  { %15433 = vmatprep.subr.bf16.mxu1 %v17833_v0 }
 0x2db   :  { %15435 = vmatpush3.bf16.msra.mxu1 %v18145_v23 }
 0x2dc   :  { %15436 = vmatprep.subr.bf16.mxu1 %v17833_v0 }
 0x2df   :  { %15438 = vmatpush3.bf16.msra.mxu1 %v18149_v26 }
 0x2e0   :  { %15451 = vmatprep.subr.bf16.mxu1 %v17833_v0 }
 0x3a5   :  { %v619_v8 = vpop.f32.mrb[2].mxu1 }
 0x3a6   :  { %v623_v9 = vadd.f32 %v619_v8, %v549_v51  ;;  %v13034_v10 = vpop.f32.mrb[3].mxu1 }
 0x3a8   :  { %v18242_v11 = vmax.f32 %v623_v9, 0.0 }
 0x3aa   :  { %13052 = vmatmul.mubr.msk.f32.vlgmr.msra.gmra.mrb[10].mxu0 %vm258_vm1, %v18242_v11 }
 0x3ab   :  { %15441 = vmatpush3.bf16.msra.mxu0 %v18138_v13  ;;  %13089 = vmatprep.mubr.msk.f32.mxu0 %vm17834_vm0, %v17835_v1 }
 0x3ac   :  { %15442 = vmatprep.subr.bf16.mxu0 %v17833_v0 }
 0x3af   :  { %15444 = vmatpush3.bf16.msra.mxu0 %v18141_v19 }
 0x3b0   :  { %15445 = vmatprep.subr.bf16.mxu0 %v17833_v0 }
 0x3b3   :  { %15447 = vmatpush3.bf16.msra.mxu0 %v18145_v23 }
 0x3b4   :  { %15448 = vmatprep.subr.bf16.mxu0 %v17833_v0 }
 0x3b7   :  { %15450 = vmatpush3.bf16.msra.mxu0 %v18149_v26 }
 0x3b8   :  { %15463 = vmatprep.subr.bf16.mxu0 %v17833_v0 }
 0x47d   :  { %v695_v12 = vpop.f32.mrb[10].mxu0 }
 0x47e   :  { %v699_v14 = vadd.f32 %v695_v12, %v625_v54  ;;  %v13053_v15 = vpop.f32.mrb[11].mxu0  ;;  %v1617_v54 = vld [vmem:[#allocation7 + $0x50] sm:$0xff] }
 0x480   :  { %v18256_v16 = vmax.f32 %v699_v14, 0.0 }
 0x482   :  { %13071 = vmatmul.mubr.msk.f32.vlgmr.msra.gmra.mrb[4].mxu1 %vm258_vm1, %v18256_v16 }
 0x483   :  { %15453 = vmatpush3.bf16.msra.mxu1 %v18138_v13  ;;  %13108 = vmatprep.mubr.msk.f32.mxu1 %vm17834_vm0, %v17835_v1 }
 0x484   :  { %15454 = vmatprep.subr.bf16.mxu1 %v17833_v0 }
 0x487   :  { %15456 = vmatpush3.bf16.msra.mxu1 %v18141_v19 }
 0x488   :  { %15457 = vmatprep.subr.bf16.mxu1 %v17833_v0 }
 0x48b   :  { %15459 = vmatpush3.bf16.msra.mxu1 %v18145_v23 }
 0x48c   :  { %15460 = vmatprep.subr.bf16.mxu1 %v17833_v0 }
 0x48f   :  { %15462 = vmatpush3.bf16.msra.mxu1 %v18149_v26 }
 0x490   :  { %15475 = vmatprep.subr.bf16.mxu1 %v17833_v0 }
 0x555   :  { %v771_v17 = vpop.f32.mrb[4].mxu1 }
 0x556   :  { %v775_v18 = vadd.f32 %v771_v17, %v18200_v55  ;;  %v13072_v20 = vpop.f32.mrb[5].mxu1  ;;  %v1618_v55 = vld [vmem:[#allocation7 + $0x58] sm:$0xff] }
 0x557   :  { %v18387_v56 = vpack.c.bf16 %v1618_v55, %v1617_v54 }
 0x558   :  { %v18271_v21 = vmax.f32 %v775_v18, 0.0 }
 0x55a   :  { %13090 = vmatmul.mubr.msk.f32.vlgmr.msra.gmra.mrb[12].mxu0 %vm258_vm1, %v18271_v21  ;;  %v1008_v42 = vsel %vm234_vm2, %v18256_v16, %v18271_v21  ;;  %v1009_v6 = vsel %vm234_vm2, %v18271_v21, %v18256_v16 }
 0x55b   :  { %15465 = vmatpush3.bf16.msra.mxu0 %v18138_v13  ;;  %13127 = vmatprep.mubr.msk.f32.mxu0 %vm17834_vm0, %v17835_v1 }
 0x55c   :  { %15466 = vmatprep.subr.bf16.mxu0 %v17833_v0 }
 0x55f   :  { %15468 = vmatpush3.bf16.msra.mxu0 %v18141_v19  ;;  %v1014_v19 = vld [vmem:[#allocation5 + $0x40] sm:$0xff] }
 0x560   :  { %15469 = vmatprep.subr.bf16.mxu0 %v17833_v0 }
 0x563   :  { %15471 = vmatpush3.bf16.msra.mxu0 %v18145_v23  ;;  %v1015_v23 = vld [vmem:[#allocation5 + $0x48] sm:$0xff] }
 0x564   :  { %15472 = vmatprep.subr.bf16.mxu0 %v17833_v0  ;;  %v18292_v27 = vpack.c.bf16 %v1015_v23, %v1014_v19 }
 0x567   :  { %15474 = vmatpush3.bf16.msra.mxu0 %v18149_v26  ;;  %v1016_v26 = vld [vmem:[#allocation5 + $0x50] sm:$0xff] }
 0x568   :  { %15487 = vmatprep.subr.bf16.mxu0 %v17833_v0  ;;  %v18296_v29 = vpack.c.bf16 %v1017_v28, %v1016_v26 }
 0x62d   :  { %v847_v22 = vpop.f32.mrb[12].mxu0 }
 0x62e   :  { %v851_v13 = vadd.f32 %v847_v22, %v18194_v52  ;;  %v13091_v24 = vpop.f32.mrb[13].mxu0 }
 0x630   :  { %v18286_v25 = vmax.f32 %v851_v13, 0.0 }
 0x632   :  { %13109 = vmatmul.mubr.msk.f32.vlgmr.msra.gmra.mrb[6].mxu1 %vm258_vm1, %v18286_v25  ;;  %v1010_v44 = vsel %vm234_vm2, %v18286_v25, %v18242_v11 }
 0x633   :  { %13146 = vmatprep.mubr.msk.f32.mxu1 %vm17834_vm0, %v17835_v1  ;;  %15477 = vmatpush3.bf16.msra.mxu1 %v18292_v27 }
 0x634   :  { %15478 = vmatprep.subr.bf16.mxu1 %v17833_v0 }
 0x637   :  { %15480 = vmatpush3.bf16.msra.mxu1 %v18296_v29 }
 0x638   :  { %15481 = vmatprep.subr.bf16.mxu1 %v17833_v0 }
 0x63b   :  { %15483 = vmatpush3.bf16.msra.mxu1 %v18300_v32 }
 0x63c   :  { %15484 = vmatprep.subr.bf16.mxu1 %v17833_v0 }
 0x63f   :  { %15486 = vmatpush3.bf16.msra.mxu1 %v18304_v35 }
 0x640   :  { %15499 = vmatprep.subr.bf16.mxu1 %v17833_v0 }
 0x705   :  { %v923_v36 = vpop.f32.mrb[6].mxu1 }
 0x706   :  { %v927_v38 = vadd.f32 %v923_v36, %v18212_v2  ;;  %v13110_v39 = vpop.f32.mrb[7].mxu1 }
 0x708   :  { %v18309_v40 = vmax.f32 %v927_v38, 0.0 }
 0x70a   :  { %13128 = vmatmul.mubr.msk.f32.vlgmr.msra.gmra.mrb[14].mxu0 %vm258_vm1, %v18309_v40  ;;  %v1006_v41 = vsel %vm234_vm2, %v18228_v7, %v18309_v40  ;;  %v1011_v10 = vsel %vm234_vm2, %v18309_v40, %v18228_v7  ;;  %v1624_v7 = vld [vmem:[#allocation8 + $0x8] sm:$0xff] }
 0x70b   :  { %15489 = vmatpush3.bf16.msra.mxu0 %v18292_v27  ;;  %13165 = vmatprep.mubr.msk.f32.mxu0 %vm17834_vm0, %v17835_v1 }
 0x70c   :  { %15490 = vmatprep.subr.bf16.mxu0 %v17833_v0 }
 0x70f   :  { %15492 = vmatpush3.bf16.msra.mxu0 %v18296_v29 }
 0x710   :  { %15493 = vmatprep.subr.bf16.mxu0 %v17833_v0 }
 0x713   :  { %15495 = vmatpush3.bf16.msra.mxu0 %v18300_v32 }
 0x714   :  { %15496 = vmatprep.subr.bf16.mxu0 %v17833_v0 }
 0x717   :  { %15498 = vmatpush3.bf16.msra.mxu0 %v18304_v35 }
 0x718   :  { %15511 = vmatprep.subr.bf16.mxu0 %v17833_v0 }
 0x71a   :  { %13166 = vmatmul.mubr.msk.f32.vlgmr.msra.gmra.mrb[16].mxu0 %vm258_vm1, %v1006_v41 }
 0x71b   :  { %15513 = vmatpush3.bf16.msra.mxu0 %v18292_v27  ;;  %13203 = vmatprep.mubr.msk.f32.mxu0 %vm17834_vm0, %v17835_v1 }
 0x71c   :  { %15514 = vmatprep.subr.bf16.mxu0 %v17833_v0 }
 0x71f   :  { %15516 = vmatpush3.bf16.msra.mxu0 %v18296_v29 }
 0x720   :  { %15517 = vmatprep.subr.bf16.mxu0 %v17833_v0 }
 0x723   :  { %15519 = vmatpush3.bf16.msra.mxu0 %v18300_v32 }
 0x724   :  { %15520 = vmatprep.subr.bf16.mxu0 %v17833_v0 }
 0x727   :  { %15522 = vmatpush3.bf16.msra.mxu0 %v18304_v35 }
 0x728   :  { %15535 = vmatprep.subr.bf16.mxu0 %v17833_v0 }
 0x72a   :  { %13204 = vmatmul.mubr.msk.f32.vlgmr.msra.gmra.mrb[18].mxu0 %vm258_vm1, %v1008_v42 }
 0x72b   :  { %15537 = vmatpush3.bf16.msra.mxu0 %v18292_v27  ;;  %13241 = vmatprep.mubr.msk.f32.mxu0 %vm17834_vm0, %v17835_v1 }
 0x72c   :  { %15538 = vmatprep.subr.bf16.mxu0 %v17833_v0 }
 0x72f   :  { %15540 = vmatpush3.bf16.msra.mxu0 %v18296_v29 }
 0x730   :  { %15541 = vmatprep.subr.bf16.mxu0 %v17833_v0 }
 0x733   :  { %15543 = vmatpush3.bf16.msra.mxu0 %v18300_v32 }
 0x734   :  { %15544 = vmatprep.subr.bf16.mxu0 %v17833_v0 }
 0x737   :  { %15546 = vmatpush3.bf16.msra.mxu0 %v18304_v35 }
 0x738   :  { %15559 = vmatprep.subr.bf16.mxu0 %v17833_v0 }
 0x73a   :  { %13242 = vmatmul.mubr.msk.f32.vlgmr.msra.gmra.mrb[20].mxu0 %vm258_vm1, %v1010_v44 }
 0x73b   :  { %15561 = vmatpush3.bf16.msra.mxu0 %v18292_v27  ;;  %13279 = vmatprep.mubr.msk.f32.mxu0 %vm17834_vm0, %v17835_v1 }
 0x73c   :  { %15562 = vmatprep.subr.bf16.mxu0 %v17833_v0 }
 0x73f   :  { %15564 = vmatpush3.bf16.msra.mxu0 %v18296_v29 }
 0x740   :  { %15565 = vmatprep.subr.bf16.mxu0 %v17833_v0 }
 0x743   :  { %15567 = vmatpush3.bf16.msra.mxu0 %v18300_v32 }
 0x744   :  { %15568 = vmatprep.subr.bf16.mxu0 %v17833_v0 }
 0x747   :  { %15570 = vmatpush3.bf16.msra.mxu0 %v18304_v35 }
 0x748   :  { %15583 = vmatprep.subr.bf16.mxu0 %v17833_v0 }
 0x7dd   :  { %v999_v45 = vpop.f32.mrb[14].mxu0 }
 0x7de   :  { %v1003_v46 = vadd.f32 %v999_v45, %v18206_v61  ;;  %v13129_v47 = vpop.f32.mrb[15].mxu0  ;;  %v1622_v61 = vld [vmem:[#allocation7 + $0x78] sm:$0xff] }
 0x7df   :  { %v18401_v2 = vpack.c.bf16 %v1622_v61, %v1621_v60 }
 0x7e0   :  { %v1004_v48 = vmax.f32 %v1003_v46, 0.0 }
 0x7e2   :  { %v1005_v51 = vsel %vm234_vm2, %v18214_v3, %v1004_v48  ;;  %v1012_v52 = vsel %vm234_vm2, %v1004_v48, %v18214_v3  ;;  %v1007_v3 = vsel %vm234_vm2, %v18242_v11, %v18286_v25  ;;  %v11633_v11 = vld [vmem:[%s20425_s3 + $0x1] ss:$0 sm:$0xff] }
 0x7e3   :  { %13147 = vmatmul.mubr.msk.f32.vlgmr.msra.gmra.mrb[8].mxu1 %vm258_vm1, %v1005_v51  ;;  %13280 = vmatmul.mubr.msk.f32.vlgmr.msra.gmra.mrb[22].mxu0 %vm258_vm1, %v1012_v52 }
 0x7e4   :  { %15501 = vmatpush3.bf16.msra.mxu1 %v18292_v27  ;;  %13184 = vmatprep.mubr.msk.f32.mxu1 %vm17834_vm0, %v17835_v1 }
 0x7e5   :  { %15502 = vmatprep.subr.bf16.mxu1 %v17833_v0  ;;  %15585 = vmatpush3.bf16.msra.mxu0 %v18377_v53 }
 0x7e6   :  { %15586 = vmatprep.subr.bf16.mxu0 %v17833_v0  ;;  %13317 = vmatprep.mubr.msk.f32.mxu0 %vm17834_vm0, %v17835_v1 }
 0x7e8   :  { %15504 = vmatpush3.bf16.msra.mxu1 %v18296_v29 }
 0x7e9   :  { %15505 = vmatprep.subr.bf16.mxu1 %v17833_v0  ;;  %15588 = vmatpush3.bf16.msra.mxu0 %v18387_v56 }
 0x7ea   :  { %15589 = vmatprep.subr.bf16.mxu0 %v17833_v0 }
 0x7ec   :  { %15507 = vmatpush3.bf16.msra.mxu1 %v18300_v32 }
 0x7ed   :  { %v18396_v62 = vpop.f32.mrb[16].mxu0  ;;  %15508 = vmatprep.subr.bf16.mxu1 %v17833_v0  ;;  %15591 = vmatpush3.bf16.msra.mxu0 %v18393_v59 }
 0x7ee   :  { %v13167_v63 = vpop.f32.mrb[17].mxu0  ;;  %15592 = vmatprep.subr.bf16.mxu0 %v17833_v0  ;;  %v1173_v33 = vadd.f32 %v11633_v11, %v18396_v62 }
 0x7f0   :  { %15510 = vmatpush3.bf16.msra.mxu1 %v18304_v35 }
 0x7f1   :  { %15523 = vmatprep.subr.bf16.mxu1 %v17833_v0  ;;  %15594 = vmatpush3.bf16.msra.mxu0 %v18401_v2 }
 0x7f2   :  { %15607 = vmatprep.subr.bf16.mxu0 %v17833_v0 }
 0x7f3   :  { %13185 = vmatmul.mubr.msk.f32.vlgmr.msra.gmra.mrb[10].mxu1 %vm258_vm1, %v1007_v3 }
 0x7f4   :  { %15525 = vmatpush3.bf16.msra.mxu1 %v18292_v27  ;;  %13222 = vmatprep.mubr.msk.f32.mxu1 %vm17834_vm0, %v17835_v1 }
 0x7f5   :  { %15526 = vmatprep.subr.bf16.mxu1 %v17833_v0 }
 0x7f8   :  { %15528 = vmatpush3.bf16.msra.mxu1 %v18296_v29 }
 0x7f9   :  { %15529 = vmatprep.subr.bf16.mxu1 %v17833_v0 }
 0x7fc   :  { %15531 = vmatpush3.bf16.msra.mxu1 %v18300_v32 }
 0x7fd   :  { %v1318_v4 = vpop.f32.mrb[18].mxu0  ;;  %15532 = vmatprep.subr.bf16.mxu1 %v17833_v0 }
 0x7fe   :  { %v13205_v5 = vpop.f32.mrb[19].mxu0  ;;  %v1319_v26 = vadd.f32 %v11633_v11, %v1318_v4 }
 0x800   :  { %15534 = vmatpush3.bf16.msra.mxu1 %v18304_v35 }
 0x801   :  { %15547 = vmatprep.subr.bf16.mxu1 %v17833_v0 }
 0x803   :  { %13223 = vmatmul.mubr.msk.f32.vlgmr.msra.gmra.mrb[12].mxu1 %vm258_vm1, %v1009_v6  ;;  %v2245_v6 = vld [vmem:[#allocation5 + $0x98] sm:$0xff] }
 0x804   :  { %15549 = vmatpush3.bf16.msra.mxu1 %v18292_v27  ;;  %13260 = vmatprep.mubr.msk.f32.mxu1 %vm17834_vm0, %v17835_v1 }
 0x805   :  { %15550 = vmatprep.subr.bf16.mxu1 %v17833_v0 }
 0x808   :  { %15552 = vmatpush3.bf16.msra.mxu1 %v18296_v29 }
 0x809   :  { %15553 = vmatprep.subr.bf16.mxu1 %v17833_v0 }
 0x80c   :  { %15555 = vmatpush3.bf16.msra.mxu1 %v18300_v32 }
 0x80d   :  { %v1464_v8 = vpop.f32.mrb[20].mxu0  ;;  %15556 = vmatprep.subr.bf16.mxu1 %v17833_v0 }
 0x80e   :  { %v13243_v9 = vpop.f32.mrb[21].mxu0  ;;  %v1465_v13 = vadd.f32 %v11633_v11, %v1464_v8 }
 0x80f   :  { %v2246_v9 = vld [vmem:[#allocation5 + $0xa0] sm:$0xff] }
 0x810   :  { %15558 = vmatpush3.bf16.msra.mxu1 %v18304_v35 }
 0x811   :  { %15571 = vmatprep.subr.bf16.mxu1 %v17833_v0 }
 0x813   :  { %13261 = vmatmul.mubr.msk.f32.vlgmr.msra.gmra.mrb[14].mxu1 %vm258_vm1, %v1011_v10  ;;  %v2247_v10 = vld [vmem:[#allocation5 + $0xa8] sm:$0xff] }
 0x814   :  { %15573 = vmatpush3.bf16.msra.mxu1 %v18377_v53  ;;  %13298 = vmatprep.mubr.msk.f32.mxu1 %vm17834_vm0, %v17835_v1 }
 0x815   :  { %15574 = vmatprep.subr.bf16.mxu1 %v17833_v0 }
 0x818   :  { %15576 = vmatpush3.bf16.msra.mxu1 %v18387_v56 }
 0x819   :  { %15577 = vmatprep.subr.bf16.mxu1 %v17833_v0 }
 0x81c   :  { %15579 = vmatpush3.bf16.msra.mxu1 %v18393_v59 }
 0x81d   :  { %15580 = vmatprep.subr.bf16.mxu1 %v17833_v0 }
 0x820   :  { %15582 = vmatpush3.bf16.msra.mxu1 %v18401_v2 }
 0x821   :  { %15595 = vmatprep.subr.bf16.mxu1 %v17833_v0 }
 0x823   :  { %13299 = vmatmul.mubr.msk.f32.vlgmr.msra.gmra.mrb[16].mxu1 %vm258_vm1, %v1624_v7  ;;  %v18577_v7 = vpack.c.bf16 %v2247_v10, %v2246_v9 }
 0x824   :  { %15597 = vmatpush3.bf16.msra.mxu1 %v18377_v53  ;;  %13336 = vmatprep.mubr.msk.f32.mxu1 %vm17834_vm0, %v17835_v1 }
 0x825   :  { %15598 = vmatprep.subr.bf16.mxu1 %v17833_v0 }
 0x828   :  { %15600 = vmatpush3.bf16.msra.mxu1 %v18387_v56 }
 0x829   :  { %15601 = vmatprep.subr.bf16.mxu1 %v17833_v0 }
 0x82c   :  { %15603 = vmatpush3.bf16.msra.mxu1 %v18393_v59 }
 0x82d   :  { %15604 = vmatprep.subr.bf16.mxu1 %v17833_v0 }
 0x830   :  { %15606 = vmatpush3.bf16.msra.mxu1 %v18401_v2 }
 0x831   :  { %15619 = vmatprep.subr.bf16.mxu1 %v17833_v0 }
 0x8b6   :  { %v1099_v12 = vpop.f32.mrb[8].mxu1  ;;  %v1610_v14 = vpop.f32.mrb[22].mxu0 }
 0x8b7   :  { %v1100_v15 = vadd.f32 %v11633_v11, %v1099_v12  ;;  %v1611_v16 = vadd.f32 %v11633_v11, %v1610_v14  ;;  %v13148_v17 = vpop.f32.mrb[9].mxu1  ;;  %v13281_v18 = vpop.f32.mrb[23].mxu0  ;;  %v2249_v12 = vld [vmem:[#allocation5 + $0xb8] sm:$0xff] }
 0x8b9   :  { %v1625_v20 = vsel %vm234_vm2, %v1100_v15, %v1611_v16  ;;  %v18470_v21 = vsel %vm234_vm2, %v1611_v16, %v1100_v15 }
 0x8c6   :  { %v1245_v22 = vpop.f32.mrb[10].mxu1 }
 0x8c7   :  { %v1246_v24 = vadd.f32 %v11633_v11, %v1245_v22  ;;  %v13186_v25 = vpop.f32.mrb[11].mxu1 }
 0x8c9   :  { %v1777_v19 = vsel %vm234_vm2, %v1246_v24, %v1465_v13  ;;  %v18476_v23 = vsel %vm234_vm2, %v1465_v13, %v1246_v24 }
 0x8d6   :  { %v1391_v27 = vpop.f32.mrb[12].mxu1 }
 0x8d7   :  { %v1392_v28 = vadd.f32 %v11633_v11, %v1391_v27  ;;  %v13224_v29 = vpop.f32.mrb[13].mxu1  ;;  %v2843_v27 = vld [vmem:[#allocation7 + $0x80] sm:$0xff] }
 0x8d9   :  { %v1853_v30 = vsel %vm234_vm2, %v1319_v26, %v1392_v28  ;;  %v18482_v31 = vsel %vm234_vm2, %v1392_v28, %v1319_v26  ;;  %v2844_v26 = vld [vmem:[#allocation7 + $0x88] sm:$0xff] }
 0x8e6   :  { %v1537_v32 = vpop.f32.mrb[14].mxu1 }
 0x8e7   :  { %v1538_v34 = vadd.f32 %v11633_v11, %v1537_v32  ;;  %v13262_v35 = vpop.f32.mrb[15].mxu1  ;;  %v2248_v11 = vld [vmem:[#allocation5 + $0xb0] sm:$0xff] }
 0x8e8   :  { %v18581_v14 = vpack.c.bf16 %v2249_v12, %v2248_v11 }
 0x8e9   :  { %v1701_v36 = vsel %vm234_vm2, %v1173_v33, %v1538_v34  ;;  %v18489_v38 = vsel %vm234_vm2, %v1538_v34, %v1173_v33  ;;  %v2847_v33 = vld [vmem:[#allocation7 + $0xa0] sm:$0xff]  ;;  %v2848_v34 = vld [vmem:[#allocation7 + $0xa8] sm:$0xff] }
 0x8ea   :  { %v18670_v35 = vpack.c.bf16 %v2848_v34, %v2847_v33 }
 0x8f6   :  { %v1695_v39 = vpop.f32.mrb[16].mxu1 }
 0x8f7   :  { %v1699_v40 = vadd.f32 %v1695_v39, %v1625_v20  ;;  %v13300_v41 = vpop.f32.mrb[17].mxu1 }
 0x8f9   :  { %v18491_v42 = vmax.f32 %v1699_v40, 0.0 }
 0x8fb   :  { %13318 = vmatmul.mubr.msk.f32.vlgmr.msra.gmra.mrb[24].mxu0 %vm258_vm1, %v18491_v42 }
 0x8fc   :  { %15609 = vmatpush3.bf16.msra.mxu0 %v18377_v53  ;;  %13355 = vmatprep.mubr.msk.f32.mxu0 %vm17834_vm0, %v17835_v1 }
 0x8fd   :  { %15610 = vmatprep.subr.bf16.mxu0 %v17833_v0 }
 0x900   :  { %15612 = vmatpush3.bf16.msra.mxu0 %v18387_v56 }
 0x901   :  { %15613 = vmatprep.subr.bf16.mxu0 %v17833_v0 }
 0x904   :  { %15615 = vmatpush3.bf16.msra.mxu0 %v18393_v59 }
 0x905   :  { %15616 = vmatprep.subr.bf16.mxu0 %v17833_v0 }
 0x908   :  { %15618 = vmatpush3.bf16.msra.mxu0 %v18401_v2 }
 0x909   :  { %15631 = vmatprep.subr.bf16.mxu0 %v17833_v0 }
 0x9ce   :  { %v1771_v44 = vpop.f32.mrb[24].mxu0 }
 0x9cf   :  { %v1775_v45 = vadd.f32 %v1771_v44, %v1701_v36  ;;  %v13319_v46 = vpop.f32.mrb[25].mxu0  ;;  %v2849_v36 = vld [vmem:[#allocation7 + $0xb0] sm:$0xff] }
 0x9d1   :  { %v18505_v47 = vmax.f32 %v1775_v45, 0.0 }
 0x9d3   :  { %13337 = vmatmul.mubr.msk.f32.vlgmr.msra.gmra.mrb[18].mxu1 %vm258_vm1, %v18505_v47 }
 0x9d4   :  { %15621 = vmatpush3.bf16.msra.mxu1 %v18377_v53  ;;  %13374 = vmatprep.mubr.msk.f32.mxu1 %vm17834_vm0, %v17835_v1 }
 0x9d5   :  { %15622 = vmatprep.subr.bf16.mxu1 %v17833_v0 }
 0x9d8   :  { %15624 = vmatpush3.bf16.msra.mxu1 %v18387_v56 }
 0x9d9   :  { %15625 = vmatprep.subr.bf16.mxu1 %v17833_v0 }
 0x9dc   :  { %15627 = vmatpush3.bf16.msra.mxu1 %v18393_v59 }
 0x9dd   :  { %15628 = vmatprep.subr.bf16.mxu1 %v17833_v0 }
 0x9e0   :  { %15630 = vmatpush3.bf16.msra.mxu1 %v18401_v2 }
 0x9e1   :  { %15643 = vmatprep.subr.bf16.mxu1 %v17833_v0 }
 0xaa6   :  { %v1847_v48 = vpop.f32.mrb[18].mxu1 }
 0xaa7   :  { %v1851_v49 = vadd.f32 %v1847_v48, %v1777_v19  ;;  %v13338_v50 = vpop.f32.mrb[19].mxu1 }
 0xaa9   :  { %v18519_v51 = vmax.f32 %v1851_v49, 0.0 }
 0xaab   :  { %13356 = vmatmul.mubr.msk.f32.vlgmr.msra.gmra.mrb[26].mxu0 %vm258_vm1, %v18519_v51 }
 0xaac   :  { %15633 = vmatpush3.bf16.msra.mxu0 %v18377_v53  ;;  %13393 = vmatprep.mubr.msk.f32.mxu0 %vm17834_vm0, %v17835_v1 }
 0xaad   :  { %15634 = vmatprep.subr.bf16.mxu0 %v17833_v0 }
 0xab0   :  { %15636 = vmatpush3.bf16.msra.mxu0 %v18387_v56 }
 0xab1   :  { %15637 = vmatprep.subr.bf16.mxu0 %v17833_v0 }
 0xab4   :  { %15639 = vmatpush3.bf16.msra.mxu0 %v18393_v59 }
 0xab5   :  { %15640 = vmatprep.subr.bf16.mxu0 %v17833_v0 }
 0xab8   :  { %15642 = vmatpush3.bf16.msra.mxu0 %v18401_v2 }
 0xab9   :  { %15655 = vmatprep.subr.bf16.mxu0 %v17833_v0 }
 0xb7e   :  { %v1923_v52 = vpop.f32.mrb[26].mxu0 }
 0xb7f   :  { %v1927_v54 = vadd.f32 %v1923_v52, %v1853_v30  ;;  %v13357_v55 = vpop.f32.mrb[27].mxu0  ;;  %v18654_v30 = vpack.c.bf16 %v2844_v26, %v2843_v27 }
 0xb81   :  { %v18533_v57 = vmax.f32 %v1927_v54, 0.0 }
 0xb83   :  { %13375 = vmatmul.mubr.msk.f32.vlgmr.msra.gmra.mrb[20].mxu1 %vm258_vm1, %v18533_v57 }
 0xb84   :  { %15645 = vmatpush3.bf16.msra.mxu1 %v18377_v53  ;;  %13412 = vmatprep.mubr.msk.f32.mxu1 %vm17834_vm0, %v17835_v1 }
 0xb85   :  { %15646 = vmatprep.subr.bf16.mxu1 %v17833_v0 }
 0xb88   :  { %15648 = vmatpush3.bf16.msra.mxu1 %v18387_v56 }
 0xb89   :  { %15649 = vmatprep.subr.bf16.mxu1 %v17833_v0 }
 0xb8c   :  { %15651 = vmatpush3.bf16.msra.mxu1 %v18393_v59 }
 0xb8d   :  { %15652 = vmatprep.subr.bf16.mxu1 %v17833_v0 }
 0xb90   :  { %15654 = vmatpush3.bf16.msra.mxu1 %v18401_v2 }
 0xb91   :  { %15667 = vmatprep.subr.bf16.mxu1 %v17833_v0 }
 0xc56   :  { %v1999_v58 = vpop.f32.mrb[20].mxu1 }
 0xc57   :  { %v2003_v60 = vadd.f32 %v1999_v58, %v18482_v31  ;;  %v13376_v61 = vpop.f32.mrb[21].mxu1  ;;  %v2846_v31 = vld [vmem:[#allocation7 + $0x98] sm:$0xff] }
 0xc59   :  { %v18548_v62 = vmax.f32 %v2003_v60, 0.0 }
 0xc5b   :  { %13394 = vmatmul.mubr.msk.f32.vlgmr.msra.gmra.mrb[28].mxu0 %vm258_vm1, %v18548_v62  ;;  %v2236_v22 = vsel %vm234_vm2, %v18533_v57, %v18548_v62  ;;  %v2237_v46 = vsel %vm234_vm2, %v18548_v62, %v18533_v57 }
 0xc5c   :  { %15657 = vmatpush3.bf16.msra.mxu0 %v18377_v53  ;;  %13431 = vmatprep.mubr.msk.f32.mxu0 %vm17834_vm0, %v17835_v1 }
 0xc5d   :  { %15658 = vmatprep.subr.bf16.mxu0 %v17833_v0 }
 0xc60   :  { %15660 = vmatpush3.bf16.msra.mxu0 %v18387_v56  ;;  %v2242_v56 = vld [vmem:[#allocation5 + $0x80] sm:$0xff] }
 0xc61   :  { %15661 = vmatprep.subr.bf16.mxu0 %v17833_v0 }
 0xc64   :  { %15663 = vmatpush3.bf16.msra.mxu0 %v18393_v59  ;;  %v2243_v59 = vld [vmem:[#allocation5 + $0x88] sm:$0xff] }
 0xc65   :  { %15664 = vmatprep.subr.bf16.mxu0 %v17833_v0  ;;  %v18569_v5 = vpack.c.bf16 %v2243_v59, %v2242_v56 }
 0xc68   :  { %15666 = vmatpush3.bf16.msra.mxu0 %v18401_v2  ;;  %v2244_v2 = vld [vmem:[#allocation5 + $0x90] sm:$0xff] }
 0xc69   :  { %15679 = vmatprep.subr.bf16.mxu0 %v17833_v0  ;;  %v18573_v8 = vpack.c.bf16 %v2245_v6, %v2244_v2 }
 0xd2e   :  { %v2075_v63 = vpop.f32.mrb[28].mxu0 }
 0xd2f   :  { %v2079_v53 = vadd.f32 %v2075_v63, %v18476_v23  ;;  %v13395_v3 = vpop.f32.mrb[29].mxu0 }
 0xd31   :  { %v18563_v4 = vmax.f32 %v2079_v53, 0.0 }
 0xd33   :  { %13413 = vmatmul.mubr.msk.f32.vlgmr.msra.gmra.mrb[22].mxu1 %vm258_vm1, %v18563_v4  ;;  %v2238_v13 = vsel %vm234_vm2, %v18563_v4, %v18519_v51 }
 0xd34   :  { %13450 = vmatprep.mubr.msk.f32.mxu1 %vm17834_vm0, %v17835_v1  ;;  %15669 = vmatpush3.bf16.msra.mxu1 %v18569_v5 }
 0xd35   :  { %15670 = vmatprep.subr.bf16.mxu1 %v17833_v0 }
 0xd38   :  { %15672 = vmatpush3.bf16.msra.mxu1 %v18573_v8 }
 0xd39   :  { %15673 = vmatprep.subr.bf16.mxu1 %v17833_v0 }
 0xd3c   :  { %15675 = vmatpush3.bf16.msra.mxu1 %v18577_v7 }
 0xd3d   :  { %15676 = vmatprep.subr.bf16.mxu1 %v17833_v0 }
 0xd40   :  { %15678 = vmatpush3.bf16.msra.mxu1 %v18581_v14 }
 0xd41   :  { %15691 = vmatprep.subr.bf16.mxu1 %v17833_v0 }
 0xe06   :  { %v2151_v15 = vpop.f32.mrb[22].mxu1 }
 0xe07   :  { %v2155_v16 = vadd.f32 %v2151_v15, %v18489_v38  ;;  %v13414_v17 = vpop.f32.mrb[23].mxu1  ;;  %v2850_v38 = vld [vmem:[#allocation7 + $0xb8] sm:$0xff] }
 0xe08   :  { %v18678_v41 = vpack.c.bf16 %v2850_v38, %v2849_v36 }
 0xe09   :  { %v18586_v18 = vmax.f32 %v2155_v16, 0.0 }
 0xe0b   :  { %13432 = vmatmul.mubr.msk.f32.vlgmr.msra.gmra.mrb[30].mxu0 %vm258_vm1, %v18586_v18  ;;  %v2234_v20 = vsel %vm234_vm2, %v18505_v47, %v18586_v18  ;;  %v2239_v50 = vsel %vm234_vm2, %v18586_v18, %v18505_v47  ;;  %v2852_v47 = vld [vmem:[#allocation8 + $0x10] sm:$0xff] }
 0xe0c   :  { %15681 = vmatpush3.bf16.msra.mxu0 %v18569_v5  ;;  %13469 = vmatprep.mubr.msk.f32.mxu0 %vm17834_vm0, %v17835_v1 }
 0xe0d   :  { %15682 = vmatprep.subr.bf16.mxu0 %v17833_v0 }
 0xe10   :  { %15684 = vmatpush3.bf16.msra.mxu0 %v18573_v8 }
 0xe11   :  { %15685 = vmatprep.subr.bf16.mxu0 %v17833_v0 }
 0xe14   :  { %15687 = vmatpush3.bf16.msra.mxu0 %v18577_v7 }
 0xe15   :  { %15688 = vmatprep.subr.bf16.mxu0 %v17833_v0 }
 0xe18   :  { %15690 = vmatpush3.bf16.msra.mxu0 %v18581_v14 }
 0xe19   :  { %15703 = vmatprep.subr.bf16.mxu0 %v17833_v0 }
 0xe1b   :  { %13470 = vmatmul.mubr.msk.f32.vlgmr.msra.gmra.mrb[32].mxu0 %vm258_vm1, %v2234_v20 }
 0xe1c   :  { %15705 = vmatpush3.bf16.msra.mxu0 %v18569_v5  ;;  %13507 = vmatprep.mubr.msk.f32.mxu0 %vm17834_vm0, %v17835_v1 }
 0xe1d   :  { %15706 = vmatprep.subr.bf16.mxu0 %v17833_v0 }
 0xe20   :  { %15708 = vmatpush3.bf16.msra.mxu0 %v18573_v8 }
 0xe21   :  { %15709 = vmatprep.subr.bf16.mxu0 %v17833_v0 }
 0xe24   :  { %15711 = vmatpush3.bf16.msra.mxu0 %v18577_v7 }
 0xe25   :  { %15712 = vmatprep.subr.bf16.mxu0 %v17833_v0 }
 0xe28   :  { %15714 = vmatpush3.bf16.msra.mxu0 %v18581_v14 }
 0xe29   :  { %15727 = vmatprep.subr.bf16.mxu0 %v17833_v0 }
 0xe2b   :  { %13508 = vmatmul.mubr.msk.f32.vlgmr.msra.gmra.mrb[34].mxu0 %vm258_vm1, %v2236_v22 }
 0xe2c   :  { %15729 = vmatpush3.bf16.msra.mxu0 %v18569_v5  ;;  %13545 = vmatprep.mubr.msk.f32.mxu0 %vm17834_vm0, %v17835_v1 }
 0xe2d   :  { %15730 = vmatprep.subr.bf16.mxu0 %v17833_v0 }
 0xe30   :  { %15732 = vmatpush3.bf16.msra.mxu0 %v18573_v8 }
 0xe31   :  { %15733 = vmatprep.subr.bf16.mxu0 %v17833_v0 }
 0xe34   :  { %15735 = vmatpush3.bf16.msra.mxu0 %v18577_v7 }
 0xe35   :  { %15736 = vmatprep.subr.bf16.mxu0 %v17833_v0 }
 0xe38   :  { %15738 = vmatpush3.bf16.msra.mxu0 %v18581_v14 }
 0xe39   :  { %15751 = vmatprep.subr.bf16.mxu0 %v17833_v0 }
 0xe3b   :  { %13546 = vmatmul.mubr.msk.f32.vlgmr.msra.gmra.mrb[36].mxu0 %vm258_vm1, %v2238_v13 }
 0xe3c   :  { %15753 = vmatpush3.bf16.msra.mxu0 %v18569_v5  ;;  %13583 = vmatprep.mubr.msk.f32.mxu0 %vm17834_vm0, %v17835_v1 }
 0xe3d   :  { %15754 = vmatprep.subr.bf16.mxu0 %v17833_v0 }
 0xe40   :  { %15756 = vmatpush3.bf16.msra.mxu0 %v18573_v8 }
 0xe41   :  { %15757 = vmatprep.subr.bf16.mxu0 %v17833_v0 }
 0xe44   :  { %15759 = vmatpush3.bf16.msra.mxu0 %v18577_v7 }
 0xe45   :  { %15760 = vmatprep.subr.bf16.mxu0 %v17833_v0 }
 0xe48   :  { %15762 = vmatpush3.bf16.msra.mxu0 %v18581_v14 }
 0xe49   :  { %15775 = vmatprep.subr.bf16.mxu0 %v17833_v0 }
 0xede   :  { %v2227_v24 = vpop.f32.mrb[30].mxu0 }
 0xedf   :  { %v2231_v25 = vadd.f32 %v2227_v24, %v18470_v21  ;;  %v13433_v19 = vpop.f32.mrb[31].mxu0  ;;  %v2845_v21 = vld [vmem:[#allocation7 + $0x90] sm:$0xff] }
 0xee0   :  { %v18664_v32 = vpack.c.bf16 %v2846_v31, %v2845_v21 }
 0xee1   :  { %v2232_v23 = vmax.f32 %v2231_v25, 0.0 }
 0xee3   :  { %v2233_v28 = vsel %vm234_vm2, %v18491_v42, %v2232_v23  ;;  %v2240_v29 = vsel %vm234_vm2, %v2232_v23, %v18491_v42  ;;  %v2235_v42 = vsel %vm234_vm2, %v18519_v51, %v18563_v4  ;;  %v11651_v51 = vld [vmem:[%s20425_s3 + $0x2] ss:$0 sm:$0xff] }
 0xee4   :  { %13451 = vmatmul.mubr.msk.f32.vlgmr.msra.gmra.mrb[24].mxu1 %vm258_vm1, %v2233_v28  ;;  %13584 = vmatmul.mubr.msk.f32.vlgmr.msra.gmra.mrb[38].mxu0 %vm258_vm1, %v2240_v29 }
 0xee5   :  { %15693 = vmatpush3.bf16.msra.mxu1 %v18569_v5  ;;  %13488 = vmatprep.mubr.msk.f32.mxu1 %vm17834_vm0, %v17835_v1 }
 0xee6   :  { %15694 = vmatprep.subr.bf16.mxu1 %v17833_v0  ;;  %15777 = vmatpush3.bf16.msra.mxu0 %v18654_v30 }
 0xee7   :  { %15778 = vmatprep.subr.bf16.mxu0 %v17833_v0  ;;  %13621 = vmatprep.mubr.msk.f32.mxu0 %vm17834_vm0, %v17835_v1 }
 0xee9   :  { %15696 = vmatpush3.bf16.msra.mxu1 %v18573_v8 }
 0xeea   :  { %15697 = vmatprep.subr.bf16.mxu1 %v17833_v0  ;;  %15780 = vmatpush3.bf16.msra.mxu0 %v18664_v32 }
 0xeeb   :  { %15781 = vmatprep.subr.bf16.mxu0 %v17833_v0 }
 0xeed   :  { %15699 = vmatpush3.bf16.msra.mxu1 %v18577_v7 }
 0xeee   :  { %v18673_v39 = vpop.f32.mrb[32].mxu0  ;;  %15700 = vmatprep.subr.bf16.mxu1 %v17833_v0  ;;  %15783 = vmatpush3.bf16.msra.mxu0 %v18670_v35 }
 0xeef   :  { %v13471_v40 = vpop.f32.mrb[33].mxu0  ;;  %15784 = vmatprep.subr.bf16.mxu0 %v17833_v0  ;;  %v2401_v11 = vadd.f32 %v11651_v51, %v18673_v39 }
 0xef1   :  { %15702 = vmatpush3.bf16.msra.mxu1 %v18581_v14 }
 0xef2   :  { %15715 = vmatprep.subr.bf16.mxu1 %v17833_v0  ;;  %15786 = vmatpush3.bf16.msra.mxu0 %v18678_v41 }
 0xef3   :  { %15799 = vmatprep.subr.bf16.mxu0 %v17833_v0 }
 0xef4   :  { %13489 = vmatmul.mubr.msk.f32.vlgmr.msra.gmra.mrb[26].mxu1 %vm258_vm1, %v2235_v42 }
 0xef5   :  { %15717 = vmatpush3.bf16.msra.mxu1 %v18569_v5  ;;  %13526 = vmatprep.mubr.msk.f32.mxu1 %vm17834_vm0, %v17835_v1 }
 0xef6   :  { %15718 = vmatprep.subr.bf16.mxu1 %v17833_v0 }
 0xef9   :  { %15720 = vmatpush3.bf16.msra.mxu1 %v18573_v8 }
 0xefa   :  { %15721 = vmatprep.subr.bf16.mxu1 %v17833_v0 }
 0xefd   :  { %15723 = vmatpush3.bf16.msra.mxu1 %v18577_v7 }
 0xefe   :  { %v2546_v44 = vpop.f32.mrb[34].mxu0  ;;  %15724 = vmatprep.subr.bf16.mxu1 %v17833_v0 }
 0xeff   :  { %v13509_v45 = vpop.f32.mrb[35].mxu0  ;;  %v2547_v2 = vadd.f32 %v11651_v51, %v2546_v44 }
 0xf01   :  { %15726 = vmatpush3.bf16.msra.mxu1 %v18581_v14 }
 0xf02   :  { %15739 = vmatprep.subr.bf16.mxu1 %v17833_v0 }
 0xf04   :  { %13527 = vmatmul.mubr.msk.f32.vlgmr.msra.gmra.mrb[28].mxu1 %vm258_vm1, %v2237_v46  ;;  %v3473_v46 = vld [vmem:[#allocation5 + $0xd8] sm:$0xff] }
 0xf05   :  { %15741 = vmatpush3.bf16.msra.mxu1 %v18569_v5  ;;  %13564 = vmatprep.mubr.msk.f32.mxu1 %vm17834_vm0, %v17835_v1 }
 0xf06   :  { %15742 = vmatprep.subr.bf16.mxu1 %v17833_v0 }
 0xf09   :  { %15744 = vmatpush3.bf16.msra.mxu1 %v18573_v8 }
 0xf0a   :  { %15745 = vmatprep.subr.bf16.mxu1 %v17833_v0 }
 0xf0d   :  { %15747 = vmatpush3.bf16.msra.mxu1 %v18577_v7 }
 0xf0e   :  { %v2692_v48 = vpop.f32.mrb[36].mxu0  ;;  %15748 = vmatprep.subr.bf16.mxu1 %v17833_v0 }
 0xf0f   :  { %v13547_v49 = vpop.f32.mrb[37].mxu0  ;;  %v2693_v53 = vadd.f32 %v11651_v51, %v2692_v48 }
 0xf10   :  { %v3474_v49 = vld [vmem:[#allocation5 + $0xe0] sm:$0xff] }
 0xf11   :  { %15750 = vmatpush3.bf16.msra.mxu1 %v18581_v14 }
 0xf12   :  { %15763 = vmatprep.subr.bf16.mxu1 %v17833_v0 }
 0xf14   :  { %13565 = vmatmul.mubr.msk.f32.vlgmr.msra.gmra.mrb[30].mxu1 %vm258_vm1, %v2239_v50  ;;  %v3475_v50 = vld [vmem:[#allocation5 + $0xe8] sm:$0xff] }
 0xf15   :  { %15765 = vmatpush3.bf16.msra.mxu1 %v18654_v30  ;;  %13602 = vmatprep.mubr.msk.f32.mxu1 %vm17834_vm0, %v17835_v1 }
 0xf16   :  { %15766 = vmatprep.subr.bf16.mxu1 %v17833_v0 }
 0xf19   :  { %15768 = vmatpush3.bf16.msra.mxu1 %v18664_v32 }
 0xf1a   :  { %15769 = vmatprep.subr.bf16.mxu1 %v17833_v0 }
 0xf1d   :  { %15771 = vmatpush3.bf16.msra.mxu1 %v18670_v35 }
 0xf1e   :  { %15772 = vmatprep.subr.bf16.mxu1 %v17833_v0 }
 0xf21   :  { %15774 = vmatpush3.bf16.msra.mxu1 %v18678_v41 }
 0xf22   :  { %15787 = vmatprep.subr.bf16.mxu1 %v17833_v0 }
 0xf24   :  { %13603 = vmatmul.mubr.msk.f32.vlgmr.msra.gmra.mrb[32].mxu1 %vm258_vm1, %v2852_v47  ;;  %v18854_v47 = vpack.c.bf16 %v3475_v50, %v3474_v49 }
 0xf25   :  { %15789 = vmatpush3.bf16.msra.mxu1 %v18654_v30  ;;  %13640 = vmatprep.mubr.msk.f32.mxu1 %vm17834_vm0, %v17835_v1 }
 0xf26   :  { %15790 = vmatprep.subr.bf16.mxu1 %v17833_v0 }
 0xf29   :  { %15792 = vmatpush3.bf16.msra.mxu1 %v18664_v32 }
 0xf2a   :  { %15793 = vmatprep.subr.bf16.mxu1 %v17833_v0 }
 0xf2d   :  { %15795 = vmatpush3.bf16.msra.mxu1 %v18670_v35 }
 0xf2e   :  { %15796 = vmatprep.subr.bf16.mxu1 %v17833_v0 }
 0xf31   :  { %15798 = vmatpush3.bf16.msra.mxu1 %v18678_v41 }
 0xf32   :  { %15811 = vmatprep.subr.bf16.mxu1 %v17833_v0 }
 0xfb7   :  { %v2327_v52 = vpop.f32.mrb[24].mxu1  ;;  %v2838_v54 = vpop.f32.mrb[38].mxu0 }
 0xfb8   :  { %v2328_v55 = vadd.f32 %v11651_v51, %v2327_v52  ;;  %v2839_v57 = vadd.f32 %v11651_v51, %v2838_v54  ;;  %v13452_v58 = vpop.f32.mrb[25].mxu1  ;;  %v13585_v60 = vpop.f32.mrb[39].mxu0  ;;  %v3477_v52 = vld [vmem:[#allocation5 + $0xf8] sm:$0xff] }
 0xfba   :  { %v2853_v61 = vsel %vm234_vm2, %v2328_v55, %v2839_v57  ;;  %v18747_v62 = vsel %vm234_vm2, %v2839_v57, %v2328_v55 }
 0xfc7   :  { %v2473_v63 = vpop.f32.mrb[26].mxu1 }
 0xfc8   :  { %v2474_v3 = vadd.f32 %v11651_v51, %v2473_v63  ;;  %v13490_v4 = vpop.f32.mrb[27].mxu1 }
 0xfca   :  { %v3005_v56 = vsel %vm234_vm2, %v2474_v3, %v2693_v53  ;;  %v18753_v59 = vsel %vm234_vm2, %v2693_v53, %v2474_v3 }
 0xfd7   :  { %v2619_v5 = vpop.f32.mrb[28].mxu1 }
 0xfd8   :  { %v2620_v6 = vadd.f32 %v11651_v51, %v2619_v5  ;;  %v13528_v8 = vpop.f32.mrb[29].mxu1  ;;  %v4071_v5 = vld [vmem:[#allocation7 + $0xc0] sm:$0xff] }
 0xfda   :  { %v3081_v9 = vsel %vm234_vm2, %v2547_v2, %v2620_v6  ;;  %v18759_v10 = vsel %vm234_vm2, %v2620_v6, %v2547_v2  ;;  %v4072_v2 = vld [vmem:[#allocation7 + $0xc8] sm:$0xff] }
 0xfe7   :  { %v2765_v7 = vpop.f32.mrb[30].mxu1 }
 0xfe8   :  { %v2766_v12 = vadd.f32 %v11651_v51, %v2765_v7  ;;  %v13566_v14 = vpop.f32.mrb[31].mxu1  ;;  %v3476_v51 = vld [vmem:[#allocation5 + $0xf0] sm:$0xff] }
 0xfe9   :  { %v18858_v54 = vpack.c.bf16 %v3477_v52, %v3476_v51 }
 0xfea   :  { %v2929_v15 = vsel %vm234_vm2, %v2401_v11, %v2766_v12  ;;  %v18766_v16 = vsel %vm234_vm2, %v2766_v12, %v2401_v11  ;;  %v4075_v11 = vld [vmem:[#allocation7 + $0xe0] sm:$0xff]  ;;  %v4076_v12 = vld [vmem:[#allocation7 + $0xe8] sm:$0xff] }
 0xfeb   :  { %v18947_v14 = vpack.c.bf16 %v4076_v12, %v4075_v11 }
 0xff7   :  { %v2923_v17 = vpop.f32.mrb[32].mxu1 }
 0xff8   :  { %v2927_v18 = vadd.f32 %v2923_v17, %v2853_v61  ;;  %v13604_v20 = vpop.f32.mrb[33].mxu1 }
 0xffa   :  { %v18768_v22 = vmax.f32 %v2927_v18, 0.0 }
 0xffc   :  { %13622 = vmatmul.mubr.msk.f32.vlgmr.msra.gmra.mrb[40].mxu0 %vm258_vm1, %v18768_v22 }
 0xffd   :  { %15801 = vmatpush3.bf16.msra.mxu0 %v18654_v30  ;;  %13659 = vmatprep.mubr.msk.f32.mxu0 %vm17834_vm0, %v17835_v1 }
 0xffe   :  { %15802 = vmatprep.subr.bf16.mxu0 %v17833_v0 }
0x1001   :  { %15804 = vmatpush3.bf16.msra.mxu0 %v18664_v32 }
0x1002   :  { %15805 = vmatprep.subr.bf16.mxu0 %v17833_v0 }
0x1005   :  { %15807 = vmatpush3.bf16.msra.mxu0 %v18670_v35 }
0x1006   :  { %15808 = vmatprep.subr.bf16.mxu0 %v17833_v0 }
0x1009   :  { %15810 = vmatpush3.bf16.msra.mxu0 %v18678_v41 }
0x100a   :  { %15823 = vmatprep.subr.bf16.mxu0 %v17833_v0 }
0x10cf   :  { %v2999_v13 = vpop.f32.mrb[40].mxu0 }
0x10d0   :  { %v3003_v24 = vadd.f32 %v2999_v13, %v2929_v15  ;;  %v13623_v25 = vpop.f32.mrb[41].mxu0  ;;  %v4077_v15 = vld [vmem:[#allocation7 + $0xf0] sm:$0xff] }
0x10d2   :  { %v18782_v19 = vmax.f32 %v3003_v24, 0.0 }
0x10d4   :  { %13641 = vmatmul.mubr.msk.f32.vlgmr.msra.gmra.mrb[34].mxu1 %vm258_vm1, %v18782_v19 }
0x10d5   :  { %15813 = vmatpush3.bf16.msra.mxu1 %v18654_v30  ;;  %13678 = vmatprep.mubr.msk.f32.mxu1 %vm17834_vm0, %v17835_v1 }
0x10d6   :  { %15814 = vmatprep.subr.bf16.mxu1 %v17833_v0 }
0x10d9   :  { %15816 = vmatpush3.bf16.msra.mxu1 %v18664_v32 }
0x10da   :  { %15817 = vmatprep.subr.bf16.mxu1 %v17833_v0 }
0x10dd   :  { %15819 = vmatpush3.bf16.msra.mxu1 %v18670_v35 }
0x10de   :  { %15820 = vmatprep.subr.bf16.mxu1 %v17833_v0 }
0x10e1   :  { %15822 = vmatpush3.bf16.msra.mxu1 %v18678_v41 }
0x10e2   :  { %15835 = vmatprep.subr.bf16.mxu1 %v17833_v0 }
0x11a7   :  { %v3075_v23 = vpop.f32.mrb[34].mxu1 }
0x11a8   :  { %v3079_v27 = vadd.f32 %v3075_v23, %v3005_v56  ;;  %v13642_v26 = vpop.f32.mrb[35].mxu1 }
0x11aa   :  { %v18796_v28 = vmax.f32 %v3079_v27, 0.0 }
0x11ac   :  { %13660 = vmatmul.mubr.msk.f32.vlgmr.msra.gmra.mrb[42].mxu0 %vm258_vm1, %v18796_v28 }
0x11ad   :  { %15825 = vmatpush3.bf16.msra.mxu0 %v18654_v30  ;;  %13697 = vmatprep.mubr.msk.f32.mxu0 %vm17834_vm0, %v17835_v1 }
0x11ae   :  { %15826 = vmatprep.subr.bf16.mxu0 %v17833_v0 }
0x11b1   :  { %15828 = vmatpush3.bf16.msra.mxu0 %v18664_v32 }
0x11b2   :  { %15829 = vmatprep.subr.bf16.mxu0 %v17833_v0 }
0x11b5   :  { %15831 = vmatpush3.bf16.msra.mxu0 %v18670_v35 }
0x11b6   :  { %15832 = vmatprep.subr.bf16.mxu0 %v17833_v0 }
0x11b9   :  { %15834 = vmatpush3.bf16.msra.mxu0 %v18678_v41 }
0x11ba   :  { %15847 = vmatprep.subr.bf16.mxu0 %v17833_v0 }
0x127f   :  { %v3151_v29 = vpop.f32.mrb[42].mxu0 }
0x1280   :  { %v3155_v21 = vadd.f32 %v3151_v29, %v3081_v9  ;;  %v13661_v31 = vpop.f32.mrb[43].mxu0  ;;  %v18931_v9 = vpack.c.bf16 %v4072_v2, %v4071_v5 }
0x1282   :  { %v18810_v33 = vmax.f32 %v3155_v21, 0.0 }
0x1284   :  { %13679 = vmatmul.mubr.msk.f32.vlgmr.msra.gmra.mrb[36].mxu1 %vm258_vm1, %v18810_v33 }
0x1285   :  { %15837 = vmatpush3.bf16.msra.mxu1 %v18654_v30  ;;  %13716 = vmatprep.mubr.msk.f32.mxu1 %vm17834_vm0, %v17835_v1 }
0x1286   :  { %15838 = vmatprep.subr.bf16.mxu1 %v17833_v0 }
0x1289   :  { %15840 = vmatpush3.bf16.msra.mxu1 %v18664_v32 }
0x128a   :  { %15841 = vmatprep.subr.bf16.mxu1 %v17833_v0 }
0x128d   :  { %15843 = vmatpush3.bf16.msra.mxu1 %v18670_v35 }
0x128e   :  { %15844 = vmatprep.subr.bf16.mxu1 %v17833_v0 }
0x1291   :  { %15846 = vmatpush3.bf16.msra.mxu1 %v18678_v41 }
0x1292   :  { %15859 = vmatprep.subr.bf16.mxu1 %v17833_v0 }
0x1357   :  { %v3227_v34 = vpop.f32.mrb[36].mxu1 }
0x1358   :  { %v3231_v36 = vadd.f32 %v3227_v34, %v18759_v10  ;;  %v13680_v38 = vpop.f32.mrb[37].mxu1  ;;  %v4074_v10 = vld [vmem:[#allocation7 + $0xd8] sm:$0xff] }
0x135a   :  { %v18825_v39 = vmax.f32 %v3231_v36, 0.0 }
0x135c   :  { %13698 = vmatmul.mubr.msk.f32.vlgmr.msra.gmra.mrb[44].mxu0 %vm258_vm1, %v18825_v39  ;;  %v3464_v63 = vsel %vm234_vm2, %v18810_v33, %v18825_v39  ;;  %v3465_v25 = vsel %vm234_vm2, %v18825_v39, %v18810_v33 }
0x135d   :  { %15849 = vmatpush3.bf16.msra.mxu0 %v18654_v30  ;;  %13735 = vmatprep.mubr.msk.f32.mxu0 %vm17834_vm0, %v17835_v1 }
0x135e   :  { %15850 = vmatprep.subr.bf16.mxu0 %v17833_v0 }
0x1361   :  { %15852 = vmatpush3.bf16.msra.mxu0 %v18664_v32  ;;  %v3470_v32 = vld [vmem:[#allocation5 + $0xc0] sm:$0xff] }
0x1362   :  { %15853 = vmatprep.subr.bf16.mxu0 %v17833_v0 }
0x1365   :  { %15855 = vmatpush3.bf16.msra.mxu0 %v18670_v35  ;;  %v3471_v35 = vld [vmem:[#allocation5 + $0xc8] sm:$0xff] }
0x1366   :  { %15856 = vmatprep.subr.bf16.mxu0 %v17833_v0  ;;  %v18846_v45 = vpack.c.bf16 %v3471_v35, %v3470_v32 }
0x1369   :  { %15858 = vmatpush3.bf16.msra.mxu0 %v18678_v41  ;;  %v3472_v41 = vld [vmem:[#allocation5 + $0xd0] sm:$0xff] }
0x136a   :  { %15871 = vmatprep.subr.bf16.mxu0 %v17833_v0  ;;  %v18850_v48 = vpack.c.bf16 %v3473_v46, %v3472_v41 }
0x142f   :  { %v3303_v40 = vpop.f32.mrb[44].mxu0 }
0x1430   :  { %v3307_v30 = vadd.f32 %v3303_v40, %v18753_v59  ;;  %v13699_v42 = vpop.f32.mrb[45].mxu0 }
0x1432   :  { %v18840_v44 = vmax.f32 %v3307_v30, 0.0 }
0x1434   :  { %13717 = vmatmul.mubr.msk.f32.vlgmr.msra.gmra.mrb[38].mxu1 %vm258_vm1, %v18840_v44  ;;  %v3466_v53 = vsel %vm234_vm2, %v18840_v44, %v18796_v28 }
0x1435   :  { %13754 = vmatprep.mubr.msk.f32.mxu1 %vm17834_vm0, %v17835_v1  ;;  %15861 = vmatpush3.bf16.msra.mxu1 %v18846_v45 }
0x1436   :  { %15862 = vmatprep.subr.bf16.mxu1 %v17833_v0 }
0x1439   :  { %15864 = vmatpush3.bf16.msra.mxu1 %v18850_v48 }
0x143a   :  { %15865 = vmatprep.subr.bf16.mxu1 %v17833_v0 }
0x143d   :  { %15867 = vmatpush3.bf16.msra.mxu1 %v18854_v47 }
0x143e   :  { %15868 = vmatprep.subr.bf16.mxu1 %v17833_v0 }
0x1441   :  { %15870 = vmatpush3.bf16.msra.mxu1 %v18858_v54 }
0x1442   :  { %15883 = vmatprep.subr.bf16.mxu1 %v17833_v0 }
0x1507   :  { %v3379_v55 = vpop.f32.mrb[38].mxu1 }
0x1508   :  { %v3383_v57 = vadd.f32 %v3379_v55, %v18766_v16  ;;  %v13718_v58 = vpop.f32.mrb[39].mxu1  ;;  %v4078_v16 = vld [vmem:[#allocation7 + $0xf8] sm:$0xff] }
0x1509   :  { %v18955_v20 = vpack.c.bf16 %v4078_v16, %v4077_v15 }
0x150a   :  { %v18863_v60 = vmax.f32 %v3383_v57, 0.0 }
0x150c   :  { %13736 = vmatmul.mubr.msk.f32.vlgmr.msra.gmra.mrb[46].mxu0 %vm258_vm1, %v18863_v60  ;;  %v3462_v61 = vsel %vm234_vm2, %v18782_v19, %v18863_v60  ;;  %v3467_v26 = vsel %vm234_vm2, %v18863_v60, %v18782_v19  ;;  %v4080_v19 = vld [vmem:[#allocation8 + $0x18] sm:$0xff] }
0x150d   :  { %15873 = vmatpush3.bf16.msra.mxu0 %v18846_v45  ;;  %13773 = vmatprep.mubr.msk.f32.mxu0 %vm17834_vm0, %v17835_v1 }
0x150e   :  { %15874 = vmatprep.subr.bf16.mxu0 %v17833_v0 }
0x1511   :  { %15876 = vmatpush3.bf16.msra.mxu0 %v18850_v48 }
0x1512   :  { %15877 = vmatprep.subr.bf16.mxu0 %v17833_v0 }
0x1515   :  { %15879 = vmatpush3.bf16.msra.mxu0 %v18854_v47 }
0x1516   :  { %15880 = vmatprep.subr.bf16.mxu0 %v17833_v0 }
0x1519   :  { %15882 = vmatpush3.bf16.msra.mxu0 %v18858_v54 }
0x151a   :  { %15895 = vmatprep.subr.bf16.mxu0 %v17833_v0 }
0x151c   :  { %13774 = vmatmul.mubr.msk.f32.vlgmr.msra.gmra.mrb[48].mxu0 %vm258_vm1, %v3462_v61 }
0x151d   :  { %15897 = vmatpush3.bf16.msra.mxu0 %v18846_v45  ;;  %13811 = vmatprep.mubr.msk.f32.mxu0 %vm17834_vm0, %v17835_v1 }
0x151e   :  { %15898 = vmatprep.subr.bf16.mxu0 %v17833_v0 }
0x1521   :  { %15900 = vmatpush3.bf16.msra.mxu0 %v18850_v48 }
0x1522   :  { %15901 = vmatprep.subr.bf16.mxu0 %v17833_v0 }
0x1525   :  { %15903 = vmatpush3.bf16.msra.mxu0 %v18854_v47 }
0x1526   :  { %15904 = vmatprep.subr.bf16.mxu0 %v17833_v0 }
0x1529   :  { %15906 = vmatpush3.bf16.msra.mxu0 %v18858_v54 }
0x152a   :  { %15919 = vmatprep.subr.bf16.mxu0 %v17833_v0 }
0x152c   :  { %13812 = vmatmul.mubr.msk.f32.vlgmr.msra.gmra.mrb[50].mxu0 %vm258_vm1, %v3464_v63 }
0x152d   :  { %15921 = vmatpush3.bf16.msra.mxu0 %v18846_v45  ;;  %13849 = vmatprep.mubr.msk.f32.mxu0 %vm17834_vm0, %v17835_v1 }
0x152e   :  { %15922 = vmatprep.subr.bf16.mxu0 %v17833_v0 }
0x1531   :  { %15924 = vmatpush3.bf16.msra.mxu0 %v18850_v48 }
0x1532   :  { %15925 = vmatprep.subr.bf16.mxu0 %v17833_v0 }
0x1535   :  { %15927 = vmatpush3.bf16.msra.mxu0 %v18854_v47 }
0x1536   :  { %15928 = vmatprep.subr.bf16.mxu0 %v17833_v0 }
0x1539   :  { %15930 = vmatpush3.bf16.msra.mxu0 %v18858_v54 }
0x153a   :  { %15943 = vmatprep.subr.bf16.mxu0 %v17833_v0 }
0x153c   :  { %13850 = vmatmul.mubr.msk.f32.vlgmr.msra.gmra.mrb[52].mxu0 %vm258_vm1, %v3466_v53 }
0x153d   :  { %15945 = vmatpush3.bf16.msra.mxu0 %v18846_v45  ;;  %13887 = vmatprep.mubr.msk.f32.mxu0 %vm17834_vm0, %v17835_v1 }
0x153e   :  { %15946 = vmatprep.subr.bf16.mxu0 %v17833_v0 }
0x1541   :  { %15948 = vmatpush3.bf16.msra.mxu0 %v18850_v48 }
0x1542   :  { %15949 = vmatprep.subr.bf16.mxu0 %v17833_v0 }
0x1545   :  { %15951 = vmatpush3.bf16.msra.mxu0 %v18854_v47 }
0x1546   :  { %15952 = vmatprep.subr.bf16.mxu0 %v17833_v0 }
0x1549   :  { %15954 = vmatpush3.bf16.msra.mxu0 %v18858_v54 }
0x154a   :  { %15967 = vmatprep.subr.bf16.mxu0 %v17833_v0 }
0x15df   :  { %v3455_v3 = vpop.f32.mrb[46].mxu0 }
0x15e0   :  { %v3459_v4 = vadd.f32 %v3455_v3, %v18747_v62  ;;  %v13737_v56 = vpop.f32.mrb[47].mxu0  ;;  %v4073_v62 = vld [vmem:[#allocation7 + $0xd0] sm:$0xff] }
0x15e1   :  { %v18941_v7 = vpack.c.bf16 %v4074_v10, %v4073_v62 }
0x15e2   :  { %v3460_v59 = vmax.f32 %v3459_v4, 0.0 }
0x15e4   :  { %v3461_v6 = vsel %vm234_vm2, %v18768_v22, %v3460_v59  ;;  %v3468_v8 = vsel %vm234_vm2, %v3460_v59, %v18768_v22  ;;  %v3463_v22 = vsel %vm234_vm2, %v18796_v28, %v18840_v44  ;;  %v11669_v28 = vld [vmem:[%s20425_s3 + $0x3] ss:$0 sm:$0xff] }
0x15e5   :  { %13755 = vmatmul.mubr.msk.f32.vlgmr.msra.gmra.mrb[40].mxu1 %vm258_vm1, %v3461_v6  ;;  %13888 = vmatmul.mubr.msk.f32.vlgmr.msra.gmra.mrb[54].mxu0 %vm258_vm1, %v3468_v8 }
0x15e6   :  { %15885 = vmatpush3.bf16.msra.mxu1 %v18846_v45  ;;  %13792 = vmatprep.mubr.msk.f32.mxu1 %vm17834_vm0, %v17835_v1 }
0x15e7   :  { %15886 = vmatprep.subr.bf16.mxu1 %v17833_v0  ;;  %15969 = vmatpush3.bf16.msra.mxu0 %v18931_v9 }
0x15e8   :  { %15970 = vmatprep.subr.bf16.mxu0 %v17833_v0  ;;  %13925 = vmatprep.mubr.msk.f32.mxu0 %vm17834_vm0, %v17835_v1 }
0x15ea   :  { %15888 = vmatpush3.bf16.msra.mxu1 %v18850_v48 }
0x15eb   :  { %15889 = vmatprep.subr.bf16.mxu1 %v17833_v0  ;;  %15972 = vmatpush3.bf16.msra.mxu0 %v18941_v7 }
0x15ec   :  { %15973 = vmatprep.subr.bf16.mxu0 %v17833_v0 }
0x15ee   :  { %15891 = vmatpush3.bf16.msra.mxu1 %v18854_v47 }
0x15ef   :  { %v18950_v17 = vpop.f32.mrb[48].mxu0  ;;  %15892 = vmatprep.subr.bf16.mxu1 %v17833_v0  ;;  %15975 = vmatpush3.bf16.msra.mxu0 %v18947_v14 }
0x15f0   :  { %v13775_v18 = vpop.f32.mrb[49].mxu0  ;;  %15976 = vmatprep.subr.bf16.mxu0 %v17833_v0  ;;  %v3629_v51 = vadd.f32 %v11669_v28, %v18950_v17 }
0x15f2   :  { %15894 = vmatpush3.bf16.msra.mxu1 %v18858_v54 }
0x15f3   :  { %15907 = vmatprep.subr.bf16.mxu1 %v17833_v0  ;;  %15978 = vmatpush3.bf16.msra.mxu0 %v18955_v20 }
0x15f4   :  { %15991 = vmatprep.subr.bf16.mxu0 %v17833_v0 }
0x15f5   :  { %13793 = vmatmul.mubr.msk.f32.vlgmr.msra.gmra.mrb[42].mxu1 %vm258_vm1, %v3463_v22 }
0x15f6   :  { %15909 = vmatpush3.bf16.msra.mxu1 %v18846_v45  ;;  %13830 = vmatprep.mubr.msk.f32.mxu1 %vm17834_vm0, %v17835_v1 }
0x15f7   :  { %15910 = vmatprep.subr.bf16.mxu1 %v17833_v0 }
0x15fa   :  { %15912 = vmatpush3.bf16.msra.mxu1 %v18850_v48 }
0x15fb   :  { %15913 = vmatprep.subr.bf16.mxu1 %v17833_v0 }
0x15fe   :  { %15915 = vmatpush3.bf16.msra.mxu1 %v18854_v47 }
0x15ff   :  { %v3774_v13 = vpop.f32.mrb[50].mxu0  ;;  %15916 = vmatprep.subr.bf16.mxu1 %v17833_v0 }
0x1600   :  { %v13813_v24 = vpop.f32.mrb[51].mxu0  ;;  %v3775_v41 = vadd.f32 %v11669_v28, %v3774_v13 }
0x1602   :  { %15918 = vmatpush3.bf16.msra.mxu1 %v18858_v54 }
0x1603   :  { %15931 = vmatprep.subr.bf16.mxu1 %v17833_v0 }
0x1605   :  { %13831 = vmatmul.mubr.msk.f32.vlgmr.msra.gmra.mrb[44].mxu1 %vm258_vm1, %v3465_v25  ;;  %v4701_v25 = vld [vmem:[#allocation5 + $0x118] sm:$0xff] }
0x1606   :  { %15933 = vmatpush3.bf16.msra.mxu1 %v18846_v45  ;;  %13868 = vmatprep.mubr.msk.f32.mxu1 %vm17834_vm0, %v17835_v1 }
0x1607   :  { %15934 = vmatprep.subr.bf16.mxu1 %v17833_v0 }
0x160a   :  { %15936 = vmatpush3.bf16.msra.mxu1 %v18850_v48 }
0x160b   :  { %15937 = vmatprep.subr.bf16.mxu1 %v17833_v0 }
0x160e   :  { %15939 = vmatpush3.bf16.msra.mxu1 %v18854_v47 }
0x160f   :  { %v3920_v23 = vpop.f32.mrb[52].mxu0  ;;  %15940 = vmatprep.subr.bf16.mxu1 %v17833_v0 }
0x1610   :  { %v13851_v27 = vpop.f32.mrb[53].mxu0  ;;  %v3921_v30 = vadd.f32 %v11669_v28, %v3920_v23 }
0x1611   :  { %v4702_v27 = vld [vmem:[#allocation5 + $0x120] sm:$0xff] }
0x1612   :  { %15942 = vmatpush3.bf16.msra.mxu1 %v18858_v54 }
0x1613   :  { %15955 = vmatprep.subr.bf16.mxu1 %v17833_v0 }
0x1615   :  { %13869 = vmatmul.mubr.msk.f32.vlgmr.msra.gmra.mrb[46].mxu1 %vm258_vm1, %v3467_v26  ;;  %v4703_v26 = vld [vmem:[#allocation5 + $0x128] sm:$0xff] }
0x1616   :  { %15957 = vmatpush3.bf16.msra.mxu1 %v18931_v9  ;;  %13906 = vmatprep.mubr.msk.f32.mxu1 %vm17834_vm0, %v17835_v1 }
0x1617   :  { %15958 = vmatprep.subr.bf16.mxu1 %v17833_v0 }
0x161a   :  { %15960 = vmatpush3.bf16.msra.mxu1 %v18941_v7 }
0x161b   :  { %15961 = vmatprep.subr.bf16.mxu1 %v17833_v0 }
0x161e   :  { %15963 = vmatpush3.bf16.msra.mxu1 %v18947_v14 }
0x161f   :  { %15964 = vmatprep.subr.bf16.mxu1 %v17833_v0 }
0x1622   :  { %15966 = vmatpush3.bf16.msra.mxu1 %v18955_v20 }
0x1623   :  { %15979 = vmatprep.subr.bf16.mxu1 %v17833_v0 }
0x1625   :  { %13907 = vmatmul.mubr.msk.f32.vlgmr.msra.gmra.mrb[48].mxu1 %vm258_vm1, %v4080_v19  ;;  %v19131_v19 = vpack.c.bf16 %v4703_v26, %v4702_v27 }
0x1626   :  { %15981 = vmatpush3.bf16.msra.mxu1 %v18931_v9  ;;  %13944 = vmatprep.mubr.msk.f32.mxu1 %vm17834_vm0, %v17835_v1 }
0x1627   :  { %15982 = vmatprep.subr.bf16.mxu1 %v17833_v0 }
0x162a   :  { %15984 = vmatpush3.bf16.msra.mxu1 %v18941_v7 }
0x162b   :  { %15985 = vmatprep.subr.bf16.mxu1 %v17833_v0 }
0x162e   :  { %15987 = vmatpush3.bf16.msra.mxu1 %v18947_v14 }
0x162f   :  { %15988 = vmatprep.subr.bf16.mxu1 %v17833_v0 }
0x1632   :  { %15990 = vmatpush3.bf16.msra.mxu1 %v18955_v20 }
0x1633   :  { %16003 = vmatprep.subr.bf16.mxu1 %v17833_v0 }
0x16b8   :  { %v3555_v29 = vpop.f32.mrb[40].mxu1  ;;  %v4066_v21 = vpop.f32.mrb[54].mxu0 }
0x16b9   :  { %v3556_v31 = vadd.f32 %v11669_v28, %v3555_v29  ;;  %v4067_v33 = vadd.f32 %v11669_v28, %v4066_v21  ;;  %v13756_v34 = vpop.f32.mrb[41].mxu1  ;;  %v13889_v36 = vpop.f32.mrb[55].mxu0  ;;  %v4705_v29 = vld [vmem:[#allocation5 + $0x138] sm:$0xff] }
0x16bb   :  { %v4081_v38 = vsel %vm234_vm2, %v3556_v31, %v4067_v33  ;;  %v19024_v39 = vsel %vm234_vm2, %v4067_v33, %v3556_v31 }
0x16c8   :  { %v3701_v40 = vpop.f32.mrb[42].mxu1 }
0x16c9   :  { %v3702_v42 = vadd.f32 %v11669_v28, %v3701_v40  ;;  %v13794_v44 = vpop.f32.mrb[43].mxu1 }
0x16cb   :  { %v4233_v32 = vsel %vm234_vm2, %v3702_v42, %v3921_v30  ;;  %v19030_v35 = vsel %vm234_vm2, %v3921_v30, %v3702_v42 }
0x16d8   :  { %v3847_v45 = vpop.f32.mrb[44].mxu1 }
0x16d9   :  { %v3848_v46 = vadd.f32 %v11669_v28, %v3847_v45  ;;  %v13832_v48 = vpop.f32.mrb[45].mxu1  ;;  %v5299_v45 = vld [vmem:[#allocation7 + $0x100] sm:$0xff] }
0x16db   :  { %v4309_v49 = vsel %vm234_vm2, %v3775_v41, %v3848_v46  ;;  %v19036_v50 = vsel %vm234_vm2, %v3848_v46, %v3775_v41  ;;  %v5300_v41 = vld [vmem:[#allocation7 + $0x108] sm:$0xff] }
0x16e8   :  { %v3993_v47 = vpop.f32.mrb[46].mxu1 }
0x16e9   :  { %v3994_v52 = vadd.f32 %v11669_v28, %v3993_v47  ;;  %v13870_v54 = vpop.f32.mrb[47].mxu1  ;;  %v4704_v28 = vld [vmem:[#allocation5 + $0x130] sm:$0xff] }
0x16ea   :  { %v19135_v21 = vpack.c.bf16 %v4705_v29, %v4704_v28 }
0x16eb   :  { %v4157_v55 = vsel %vm234_vm2, %v3629_v51, %v3994_v52  ;;  %v19043_v57 = vsel %vm234_vm2, %v3994_v52, %v3629_v51  ;;  %v5303_v51 = vld [vmem:[#allocation7 + $0x120] sm:$0xff]  ;;  %v5304_v52 = vld [vmem:[#allocation7 + $0x128] sm:$0xff] }
0x16ec   :  { %v19224_v54 = vpack.c.bf16 %v5304_v52, %v5303_v51 }
0x16f8   :  { %v4151_v58 = vpop.f32.mrb[48].mxu1 }
0x16f9   :  { %v4155_v60 = vadd.f32 %v4151_v58, %v4081_v38  ;;  %v13908_v61 = vpop.f32.mrb[49].mxu1 }
0x16fb   :  { %v19045_v63 = vmax.f32 %v4155_v60, 0.0 }
0x16fd   :  { %13926 = vmatmul.mubr.msk.f32.vlgmr.msra.gmra.mrb[56].mxu0 %vm258_vm1, %v19045_v63 }
0x16fe   :  { %15993 = vmatpush3.bf16.msra.mxu0 %v18931_v9  ;;  %13963 = vmatprep.mubr.msk.f32.mxu0 %vm17834_vm0, %v17835_v1 }
0x16ff   :  { %15994 = vmatprep.subr.bf16.mxu0 %v17833_v0 }
0x1702   :  { %15996 = vmatpush3.bf16.msra.mxu0 %v18941_v7 }
0x1703   :  { %15997 = vmatprep.subr.bf16.mxu0 %v17833_v0 }
0x1706   :  { %15999 = vmatpush3.bf16.msra.mxu0 %v18947_v14 }
0x1707   :  { %16000 = vmatprep.subr.bf16.mxu0 %v17833_v0 }
0x170a   :  { %16002 = vmatpush3.bf16.msra.mxu0 %v18955_v20 }
0x170b   :  { %16015 = vmatprep.subr.bf16.mxu0 %v17833_v0 }
0x17d0   :  { %v4227_v53 = vpop.f32.mrb[56].mxu0 }
0x17d1   :  { %v4231_v3 = vadd.f32 %v4227_v53, %v4157_v55  ;;  %v13927_v4 = vpop.f32.mrb[57].mxu0  ;;  %v5305_v55 = vld [vmem:[#allocation7 + $0x130] sm:$0xff] }
0x17d3   :  { %v19059_v56 = vmax.f32 %v4231_v3, 0.0 }
0x17d5   :  { %13945 = vmatmul.mubr.msk.f32.vlgmr.msra.gmra.mrb[50].mxu1 %vm258_vm1, %v19059_v56 }
0x17d6   :  { %16005 = vmatpush3.bf16.msra.mxu1 %v18931_v9  ;;  %13982 = vmatprep.mubr.msk.f32.mxu1 %vm17834_vm0, %v17835_v1 }
0x17d7   :  { %16006 = vmatprep.subr.bf16.mxu1 %v17833_v0 }
0x17da   :  { %16008 = vmatpush3.bf16.msra.mxu1 %v18941_v7 }
0x17db   :  { %16009 = vmatprep.subr.bf16.mxu1 %v17833_v0 }
0x17de   :  { %16011 = vmatpush3.bf16.msra.mxu1 %v18947_v14 }
0x17df   :  { %16012 = vmatprep.subr.bf16.mxu1 %v17833_v0 }
0x17e2   :  { %16014 = vmatpush3.bf16.msra.mxu1 %v18955_v20 }
0x17e3   :  { %16027 = vmatprep.subr.bf16.mxu1 %v17833_v0 }
0x18a8   :  { %v4303_v59 = vpop.f32.mrb[50].mxu1 }
0x18a9   :  { %v4307_v5 = vadd.f32 %v4303_v59, %v4233_v32  ;;  %v13946_v2 = vpop.f32.mrb[51].mxu1 }
0x18ab   :  { %v19073_v6 = vmax.f32 %v4307_v5, 0.0 }
0x18ad   :  { %13964 = vmatmul.mubr.msk.f32.vlgmr.msra.gmra.mrb[58].mxu0 %vm258_vm1, %v19073_v6 }
0x18ae   :  { %16017 = vmatpush3.bf16.msra.mxu0 %v18931_v9  ;;  %14001 = vmatprep.mubr.msk.f32.mxu0 %vm17834_vm0, %v17835_v1 }
0x18af   :  { %16018 = vmatprep.subr.bf16.mxu0 %v17833_v0 }
0x18b2   :  { %16020 = vmatpush3.bf16.msra.mxu0 %v18941_v7 }
0x18b3   :  { %16021 = vmatprep.subr.bf16.mxu0 %v17833_v0 }
0x18b6   :  { %16023 = vmatpush3.bf16.msra.mxu0 %v18947_v14 }
0x18b7   :  { %16024 = vmatprep.subr.bf16.mxu0 %v17833_v0 }
0x18ba   :  { %16026 = vmatpush3.bf16.msra.mxu0 %v18955_v20 }
0x18bb   :  { %16039 = vmatprep.subr.bf16.mxu0 %v17833_v0 }
0x1980   :  { %v4379_v8 = vpop.f32.mrb[58].mxu0 }
0x1981   :  { %v4383_v62 = vadd.f32 %v4379_v8, %v4309_v49  ;;  %v13965_v10 = vpop.f32.mrb[59].mxu0  ;;  %v19208_v49 = vpack.c.bf16 %v5300_v41, %v5299_v45 }
0x1983   :  { %v19087_v11 = vmax.f32 %v4383_v62, 0.0 }
0x1985   :  { %13983 = vmatmul.mubr.msk.f32.vlgmr.msra.gmra.mrb[52].mxu1 %vm258_vm1, %v19087_v11 }
0x1986   :  { %16029 = vmatpush3.bf16.msra.mxu1 %v18931_v9  ;;  %14020 = vmatprep.mubr.msk.f32.mxu1 %vm17834_vm0, %v17835_v1 }
0x1987   :  { %16030 = vmatprep.subr.bf16.mxu1 %v17833_v0 }
0x198a   :  { %16032 = vmatpush3.bf16.msra.mxu1 %v18941_v7 }
0x198b   :  { %16033 = vmatprep.subr.bf16.mxu1 %v17833_v0 }
0x198e   :  { %16035 = vmatpush3.bf16.msra.mxu1 %v18947_v14 }
0x198f   :  { %16036 = vmatprep.subr.bf16.mxu1 %v17833_v0 }
0x1992   :  { %16038 = vmatpush3.bf16.msra.mxu1 %v18955_v20 }
0x1993   :  { %16051 = vmatprep.subr.bf16.mxu1 %v17833_v0 }
0x1a58   :  { %v4455_v12 = vpop.f32.mrb[52].mxu1 }
0x1a59   :  { %v4459_v15 = vadd.f32 %v4455_v12, %v19036_v50  ;;  %v13984_v16 = vpop.f32.mrb[53].mxu1  ;;  %v5302_v50 = vld [vmem:[#allocation7 + $0x118] sm:$0xff] }
0x1a5b   :  { %v19102_v17 = vmax.f32 %v4459_v15, 0.0 }
0x1a5d   :  { %14002 = vmatmul.mubr.msk.f32.vlgmr.msra.gmra.mrb[60].mxu0 %vm258_vm1, %v19102_v17  ;;  %v4692_v40 = vsel %vm234_vm2, %v19087_v11, %v19102_v17  ;;  %v4693_v4 = vsel %vm234_vm2, %v19102_v17, %v19087_v11 }
0x1a5e   :  { %16041 = vmatpush3.bf16.msra.mxu0 %v18931_v9  ;;  %14039 = vmatprep.mubr.msk.f32.mxu0 %vm17834_vm0, %v17835_v1 }
0x1a5f   :  { %16042 = vmatprep.subr.bf16.mxu0 %v17833_v0 }
0x1a62   :  { %16044 = vmatpush3.bf16.msra.mxu0 %v18941_v7  ;;  %v4698_v7 = vld [vmem:[#allocation5 + $0x100] sm:$0xff] }
0x1a63   :  { %16045 = vmatprep.subr.bf16.mxu0 %v17833_v0 }
0x1a66   :  { %16047 = vmatpush3.bf16.msra.mxu0 %v18947_v14  ;;  %v4699_v14 = vld [vmem:[#allocation5 + $0x108] sm:$0xff] }
0x1a67   :  { %16048 = vmatprep.subr.bf16.mxu0 %v17833_v0  ;;  %v19123_v24 = vpack.c.bf16 %v4699_v14, %v4698_v7 }
0x1a6a   :  { %16050 = vmatpush3.bf16.msra.mxu0 %v18955_v20  ;;  %v4700_v20 = vld [vmem:[#allocation5 + $0x110] sm:$0xff] }
0x1a6b   :  { %16063 = vmatprep.subr.bf16.mxu0 %v17833_v0  ;;  %v19127_v23 = vpack.c.bf16 %v4701_v25, %v4700_v20 }
0x1b30   :  { %v4531_v18 = vpop.f32.mrb[60].mxu0 }
0x1b31   :  { %v4535_v9 = vadd.f32 %v4531_v18, %v19030_v35  ;;  %v14003_v22 = vpop.f32.mrb[61].mxu0 }
0x1b33   :  { %v19117_v13 = vmax.f32 %v4535_v9, 0.0 }
0x1b35   :  { %14021 = vmatmul.mubr.msk.f32.vlgmr.msra.gmra.mrb[54].mxu1 %vm258_vm1, %v19117_v13  ;;  %v4694_v30 = vsel %vm234_vm2, %v19117_v13, %v19073_v6 }
0x1b36   :  { %14058 = vmatprep.mubr.msk.f32.mxu1 %vm17834_vm0, %v17835_v1  ;;  %16053 = vmatpush3.bf16.msra.mxu1 %v19123_v24 }
0x1b37   :  { %16054 = vmatprep.subr.bf16.mxu1 %v17833_v0 }
0x1b3a   :  { %16056 = vmatpush3.bf16.msra.mxu1 %v19127_v23 }
0x1b3b   :  { %16057 = vmatprep.subr.bf16.mxu1 %v17833_v0 }
0x1b3e   :  { %16059 = vmatpush3.bf16.msra.mxu1 %v19131_v19 }
0x1b3f   :  { %16060 = vmatprep.subr.bf16.mxu1 %v17833_v0 }
0x1b42   :  { %16062 = vmatpush3.bf16.msra.mxu1 %v19135_v21 }
0x1b43   :  { %16075 = vmatprep.subr.bf16.mxu1 %v17833_v0 }
0x1c08   :  { %v4607_v31 = vpop.f32.mrb[54].mxu1 }
0x1c09   :  { %v4611_v33 = vadd.f32 %v4607_v31, %v19043_v57  ;;  %v14022_v34 = vpop.f32.mrb[55].mxu1  ;;  %v5306_v57 = vld [vmem:[#allocation7 + $0x138] sm:$0xff] }
0x1c0a   :  { %v19232_v61 = vpack.c.bf16 %v5306_v57, %v5305_v55 }
0x1c0b   :  { %v19140_v36 = vmax.f32 %v4611_v33, 0.0 }
0x1c0d   :  { %14040 = vmatmul.mubr.msk.f32.vlgmr.msra.gmra.mrb[62].mxu0 %vm258_vm1, %v19140_v36  ;;  %v4690_v38 = vsel %vm234_vm2, %v19059_v56, %v19140_v36  ;;  %v4695_v2 = vsel %vm234_vm2, %v19140_v36, %v19059_v56  ;;  %v5308_v56 = vld [vmem:[#allocation8 + $0x20] sm:$0xff] }
0x1c0e   :  { %16065 = vmatpush3.bf16.msra.mxu0 %v19123_v24  ;;  %14077 = vmatprep.mubr.msk.f32.mxu0 %vm17834_vm0, %v17835_v1 }
0x1c0f   :  { %16066 = vmatprep.subr.bf16.mxu0 %v17833_v0 }
0x1c12   :  { %16068 = vmatpush3.bf16.msra.mxu0 %v19127_v23 }
0x1c13   :  { %16069 = vmatprep.subr.bf16.mxu0 %v17833_v0 }
0x1c16   :  { %16071 = vmatpush3.bf16.msra.mxu0 %v19131_v19 }
0x1c17   :  { %16072 = vmatprep.subr.bf16.mxu0 %v17833_v0 }
0x1c1a   :  { %16074 = vmatpush3.bf16.msra.mxu0 %v19135_v21 }
0x1c1b   :  { %16087 = vmatprep.subr.bf16.mxu0 %v17833_v0 }
0x1c1d   :  { %14078 = vmatmul.mubr.msk.f32.vlgmr.msra.gmra.mrb[64].mxu0 %vm258_vm1, %v4690_v38 }
0x1c1e   :  { %16089 = vmatpush3.bf16.msra.mxu0 %v19123_v24  ;;  %14115 = vmatprep.mubr.msk.f32.mxu0 %vm17834_vm0, %v17835_v1 }
0x1c1f   :  { %16090 = vmatprep.subr.bf16.mxu0 %v17833_v0 }
0x1c22   :  { %16092 = vmatpush3.bf16.msra.mxu0 %v19127_v23 }
0x1c23   :  { %16093 = vmatprep.subr.bf16.mxu0 %v17833_v0 }
0x1c26   :  { %16095 = vmatpush3.bf16.msra.mxu0 %v19131_v19 }
0x1c27   :  { %16096 = vmatprep.subr.bf16.mxu0 %v17833_v0 }
0x1c2a   :  { %16098 = vmatpush3.bf16.msra.mxu0 %v19135_v21 }
0x1c2b   :  { %16111 = vmatprep.subr.bf16.mxu0 %v17833_v0 }
0x1c2d   :  { %14116 = vmatmul.mubr.msk.f32.vlgmr.msra.gmra.mrb[66].mxu0 %vm258_vm1, %v4692_v40 }
0x1c2e   :  { %16113 = vmatpush3.bf16.msra.mxu0 %v19123_v24  ;;  %14153 = vmatprep.mubr.msk.f32.mxu0 %vm17834_vm0, %v17835_v1 }
0x1c2f   :  { %16114 = vmatprep.subr.bf16.mxu0 %v17833_v0 }
0x1c32   :  { %16116 = vmatpush3.bf16.msra.mxu0 %v19127_v23 }
0x1c33   :  { %16117 = vmatprep.subr.bf16.mxu0 %v17833_v0 }
0x1c36   :  { %16119 = vmatpush3.bf16.msra.mxu0 %v19131_v19 }
0x1c37   :  { %16120 = vmatprep.subr.bf16.mxu0 %v17833_v0 }
0x1c3a   :  { %16122 = vmatpush3.bf16.msra.mxu0 %v19135_v21 }
0x1c3b   :  { %16135 = vmatprep.subr.bf16.mxu0 %v17833_v0 }
0x1c3d   :  { %14154 = vmatmul.mubr.msk.f32.vlgmr.msra.gmra.mrb[68].mxu0 %vm258_vm1, %v4694_v30 }
0x1c3e   :  { %16137 = vmatpush3.bf16.msra.mxu0 %v19123_v24  ;;  %14191 = vmatprep.mubr.msk.f32.mxu0 %vm17834_vm0, %v17835_v1 }
0x1c3f   :  { %16138 = vmatprep.subr.bf16.mxu0 %v17833_v0 }
0x1c42   :  { %16140 = vmatpush3.bf16.msra.mxu0 %v19127_v23 }
0x1c43   :  { %16141 = vmatprep.subr.bf16.mxu0 %v17833_v0 }
0x1c46   :  { %16143 = vmatpush3.bf16.msra.mxu0 %v19131_v19 }
0x1c47   :  { %16144 = vmatprep.subr.bf16.mxu0 %v17833_v0 }
0x1c4a   :  { %16146 = vmatpush3.bf16.msra.mxu0 %v19135_v21 }
0x1c4b   :  { %16159 = vmatprep.subr.bf16.mxu0 %v17833_v0 }
0x1ce0   :  { %v4683_v42 = vpop.f32.mrb[62].mxu0 }
0x1ce1   :  { %v4687_v44 = vadd.f32 %v4683_v42, %v19024_v39  ;;  %v14041_v32 = vpop.f32.mrb[63].mxu0  ;;  %v5301_v39 = vld [vmem:[#allocation7 + $0x110] sm:$0xff] }
0x1ce2   :  { %v19218_v47 = vpack.c.bf16 %v5302_v50, %v5301_v39 }
0x1ce3   :  { %v4688_v35 = vmax.f32 %v4687_v44, 0.0 }
0x1ce5   :  { %v4689_v46 = vsel %vm234_vm2, %v19045_v63, %v4688_v35  ;;  %v4696_v48 = vsel %vm234_vm2, %v4688_v35, %v19045_v63  ;;  %v4691_v63 = vsel %vm234_vm2, %v19073_v6, %v19117_v13  ;;  %v11687_v6 = vld [vmem:[%s20425_s3 + $0x4] ss:$0 sm:$0xff] }
0x1ce6   :  { %14059 = vmatmul.mubr.msk.f32.vlgmr.msra.gmra.mrb[56].mxu1 %vm258_vm1, %v4689_v46  ;;  %14192 = vmatmul.mubr.msk.f32.vlgmr.msra.gmra.mrb[70].mxu0 %vm258_vm1, %v4696_v48 }
0x1ce7   :  { %16077 = vmatpush3.bf16.msra.mxu1 %v19123_v24  ;;  %14096 = vmatprep.mubr.msk.f32.mxu1 %vm17834_vm0, %v17835_v1 }
0x1ce8   :  { %16078 = vmatprep.subr.bf16.mxu1 %v17833_v0  ;;  %16161 = vmatpush3.bf16.msra.mxu0 %v19208_v49 }
0x1ce9   :  { %16162 = vmatprep.subr.bf16.mxu0 %v17833_v0  ;;  %14229 = vmatprep.mubr.msk.f32.mxu0 %vm17834_vm0, %v17835_v1 }
0x1ceb   :  { %16080 = vmatpush3.bf16.msra.mxu1 %v19127_v23 }
0x1cec   :  { %16081 = vmatprep.subr.bf16.mxu1 %v17833_v0  ;;  %16164 = vmatpush3.bf16.msra.mxu0 %v19218_v47 }
0x1ced   :  { %16165 = vmatprep.subr.bf16.mxu0 %v17833_v0 }
0x1cef   :  { %16083 = vmatpush3.bf16.msra.mxu1 %v19131_v19 }
0x1cf0   :  { %v19227_v58 = vpop.f32.mrb[64].mxu0  ;;  %16084 = vmatprep.subr.bf16.mxu1 %v17833_v0  ;;  %16167 = vmatpush3.bf16.msra.mxu0 %v19224_v54 }
0x1cf1   :  { %v14079_v60 = vpop.f32.mrb[65].mxu0  ;;  %16168 = vmatprep.subr.bf16.mxu0 %v17833_v0  ;;  %v4857_v28 = vadd.f32 %v11687_v6, %v19227_v58 }
0x1cf3   :  { %16086 = vmatpush3.bf16.msra.mxu1 %v19135_v21 }
0x1cf4   :  { %16099 = vmatprep.subr.bf16.mxu1 %v17833_v0  ;;  %16170 = vmatpush3.bf16.msra.mxu0 %v19232_v61 }
0x1cf5   :  { %16183 = vmatprep.subr.bf16.mxu0 %v17833_v0 }
0x1cf6   :  { %14097 = vmatmul.mubr.msk.f32.vlgmr.msra.gmra.mrb[58].mxu1 %vm258_vm1, %v4691_v63 }
0x1cf7   :  { %16101 = vmatpush3.bf16.msra.mxu1 %v19123_v24  ;;  %14134 = vmatprep.mubr.msk.f32.mxu1 %vm17834_vm0, %v17835_v1 }
0x1cf8   :  { %16102 = vmatprep.subr.bf16.mxu1 %v17833_v0 }
0x1cfb   :  { %16104 = vmatpush3.bf16.msra.mxu1 %v19127_v23 }
0x1cfc   :  { %16105 = vmatprep.subr.bf16.mxu1 %v17833_v0 }
0x1cff   :  { %16107 = vmatpush3.bf16.msra.mxu1 %v19131_v19 }
0x1d00   :  { %v5002_v53 = vpop.f32.mrb[66].mxu0  ;;  %16108 = vmatprep.subr.bf16.mxu1 %v17833_v0 }
0x1d01   :  { %v14117_v3 = vpop.f32.mrb[67].mxu0  ;;  %v5003_v20 = vadd.f32 %v11687_v6, %v5002_v53 }
0x1d03   :  { %16110 = vmatpush3.bf16.msra.mxu1 %v19135_v21 }
0x1d04   :  { %16123 = vmatprep.subr.bf16.mxu1 %v17833_v0 }
0x1d06   :  { %14135 = vmatmul.mubr.msk.f32.vlgmr.msra.gmra.mrb[60].mxu1 %vm258_vm1, %v4693_v4  ;;  %v5929_v4 = vld [vmem:[#allocation5 + $0x158] sm:$0xff] }
0x1d07   :  { %16125 = vmatpush3.bf16.msra.mxu1 %v19123_v24  ;;  %14172 = vmatprep.mubr.msk.f32.mxu1 %vm17834_vm0, %v17835_v1 }
0x1d08   :  { %16126 = vmatprep.subr.bf16.mxu1 %v17833_v0 }
0x1d0b   :  { %16128 = vmatpush3.bf16.msra.mxu1 %v19127_v23 }
0x1d0c   :  { %16129 = vmatprep.subr.bf16.mxu1 %v17833_v0 }
0x1d0f   :  { %16131 = vmatpush3.bf16.msra.mxu1 %v19131_v19 }
0x1d10   :  { %v5148_v59 = vpop.f32.mrb[68].mxu0  ;;  %16132 = vmatprep.subr.bf16.mxu1 %v17833_v0 }
0x1d11   :  { %v14155_v5 = vpop.f32.mrb[69].mxu0  ;;  %v5149_v9 = vadd.f32 %v11687_v6, %v5148_v59 }
0x1d12   :  { %v5930_v5 = vld [vmem:[#allocation5 + $0x160] sm:$0xff] }
0x1d13   :  { %16134 = vmatpush3.bf16.msra.mxu1 %v19135_v21 }
0x1d14   :  { %16147 = vmatprep.subr.bf16.mxu1 %v17833_v0 }
0x1d16   :  { %14173 = vmatmul.mubr.msk.f32.vlgmr.msra.gmra.mrb[62].mxu1 %vm258_vm1, %v4695_v2  ;;  %v5931_v2 = vld [vmem:[#allocation5 + $0x168] sm:$0xff] }
0x1d17   :  { %16149 = vmatpush3.bf16.msra.mxu1 %v19208_v49  ;;  %14210 = vmatprep.mubr.msk.f32.mxu1 %vm17834_vm0, %v17835_v1 }
0x1d18   :  { %16150 = vmatprep.subr.bf16.mxu1 %v17833_v0 }
0x1d1b   :  { %16152 = vmatpush3.bf16.msra.mxu1 %v19218_v47 }
0x1d1c   :  { %16153 = vmatprep.subr.bf16.mxu1 %v17833_v0 }
0x1d1f   :  { %16155 = vmatpush3.bf16.msra.mxu1 %v19224_v54 }
0x1d20   :  { %16156 = vmatprep.subr.bf16.mxu1 %v17833_v0 }
0x1d23   :  { %16158 = vmatpush3.bf16.msra.mxu1 %v19232_v61 }
0x1d24   :  { %16171 = vmatprep.subr.bf16.mxu1 %v17833_v0 }
0x1d26   :  { %14211 = vmatmul.mubr.msk.f32.vlgmr.msra.gmra.mrb[64].mxu1 %vm258_vm1, %v5308_v56  ;;  %v19408_v56 = vpack.c.bf16 %v5931_v2, %v5930_v5 }
0x1d27   :  { %16173 = vmatpush3.bf16.msra.mxu1 %v19208_v49  ;;  %14248 = vmatprep.mubr.msk.f32.mxu1 %vm17834_vm0, %v17835_v1 }
0x1d28   :  { %16174 = vmatprep.subr.bf16.mxu1 %v17833_v0 }
0x1d2b   :  { %16176 = vmatpush3.bf16.msra.mxu1 %v19218_v47 }
0x1d2c   :  { %16177 = vmatprep.subr.bf16.mxu1 %v17833_v0 }
0x1d2f   :  { %16179 = vmatpush3.bf16.msra.mxu1 %v19224_v54 }
0x1d30   :  { %16180 = vmatprep.subr.bf16.mxu1 %v17833_v0 }
0x1d33   :  { %16182 = vmatpush3.bf16.msra.mxu1 %v19232_v61 }
0x1d34   :  { %16195 = vmatprep.subr.bf16.mxu1 %v17833_v0 }
0x1db9   :  { %v4783_v8 = vpop.f32.mrb[56].mxu1  ;;  %v5294_v62 = vpop.f32.mrb[70].mxu0 }
0x1dba   :  { %v4784_v10 = vadd.f32 %v11687_v6, %v4783_v8  ;;  %v5295_v11 = vadd.f32 %v11687_v6, %v5294_v62  ;;  %v14060_v12 = vpop.f32.mrb[57].mxu1  ;;  %v14193_v15 = vpop.f32.mrb[71].mxu0  ;;  %v5933_v8 = vld [vmem:[#allocation5 + $0x178] sm:$0xff] }
0x1dbc   :  { %v5309_v16 = vsel %vm234_vm2, %v4784_v10, %v5295_v11  ;;  %v19301_v17 = vsel %vm234_vm2, %v5295_v11, %v4784_v10 }
0x1dc9   :  { %v4929_v18 = vpop.f32.mrb[58].mxu1 }
0x1dca   :  { %v4930_v22 = vadd.f32 %v11687_v6, %v4929_v18  ;;  %v14098_v13 = vpop.f32.mrb[59].mxu1 }
0x1dcc   :  { %v5461_v7 = vsel %vm234_vm2, %v4930_v22, %v5149_v9  ;;  %v19307_v14 = vsel %vm234_vm2, %v5149_v9, %v4930_v22 }
0x1dd9   :  { %v5075_v24 = vpop.f32.mrb[60].mxu1 }
0x1dda   :  { %v5076_v25 = vadd.f32 %v11687_v6, %v5075_v24  ;;  %v14136_v23 = vpop.f32.mrb[61].mxu1  ;;  %v6527_v24 = vld [vmem:[#allocation7 + $0x140] sm:$0xff] }
0x1ddc   :  { %v5537_v27 = vsel %vm234_vm2, %v5003_v20, %v5076_v25  ;;  %v19313_v26 = vsel %vm234_vm2, %v5076_v25, %v5003_v20  ;;  %v6528_v20 = vld [vmem:[#allocation7 + $0x148] sm:$0xff] }
0x1de9   :  { %v5221_v19 = vpop.f32.mrb[62].mxu1 }
0x1dea   :  { %v5222_v29 = vadd.f32 %v11687_v6, %v5221_v19  ;;  %v14174_v21 = vpop.f32.mrb[63].mxu1  ;;  %v5932_v6 = vld [vmem:[#allocation5 + $0x170] sm:$0xff] }
0x1deb   :  { %v19412_v62 = vpack.c.bf16 %v5933_v8, %v5932_v6 }
0x1dec   :  { %v5385_v31 = vsel %vm234_vm2, %v4857_v28, %v5222_v29  ;;  %v19320_v33 = vsel %vm234_vm2, %v5222_v29, %v4857_v28  ;;  %v6531_v28 = vld [vmem:[#allocation7 + $0x160] sm:$0xff]  ;;  %v6532_v29 = vld [vmem:[#allocation7 + $0x168] sm:$0xff] }
0x1ded   :  { %v19501_v21 = vpack.c.bf16 %v6532_v29, %v6531_v28 }
0x1df9   :  { %v5379_v34 = vpop.f32.mrb[64].mxu1 }
0x1dfa   :  { %v5383_v36 = vadd.f32 %v5379_v34, %v5309_v16  ;;  %v14212_v38 = vpop.f32.mrb[65].mxu1 }
0x1dfc   :  { %v19322_v40 = vmax.f32 %v5383_v36, 0.0 }
0x1dfe   :  { %14230 = vmatmul.mubr.msk.f32.vlgmr.msra.gmra.mrb[72].mxu0 %vm258_vm1, %v19322_v40 }
0x1dff   :  { %16185 = vmatpush3.bf16.msra.mxu0 %v19208_v49  ;;  %14267 = vmatprep.mubr.msk.f32.mxu0 %vm17834_vm0, %v17835_v1 }
0x1e00   :  { %16186 = vmatprep.subr.bf16.mxu0 %v17833_v0 }
0x1e03   :  { %16188 = vmatpush3.bf16.msra.mxu0 %v19218_v47 }
0x1e04   :  { %16189 = vmatprep.subr.bf16.mxu0 %v17833_v0 }
0x1e07   :  { %16191 = vmatpush3.bf16.msra.mxu0 %v19224_v54 }
0x1e08   :  { %16192 = vmatprep.subr.bf16.mxu0 %v17833_v0 }
0x1e0b   :  { %16194 = vmatpush3.bf16.msra.mxu0 %v19232_v61 }
0x1e0c   :  { %16207 = vmatprep.subr.bf16.mxu0 %v17833_v0 }
0x1ed1   :  { %v5455_v30 = vpop.f32.mrb[72].mxu0 }
0x1ed2   :  { %v5459_v42 = vadd.f32 %v5455_v30, %v5385_v31  ;;  %v14231_v44 = vpop.f32.mrb[73].mxu0  ;;  %v6533_v31 = vld [vmem:[#allocation7 + $0x170] sm:$0xff] }
0x1ed4   :  { %v19336_v32 = vmax.f32 %v5459_v42, 0.0 }
0x1ed6   :  { %14249 = vmatmul.mubr.msk.f32.vlgmr.msra.gmra.mrb[66].mxu1 %vm258_vm1, %v19336_v32 }
0x1ed7   :  { %16197 = vmatpush3.bf16.msra.mxu1 %v19208_v49  ;;  %14286 = vmatprep.mubr.msk.f32.mxu1 %vm17834_vm0, %v17835_v1 }
0x1ed8   :  { %16198 = vmatprep.subr.bf16.mxu1 %v17833_v0 }
0x1edb   :  { %16200 = vmatpush3.bf16.msra.mxu1 %v19218_v47 }
0x1edc   :  { %16201 = vmatprep.subr.bf16.mxu1 %v17833_v0 }
0x1edf   :  { %16203 = vmatpush3.bf16.msra.mxu1 %v19224_v54 }
0x1ee0   :  { %16204 = vmatprep.subr.bf16.mxu1 %v17833_v0 }
0x1ee3   :  { %16206 = vmatpush3.bf16.msra.mxu1 %v19232_v61 }
0x1ee4   :  { %16219 = vmatprep.subr.bf16.mxu1 %v17833_v0 }
0x1fa9   :  { %v5531_v35 = vpop.f32.mrb[66].mxu1 }
0x1faa   :  { %v5535_v45 = vadd.f32 %v5531_v35, %v5461_v7  ;;  %v14250_v41 = vpop.f32.mrb[67].mxu1 }
0x1fac   :  { %v19350_v46 = vmax.f32 %v5535_v45, 0.0 }
0x1fae   :  { %14268 = vmatmul.mubr.msk.f32.vlgmr.msra.gmra.mrb[74].mxu0 %vm258_vm1, %v19350_v46 }
0x1faf   :  { %16209 = vmatpush3.bf16.msra.mxu0 %v19208_v49  ;;  %14305 = vmatprep.mubr.msk.f32.mxu0 %vm17834_vm0, %v17835_v1 }
0x1fb0   :  { %16210 = vmatprep.subr.bf16.mxu0 %v17833_v0 }
0x1fb3   :  { %16212 = vmatpush3.bf16.msra.mxu0 %v19218_v47 }
0x1fb4   :  { %16213 = vmatprep.subr.bf16.mxu0 %v17833_v0 }
0x1fb7   :  { %16215 = vmatpush3.bf16.msra.mxu0 %v19224_v54 }
0x1fb8   :  { %16216 = vmatprep.subr.bf16.mxu0 %v17833_v0 }
0x1fbb   :  { %16218 = vmatpush3.bf16.msra.mxu0 %v19232_v61 }
0x1fbc   :  { %16231 = vmatprep.subr.bf16.mxu0 %v17833_v0 }
0x2081   :  { %v5607_v48 = vpop.f32.mrb[74].mxu0 }
0x2082   :  { %v5611_v39 = vadd.f32 %v5607_v48, %v5537_v27  ;;  %v14269_v50 = vpop.f32.mrb[75].mxu0  ;;  %v19485_v27 = vpack.c.bf16 %v6528_v20, %v6527_v24 }
0x2084   :  { %v19364_v51 = vmax.f32 %v5611_v39, 0.0 }
0x2086   :  { %14287 = vmatmul.mubr.msk.f32.vlgmr.msra.gmra.mrb[68].mxu1 %vm258_vm1, %v19364_v51 }
0x2087   :  { %16221 = vmatpush3.bf16.msra.mxu1 %v19208_v49  ;;  %14324 = vmatprep.mubr.msk.f32.mxu1 %vm17834_vm0, %v17835_v1 }
0x2088   :  { %16222 = vmatprep.subr.bf16.mxu1 %v17833_v0 }
0x208b   :  { %16224 = vmatpush3.bf16.msra.mxu1 %v19218_v47 }
0x208c   :  { %16225 = vmatprep.subr.bf16.mxu1 %v17833_v0 }
0x208f   :  { %16227 = vmatpush3.bf16.msra.mxu1 %v19224_v54 }
0x2090   :  { %16228 = vmatprep.subr.bf16.mxu1 %v17833_v0 }
0x2093   :  { %16230 = vmatpush3.bf16.msra.mxu1 %v19232_v61 }
0x2094   :  { %16243 = vmatprep.subr.bf16.mxu1 %v17833_v0 }
0x2159   :  { %v5683_v52 = vpop.f32.mrb[68].mxu1 }
0x215a   :  { %v5687_v55 = vadd.f32 %v5683_v52, %v19313_v26  ;;  %v14288_v57 = vpop.f32.mrb[69].mxu1  ;;  %v6530_v26 = vld [vmem:[#allocation7 + $0x158] sm:$0xff] }
0x215c   :  { %v19379_v58 = vmax.f32 %v5687_v55, 0.0 }
0x215e   :  { %14306 = vmatmul.mubr.msk.f32.vlgmr.msra.gmra.mrb[76].mxu0 %vm258_vm1, %v19379_v58  ;;  %v5920_v18 = vsel %vm234_vm2, %v19364_v51, %v19379_v58  ;;  %v5921_v44 = vsel %vm234_vm2, %v19379_v58, %v19364_v51 }
0x215f   :  { %16233 = vmatpush3.bf16.msra.mxu0 %v19208_v49  ;;  %14343 = vmatprep.mubr.msk.f32.mxu0 %vm17834_vm0, %v17835_v1 }
0x2160   :  { %16234 = vmatprep.subr.bf16.mxu0 %v17833_v0 }
0x2163   :  { %16236 = vmatpush3.bf16.msra.mxu0 %v19218_v47  ;;  %v5926_v47 = vld [vmem:[#allocation5 + $0x140] sm:$0xff] }
0x2164   :  { %16237 = vmatprep.subr.bf16.mxu0 %v17833_v0 }
0x2167   :  { %16239 = vmatpush3.bf16.msra.mxu0 %v19224_v54  ;;  %v5927_v54 = vld [vmem:[#allocation5 + $0x148] sm:$0xff] }
0x2168   :  { %16240 = vmatprep.subr.bf16.mxu0 %v17833_v0  ;;  %v19400_v3 = vpack.c.bf16 %v5927_v54, %v5926_v47 }
0x216b   :  { %16242 = vmatpush3.bf16.msra.mxu0 %v19232_v61  ;;  %v5928_v61 = vld [vmem:[#allocation5 + $0x150] sm:$0xff] }
0x216c   :  { %16255 = vmatprep.subr.bf16.mxu0 %v17833_v0  ;;  %v19404_v59 = vpack.c.bf16 %v5929_v4, %v5928_v61 }
0x2231   :  { %v5759_v60 = vpop.f32.mrb[76].mxu0 }
0x2232   :  { %v5763_v49 = vadd.f32 %v5759_v60, %v19307_v14  ;;  %v14307_v63 = vpop.f32.mrb[77].mxu0 }
0x2234   :  { %v19394_v53 = vmax.f32 %v5763_v49, 0.0 }
0x2236   :  { %14325 = vmatmul.mubr.msk.f32.vlgmr.msra.gmra.mrb[70].mxu1 %vm258_vm1, %v19394_v53  ;;  %v5922_v9 = vsel %vm234_vm2, %v19394_v53, %v19350_v46 }
0x2237   :  { %14362 = vmatprep.mubr.msk.f32.mxu1 %vm17834_vm0, %v17835_v1  ;;  %16245 = vmatpush3.bf16.msra.mxu1 %v19400_v3 }
0x2238   :  { %16246 = vmatprep.subr.bf16.mxu1 %v17833_v0 }
0x223b   :  { %16248 = vmatpush3.bf16.msra.mxu1 %v19404_v59 }
0x223c   :  { %16249 = vmatprep.subr.bf16.mxu1 %v17833_v0 }
0x223f   :  { %16251 = vmatpush3.bf16.msra.mxu1 %v19408_v56 }
0x2240   :  { %16252 = vmatprep.subr.bf16.mxu1 %v17833_v0 }
0x2243   :  { %16254 = vmatpush3.bf16.msra.mxu1 %v19412_v62 }
0x2244   :  { %16267 = vmatprep.subr.bf16.mxu1 %v17833_v0 }
0x2309   :  { %v5835_v10 = vpop.f32.mrb[70].mxu1 }
0x230a   :  { %v5839_v11 = vadd.f32 %v5835_v10, %v19320_v33  ;;  %v14326_v12 = vpop.f32.mrb[71].mxu1  ;;  %v6534_v33 = vld [vmem:[#allocation7 + $0x178] sm:$0xff] }
0x230b   :  { %v19509_v38 = vpack.c.bf16 %v6534_v33, %v6533_v31 }
0x230c   :  { %v19417_v15 = vmax.f32 %v5839_v11, 0.0 }
0x230e   :  { %14344 = vmatmul.mubr.msk.f32.vlgmr.msra.gmra.mrb[78].mxu0 %vm258_vm1, %v19417_v15  ;;  %v5918_v16 = vsel %vm234_vm2, %v19336_v32, %v19417_v15  ;;  %v5923_v41 = vsel %vm234_vm2, %v19417_v15, %v19336_v32  ;;  %v6536_v32 = vld [vmem:[#allocation8 + $0x28] sm:$0xff] }
0x230f   :  { %16257 = vmatpush3.bf16.msra.mxu0 %v19400_v3  ;;  %14381 = vmatprep.mubr.msk.f32.mxu0 %vm17834_vm0, %v17835_v1 }
0x2310   :  { %16258 = vmatprep.subr.bf16.mxu0 %v17833_v0 }
0x2313   :  { %16260 = vmatpush3.bf16.msra.mxu0 %v19404_v59 }
0x2314   :  { %16261 = vmatprep.subr.bf16.mxu0 %v17833_v0 }
0x2317   :  { %16263 = vmatpush3.bf16.msra.mxu0 %v19408_v56 }
0x2318   :  { %16264 = vmatprep.subr.bf16.mxu0 %v17833_v0 }
0x231b   :  { %16266 = vmatpush3.bf16.msra.mxu0 %v19412_v62 }
0x231c   :  { %16279 = vmatprep.subr.bf16.mxu0 %v17833_v0 }
0x231e   :  { %14382 = vmatmul.mubr.msk.f32.vlgmr.msra.gmra.mrb[80].mxu0 %vm258_vm1, %v5918_v16 }
0x231f   :  { %16281 = vmatpush3.bf16.msra.mxu0 %v19400_v3  ;;  %14419 = vmatprep.mubr.msk.f32.mxu0 %vm17834_vm0, %v17835_v1 }
0x2320   :  { %16282 = vmatprep.subr.bf16.mxu0 %v17833_v0 }
0x2323   :  { %16284 = vmatpush3.bf16.msra.mxu0 %v19404_v59 }
0x2324   :  { %16285 = vmatprep.subr.bf16.mxu0 %v17833_v0 }
0x2327   :  { %16287 = vmatpush3.bf16.msra.mxu0 %v19408_v56 }
0x2328   :  { %16288 = vmatprep.subr.bf16.mxu0 %v17833_v0 }
0x232b   :  { %16290 = vmatpush3.bf16.msra.mxu0 %v19412_v62 }
0x232c   :  { %16303 = vmatprep.subr.bf16.mxu0 %v17833_v0 }
0x232e   :  { %14420 = vmatmul.mubr.msk.f32.vlgmr.msra.gmra.mrb[82].mxu0 %vm258_vm1, %v5920_v18 }
0x232f   :  { %16305 = vmatpush3.bf16.msra.mxu0 %v19400_v3  ;;  %14457 = vmatprep.mubr.msk.f32.mxu0 %vm17834_vm0, %v17835_v1 }
0x2330   :  { %16306 = vmatprep.subr.bf16.mxu0 %v17833_v0 }
0x2333   :  { %16308 = vmatpush3.bf16.msra.mxu0 %v19404_v59 }
0x2334   :  { %16309 = vmatprep.subr.bf16.mxu0 %v17833_v0 }
0x2337   :  { %16311 = vmatpush3.bf16.msra.mxu0 %v19408_v56 }
0x2338   :  { %16312 = vmatprep.subr.bf16.mxu0 %v17833_v0 }
0x233b   :  { %16314 = vmatpush3.bf16.msra.mxu0 %v19412_v62 }
0x233c   :  { %16327 = vmatprep.subr.bf16.mxu0 %v17833_v0 }
0x233e   :  { %14458 = vmatmul.mubr.msk.f32.vlgmr.msra.gmra.mrb[84].mxu0 %vm258_vm1, %v5922_v9 }
0x233f   :  { %16329 = vmatpush3.bf16.msra.mxu0 %v19400_v3  ;;  %14495 = vmatprep.mubr.msk.f32.mxu0 %vm17834_vm0, %v17835_v1 }
0x2340   :  { %16330 = vmatprep.subr.bf16.mxu0 %v17833_v0 }
0x2343   :  { %16332 = vmatpush3.bf16.msra.mxu0 %v19404_v59 }
0x2344   :  { %16333 = vmatprep.subr.bf16.mxu0 %v17833_v0 }
0x2347   :  { %16335 = vmatpush3.bf16.msra.mxu0 %v19408_v56 }
0x2348   :  { %16336 = vmatprep.subr.bf16.mxu0 %v17833_v0 }
0x234b   :  { %16338 = vmatpush3.bf16.msra.mxu0 %v19412_v62 }
0x234c   :  { %16351 = vmatprep.subr.bf16.mxu0 %v17833_v0 }
0x23e1   :  { %v5911_v22 = vpop.f32.mrb[78].mxu0 }
0x23e2   :  { %v5915_v13 = vadd.f32 %v5911_v22, %v19301_v17  ;;  %v14345_v7 = vpop.f32.mrb[79].mxu0  ;;  %v6529_v17 = vld [vmem:[#allocation7 + $0x150] sm:$0xff] }
0x23e3   :  { %v19495_v19 = vpack.c.bf16 %v6530_v26, %v6529_v17 }
0x23e4   :  { %v5916_v14 = vmax.f32 %v5915_v13, 0.0 }
0x23e6   :  { %v5917_v25 = vsel %vm234_vm2, %v19322_v40, %v5916_v14  ;;  %v5924_v23 = vsel %vm234_vm2, %v5916_v14, %v19322_v40  ;;  %v5919_v40 = vsel %vm234_vm2, %v19350_v46, %v19394_v53  ;;  %v11705_v46 = vld [vmem:[%s20425_s3 + $0x5] ss:$0 sm:$0xff] }
0x23e7   :  { %14363 = vmatmul.mubr.msk.f32.vlgmr.msra.gmra.mrb[72].mxu1 %vm258_vm1, %v5917_v25  ;;  %14496 = vmatmul.mubr.msk.f32.vlgmr.msra.gmra.mrb[86].mxu0 %vm258_vm1, %v5924_v23 }
0x23e8   :  { %16269 = vmatpush3.bf16.msra.mxu1 %v19400_v3  ;;  %14400 = vmatprep.mubr.msk.f32.mxu1 %vm17834_vm0, %v17835_v1 }
0x23e9   :  { %16270 = vmatprep.subr.bf16.mxu1 %v17833_v0  ;;  %16353 = vmatpush3.bf16.msra.mxu0 %v19485_v27 }
0x23ea   :  { %16354 = vmatprep.subr.bf16.mxu0 %v17833_v0  ;;  %14533 = vmatprep.mubr.msk.f32.mxu0 %vm17834_vm0, %v17835_v1 }
0x23ec   :  { %16272 = vmatpush3.bf16.msra.mxu1 %v19404_v59 }
0x23ed   :  { %16273 = vmatprep.subr.bf16.mxu1 %v17833_v0  ;;  %16356 = vmatpush3.bf16.msra.mxu0 %v19495_v19 }
0x23ee   :  { %16357 = vmatprep.subr.bf16.mxu0 %v17833_v0 }
0x23f0   :  { %16275 = vmatpush3.bf16.msra.mxu1 %v19408_v56 }
0x23f1   :  { %v19504_v34 = vpop.f32.mrb[80].mxu0  ;;  %16276 = vmatprep.subr.bf16.mxu1 %v17833_v0  ;;  %16359 = vmatpush3.bf16.msra.mxu0 %v19501_v21 }
0x23f2   :  { %v14383_v36 = vpop.f32.mrb[81].mxu0  ;;  %16360 = vmatprep.subr.bf16.mxu0 %v17833_v0  ;;  %v6085_v6 = vadd.f32 %v11705_v46, %v19504_v34 }
0x23f4   :  { %16278 = vmatpush3.bf16.msra.mxu1 %v19412_v62 }
0x23f5   :  { %16291 = vmatprep.subr.bf16.mxu1 %v17833_v0  ;;  %16362 = vmatpush3.bf16.msra.mxu0 %v19509_v38 }
0x23f6   :  { %16375 = vmatprep.subr.bf16.mxu0 %v17833_v0 }
0x23f7   :  { %14401 = vmatmul.mubr.msk.f32.vlgmr.msra.gmra.mrb[74].mxu1 %vm258_vm1, %v5919_v40 }
0x23f8   :  { %16293 = vmatpush3.bf16.msra.mxu1 %v19400_v3  ;;  %14438 = vmatprep.mubr.msk.f32.mxu1 %vm17834_vm0, %v17835_v1 }
0x23f9   :  { %16294 = vmatprep.subr.bf16.mxu1 %v17833_v0 }
0x23fc   :  { %16296 = vmatpush3.bf16.msra.mxu1 %v19404_v59 }
0x23fd   :  { %16297 = vmatprep.subr.bf16.mxu1 %v17833_v0 }
0x2400   :  { %16299 = vmatpush3.bf16.msra.mxu1 %v19408_v56 }
0x2401   :  { %v6230_v30 = vpop.f32.mrb[82].mxu0  ;;  %16300 = vmatprep.subr.bf16.mxu1 %v17833_v0 }
0x2402   :  { %v14421_v42 = vpop.f32.mrb[83].mxu0  ;;  %v6231_v61 = vadd.f32 %v11705_v46, %v6230_v30 }
0x2404   :  { %16302 = vmatpush3.bf16.msra.mxu1 %v19412_v62 }
0x2405   :  { %16315 = vmatprep.subr.bf16.mxu1 %v17833_v0 }
0x2407   :  { %14439 = vmatmul.mubr.msk.f32.vlgmr.msra.gmra.mrb[76].mxu1 %vm258_vm1, %v5921_v44  ;;  %v7157_v44 = vld [vmem:[#allocation5 + $0x198] sm:$0xff] }
0x2408   :  { %16317 = vmatpush3.bf16.msra.mxu1 %v19400_v3  ;;  %14476 = vmatprep.mubr.msk.f32.mxu1 %vm17834_vm0, %v17835_v1 }
0x2409   :  { %16318 = vmatprep.subr.bf16.mxu1 %v17833_v0 }
0x240c   :  { %16320 = vmatpush3.bf16.msra.mxu1 %v19404_v59 }
0x240d   :  { %16321 = vmatprep.subr.bf16.mxu1 %v17833_v0 }
0x2410   :  { %16323 = vmatpush3.bf16.msra.mxu1 %v19408_v56 }
0x2411   :  { %v6376_v35 = vpop.f32.mrb[84].mxu0  ;;  %16324 = vmatprep.subr.bf16.mxu1 %v17833_v0 }
0x2412   :  { %v14459_v45 = vpop.f32.mrb[85].mxu0  ;;  %v6377_v49 = vadd.f32 %v11705_v46, %v6376_v35 }
0x2413   :  { %v7158_v45 = vld [vmem:[#allocation5 + $0x1a0] sm:$0xff] }
0x2414   :  { %16326 = vmatpush3.bf16.msra.mxu1 %v19412_v62 }
0x2415   :  { %16339 = vmatprep.subr.bf16.mxu1 %v17833_v0 }
0x2417   :  { %14477 = vmatmul.mubr.msk.f32.vlgmr.msra.gmra.mrb[78].mxu1 %vm258_vm1, %v5923_v41  ;;  %v7159_v41 = vld [vmem:[#allocation5 + $0x1a8] sm:$0xff] }
0x2418   :  { %16341 = vmatpush3.bf16.msra.mxu1 %v19485_v27  ;;  %14514 = vmatprep.mubr.msk.f32.mxu1 %vm17834_vm0, %v17835_v1 }
0x2419   :  { %16342 = vmatprep.subr.bf16.mxu1 %v17833_v0 }
0x241c   :  { %16344 = vmatpush3.bf16.msra.mxu1 %v19495_v19 }
0x241d   :  { %16345 = vmatprep.subr.bf16.mxu1 %v17833_v0 }
0x2420   :  { %16347 = vmatpush3.bf16.msra.mxu1 %v19501_v21 }
0x2421   :  { %16348 = vmatprep.subr.bf16.mxu1 %v17833_v0 }
0x2424   :  { %16350 = vmatpush3.bf16.msra.mxu1 %v19509_v38 }
0x2425   :  { %16363 = vmatprep.subr.bf16.mxu1 %v17833_v0 }
0x2427   :  { %14515 = vmatmul.mubr.msk.f32.vlgmr.msra.gmra.mrb[80].mxu1 %vm258_vm1, %v6536_v32  ;;  %v19685_v32 = vpack.c.bf16 %v7159_v41, %v7158_v45 }
0x2428   :  { %16365 = vmatpush3.bf16.msra.mxu1 %v19485_v27  ;;  %14552 = vmatprep.mubr.msk.f32.mxu1 %vm17834_vm0, %v17835_v1 }
0x2429   :  { %16366 = vmatprep.subr.bf16.mxu1 %v17833_v0 }
0x242c   :  { %16368 = vmatpush3.bf16.msra.mxu1 %v19495_v19 }
0x242d   :  { %16369 = vmatprep.subr.bf16.mxu1 %v17833_v0 }
0x2430   :  { %16371 = vmatpush3.bf16.msra.mxu1 %v19501_v21 }
0x2431   :  { %16372 = vmatprep.subr.bf16.mxu1 %v17833_v0 }
0x2434   :  { %16374 = vmatpush3.bf16.msra.mxu1 %v19509_v38 }
0x2435   :  { %16387 = vmatprep.subr.bf16.mxu1 %v17833_v0 }
0x24ba   :  { %v6011_v48 = vpop.f32.mrb[72].mxu1  ;;  %v6522_v39 = vpop.f32.mrb[86].mxu0 }
0x24bb   :  { %v6012_v50 = vadd.f32 %v11705_v46, %v6011_v48  ;;  %v6523_v51 = vadd.f32 %v11705_v46, %v6522_v39  ;;  %v14364_v52 = vpop.f32.mrb[73].mxu1  ;;  %v14497_v55 = vpop.f32.mrb[87].mxu0  ;;  %v7161_v48 = vld [vmem:[#allocation5 + $0x1b8] sm:$0xff] }
0x24bd   :  { %v6537_v57 = vsel %vm234_vm2, %v6012_v50, %v6523_v51  ;;  %v19578_v58 = vsel %vm234_vm2, %v6523_v51, %v6012_v50 }
0x24ca   :  { %v6157_v60 = vpop.f32.mrb[74].mxu1 }
0x24cb   :  { %v6158_v63 = vadd.f32 %v11705_v46, %v6157_v60  ;;  %v14402_v53 = vpop.f32.mrb[75].mxu1 }
0x24cd   :  { %v6689_v47 = vsel %vm234_vm2, %v6158_v63, %v6377_v49  ;;  %v19584_v54 = vsel %vm234_vm2, %v6377_v49, %v6158_v63 }
0x24da   :  { %v6303_v3 = vpop.f32.mrb[76].mxu1 }
0x24db   :  { %v6304_v4 = vadd.f32 %v11705_v46, %v6303_v3  ;;  %v14440_v59 = vpop.f32.mrb[77].mxu1  ;;  %v7755_v3 = vld [vmem:[#allocation7 + $0x180] sm:$0xff] }
0x24dd   :  { %v6765_v5 = vsel %vm234_vm2, %v6231_v61, %v6304_v4  ;;  %v19590_v2 = vsel %vm234_vm2, %v6304_v4, %v6231_v61  ;;  %v7756_v61 = vld [vmem:[#allocation7 + $0x188] sm:$0xff] }
0x24ea   :  { %v6449_v56 = vpop.f32.mrb[78].mxu1 }
0x24eb   :  { %v6450_v8 = vadd.f32 %v11705_v46, %v6449_v56  ;;  %v14478_v62 = vpop.f32.mrb[79].mxu1  ;;  %v7160_v46 = vld [vmem:[#allocation5 + $0x1b0] sm:$0xff] }
0x24ec   :  { %v19689_v39 = vpack.c.bf16 %v7161_v48, %v7160_v46 }
0x24ed   :  { %v6613_v10 = vsel %vm234_vm2, %v6085_v6, %v6450_v8  ;;  %v19597_v11 = vsel %vm234_vm2, %v6450_v8, %v6085_v6  ;;  %v7759_v6 = vld [vmem:[#allocation7 + $0x1a0] sm:$0xff]  ;;  %v7760_v8 = vld [vmem:[#allocation7 + $0x1a8] sm:$0xff] }
0x24ee   :  { %v19778_v62 = vpack.c.bf16 %v7760_v8, %v7759_v6 }
0x24fa   :  { %v6607_v12 = vpop.f32.mrb[80].mxu1 }
0x24fb   :  { %v6611_v15 = vadd.f32 %v6607_v12, %v6537_v57  ;;  %v14516_v16 = vpop.f32.mrb[81].mxu1 }
0x24fd   :  { %v19599_v18 = vmax.f32 %v6611_v15, 0.0 }
0x24ff   :  { %14534 = vmatmul.mubr.msk.f32.vlgmr.msra.gmra.mrb[88].mxu0 %vm258_vm1, %v19599_v18 }
0x2500   :  { %16377 = vmatpush3.bf16.msra.mxu0 %v19485_v27  ;;  %14571 = vmatprep.mubr.msk.f32.mxu0 %vm17834_vm0, %v17835_v1 }
0x2501   :  { %16378 = vmatprep.subr.bf16.mxu0 %v17833_v0 }
0x2504   :  { %16380 = vmatpush3.bf16.msra.mxu0 %v19495_v19 }
0x2505   :  { %16381 = vmatprep.subr.bf16.mxu0 %v17833_v0 }
0x2508   :  { %16383 = vmatpush3.bf16.msra.mxu0 %v19501_v21 }
0x2509   :  { %16384 = vmatprep.subr.bf16.mxu0 %v17833_v0 }
0x250c   :  { %16386 = vmatpush3.bf16.msra.mxu0 %v19509_v38 }
0x250d   :  { %16399 = vmatprep.subr.bf16.mxu0 %v17833_v0 }
0x25d2   :  { %v6683_v9 = vpop.f32.mrb[88].mxu0 }
0x25d3   :  { %v6687_v22 = vadd.f32 %v6683_v9, %v6613_v10  ;;  %v14535_v13 = vpop.f32.mrb[89].mxu0  ;;  %v7761_v10 = vld [vmem:[#allocation7 + $0x1b0] sm:$0xff] }
0x25d5   :  { %v19613_v7 = vmax.f32 %v6687_v22, 0.0 }
0x25d7   :  { %14553 = vmatmul.mubr.msk.f32.vlgmr.msra.gmra.mrb[82].mxu1 %vm258_vm1, %v19613_v7 }
0x25d8   :  { %16389 = vmatpush3.bf16.msra.mxu1 %v19485_v27  ;;  %14590 = vmatprep.mubr.msk.f32.mxu1 %vm17834_vm0, %v17835_v1 }
0x25d9   :  { %16390 = vmatprep.subr.bf16.mxu1 %v17833_v0 }
0x25dc   :  { %16392 = vmatpush3.bf16.msra.mxu1 %v19495_v19 }
0x25dd   :  { %16393 = vmatprep.subr.bf16.mxu1 %v17833_v0 }
0x25e0   :  { %16395 = vmatpush3.bf16.msra.mxu1 %v19501_v21 }
0x25e1   :  { %16396 = vmatprep.subr.bf16.mxu1 %v17833_v0 }
0x25e4   :  { %16398 = vmatpush3.bf16.msra.mxu1 %v19509_v38 }
0x25e5   :  { %16411 = vmatprep.subr.bf16.mxu1 %v17833_v0 }
0x26aa   :  { %v6759_v14 = vpop.f32.mrb[82].mxu1 }
0x26ab   :  { %v6763_v24 = vadd.f32 %v6759_v14, %v6689_v47  ;;  %v14554_v20 = vpop.f32.mrb[83].mxu1 }
0x26ad   :  { %v19627_v25 = vmax.f32 %v6763_v24, 0.0 }
0x26af   :  { %14572 = vmatmul.mubr.msk.f32.vlgmr.msra.gmra.mrb[90].mxu0 %vm258_vm1, %v19627_v25 }
0x26b0   :  { %16401 = vmatpush3.bf16.msra.mxu0 %v19485_v27  ;;  %14609 = vmatprep.mubr.msk.f32.mxu0 %vm17834_vm0, %v17835_v1 }
0x26b1   :  { %16402 = vmatprep.subr.bf16.mxu0 %v17833_v0 }
0x26b4   :  { %16404 = vmatpush3.bf16.msra.mxu0 %v19495_v19 }
0x26b5   :  { %16405 = vmatprep.subr.bf16.mxu0 %v17833_v0 }
0x26b8   :  { %16407 = vmatpush3.bf16.msra.mxu0 %v19501_v21 }
0x26b9   :  { %16408 = vmatprep.subr.bf16.mxu0 %v17833_v0 }
0x26bc   :  { %16410 = vmatpush3.bf16.msra.mxu0 %v19509_v38 }
0x26bd   :  { %16423 = vmatprep.subr.bf16.mxu0 %v17833_v0 }
0x2782   :  { %v6835_v23 = vpop.f32.mrb[90].mxu0 }
0x2783   :  { %v6839_v17 = vadd.f32 %v6835_v23, %v6765_v5  ;;  %v14573_v26 = vpop.f32.mrb[91].mxu0  ;;  %v19762_v5 = vpack.c.bf16 %v7756_v61, %v7755_v3 }
0x2785   :  { %v19641_v28 = vmax.f32 %v6839_v17, 0.0 }
0x2787   :  { %14591 = vmatmul.mubr.msk.f32.vlgmr.msra.gmra.mrb[84].mxu1 %vm258_vm1, %v19641_v28 }
0x2788   :  { %16413 = vmatpush3.bf16.msra.mxu1 %v19485_v27  ;;  %14628 = vmatprep.mubr.msk.f32.mxu1 %vm17834_vm0, %v17835_v1 }
0x2789   :  { %16414 = vmatprep.subr.bf16.mxu1 %v17833_v0 }
0x278c   :  { %16416 = vmatpush3.bf16.msra.mxu1 %v19495_v19 }
0x278d   :  { %16417 = vmatprep.subr.bf16.mxu1 %v17833_v0 }
0x2790   :  { %16419 = vmatpush3.bf16.msra.mxu1 %v19501_v21 }
0x2791   :  { %16420 = vmatprep.subr.bf16.mxu1 %v17833_v0 }
0x2794   :  { %16422 = vmatpush3.bf16.msra.mxu1 %v19509_v38 }
0x2795   :  { %16435 = vmatprep.subr.bf16.mxu1 %v17833_v0 }
0x285a   :  { %v6911_v29 = vpop.f32.mrb[84].mxu1 }
0x285b   :  { %v6915_v31 = vadd.f32 %v6911_v29, %v19590_v2  ;;  %v14592_v33 = vpop.f32.mrb[85].mxu1  ;;  %v7758_v2 = vld [vmem:[#allocation7 + $0x198] sm:$0xff] }
0x285d   :  { %v19656_v34 = vmax.f32 %v6915_v31, 0.0 }
0x285f   :  { %14610 = vmatmul.mubr.msk.f32.vlgmr.msra.gmra.mrb[92].mxu0 %vm258_vm1, %v19656_v34  ;;  %v7148_v60 = vsel %vm234_vm2, %v19641_v28, %v19656_v34  ;;  %v7149_v13 = vsel %vm234_vm2, %v19656_v34, %v19641_v28 }
0x2860   :  { %16425 = vmatpush3.bf16.msra.mxu0 %v19485_v27  ;;  %14647 = vmatprep.mubr.msk.f32.mxu0 %vm17834_vm0, %v17835_v1 }
0x2861   :  { %16426 = vmatprep.subr.bf16.mxu0 %v17833_v0 }
0x2864   :  { %16428 = vmatpush3.bf16.msra.mxu0 %v19495_v19  ;;  %v7154_v19 = vld [vmem:[#allocation5 + $0x180] sm:$0xff] }
0x2865   :  { %16429 = vmatprep.subr.bf16.mxu0 %v17833_v0 }
0x2868   :  { %16431 = vmatpush3.bf16.msra.mxu0 %v19501_v21  ;;  %v7155_v21 = vld [vmem:[#allocation5 + $0x188] sm:$0xff] }
0x2869   :  { %16432 = vmatprep.subr.bf16.mxu0 %v17833_v0  ;;  %v19677_v42 = vpack.c.bf16 %v7155_v21, %v7154_v19 }
0x286c   :  { %16434 = vmatpush3.bf16.msra.mxu0 %v19509_v38  ;;  %v7156_v38 = vld [vmem:[#allocation5 + $0x190] sm:$0xff] }
0x286d   :  { %16447 = vmatprep.subr.bf16.mxu0 %v17833_v0  ;;  %v19681_v35 = vpack.c.bf16 %v7157_v44, %v7156_v38 }
0x2932   :  { %v6987_v36 = vpop.f32.mrb[92].mxu0 }
0x2933   :  { %v6991_v27 = vadd.f32 %v6987_v36, %v19584_v54  ;;  %v14611_v40 = vpop.f32.mrb[93].mxu0 }
0x2935   :  { %v19671_v30 = vmax.f32 %v6991_v27, 0.0 }
0x2937   :  { %14629 = vmatmul.mubr.msk.f32.vlgmr.msra.gmra.mrb[86].mxu1 %vm258_vm1, %v19671_v30  ;;  %v7150_v49 = vsel %vm234_vm2, %v19671_v30, %v19627_v25 }
0x2938   :  { %14666 = vmatprep.mubr.msk.f32.mxu1 %vm17834_vm0, %v17835_v1  ;;  %16437 = vmatpush3.bf16.msra.mxu1 %v19677_v42 }
0x2939   :  { %16438 = vmatprep.subr.bf16.mxu1 %v17833_v0 }
0x293c   :  { %16440 = vmatpush3.bf16.msra.mxu1 %v19681_v35 }
0x293d   :  { %16441 = vmatprep.subr.bf16.mxu1 %v17833_v0 }
0x2940   :  { %16443 = vmatpush3.bf16.msra.mxu1 %v19685_v32 }
0x2941   :  { %16444 = vmatprep.subr.bf16.mxu1 %v17833_v0 }
0x2944   :  { %16446 = vmatpush3.bf16.msra.mxu1 %v19689_v39 }
0x2945   :  { %16459 = vmatprep.subr.bf16.mxu1 %v17833_v0 }
0x2a0a   :  { %v7063_v50 = vpop.f32.mrb[86].mxu1 }
0x2a0b   :  { %v7067_v51 = vadd.f32 %v7063_v50, %v19597_v11  ;;  %v14630_v52 = vpop.f32.mrb[87].mxu1  ;;  %v7762_v11 = vld [vmem:[#allocation7 + $0x1b8] sm:$0xff] }
0x2a0c   :  { %v19786_v16 = vpack.c.bf16 %v7762_v11, %v7761_v10 }
0x2a0d   :  { %v19694_v55 = vmax.f32 %v7067_v51, 0.0 }
0x2a0f   :  { %14648 = vmatmul.mubr.msk.f32.vlgmr.msra.gmra.mrb[94].mxu0 %vm258_vm1, %v19694_v55  ;;  %v7146_v57 = vsel %vm234_vm2, %v19613_v7, %v19694_v55  ;;  %v7151_v20 = vsel %vm234_vm2, %v19694_v55, %v19613_v7  ;;  %v7764_v7 = vld [vmem:[#allocation8 + $0x30] sm:$0xff] }
0x2a10   :  { %16449 = vmatpush3.bf16.msra.mxu0 %v19677_v42  ;;  %14685 = vmatprep.mubr.msk.f32.mxu0 %vm17834_vm0, %v17835_v1 }
0x2a11   :  { %16450 = vmatprep.subr.bf16.mxu0 %v17833_v0 }
0x2a14   :  { %16452 = vmatpush3.bf16.msra.mxu0 %v19681_v35 }
0x2a15   :  { %16453 = vmatprep.subr.bf16.mxu0 %v17833_v0 }
0x2a18   :  { %16455 = vmatpush3.bf16.msra.mxu0 %v19685_v32 }
0x2a19   :  { %16456 = vmatprep.subr.bf16.mxu0 %v17833_v0 }
0x2a1c   :  { %16458 = vmatpush3.bf16.msra.mxu0 %v19689_v39 }
0x2a1d   :  { %16471 = vmatprep.subr.bf16.mxu0 %v17833_v0 }
0x2a1f   :  { %14686 = vmatmul.mubr.msk.f32.vlgmr.msra.gmra.mrb[96].mxu0 %vm258_vm1, %v7146_v57 }
0x2a20   :  { %16473 = vmatpush3.bf16.msra.mxu0 %v19677_v42  ;;  %14723 = vmatprep.mubr.msk.f32.mxu0 %vm17834_vm0, %v17835_v1 }
0x2a21   :  { %16474 = vmatprep.subr.bf16.mxu0 %v17833_v0 }
0x2a24   :  { %16476 = vmatpush3.bf16.msra.mxu0 %v19681_v35 }
0x2a25   :  { %16477 = vmatprep.subr.bf16.mxu0 %v17833_v0 }
0x2a28   :  { %16479 = vmatpush3.bf16.msra.mxu0 %v19685_v32 }
0x2a29   :  { %16480 = vmatprep.subr.bf16.mxu0 %v17833_v0 }
0x2a2c   :  { %16482 = vmatpush3.bf16.msra.mxu0 %v19689_v39 }
0x2a2d   :  { %16495 = vmatprep.subr.bf16.mxu0 %v17833_v0 }
0x2a2f   :  { %14724 = vmatmul.mubr.msk.f32.vlgmr.msra.gmra.mrb[98].mxu0 %vm258_vm1, %v7148_v60 }
0x2a30   :  { %16497 = vmatpush3.bf16.msra.mxu0 %v19677_v42  ;;  %14761 = vmatprep.mubr.msk.f32.mxu0 %vm17834_vm0, %v17835_v1 }
0x2a31   :  { %16498 = vmatprep.subr.bf16.mxu0 %v17833_v0 }
0x2a34   :  { %16500 = vmatpush3.bf16.msra.mxu0 %v19681_v35 }
0x2a35   :  { %16501 = vmatprep.subr.bf16.mxu0 %v17833_v0 }
0x2a38   :  { %16503 = vmatpush3.bf16.msra.mxu0 %v19685_v32 }
0x2a39   :  { %16504 = vmatprep.subr.bf16.mxu0 %v17833_v0 }
0x2a3c   :  { %16506 = vmatpush3.bf16.msra.mxu0 %v19689_v39 }
0x2a3d   :  { %16519 = vmatprep.subr.bf16.mxu0 %v17833_v0 }
0x2a3f   :  { %14762 = vmatmul.mubr.msk.f32.vlgmr.msra.gmra.mrb[100].mxu0 %vm258_vm1, %v7150_v49 }
0x2a40   :  { %16521 = vmatpush3.bf16.msra.mxu0 %v19677_v42  ;;  %14799 = vmatprep.mubr.msk.f32.mxu0 %vm17834_vm0, %v17835_v1 }
0x2a41   :  { %16522 = vmatprep.subr.bf16.mxu0 %v17833_v0 }
0x2a44   :  { %16524 = vmatpush3.bf16.msra.mxu0 %v19681_v35 }
0x2a45   :  { %16525 = vmatprep.subr.bf16.mxu0 %v17833_v0 }
0x2a48   :  { %16527 = vmatpush3.bf16.msra.mxu0 %v19685_v32 }
0x2a49   :  { %16528 = vmatprep.subr.bf16.mxu0 %v17833_v0 }
0x2a4c   :  { %16530 = vmatpush3.bf16.msra.mxu0 %v19689_v39 }
0x2a4d   :  { %16543 = vmatprep.subr.bf16.mxu0 %v17833_v0 }
0x2ae2   :  { %v7139_v63 = vpop.f32.mrb[94].mxu0 }
0x2ae3   :  { %v7143_v53 = vadd.f32 %v7139_v63, %v19578_v58  ;;  %v14649_v47 = vpop.f32.mrb[95].mxu0  ;;  %v7757_v58 = vld [vmem:[#allocation7 + $0x190] sm:$0xff] }
0x2ae4   :  { %v19772_v56 = vpack.c.bf16 %v7758_v2, %v7757_v58 }
0x2ae5   :  { %v7144_v54 = vmax.f32 %v7143_v53, 0.0 }
0x2ae7   :  { %v7145_v4 = vsel %vm234_vm2, %v19599_v18, %v7144_v54  ;;  %v7152_v59 = vsel %vm234_vm2, %v7144_v54, %v19599_v18  ;;  %v7147_v18 = vsel %vm234_vm2, %v19627_v25, %v19671_v30  ;;  %v11723_v25 = vld [vmem:[%s20425_s3 + $0x6] ss:$0 sm:$0xff] }
0x2ae8   :  { %14667 = vmatmul.mubr.msk.f32.vlgmr.msra.gmra.mrb[88].mxu1 %vm258_vm1, %v7145_v4  ;;  %14800 = vmatmul.mubr.msk.f32.vlgmr.msra.gmra.mrb[102].mxu0 %vm258_vm1, %v7152_v59 }
0x2ae9   :  { %16461 = vmatpush3.bf16.msra.mxu1 %v19677_v42  ;;  %14704 = vmatprep.mubr.msk.f32.mxu1 %vm17834_vm0, %v17835_v1 }
0x2aea   :  { %16462 = vmatprep.subr.bf16.mxu1 %v17833_v0  ;;  %16545 = vmatpush3.bf16.msra.mxu0 %v19762_v5 }
0x2aeb   :  { %16546 = vmatprep.subr.bf16.mxu0 %v17833_v0  ;;  %14837 = vmatprep.mubr.msk.f32.mxu0 %vm17834_vm0, %v17835_v1 }
0x2aed   :  { %16464 = vmatpush3.bf16.msra.mxu1 %v19681_v35 }
0x2aee   :  { %16465 = vmatprep.subr.bf16.mxu1 %v17833_v0  ;;  %16548 = vmatpush3.bf16.msra.mxu0 %v19772_v56 }
0x2aef   :  { %16549 = vmatprep.subr.bf16.mxu0 %v17833_v0 }
0x2af1   :  { %16467 = vmatpush3.bf16.msra.mxu1 %v19685_v32 }
0x2af2   :  { %v19781_v12 = vpop.f32.mrb[96].mxu0  ;;  %16468 = vmatprep.subr.bf16.mxu1 %v17833_v0  ;;  %16551 = vmatpush3.bf16.msra.mxu0 %v19778_v62 }
0x2af3   :  { %v14687_v15 = vpop.f32.mrb[97].mxu0  ;;  %16552 = vmatprep.subr.bf16.mxu0 %v17833_v0  ;;  %v7313_v46 = vadd.f32 %v11723_v25, %v19781_v12 }
0x2af5   :  { %16470 = vmatpush3.bf16.msra.mxu1 %v19689_v39 }
0x2af6   :  { %16483 = vmatprep.subr.bf16.mxu1 %v17833_v0  ;;  %16554 = vmatpush3.bf16.msra.mxu0 %v19786_v16 }
0x2af7   :  { %16567 = vmatprep.subr.bf16.mxu0 %v17833_v0 }
0x2af8   :  { %14705 = vmatmul.mubr.msk.f32.vlgmr.msra.gmra.mrb[90].mxu1 %vm258_vm1, %v7147_v18 }
0x2af9   :  { %16485 = vmatpush3.bf16.msra.mxu1 %v19677_v42  ;;  %14742 = vmatprep.mubr.msk.f32.mxu1 %vm17834_vm0, %v17835_v1 }
0x2afa   :  { %16486 = vmatprep.subr.bf16.mxu1 %v17833_v0 }
0x2afd   :  { %16488 = vmatpush3.bf16.msra.mxu1 %v19681_v35 }
0x2afe   :  { %16489 = vmatprep.subr.bf16.mxu1 %v17833_v0 }
0x2b01   :  { %16491 = vmatpush3.bf16.msra.mxu1 %v19685_v32 }
0x2b02   :  { %v7458_v9 = vpop.f32.mrb[98].mxu0  ;;  %16492 = vmatprep.subr.bf16.mxu1 %v17833_v0 }
0x2b03   :  { %v14725_v22 = vpop.f32.mrb[99].mxu0  ;;  %v7459_v38 = vadd.f32 %v11723_v25, %v7458_v9 }
0x2b05   :  { %16494 = vmatpush3.bf16.msra.mxu1 %v19689_v39 }
0x2b06   :  { %16507 = vmatprep.subr.bf16.mxu1 %v17833_v0 }
0x2b08   :  { %14743 = vmatmul.mubr.msk.f32.vlgmr.msra.gmra.mrb[92].mxu1 %vm258_vm1, %v7149_v13  ;;  %v8385_v13 = vld [vmem:[#allocation5 + $0x1d8] sm:$0xff] }
0x2b09   :  { %16509 = vmatpush3.bf16.msra.mxu1 %v19677_v42  ;;  %14780 = vmatprep.mubr.msk.f32.mxu1 %vm17834_vm0, %v17835_v1 }
0x2b0a   :  { %16510 = vmatprep.subr.bf16.mxu1 %v17833_v0 }
0x2b0d   :  { %16512 = vmatpush3.bf16.msra.mxu1 %v19681_v35 }
0x2b0e   :  { %16513 = vmatprep.subr.bf16.mxu1 %v17833_v0 }
0x2b11   :  { %16515 = vmatpush3.bf16.msra.mxu1 %v19685_v32 }
0x2b12   :  { %v7604_v14 = vpop.f32.mrb[100].mxu0  ;;  %16516 = vmatprep.subr.bf16.mxu1 %v17833_v0 }
0x2b13   :  { %v14763_v24 = vpop.f32.mrb[101].mxu0  ;;  %v7605_v27 = vadd.f32 %v11723_v25, %v7604_v14 }
0x2b14   :  { %v8386_v24 = vld [vmem:[#allocation5 + $0x1e0] sm:$0xff] }
0x2b15   :  { %16518 = vmatpush3.bf16.msra.mxu1 %v19689_v39 }
0x2b16   :  { %16531 = vmatprep.subr.bf16.mxu1 %v17833_v0 }
0x2b18   :  { %14781 = vmatmul.mubr.msk.f32.vlgmr.msra.gmra.mrb[94].mxu1 %vm258_vm1, %v7151_v20  ;;  %v8387_v20 = vld [vmem:[#allocation5 + $0x1e8] sm:$0xff] }
0x2b19   :  { %16533 = vmatpush3.bf16.msra.mxu1 %v19762_v5  ;;  %14818 = vmatprep.mubr.msk.f32.mxu1 %vm17834_vm0, %v17835_v1 }
0x2b1a   :  { %16534 = vmatprep.subr.bf16.mxu1 %v17833_v0 }
0x2b1d   :  { %16536 = vmatpush3.bf16.msra.mxu1 %v19772_v56 }
0x2b1e   :  { %16537 = vmatprep.subr.bf16.mxu1 %v17833_v0 }
0x2b21   :  { %16539 = vmatpush3.bf16.msra.mxu1 %v19778_v62 }
0x2b22   :  { %16540 = vmatprep.subr.bf16.mxu1 %v17833_v0 }
0x2b25   :  { %16542 = vmatpush3.bf16.msra.mxu1 %v19786_v16 }
0x2b26   :  { %16555 = vmatprep.subr.bf16.mxu1 %v17833_v0 }
0x2b28   :  { %14819 = vmatmul.mubr.msk.f32.vlgmr.msra.gmra.mrb[96].mxu1 %vm258_vm1, %v7764_v7  ;;  %v19962_v7 = vpack.c.bf16 %v8387_v20, %v8386_v24 }
0x2b29   :  { %16557 = vmatpush3.bf16.msra.mxu1 %v19762_v5  ;;  %14856 = vmatprep.mubr.msk.f32.mxu1 %vm17834_vm0, %v17835_v1 }
0x2b2a   :  { %16558 = vmatprep.subr.bf16.mxu1 %v17833_v0 }
0x2b2d   :  { %16560 = vmatpush3.bf16.msra.mxu1 %v19772_v56 }
0x2b2e   :  { %16561 = vmatprep.subr.bf16.mxu1 %v17833_v0 }
0x2b31   :  { %16563 = vmatpush3.bf16.msra.mxu1 %v19778_v62 }
0x2b32   :  { %16564 = vmatprep.subr.bf16.mxu1 %v17833_v0 }
0x2b35   :  { %16566 = vmatpush3.bf16.msra.mxu1 %v19786_v16 }
0x2b36   :  { %16579 = vmatprep.subr.bf16.mxu1 %v17833_v0 }
0x2bbb   :  { %v7239_v23 = vpop.f32.mrb[88].mxu1  ;;  %v7750_v17 = vpop.f32.mrb[102].mxu0 }
0x2bbc   :  { %v7240_v26 = vadd.f32 %v11723_v25, %v7239_v23  ;;  %v7751_v28 = vadd.f32 %v11723_v25, %v7750_v17  ;;  %v14668_v29 = vpop.f32.mrb[89].mxu1  ;;  %v14801_v31 = vpop.f32.mrb[103].mxu0  ;;  %v8389_v23 = vld [vmem:[#allocation5 + $0x1f8] sm:$0xff] }
0x2bbe   :  { %v7765_v33 = vsel %vm234_vm2, %v7240_v26, %v7751_v28  ;;  %v19855_v34 = vsel %vm234_vm2, %v7751_v28, %v7240_v26 }
0x2bcb   :  { %v7385_v36 = vpop.f32.mrb[90].mxu1 }
0x2bcc   :  { %v7386_v40 = vadd.f32 %v11723_v25, %v7385_v36  ;;  %v14706_v30 = vpop.f32.mrb[91].mxu1 }
0x2bce   :  { %v7917_v19 = vsel %vm234_vm2, %v7386_v40, %v7605_v27  ;;  %v19861_v21 = vsel %vm234_vm2, %v7605_v27, %v7386_v40 }
0x2bdb   :  { %v7531_v42 = vpop.f32.mrb[92].mxu1 }
0x2bdc   :  { %v7532_v44 = vadd.f32 %v11723_v25, %v7531_v42  ;;  %v14744_v35 = vpop.f32.mrb[93].mxu1  ;;  %v8983_v42 = vld [vmem:[#allocation7 + $0x1c0] sm:$0xff] }
0x2bde   :  { %v7993_v45 = vsel %vm234_vm2, %v7459_v38, %v7532_v44  ;;  %v19867_v41 = vsel %vm234_vm2, %v7532_v44, %v7459_v38  ;;  %v8984_v38 = vld [vmem:[#allocation7 + $0x1c8] sm:$0xff] }
0x2beb   :  { %v7677_v32 = vpop.f32.mrb[94].mxu1 }
0x2bec   :  { %v7678_v48 = vadd.f32 %v11723_v25, %v7677_v32  ;;  %v14782_v39 = vpop.f32.mrb[95].mxu1  ;;  %v8388_v25 = vld [vmem:[#allocation5 + $0x1f0] sm:$0xff] }
0x2bed   :  { %v19966_v17 = vpack.c.bf16 %v8389_v23, %v8388_v25 }
0x2bee   :  { %v7841_v50 = vsel %vm234_vm2, %v7313_v46, %v7678_v48  ;;  %v19874_v51 = vsel %vm234_vm2, %v7678_v48, %v7313_v46  ;;  %v8987_v46 = vld [vmem:[#allocation7 + $0x1e0] sm:$0xff]  ;;  %v8988_v48 = vld [vmem:[#allocation7 + $0x1e8] sm:$0xff] }
0x2bef   :  { %v20055_v39 = vpack.c.bf16 %v8988_v48, %v8987_v46 }
0x2bfb   :  { %v7835_v52 = vpop.f32.mrb[96].mxu1 }
0x2bfc   :  { %v7839_v55 = vadd.f32 %v7835_v52, %v7765_v33  ;;  %v14820_v57 = vpop.f32.mrb[97].mxu1 }
0x2bfe   :  { %v19876_v60 = vmax.f32 %v7839_v55, 0.0 }
0x2c00   :  { %14838 = vmatmul.mubr.msk.f32.vlgmr.msra.gmra.mrb[104].mxu0 %vm258_vm1, %v19876_v60 }
0x2c01   :  { %16569 = vmatpush3.bf16.msra.mxu0 %v19762_v5  ;;  %14875 = vmatprep.mubr.msk.f32.mxu0 %vm17834_vm0, %v17835_v1 }
0x2c02   :  { %16570 = vmatprep.subr.bf16.mxu0 %v17833_v0 }
0x2c05   :  { %16572 = vmatpush3.bf16.msra.mxu0 %v19772_v56 }
0x2c06   :  { %16573 = vmatprep.subr.bf16.mxu0 %v17833_v0 }
0x2c09   :  { %16575 = vmatpush3.bf16.msra.mxu0 %v19778_v62 }
0x2c0a   :  { %16576 = vmatprep.subr.bf16.mxu0 %v17833_v0 }
0x2c0d   :  { %16578 = vmatpush3.bf16.msra.mxu0 %v19786_v16 }
0x2c0e   :  { %16591 = vmatprep.subr.bf16.mxu0 %v17833_v0 }
0x2cd3   :  { %v7911_v49 = vpop.f32.mrb[104].mxu0 }
0x2cd4   :  { %v7915_v63 = vadd.f32 %v7911_v49, %v7841_v50  ;;  %v14839_v53 = vpop.f32.mrb[105].mxu0  ;;  %v8989_v50 = vld [vmem:[#allocation7 + $0x1f0] sm:$0xff] }
0x2cd6   :  { %v19890_v47 = vmax.f32 %v7915_v63, 0.0 }
0x2cd8   :  { %14857 = vmatmul.mubr.msk.f32.vlgmr.msra.gmra.mrb[98].mxu1 %vm258_vm1, %v19890_v47 }
0x2cd9   :  { %16581 = vmatpush3.bf16.msra.mxu1 %v19762_v5  ;;  %14894 = vmatprep.mubr.msk.f32.mxu1 %vm17834_vm0, %v17835_v1 }
0x2cda   :  { %16582 = vmatprep.subr.bf16.mxu1 %v17833_v0 }
0x2cdd   :  { %16584 = vmatpush3.bf16.msra.mxu1 %v19772_v56 }
0x2cde   :  { %16585 = vmatprep.subr.bf16.mxu1 %v17833_v0 }
0x2ce1   :  { %16587 = vmatpush3.bf16.msra.mxu1 %v19778_v62 }
0x2ce2   :  { %16588 = vmatprep.subr.bf16.mxu1 %v17833_v0 }
0x2ce5   :  { %16590 = vmatpush3.bf16.msra.mxu1 %v19786_v16 }
0x2ce6   :  { %16603 = vmatprep.subr.bf16.mxu1 %v17833_v0 }
0x2dab   :  { %v7987_v54 = vpop.f32.mrb[98].mxu1 }
0x2dac   :  { %v7991_v3 = vadd.f32 %v7987_v54, %v7917_v19  ;;  %v14858_v61 = vpop.f32.mrb[99].mxu1 }
0x2dae   :  { %v19904_v4 = vmax.f32 %v7991_v3, 0.0 }
0x2db0   :  { %14876 = vmatmul.mubr.msk.f32.vlgmr.msra.gmra.mrb[106].mxu0 %vm258_vm1, %v19904_v4 }
0x2db1   :  { %16593 = vmatpush3.bf16.msra.mxu0 %v19762_v5  ;;  %14913 = vmatprep.mubr.msk.f32.mxu0 %vm17834_vm0, %v17835_v1 }
0x2db2   :  { %16594 = vmatprep.subr.bf16.mxu0 %v17833_v0 }
0x2db5   :  { %16596 = vmatpush3.bf16.msra.mxu0 %v19772_v56 }
0x2db6   :  { %16597 = vmatprep.subr.bf16.mxu0 %v17833_v0 }
0x2db9   :  { %16599 = vmatpush3.bf16.msra.mxu0 %v19778_v62 }
0x2dba   :  { %16600 = vmatprep.subr.bf16.mxu0 %v17833_v0 }
0x2dbd   :  { %16602 = vmatpush3.bf16.msra.mxu0 %v19786_v16 }
0x2dbe   :  { %16615 = vmatprep.subr.bf16.mxu0 %v17833_v0 }
0x2e83   :  { %v8063_v59 = vpop.f32.mrb[106].mxu0 }
0x2e84   :  { %v8067_v58 = vadd.f32 %v8063_v59, %v7993_v45  ;;  %v14877_v2 = vpop.f32.mrb[107].mxu0  ;;  %v20039_v45 = vpack.c.bf16 %v8984_v38, %v8983_v42 }
0x2e86   :  { %v19918_v6 = vmax.f32 %v8067_v58, 0.0 }
0x2e88   :  { %14895 = vmatmul.mubr.msk.f32.vlgmr.msra.gmra.mrb[100].mxu1 %vm258_vm1, %v19918_v6 }
0x2e89   :  { %16605 = vmatpush3.bf16.msra.mxu1 %v19762_v5  ;;  %14932 = vmatprep.mubr.msk.f32.mxu1 %vm17834_vm0, %v17835_v1 }
0x2e8a   :  { %16606 = vmatprep.subr.bf16.mxu1 %v17833_v0 }
0x2e8d   :  { %16608 = vmatpush3.bf16.msra.mxu1 %v19772_v56 }
0x2e8e   :  { %16609 = vmatprep.subr.bf16.mxu1 %v17833_v0 }
0x2e91   :  { %16611 = vmatpush3.bf16.msra.mxu1 %v19778_v62 }
0x2e92   :  { %16612 = vmatprep.subr.bf16.mxu1 %v17833_v0 }
0x2e95   :  { %16614 = vmatpush3.bf16.msra.mxu1 %v19786_v16 }
0x2e96   :  { %16627 = vmatprep.subr.bf16.mxu1 %v17833_v0 }
0x2f5b   :  { %v8139_v8 = vpop.f32.mrb[100].mxu1 }
0x2f5c   :  { %v8143_v10 = vadd.f32 %v8139_v8, %v19867_v41  ;;  %v14896_v11 = vpop.f32.mrb[101].mxu1  ;;  %v8986_v41 = vld [vmem:[#allocation7 + $0x1d8] sm:$0xff] }
0x2f5e   :  { %v19933_v12 = vmax.f32 %v8143_v10, 0.0 }
0x2f60   :  { %14914 = vmatmul.mubr.msk.f32.vlgmr.msra.gmra.mrb[108].mxu0 %vm258_vm1, %v19933_v12  ;;  %v8376_v36 = vsel %vm234_vm2, %v19918_v6, %v19933_v12  ;;  %v8377_v53 = vsel %vm234_vm2, %v19933_v12, %v19918_v6 }
0x2f61   :  { %16617 = vmatpush3.bf16.msra.mxu0 %v19762_v5  ;;  %14951 = vmatprep.mubr.msk.f32.mxu0 %vm17834_vm0, %v17835_v1 }
0x2f62   :  { %16618 = vmatprep.subr.bf16.mxu0 %v17833_v0 }
0x2f65   :  { %16620 = vmatpush3.bf16.msra.mxu0 %v19772_v56  ;;  %v8382_v56 = vld [vmem:[#allocation5 + $0x1c0] sm:$0xff] }
0x2f66   :  { %16621 = vmatprep.subr.bf16.mxu0 %v17833_v0 }
0x2f69   :  { %16623 = vmatpush3.bf16.msra.mxu0 %v19778_v62  ;;  %v8383_v62 = vld [vmem:[#allocation5 + $0x1c8] sm:$0xff] }
0x2f6a   :  { %16624 = vmatprep.subr.bf16.mxu0 %v17833_v0  ;;  %v19954_v22 = vpack.c.bf16 %v8383_v62, %v8382_v56 }
0x2f6d   :  { %16626 = vmatpush3.bf16.msra.mxu0 %v19786_v16  ;;  %v8384_v16 = vld [vmem:[#allocation5 + $0x1d0] sm:$0xff] }
0x2f6e   :  { %16639 = vmatprep.subr.bf16.mxu0 %v17833_v0  ;;  %v19958_v14 = vpack.c.bf16 %v8385_v13, %v8384_v16 }
0x3033   :  { %v8215_v15 = vpop.f32.mrb[108].mxu0 }
0x3034   :  { %v8219_v5 = vadd.f32 %v8215_v15, %v19861_v21  ;;  %v14915_v18 = vpop.f32.mrb[109].mxu0 }
0x3036   :  { %v19948_v9 = vmax.f32 %v8219_v5, 0.0 }
0x3038   :  { %14933 = vmatmul.mubr.msk.f32.vlgmr.msra.gmra.mrb[102].mxu1 %vm258_vm1, %v19948_v9  ;;  %v8378_v27 = vsel %vm234_vm2, %v19948_v9, %v19904_v4 }
0x3039   :  { %14970 = vmatprep.mubr.msk.f32.mxu1 %vm17834_vm0, %v17835_v1  ;;  %16629 = vmatpush3.bf16.msra.mxu1 %v19954_v22 }
0x303a   :  { %16630 = vmatprep.subr.bf16.mxu1 %v17833_v0 }
0x303d   :  { %16632 = vmatpush3.bf16.msra.mxu1 %v19958_v14 }
0x303e   :  { %16633 = vmatprep.subr.bf16.mxu1 %v17833_v0 }
0x3041   :  { %16635 = vmatpush3.bf16.msra.mxu1 %v19962_v7 }
0x3042   :  { %16636 = vmatprep.subr.bf16.mxu1 %v17833_v0 }
0x3045   :  { %16638 = vmatpush3.bf16.msra.mxu1 %v19966_v17 }
0x3046   :  { %16651 = vmatprep.subr.bf16.mxu1 %v17833_v0 }
0x310b   :  { %v8291_v26 = vpop.f32.mrb[102].mxu1 }
0x310c   :  { %v8295_v28 = vadd.f32 %v8291_v26, %v19874_v51  ;;  %v14934_v29 = vpop.f32.mrb[103].mxu1  ;;  %v8990_v51 = vld [vmem:[#allocation7 + $0x1f8] sm:$0xff] }
0x310d   :  { %v20063_v57 = vpack.c.bf16 %v8990_v51, %v8989_v50 }
0x310e   :  { %v19971_v31 = vmax.f32 %v8295_v28, 0.0 }
0x3110   :  { %14952 = vmatmul.mubr.msk.f32.vlgmr.msra.gmra.mrb[110].mxu0 %vm258_vm1, %v19971_v31  ;;  %v8374_v33 = vsel %vm234_vm2, %v19890_v47, %v19971_v31  ;;  %v8379_v61 = vsel %vm234_vm2, %v19971_v31, %v19890_v47  ;;  %v8992_v47 = vld [vmem:[#allocation8 + $0x38] sm:$0xff] }
0x3111   :  { %16641 = vmatpush3.bf16.msra.mxu0 %v19954_v22  ;;  %14989 = vmatprep.mubr.msk.f32.mxu0 %vm17834_vm0, %v17835_v1 }
0x3112   :  { %16642 = vmatprep.subr.bf16.mxu0 %v17833_v0 }
0x3115   :  { %16644 = vmatpush3.bf16.msra.mxu0 %v19958_v14 }
0x3116   :  { %16645 = vmatprep.subr.bf16.mxu0 %v17833_v0 }
0x3119   :  { %16647 = vmatpush3.bf16.msra.mxu0 %v19962_v7 }
0x311a   :  { %16648 = vmatprep.subr.bf16.mxu0 %v17833_v0 }
0x311d   :  { %16650 = vmatpush3.bf16.msra.mxu0 %v19966_v17 }
0x311e   :  { %16663 = vmatprep.subr.bf16.mxu0 %v17833_v0 }
0x3120   :  { %14990 = vmatmul.mubr.msk.f32.vlgmr.msra.gmra.mrb[112].mxu0 %vm258_vm1, %v8374_v33 }
0x3121   :  { %16665 = vmatpush3.bf16.msra.mxu0 %v19954_v22  ;;  %15027 = vmatprep.mubr.msk.f32.mxu0 %vm17834_vm0, %v17835_v1 }
0x3122   :  { %16666 = vmatprep.subr.bf16.mxu0 %v17833_v0 }
0x3125   :  { %16668 = vmatpush3.bf16.msra.mxu0 %v19958_v14 }
0x3126   :  { %16669 = vmatprep.subr.bf16.mxu0 %v17833_v0 }
0x3129   :  { %16671 = vmatpush3.bf16.msra.mxu0 %v19962_v7 }
0x312a   :  { %16672 = vmatprep.subr.bf16.mxu0 %v17833_v0 }
0x312d   :  { %16674 = vmatpush3.bf16.msra.mxu0 %v19966_v17 }
0x312e   :  { %16687 = vmatprep.subr.bf16.mxu0 %v17833_v0 }
0x3130   :  { %15028 = vmatmul.mubr.msk.f32.vlgmr.msra.gmra.mrb[114].mxu0 %vm258_vm1, %v8376_v36 }
0x3131   :  { %16689 = vmatpush3.bf16.msra.mxu0 %v19954_v22  ;;  %15065 = vmatprep.mubr.msk.f32.mxu0 %vm17834_vm0, %v17835_v1 }
0x3132   :  { %16690 = vmatprep.subr.bf16.mxu0 %v17833_v0 }
0x3135   :  { %16692 = vmatpush3.bf16.msra.mxu0 %v19958_v14 }
0x3136   :  { %16693 = vmatprep.subr.bf16.mxu0 %v17833_v0 }
0x3139   :  { %16695 = vmatpush3.bf16.msra.mxu0 %v19962_v7 }
0x313a   :  { %16696 = vmatprep.subr.bf16.mxu0 %v17833_v0 }
0x313d   :  { %16698 = vmatpush3.bf16.msra.mxu0 %v19966_v17 }
0x313e   :  { %16711 = vmatprep.subr.bf16.mxu0 %v17833_v0 }
0x3140   :  { %15066 = vmatmul.mubr.msk.f32.vlgmr.msra.gmra.mrb[116].mxu0 %vm258_vm1, %v8378_v27 }
0x3141   :  { %16713 = vmatpush3.bf16.msra.mxu0 %v19954_v22  ;;  %15103 = vmatprep.mubr.msk.f32.mxu0 %vm17834_vm0, %v17835_v1 }
0x3142   :  { %16714 = vmatprep.subr.bf16.mxu0 %v17833_v0 }
0x3145   :  { %16716 = vmatpush3.bf16.msra.mxu0 %v19958_v14 }
0x3146   :  { %16717 = vmatprep.subr.bf16.mxu0 %v17833_v0 }
0x3149   :  { %16719 = vmatpush3.bf16.msra.mxu0 %v19962_v7 }
0x314a   :  { %16720 = vmatprep.subr.bf16.mxu0 %v17833_v0 }
0x314d   :  { %16722 = vmatpush3.bf16.msra.mxu0 %v19966_v17 }
0x314e   :  { %16735 = vmatprep.subr.bf16.mxu0 %v17833_v0 }
0x31e3   :  { %v8367_v40 = vpop.f32.mrb[110].mxu0 }
0x31e4   :  { %v8371_v30 = vadd.f32 %v8367_v40, %v19855_v34  ;;  %v14953_v19 = vpop.f32.mrb[111].mxu0  ;;  %v8985_v34 = vld [vmem:[#allocation7 + $0x1d0] sm:$0xff] }
0x31e5   :  { %v20049_v32 = vpack.c.bf16 %v8986_v41, %v8985_v34 }
0x31e6   :  { %v8372_v21 = vmax.f32 %v8371_v30, 0.0 }
0x31e8   :  { %v8373_v44 = vsel %vm234_vm2, %v19876_v60, %v8372_v21  ;;  %v8380_v35 = vsel %vm234_vm2, %v8372_v21, %v19876_v60  ;;  %v8375_v60 = vsel %vm234_vm2, %v19904_v4, %v19948_v9  ;;  %v11741_v4 = vld [vmem:[%s20425_s3 + $0x7] ss:$0 sm:$0xff] }
0x31e9   :  { %14971 = vmatmul.mubr.msk.f32.vlgmr.msra.gmra.mrb[104].mxu1 %vm258_vm1, %v8373_v44  ;;  %15104 = vmatmul.mubr.msk.f32.vlgmr.msra.gmra.mrb[118].mxu0 %vm258_vm1, %v8380_v35 }
0x31ea   :  { %16653 = vmatpush3.bf16.msra.mxu1 %v19954_v22  ;;  %15008 = vmatprep.mubr.msk.f32.mxu1 %vm17834_vm0, %v17835_v1 }
0x31eb   :  { %16654 = vmatprep.subr.bf16.mxu1 %v17833_v0  ;;  %16737 = vmatpush3.bf16.msra.mxu0 %v20039_v45 }
0x31ec   :  { %16738 = vmatprep.subr.bf16.mxu0 %v17833_v0  ;;  %15141 = vmatprep.mubr.msk.f32.mxu0 %vm17834_vm0, %v17835_v1 }
0x31ee   :  { %16656 = vmatpush3.bf16.msra.mxu1 %v19958_v14 }
0x31ef   :  { %16657 = vmatprep.subr.bf16.mxu1 %v17833_v0  ;;  %16740 = vmatpush3.bf16.msra.mxu0 %v20049_v32 }
0x31f0   :  { %16741 = vmatprep.subr.bf16.mxu0 %v17833_v0 }
0x31f2   :  { %16659 = vmatpush3.bf16.msra.mxu1 %v19962_v7 }
0x31f3   :  { %v20058_v52 = vpop.f32.mrb[112].mxu0  ;;  %16660 = vmatprep.subr.bf16.mxu1 %v17833_v0  ;;  %16743 = vmatpush3.bf16.msra.mxu0 %v20055_v39 }
0x31f4   :  { %v14991_v55 = vpop.f32.mrb[113].mxu0  ;;  %16744 = vmatprep.subr.bf16.mxu0 %v17833_v0  ;;  %v8541_v25 = vadd.f32 %v11741_v4, %v20058_v52 }
0x31f5   :  { %v9606_v55 = vld [vmem:[#allocation10 + $0x8] sm:$0xff] }
0x31f6   :  { %16662 = vmatpush3.bf16.msra.mxu1 %v19966_v17 }
0x31f7   :  { %16675 = vmatprep.subr.bf16.mxu1 %v17833_v0  ;;  %16746 = vmatpush3.bf16.msra.mxu0 %v20063_v57 }
0x31f8   :  { %16759 = vmatprep.subr.bf16.mxu0 %v17833_v0 }
0x31f9   :  { %15009 = vmatmul.mubr.msk.f32.vlgmr.msra.gmra.mrb[106].mxu1 %vm258_vm1, %v8375_v60  ;;  %v9610_v60 = vld [vmem:[#allocation10 + $0x28] sm:$0xff] }
0x31fa   :  { %16677 = vmatpush3.bf16.msra.mxu1 %v19954_v22  ;;  %15046 = vmatprep.mubr.msk.f32.mxu1 %vm17834_vm0, %v17835_v1 }
0x31fb   :  { %16678 = vmatprep.subr.bf16.mxu1 %v17833_v0 }
0x31fe   :  { %16680 = vmatpush3.bf16.msra.mxu1 %v19958_v14 }
0x31ff   :  { %16681 = vmatprep.subr.bf16.mxu1 %v17833_v0 }
0x3202   :  { %16683 = vmatpush3.bf16.msra.mxu1 %v19962_v7 }
0x3203   :  { %v8686_v49 = vpop.f32.mrb[114].mxu0  ;;  %16684 = vmatprep.subr.bf16.mxu1 %v17833_v0 }
0x3204   :  { %v15029_v63 = vpop.f32.mrb[115].mxu0  ;;  %v8687_v16 = vadd.f32 %v11741_v4, %v8686_v49  ;;  %v16819_v49 = vpack.c.bf16 %v9610_v60, %v9606_v55  ;;  %v9612_v55 = vld [vmem:[#allocation10 + $0x38] sm:$0xff] }
0x3205   :  { %v9609_v63 = vld [vmem:[#allocation10 + $0x20] sm:$0xff] }
0x3206   :  { %16686 = vmatpush3.bf16.msra.mxu1 %v19966_v17 }
0x3207   :  { %16699 = vmatprep.subr.bf16.mxu1 %v17833_v0 }
0x3209   :  { %15047 = vmatmul.mubr.msk.f32.vlgmr.msra.gmra.mrb[108].mxu1 %vm258_vm1, %v8377_v53 }
0x320a   :  { %16701 = vmatpush3.bf16.msra.mxu1 %v19954_v22  ;;  %15084 = vmatprep.mubr.msk.f32.mxu1 %vm17834_vm0, %v17835_v1 }
0x320b   :  { %16702 = vmatprep.subr.bf16.mxu1 %v17833_v0 }
0x320e   :  { %16704 = vmatpush3.bf16.msra.mxu1 %v19958_v14 }
0x320f   :  { %16705 = vmatprep.subr.bf16.mxu1 %v17833_v0 }
0x3212   :  { %16707 = vmatpush3.bf16.msra.mxu1 %v19962_v7 }
0x3213   :  { %v8832_v54 = vpop.f32.mrb[116].mxu0  ;;  %16708 = vmatprep.subr.bf16.mxu1 %v17833_v0 }
0x3214   :  { %v15067_v3 = vpop.f32.mrb[117].mxu0  ;;  %v8833_v5 = vadd.f32 %v11741_v4, %v8832_v54  ;;  %v9614_v54 = vld [vmem:[#allocation10 + $0x48] sm:$0xff] }
0x3215   :  { %v9618_v3 = vld [vmem:[#allocation10 + $0x68] sm:$0xff] }
0x3216   :  { %16710 = vmatpush3.bf16.msra.mxu1 %v19966_v17 }
0x3217   :  { %16723 = vmatprep.subr.bf16.mxu1 %v17833_v0 }
0x3219   :  { %15085 = vmatmul.mubr.msk.f32.vlgmr.msra.gmra.mrb[110].mxu1 %vm258_vm1, %v8379_v61 }
0x321a   :  { %16725 = vmatpush3.bf16.msra.mxu1 %v20039_v45  ;;  %15122 = vmatprep.mubr.msk.f32.mxu1 %vm17834_vm0, %v17835_v1 }
0x321b   :  { %16726 = vmatprep.subr.bf16.mxu1 %v17833_v0 }
0x321e   :  { %16728 = vmatpush3.bf16.msra.mxu1 %v20049_v32 }
0x321f   :  { %16729 = vmatprep.subr.bf16.mxu1 %v17833_v0 }
0x3222   :  { %16731 = vmatpush3.bf16.msra.mxu1 %v20055_v39 }
0x3223   :  { %16732 = vmatprep.subr.bf16.mxu1 %v17833_v0 }
0x3226   :  { %16734 = vmatpush3.bf16.msra.mxu1 %v20063_v57 }
0x3227   :  { %16747 = vmatprep.subr.bf16.mxu1 %v17833_v0 }
0x3229   :  { %15123 = vmatmul.mubr.msk.f32.vlgmr.msra.gmra.mrb[112].mxu1 %vm258_vm1, %v8992_v47 }
0x322a   :  { %16749 = vmatpush3.bf16.msra.mxu1 %v20039_v45  ;;  %15160 = vmatprep.mubr.msk.f32.mxu1 %vm17834_vm0, %v17835_v1 }
0x322b   :  { %16750 = vmatprep.subr.bf16.mxu1 %v17833_v0 }
0x322e   :  { %16752 = vmatpush3.bf16.msra.mxu1 %v20049_v32 }
0x322f   :  { %16753 = vmatprep.subr.bf16.mxu1 %v17833_v0 }
0x3232   :  { %16755 = vmatpush3.bf16.msra.mxu1 %v20055_v39 }
0x3233   :  { %16756 = vmatprep.subr.bf16.mxu1 %v17833_v0 }
0x3236   :  { %16758 = vmatpush3.bf16.msra.mxu1 %v20063_v57 }
0x3237   :  { %16771 = vmatprep.subr.bf16.mxu1 %v17833_v0 }
0x32bc   :  { %v8467_v59 = vpop.f32.mrb[104].mxu1  ;;  %v8978_v58 = vpop.f32.mrb[118].mxu0 }
0x32bd   :  { %v8468_v2 = vadd.f32 %v11741_v4, %v8467_v59  ;;  %v8979_v6 = vadd.f32 %v11741_v4, %v8978_v58  ;;  %v14972_v8 = vpop.f32.mrb[105].mxu1  ;;  %v15105_v10 = vpop.f32.mrb[119].mxu0  ;;  %v16823_v59 = vpack.c.bf16 %v9618_v3, %v9614_v54  ;;  %v9617_v58 = vld [vmem:[#allocation10 + $0x60] sm:$0xff]  ;;  %v9611_v54 = vld [vmem:[#allocation10 + $0x30] sm:$0xff] }
0x32be   :  { %v9621_v10 = vld [vmem:[#allocation10 + $0x80] sm:$0xff] }
0x32bf   :  { %v8993_v11 = vsel %vm234_vm2, %v8468_v2, %v8979_v6  ;;  %v20132_v12 = vsel %vm234_vm2, %v8979_v6, %v8468_v2  ;;  %v9622_v2 = vld [vmem:[#allocation10 + $0x88] sm:$0xff] }
0x32c0   :  { %v9626_v6 = vld [vmem:[#allocation10 + $0xa8] sm:$0xff] }
0x32c1   :  { %v16827_v8 = vpack.c.bf16 %v9626_v6, %v9622_v2  ;;  %v9997_v2 = vld [vmem:[#allocation10 + $0x248] sm:$0xff] }
0x32c2   :  { %v10001_v6 = vld [vmem:[#allocation10 + $0x268] sm:$0xff] }
0x32cc   :  { %v8613_v15 = vpop.f32.mrb[106].mxu1 }
0x32cd   :  { %v8614_v18 = vadd.f32 %v11741_v4, %v8613_v15  ;;  %v15010_v9 = vpop.f32.mrb[107].mxu1  ;;  %v9630_v15 = vld [vmem:[#allocation10 + $0xc8] sm:$0xff] }
0x32cf   :  { %v9145_v56 = vsel %vm234_vm2, %v8614_v18, %v8833_v5  ;;  %v20138_v62 = vsel %vm234_vm2, %v8833_v5, %v8614_v18  ;;  %v9634_v5 = vld [vmem:[#allocation10 + $0xe8] sm:$0xff] }
0x32d0   :  { %v16831_v9 = vpack.c.bf16 %v9634_v5, %v9630_v15  ;;  %v9624_v15 = vld [vmem:[#allocation10 + $0x98] sm:$0xff] }
0x32d1   :  { %v9628_v5 = vld [vmem:[#allocation10 + $0xb8] sm:$0xff] }
0x32dc   :  { %v8759_v22 = vpop.f32.mrb[108].mxu1 }
0x32dd   :  { %v8760_v13 = vadd.f32 %v11741_v4, %v8759_v22  ;;  %v15048_v14 = vpop.f32.mrb[109].mxu1  ;;  %v9808_v22 = vld [vmem:[#allocation10 + $0x108] sm:$0xff] }
0x32df   :  { %v9221_v24 = vsel %vm234_vm2, %v8687_v16, %v8760_v13  ;;  %v20144_v20 = vsel %vm234_vm2, %v8760_v13, %v8687_v16  ;;  %v9812_v16 = vld [vmem:[#allocation10 + $0x128] sm:$0xff] }
0x32e0   :  { %v16851_v14 = vpack.c.bf16 %v9812_v16, %v9808_v22  ;;  %v10005_v16 = vld [vmem:[#allocation10 + $0x288] sm:$0xff] }
0x32ec   :  { %v8905_v7 = vpop.f32.mrb[110].mxu1 }
0x32ed   :  { %v8906_v23 = vadd.f32 %v11741_v4, %v8905_v7  ;;  %v15086_v17 = vpop.f32.mrb[111].mxu1  ;;  %v9816_v7 = vld [vmem:[#allocation10 + $0x148] sm:$0xff] }
0x32ef   :  { %v9069_v26 = vsel %vm234_vm2, %v8541_v25, %v8906_v23  ;;  %v20151_v28 = vsel %vm234_vm2, %v8906_v23, %v8541_v25  ;;  %v9820_v25 = vld [vmem:[#allocation10 + $0x168] sm:$0xff] }
0x32f0   :  { %v16855_v17 = vpack.c.bf16 %v9820_v25, %v9816_v7 }
0x32fc   :  { %v9063_v29 = vpop.f32.mrb[112].mxu1 }
0x32fd   :  { %v20153_v31 = vadd.f32 %v9063_v29, %v8993_v11  ;;  %v15124_v33 = vpop.f32.mrb[113].mxu1  ;;  %v9625_v11 = vld [vmem:[#allocation10 + $0xa0] sm:$0xff] }
0x32fe   :  { %v16829_v18 = vpack.c.bf16 %v9625_v11, %v9621_v10  ;;  %v9819_v29 = vld [vmem:[#allocation10 + $0x160] sm:$0xff]  ;;  %v9615_v10 = vld [vmem:[#allocation10 + $0x50] sm:$0xff] }
0x32ff   :  { %v9068_v36 = vmax.f32 %v20153_v31, 0.0  ;;  %v9619_v11 = vld [vmem:[#allocation10 + $0x70] sm:$0xff] }
0x3300   :  { %v16841_v22 = vpack.c.bf16 %v9619_v11, %v9615_v10  ;;  %v10003_v10 = vld [vmem:[#allocation10 + $0x278] sm:$0xff] }
0x3301   :  { %15142 = vmatmul.mubr.msk.f32.vlgmr.msra.gmra.mrb[120].mxu0 %vm258_vm1, %v9068_v36 }
0x3302   :  { %16761 = vmatpush3.bf16.msra.mxu0 %v20039_v45  ;;  %15179 = vmatprep.mubr.msk.f32.mxu0 %vm17834_vm0, %v17835_v1 }
0x3303   :  { %16762 = vmatprep.subr.bf16.mxu0 %v17833_v0 }
0x3306   :  { %16764 = vmatpush3.bf16.msra.mxu0 %v20049_v32 }
0x3307   :  { %16765 = vmatprep.subr.bf16.mxu0 %v17833_v0 }
0x330a   :  { %16767 = vmatpush3.bf16.msra.mxu0 %v20055_v39 }
0x330b   :  { %16768 = vmatprep.subr.bf16.mxu0 %v17833_v0 }
0x330e   :  { %16770 = vmatpush3.bf16.msra.mxu0 %v20063_v57 }
0x330f   :  { %16783 = vmatprep.subr.bf16.mxu0 %v17833_v0 }
0x33d4   :  { %v9139_v27 = vpop.f32.mrb[120].mxu0 }
0x33d5   :  { %v20169_v40 = vadd.f32 %v9139_v27, %v9069_v26  ;;  %v15143_v30 = vpop.f32.mrb[121].mxu0  ;;  %v9815_v26 = vld [vmem:[#allocation10 + $0x140] sm:$0xff]  ;;  %v9824_v27 = vld [vmem:[#allocation10 + $0x188] sm:$0xff] }
0x33d6   :  { %v9828_v30 = vld [vmem:[#allocation10 + $0x1a8] sm:$0xff] }
0x33d7   :  { %v9144_v19 = vmax.f32 %v20169_v40, 0.0  ;;  %v9627_v40 = vld [vmem:[#allocation10 + $0xb0] sm:$0xff] }
0x33d9   :  { %15161 = vmatmul.mubr.msk.f32.vlgmr.msra.gmra.mrb[114].mxu1 %vm258_vm1, %v9144_v19 }
0x33da   :  { %16773 = vmatpush3.bf16.msra.mxu1 %v20039_v45  ;;  %15198 = vmatprep.mubr.msk.f32.mxu1 %vm17834_vm0, %v17835_v1 }
0x33db   :  { %16774 = vmatprep.subr.bf16.mxu1 %v17833_v0 }
0x33de   :  { %16776 = vmatpush3.bf16.msra.mxu1 %v20049_v32 }
0x33df   :  { %16777 = vmatprep.subr.bf16.mxu1 %v17833_v0 }
0x33e2   :  { %16779 = vmatpush3.bf16.msra.mxu1 %v20055_v39 }
0x33e3   :  { %16780 = vmatprep.subr.bf16.mxu1 %v17833_v0 }
0x33e6   :  { %16782 = vmatpush3.bf16.msra.mxu1 %v20063_v57 }
0x33e7   :  { %16795 = vmatprep.subr.bf16.mxu1 %v17833_v0 }
0x34ac   :  { %v9215_v21 = vpop.f32.mrb[114].mxu1 }
0x34ad   :  { %v20185_v42 = vadd.f32 %v9215_v21, %v9145_v56  ;;  %v15162_v38 = vpop.f32.mrb[115].mxu1  ;;  %v9629_v56 = vld [vmem:[#allocation10 + $0xc0] sm:$0xff]  ;;  %v16857_v21 = vpack.c.bf16 %v9819_v29, %v9815_v26 }
0x34ae   :  { %v16859_v38 = vpack.c.bf16 %v9828_v30, %v9824_v27  ;;  %v9631_v27 = vld [vmem:[#allocation10 + $0xd0] sm:$0xff] }
0x34af   :  { %v9220_v44 = vmax.f32 %v20185_v42, 0.0  ;;  %v9832_v42 = vld [vmem:[#allocation10 + $0x1c8] sm:$0xff]  ;;  %v9635_v30 = vld [vmem:[#allocation10 + $0xf0] sm:$0xff] }
0x34b1   :  { %15180 = vmatmul.mubr.msk.f32.vlgmr.msra.gmra.mrb[122].mxu0 %vm258_vm1, %v9220_v44 }
0x34b2   :  { %16785 = vmatpush3.bf16.msra.mxu0 %v20039_v45  ;;  %15217 = vmatprep.mubr.msk.f32.mxu0 %vm17834_vm0, %v17835_v1 }
0x34b3   :  { %16786 = vmatprep.subr.bf16.mxu0 %v17833_v0 }
0x34b6   :  { %16788 = vmatpush3.bf16.msra.mxu0 %v20049_v32 }
0x34b7   :  { %16789 = vmatprep.subr.bf16.mxu0 %v17833_v0 }
0x34ba   :  { %16791 = vmatpush3.bf16.msra.mxu0 %v20055_v39 }
0x34bb   :  { %16792 = vmatprep.subr.bf16.mxu0 %v17833_v0 }
0x34be   :  { %16794 = vmatpush3.bf16.msra.mxu0 %v20063_v57 }
0x34bf   :  { %16807 = vmatprep.subr.bf16.mxu0 %v17833_v0 }
0x3584   :  { %v9291_v35 = vpop.f32.mrb[122].mxu0 }
0x3585   :  { %v9295_v34 = vadd.f32 %v9291_v35, %v9221_v24  ;;  %v15181_v41 = vpop.f32.mrb[123].mxu0  ;;  %v9807_v24 = vld [vmem:[#allocation10 + $0x100] sm:$0xff] }
0x3586   :  { %v9823_v35 = vld [vmem:[#allocation10 + $0x180] sm:$0xff] }
0x3587   :  { %v9296_v46 = vmax.f32 %v9295_v34, 0.0  ;;  %v9827_v34 = vld [vmem:[#allocation10 + $0x1a0] sm:$0xff] }
0x3588   :  { %v16861_v41 = vpack.c.bf16 %v9827_v34, %v9823_v35  ;;  %v16849_v34 = vpack.c.bf16 %v9635_v30, %v9631_v27  ;;  %v10182_v30 = vld [vmem:[#allocation11 + $0x8] sm:$0xff] }
0x3589   :  { %15199 = vmatmul.mubr.msk.f32.vlgmr.msra.gmra.mrb[116].mxu1 %vm258_vm1, %v9296_v46 }
0x358a   :  { %16797 = vmatpush3.bf16.msra.mxu1 %v20039_v45  ;;  %15236 = vmatprep.mubr.msk.f32.mxu1 %vm17834_vm0, %v17835_v1 }
0x358b   :  { %16798 = vmatprep.subr.bf16.mxu1 %v17833_v0 }
0x358e   :  { %16800 = vmatpush3.bf16.msra.mxu1 %v20049_v32 }
0x358f   :  { %16801 = vmatprep.subr.bf16.mxu1 %v17833_v0 }
0x3592   :  { %16803 = vmatpush3.bf16.msra.mxu1 %v20055_v39 }
0x3593   :  { %16804 = vmatprep.subr.bf16.mxu1 %v17833_v0 }
0x3596   :  { %16806 = vmatpush3.bf16.msra.mxu1 %v20063_v57 }
0x3597   :  { %16820 = vmatprep.subr.bf16.mxu1 %v16819_v49  ;;  %v9989_v49 = vld [vmem:[#allocation10 + $0x208] sm:$0xff] }
0x365c   :  { %v9367_v48 = vpop.f32.mrb[116].mxu1 }
0x365d   :  { %v9371_v50 = vadd.f32 %v9367_v48, %v20144_v20  ;;  %v15200_v51 = vpop.f32.mrb[117].mxu1  ;;  %v9811_v20 = vld [vmem:[#allocation10 + $0x120] sm:$0xff] }
0x365e   :  { %v16853_v23 = vpack.c.bf16 %v9811_v20, %v9807_v24  ;;  %v9831_v48 = vld [vmem:[#allocation10 + $0x1c0] sm:$0xff]  ;;  %v9623_v24 = vld [vmem:[#allocation10 + $0x90] sm:$0xff]  ;;  %v9636_v20 = vld [vmem:[#allocation10 + $0xf8] sm:$0xff] }
0x365f   :  { %v9372_v52 = vmax.f32 %v9371_v50, 0.0  ;;  %v9835_v50 = vld [vmem:[#allocation10 + $0x1e0] sm:$0xff]  ;;  %v16845_v26 = vpack.c.bf16 %v9627_v40, %v9623_v24  ;;  %v10013_v24 = vld [vmem:[#allocation10 + $0x2c8] sm:$0xff] }
0x3660   :  { %v16865_v51 = vpack.c.bf16 %v9835_v50, %v9831_v48  ;;  %v9822_v48 = vld [vmem:[#allocation10 + $0x178] sm:$0xff]  ;;  %v10017_v40 = vld [vmem:[#allocation10 + $0x2e8] sm:$0xff] }
0x3661   :  { %15218 = vmatmul.mubr.msk.f32.vlgmr.msra.gmra.mrb[124].mxu0 %vm258_vm1, %v9372_v52  ;;  %v9608_v52 = vld [vmem:[#allocation10 + $0x18] sm:$0xff] }
0x3662   :  { %16809 = vmatpush3.bf16.msra.mxu0 %v20039_v45  ;;  %15255 = vmatprep.mubr.msk.f32.mxu0 %vm17834_vm0, %v17835_v1  ;;  %v9605_v45 = vld [vmem:[#allocation10] sm:$0xff]  ;;  %v16835_v60 = vpack.c.bf16 %v9612_v55, %v9608_v52  ;;  %v9817_v52 = vld [vmem:[#allocation10 + $0x150] sm:$0xff] }
0x3663   :  { %16810 = vmatprep.subr.bf16.mxu0 %v17833_v0  ;;  %v16821_v47 = vpack.c.bf16 %v9609_v63, %v9605_v45  ;;  %v9993_v45 = vld [vmem:[#allocation10 + $0x228] sm:$0xff]  ;;  %v9821_v55 = vld [vmem:[#allocation10 + $0x170] sm:$0xff] }
0x3664   :  { %v16883_v63 = vpack.c.bf16 %v9993_v45, %v9989_v49  ;;  %v9830_v49 = vld [vmem:[#allocation10 + $0x1b8] sm:$0xff]  ;;  %v16873_v45 = vpack.c.bf16 %v9821_v55, %v9817_v52 }
0x3666   :  { %16812 = vmatpush3.bf16.msra.mxu0 %v20049_v32 }
0x3667   :  { %16813 = vmatprep.subr.bf16.mxu0 %v17833_v0 }
0x366a   :  { %16815 = vmatpush3.bf16.msra.mxu0 %v20055_v39  ;;  %v9613_v39 = vld [vmem:[#allocation10 + $0x40] sm:$0xff] }
0x366b   :  { %16816 = vmatprep.subr.bf16.mxu0 %v17833_v0 }
0x366e   :  { %16818 = vmatpush3.bf16.msra.mxu0 %v20063_v57  ;;  %v16825_v57 = vpack.c.bf16 %v9617_v58, %v9613_v39  ;;  %v9992_v39 = vld [vmem:[#allocation10 + $0x220] sm:$0xff] }
0x366f   :  { %16836 = vmatprep.subr.bf16.mxu0 %v16835_v60  ;;  %v9826_v60 = vld [vmem:[#allocation10 + $0x198] sm:$0xff] }
0x3734   :  { %v9443_v53 = vpop.f32.mrb[124].mxu0 }
0x3735   :  { %v9447_v61 = vadd.f32 %v9443_v53, %v20138_v62  ;;  %v15219_v32 = vpop.f32.mrb[125].mxu0  ;;  %v9633_v62 = vld [vmem:[#allocation10 + $0xe0] sm:$0xff]  ;;  %v9607_v53 = vld [vmem:[#allocation10 + $0x10] sm:$0xff] }
0x3736   :  { %v16833_v13 = vpack.c.bf16 %v9633_v62, %v9629_v56  ;;  %v9620_v32 = vld [vmem:[#allocation10 + $0x78] sm:$0xff]  ;;  %v16837_v58 = vpack.c.bf16 %v9611_v54, %v9607_v53  ;;  %v9996_v56 = vld [vmem:[#allocation10 + $0x240] sm:$0xff]  ;;  %v9825_v53 = vld [vmem:[#allocation10 + $0x190] sm:$0xff] }
0x3737   :  { %v9448_v4 = vmax.f32 %v9447_v61, 0.0  ;;  %v9616_v61 = vld [vmem:[#allocation10 + $0x58] sm:$0xff]  ;;  %v10000_v62 = vld [vmem:[#allocation10 + $0x260] sm:$0xff]  ;;  %v9829_v54 = vld [vmem:[#allocation10 + $0x1b0] sm:$0xff] }
0x3738   :  { %v16889_v7 = vpack.c.bf16 %v10000_v62, %v9996_v56  ;;  %v10011_v56 = vld [vmem:[#allocation10 + $0x2b8] sm:$0xff] }
0x3739   :  { %15237 = vmatmul.mubr.msk.f32.vlgmr.msra.gmra.mrb[118].mxu1 %vm258_vm1, %v9448_v4  ;;  %v20229_v33 = vsel %vm234_vm2, %v9448_v4, %v9220_v44  ;;  %v9836_v44 = vld [vmem:[#allocation10 + $0x1e8] sm:$0xff] }
0x373a   :  { %16822 = vmatpush1.bf16.msra.mxu1 %v16821_v47  ;;  %9704 = vmatprep.mubr.f32.mxu1 %v17835_v1  ;;  %v16863_v46 = vpack.c.bf16 %v9836_v44, %v9832_v42  ;;  %v9809_v42 = vld [vmem:[#allocation10 + $0x110] sm:$0xff] }
0x373b   :  { %16824 = vmatprep.subr.bf16.mxu1 %v16823_v59  ;;  %v9988_v59 = vld [vmem:[#allocation10 + $0x200] sm:$0xff]  ;;  %v9813_v44 = vld [vmem:[#allocation10 + $0x130] sm:$0xff] }
0x373c   :  { %v16869_v50 = vpack.c.bf16 %v9813_v44, %v9809_v42  ;;  %v10181_v42 = vld [vmem:[#allocation11] sm:$0xff] }
0x373d   :  { %v10185_v44 = vld [vmem:[#allocation11 + $0x20] sm:$0xff] }
0x373e   :  { %16826 = vmatpush1.bf16.msra.mxu1 %v16825_v57 }
0x373f   :  { %16828 = vmatprep.subr.bf16.mxu1 %v16827_v8  ;;  %v16839_v8 = vpack.c.bf16 %v9620_v32, %v9616_v61  ;;  %v9838_v61 = vld [vmem:[#allocation10 + $0x1f8] sm:$0xff]  ;;  %v16877_v32 = vpack.c.bf16 %v9829_v54, %v9825_v53  ;;  %v16917_v53 = vpack.c.bf16 %v10185_v44, %v10181_v42 }
0x3742   :  { %16830 = vmatpush1.bf16.msra.mxu1 %v16829_v18  ;;  %v16885_v18 = vpack.c.bf16 %v9992_v39, %v9988_v59  ;;  %v9837_v59 = vld [vmem:[#allocation10 + $0x1f0] sm:$0xff]  ;;  %v9991_v39 = vld [vmem:[#allocation10 + $0x218] sm:$0xff] }
0x3743   :  { %16832 = vmatprep.subr.bf16.mxu1 %v16831_v9 }
0x3746   :  { %16834 = vmatpush1.bf16.msra.mxu1 %v16833_v13  ;;  %v10009_v13 = vld [vmem:[#allocation10 + $0x2a8] sm:$0xff] }
0x3747   :  { %16852 = vmatprep.subr.bf16.mxu1 %v16851_v14  ;;  %v16843_v14 = vpack.c.bf16 %v9628_v5, %v9624_v15  ;;  %v16891_v25 = vpack.c.bf16 %v10009_v13, %v10005_v16  ;;  %v9998_v5 = vld [vmem:[#allocation10 + $0x250] sm:$0xff] }
0x3748   :  { %v10006_v16 = vld [vmem:[#allocation10 + $0x290] sm:$0xff] }
0x3749   :  { %11758 = vmatmul.mubr.msk.f32.vlgmr.msra.gmra.mrb[120].mxu1 %vm258_vm1, %v20229_v33  ;;  %v10010_v13 = vld [vmem:[#allocation10 + $0x2b0] sm:$0xff] }
0x374a   :  { %16854 = vmatpush1.bf16.msra.mxu1 %v16853_v23  ;;  %9906 = vmatprep.mubr.f32.mxu1 %v17835_v1  ;;  %v10004_v23 = vld [vmem:[#allocation10 + $0x280] sm:$0xff] }
0x374b   :  { %16856 = vmatprep.subr.bf16.mxu1 %v16855_v17  ;;  %v10008_v17 = vld [vmem:[#allocation10 + $0x2a0] sm:$0xff] }
0x374c   :  { %v16893_v35 = vpack.c.bf16 %v10008_v17, %v10004_v23  ;;  %v10016_v23 = vld [vmem:[#allocation10 + $0x2e0] sm:$0xff] }
0x374e   :  { %16858 = vmatpush1.bf16.msra.mxu1 %v16857_v21  ;;  %v9810_v21 = vld [vmem:[#allocation10 + $0x118] sm:$0xff] }
0x374f   :  { %16860 = vmatprep.subr.bf16.mxu1 %v16859_v38  ;;  %v9814_v38 = vld [vmem:[#allocation10 + $0x138] sm:$0xff] }
0x3752   :  { %16862 = vmatpush1.bf16.msra.mxu1 %v16861_v41  ;;  %v16867_v41 = vpack.c.bf16 %v9814_v38, %v9810_v21  ;;  %v10186_v21 = vld [vmem:[#allocation11 + $0x28] sm:$0xff]  ;;  %v10184_v38 = vld [vmem:[#allocation11 + $0x18] sm:$0xff] }
0x3753   :  { %16864 = vmatprep.subr.bf16.mxu1 %v16863_v46  ;;  %v9818_v46 = vld [vmem:[#allocation10 + $0x158] sm:$0xff] }
0x3756   :  { %16866 = vmatpush1.bf16.msra.mxu1 %v16865_v51  ;;  %v16871_v51 = vpack.c.bf16 %v9822_v48, %v9818_v46  ;;  %v10183_v48 = vld [vmem:[#allocation11 + $0x10] sm:$0xff] }
0x3757   :  { %16884 = vmatprep.subr.bf16.mxu1 %v16883_v63  ;;  %v16875_v63 = vpack.c.bf16 %v9830_v49, %v9826_v60  ;;  %v10194_v60 = vld [vmem:[#allocation11 + $0x68] sm:$0xff]  ;;  %v10192_v49 = vld [vmem:[#allocation11 + $0x58] sm:$0xff] }
0x380c   :  { %v9519_v3 = vpop.f32.mrb[118].mxu1 }
0x380d   :  { %v9523_v47 = vadd.f32 %v9519_v3, %v20151_v28  ;;  %v15238_v4 = vpop.f32.mrb[119].mxu1  ;;  %v16887_v28 = vpack.c.bf16 %v10001_v6, %v9997_v2  ;;  %v9834_v3 = vld [vmem:[#allocation10 + $0x1d8] sm:$0xff]  ;;  %v9990_v6 = vld [vmem:[#allocation10 + $0x210] sm:$0xff] }
0x380e   :  { %v9833_v4 = vld [vmem:[#allocation10 + $0x1d0] sm:$0xff] }
0x380f   :  { %v9524_v57 = vmax.f32 %v9523_v47, 0.0  ;;  %v16879_v47 = vpack.c.bf16 %v9838_v61, %v9834_v3  ;;  %v10189_v3 = vld [vmem:[#allocation11 + $0x40] sm:$0xff] }
0x3810   :  { %v10193_v61 = vld [vmem:[#allocation11 + $0x60] sm:$0xff] }
0x3811   :  { %v20239_v9 = vsel %vm234_vm2, %v9524_v57, %v9144_v19  ;;  %15256 = vmatmul.mubr.msk.f32.vlgmr.msra.gmra.mrb[126].mxu0 %vm258_vm1, %v9524_v57  ;;  %v9632_v19 = vld [vmem:[#allocation10 + $0xd8] sm:$0xff]  ;;  %v9994_v57 = vld [vmem:[#allocation10 + $0x230] sm:$0xff] }
0x3812   :  { %16838 = vmatpush1.bf16.msra.mxu0 %v16837_v58  ;;  %11760 = vmatmul.mubr.msk.f32.vlgmr.msra.gmra.mrb[120].mxu1 %vm258_vm1, %v20239_v9  ;;  %v16847_v29 = vpack.c.bf16 %v9636_v20, %v9632_v19  ;;  %v9995_v58 = vld [vmem:[#allocation10 + $0x238] sm:$0xff]  ;;  %v16901_v11 = vpack.c.bf16 %v9994_v57, %v9990_v6  ;;  %v16895_v20 = vpack.c.bf16 %v10017_v40, %v10013_v24  ;;  %v10207_v24 = vld [vmem:[#allocation11 + $0xd0] sm:$0xff] }
0x3813   :  { %16840 = vmatprep.subr.bf16.mxu0 %v16839_v8  ;;  %9775 = vmatprep.mubr.f32.mxu0 %v17835_v1  ;;  %v16899_v2 = vpack.c.bf16 %v9995_v58, %v9991_v39  ;;  %v9999_v8 = vld [vmem:[#allocation10 + $0x258] sm:$0xff]  ;;  %v10198_v39 = vld [vmem:[#allocation11 + $0x88] sm:$0xff]  ;;  %v16921_v6 = vpack.c.bf16 %v10193_v61, %v10189_v3  ;;  %v10211_v40 = vld [vmem:[#allocation11 + $0xf0] sm:$0xff] }
0x3814   :  { %16886 = vmatpush1.bf16.msra.mxu1 %v16885_v18  ;;  %10087 = vmatprep.mubr.f32.mxu1 %v17835_v1  ;;  %v16903_v15 = vpack.c.bf16 %v10003_v10, %v9999_v8  ;;  %v10002_v18 = vld [vmem:[#allocation10 + $0x270] sm:$0xff]  ;;  %v10015_v19 = vld [vmem:[#allocation10 + $0x2d8] sm:$0xff]  ;;  %v10197_v8 = vld [vmem:[#allocation11 + $0x80] sm:$0xff] }
0x3815   :  { %16888 = vmatprep.subr.bf16.mxu1 %v16887_v28  ;;  %v10007_v28 = vld [vmem:[#allocation10 + $0x298] sm:$0xff]  ;;  %v16905_v62 = vpack.c.bf16 %v10002_v18, %v9998_v5  ;;  %v10201_v10 = vld [vmem:[#allocation11 + $0xa0] sm:$0xff]  ;;  %v10210_v5 = vld [vmem:[#allocation11 + $0xe8] sm:$0xff] }
0x3816   :  { %16842 = vmatpush1.bf16.msra.mxu0 %v16841_v22  ;;  %v16907_v22 = vpack.c.bf16 %v10011_v56, %v10007_v28  ;;  %v10208_v18 = vld [vmem:[#allocation11 + $0xd8] sm:$0xff]  ;;  %v16925_v56 = vpack.c.bf16 %v10201_v10, %v10197_v8  ;;  %v10229_v3 = vld [vmem:[#allocation11 + $0x180] sm:$0xff] }
0x3817   :  { %16844 = vmatprep.subr.bf16.mxu0 %v16843_v14  ;;  %v16909_v14 = vpack.c.bf16 %v10010_v13, %v10006_v16  ;;  %v10212_v28 = vld [vmem:[#allocation11 + $0xf8] sm:$0xff]  ;;  %v10209_v16 = vld [vmem:[#allocation11 + $0xe0] sm:$0xff] }
0x3818   :  { %16890 = vmatpush1.bf16.msra.mxu1 %v16889_v7  ;;  %v10019_v7 = vld [vmem:[#allocation10 + $0x2f8] sm:$0xff]  ;;  %v10233_v61 = vld [vmem:[#allocation11 + $0x1a0] sm:$0xff] }
0x3819   :  { %16892 = vmatprep.subr.bf16.mxu1 %v16891_v25  ;;  %v10012_v25 = vld [vmem:[#allocation10 + $0x2c0] sm:$0xff] }
0x381a   :  { %16846 = vmatpush1.bf16.msra.mxu0 %v16845_v26  ;;  %v16897_v17 = vpack.c.bf16 %v10016_v23, %v10012_v25  ;;  %v10014_v26 = vld [vmem:[#allocation10 + $0x2d0] sm:$0xff]  ;;  %v10220_v25 = vld [vmem:[#allocation11 + $0x138] sm:$0xff]  ;;  %v10241_v8 = vld [vmem:[#allocation11 + $0x1e0] sm:$0xff] }
0x381b   :  { %16848 = vmatprep.subr.bf16.mxu0 %v16847_v29  ;;  %v10018_v29 = vld [vmem:[#allocation10 + $0x2f0] sm:$0xff] }
0x381c   :  { %16894 = vmatpush1.bf16.msra.mxu1 %v16893_v35  ;;  %v16913_v27 = vpack.c.bf16 %v10018_v29, %v10014_v26  ;;  %v16915_v35 = vpack.c.bf16 %v10186_v21, %v10182_v30  ;;  %v10217_v26 = vld [vmem:[#allocation11 + $0x120] sm:$0xff]  ;;  %v10215_v30 = vld [vmem:[#allocation11 + $0x110] sm:$0xff] }
0x381d   :  { %16896 = vmatprep.subr.bf16.mxu1 %v16895_v20  ;;  %v10218_v20 = vld [vmem:[#allocation11 + $0x128] sm:$0xff]  ;;  %v10219_v21 = vld [vmem:[#allocation11 + $0x130] sm:$0xff] }
0x381e   :  { %16850 = vmatpush1.bf16.msra.mxu0 %v16849_v34  ;;  %v10188_v34 = vld [vmem:[#allocation11 + $0x38] sm:$0xff]  ;;  %v17061_v44 = vpack.c.bf16 %v10219_v21, %v10215_v30  ;;  %v10259_v30 = vld [vmem:[#allocation11 + $0x270] sm:$0xff]  ;;  %v10262_v21 = vld [vmem:[#allocation11 + $0x288] sm:$0xff] }
0x381f   :  { %16868 = vmatprep.subr.bf16.mxu0 %v16867_v41  ;;  %v17043_v41 = vpack.c.bf16 %v10188_v34, %v10184_v38  ;;  %v10222_v38 = vld [vmem:[#allocation11 + $0x148] sm:$0xff]  ;;  %v10224_v34 = vld [vmem:[#allocation11 + $0x158] sm:$0xff] }
0x3820   :  { %16898 = vmatpush1.bf16.msra.mxu1 %v16897_v17  ;;  %v10213_v17 = vld [vmem:[#allocation11 + $0x100] sm:$0xff] }
0x3821   :  { %11759 = vmatmul.mubr.msk.f32.vlgmr.msra.gmra.mrb[128].mxu0 %vm258_vm1, %v20229_v33  ;;  %v16881_v33 = vpack.c.bf16 %v9837_v59, %v9833_v4  ;;  %16916 = vmatprep.subr.bf16.mxu1 %v16915_v35  ;;  %v10191_v4 = vld [vmem:[#allocation11 + $0x50] sm:$0xff]  ;;  %v10226_v35 = vld [vmem:[#allocation11 + $0x168] sm:$0xff]  ;;  %v16933_v42 = vpack.c.bf16 %v10217_v26, %v10213_v17  ;;  %v10257_v17 = vld [vmem:[#allocation11 + $0x260] sm:$0xff] }
0x3822   :  { %16870 = vmatpush1.bf16.msra.mxu0 %v16869_v50  ;;  %9977 = vmatprep.mubr.f32.mxu0 %v17835_v1  ;;  %v10187_v50 = vld [vmem:[#allocation11 + $0x30] sm:$0xff] }
0x3823   :  { %16872 = vmatprep.subr.bf16.mxu0 %v16871_v51  ;;  %v10190_v51 = vld [vmem:[#allocation11 + $0x48] sm:$0xff]  ;;  %v17045_v54 = vpack.c.bf16 %v10187_v50, %v10183_v48  ;;  %v10195_v59 = vld [vmem:[#allocation11 + $0x70] sm:$0xff]  ;;  %v10225_v48 = vld [vmem:[#allocation11 + $0x160] sm:$0xff]  ;;  %v16935_v50 = vpack.c.bf16 %v10226_v35, %v10222_v38 }
0x3824   :  { %v17049_v57 = vpack.c.bf16 %v10195_v59, %v10191_v4  ;;  %v10231_v4 = vld [vmem:[#allocation11 + $0x190] sm:$0xff]  ;;  %v10266_v38 = vld [vmem:[#allocation11 + $0x2a8] sm:$0xff]  ;;  %v10264_v35 = vld [vmem:[#allocation11 + $0x298] sm:$0xff] }
0x3825   :  { %v10235_v59 = vld [vmem:[#allocation11 + $0x1b0] sm:$0xff] }
0x3826   :  { %16874 = vmatpush1.bf16.msra.mxu0 %v16873_v45  ;;  %v10196_v45 = vld [vmem:[#allocation11 + $0x78] sm:$0xff] }
0x3827   :  { %16876 = vmatprep.subr.bf16.mxu0 %v16875_v63 }
0x382a   :  { %16878 = vmatpush1.bf16.msra.mxu0 %v16877_v32  ;;  %v16919_v32 = vpack.c.bf16 %v10194_v60, %v10190_v51  ;;  %v10230_v60 = vld [vmem:[#allocation11 + $0x188] sm:$0xff] }
0x382b   :  { %16880 = vmatprep.subr.bf16.mxu0 %v16879_v47  ;;  %v17047_v47 = vpack.c.bf16 %v10196_v45, %v10192_v49  ;;  %v10234_v49 = vld [vmem:[#allocation11 + $0x1a8] sm:$0xff]  ;;  %v10232_v45 = vld [vmem:[#allocation11 + $0x198] sm:$0xff] }
0x382e   :  { %16882 = vmatpush1.bf16.msra.mxu0 %v16881_v33  ;;  %v10200_v33 = vld [vmem:[#allocation11 + $0x98] sm:$0xff] }
0x382f   :  { %16900 = vmatprep.subr.bf16.mxu0 %v16899_v2  ;;  %v10204_v2 = vld [vmem:[#allocation11 + $0xb8] sm:$0xff] }
0x3830   :  { %v17051_v31 = vpack.c.bf16 %v10204_v2, %v10200_v33  ;;  %v10244_v33 = vld [vmem:[#allocation11 + $0x1f8] sm:$0xff]  ;;  %v16941_v2 = vpack.c.bf16 %v10233_v61, %v10229_v3  ;;  %v10273_v3 = vld [vmem:[#allocation11 + $0x2e0] sm:$0xff] }
0x3831   :  { %11761 = vmatmul.mubr.msk.f32.vlgmr.msra.gmra.mrb[128].mxu0 %vm258_vm1, %v20239_v9  ;;  %v16911_v9 = vpack.c.bf16 %v10019_v7, %v10015_v19  ;;  %v10214_v19 = vld [vmem:[#allocation11 + $0x108] sm:$0xff]  ;;  %v10216_v7 = vld [vmem:[#allocation11 + $0x118] sm:$0xff] }
0x3832   :  { %16902 = vmatpush1.bf16.msra.mxu0 %v16901_v11  ;;  %10158 = vmatprep.mubr.f32.mxu0 %v17835_v1  ;;  %v16931_v29 = vpack.c.bf16 %v10218_v20, %v10214_v19  ;;  %v10258_v19 = vld [vmem:[#allocation11 + $0x268] sm:$0xff]  ;;  %v10256_v20 = vld [vmem:[#allocation11 + $0x258] sm:$0xff] }
0x3833   :  { %16904 = vmatprep.subr.bf16.mxu0 %v16903_v15  ;;  %v10199_v15 = vld [vmem:[#allocation11 + $0x90] sm:$0xff] }
0x3836   :  { %16906 = vmatpush1.bf16.msra.mxu0 %v16905_v62  ;;  %v17053_v62 = vpack.c.bf16 %v10203_v43, %v10199_v15  ;;  %v10243_v15 = vld [vmem:[#allocation11 + $0x1f0] sm:$0xff]  ;;  %v10246_v43 = vld [vmem:[#allocation11 + $0x208] sm:$0xff] }
0x3837   :  { %16908 = vmatprep.subr.bf16.mxu0 %v16907_v22  ;;  %v10205_v22 = vld [vmem:[#allocation11 + $0xc0] sm:$0xff] }
0x3838   :  { %v16929_v23 = vpack.c.bf16 %v10209_v16, %v10205_v22  ;;  %v10249_v22 = vld [vmem:[#allocation11 + $0x220] sm:$0xff] }
0x383a   :  { %16910 = vmatpush1.bf16.msra.mxu0 %v16909_v14  ;;  %v17055_v14 = vpack.c.bf16 %v10212_v28, %v10208_v18  ;;  %v10252_v18 = vld [vmem:[#allocation11 + $0x238] sm:$0xff] }
0x383b   :  { %16912 = vmatprep.subr.bf16.mxu0 %v16911_v9  ;;  %v17057_v9 = vpack.c.bf16 %v10211_v40, %v10207_v24  ;;  %v10251_v24 = vld [vmem:[#allocation11 + $0x230] sm:$0xff]  ;;  %v10254_v40 = vld [vmem:[#allocation11 + $0x248] sm:$0xff] }
0x383c   :  { %v16951_v26 = vpack.c.bf16 %v10258_v19, %v10254_v40  ;;  %v10298_v40 = vld [vmem:[#allocation11 + $0x3a8] sm:$0xff]  ;;  %v10296_v19 = vld [vmem:[#allocation11 + $0x398] sm:$0xff] }
0x383e   :  { %16914 = vmatpush1.bf16.msra.mxu0 %v16913_v27  ;;  %v17059_v27 = vpack.c.bf16 %v10220_v25, %v10216_v7  ;;  %v10260_v7 = vld [vmem:[#allocation11 + $0x278] sm:$0xff] }
0x383f   :  { %17044 = vmatprep.subr.bf16.mxu0 %v17043_v41  ;;  %v10228_v41 = vld [vmem:[#allocation11 + $0x178] sm:$0xff] }
0x3840   :  { %v17063_v51 = vpack.c.bf16 %v10228_v41, %v10224_v34  ;;  %v10268_v34 = vld [vmem:[#allocation11 + $0x2b8] sm:$0xff] }
0x38e4   :  { %v9595_v46 = vpop.f32.mrb[126].mxu0 }
0x38e5   :  { %v9599_v52 = vadd.f32 %v9595_v46, %v20132_v12  ;;  %v15257_v55 = vpop.f32.mrb[127].mxu0  ;;  %v10202_v12 = vld [vmem:[#allocation11 + $0xa8] sm:$0xff]  ;;  %v10221_v46 = vld [vmem:[#allocation11 + $0x140] sm:$0xff] }
0x38e6   :  { %v16923_v11 = vpack.c.bf16 %v10202_v12, %v10198_v39  ;;  %v10227_v55 = vld [vmem:[#allocation11 + $0x170] sm:$0xff]  ;;  %v10238_v39 = vld [vmem:[#allocation11 + $0x1c8] sm:$0xff]  ;;  %v10240_v12 = vld [vmem:[#allocation11 + $0x1d8] sm:$0xff] }
0x38e7   :  { %v9600_v63 = vmax.f32 %v9599_v52, 0.0  ;;  %v10223_v52 = vld [vmem:[#allocation11 + $0x150] sm:$0xff] }
0x38e9   :  { %v9603_v58 = vsel %vm234_vm2, %v9600_v63, %v9068_v36  ;;  %v10206_v36 = vld [vmem:[#allocation11 + $0xc8] sm:$0xff]  ;;  %v10236_v63 = vld [vmem:[#allocation11 + $0x1b8] sm:$0xff] }
0x38ea   :  { %11762 = vmatmul.mubr.msk.f32.vlgmr.msra.gmra.mrb[120].mxu1 %vm258_vm1, %v9603_v58  ;;  %11763 = vmatmul.mubr.msk.f32.vlgmr.msra.gmra.mrb[128].mxu0 %vm258_vm1, %v9603_v58  ;;  %v16927_v13 = vpack.c.bf16 %v10210_v5, %v10206_v36  ;;  %v10242_v58 = vld [vmem:[#allocation11 + $0x1e8] sm:$0xff]  ;;  %v10248_v5 = vld [vmem:[#allocation11 + $0x218] sm:$0xff] }
0x38eb   :  { %16918 = vmatpush1.bf16.msra.mxu1 %v16917_v53  ;;  %17046 = vmatpush1.bf16.msra.mxu0 %v17045_v54  ;;  %v16937_v53 = vpack.c.bf16 %v10225_v48, %v10221_v46  ;;  %v17065_v54 = vpack.c.bf16 %v10227_v55, %v10223_v52  ;;  %v16943_v10 = vpack.c.bf16 %v10242_v58, %v10238_v39  ;;  %v10250_v36 = vld [vmem:[#allocation11 + $0x228] sm:$0xff]  ;;  %v10265_v46 = vld [vmem:[#allocation11 + $0x2a0] sm:$0xff]  ;;  %v10267_v52 = vld [vmem:[#allocation11 + $0x2b0] sm:$0xff] }
0x38ec   :  { %16920 = vmatprep.subr.bf16.mxu1 %v16919_v32  ;;  %17048 = vmatprep.subr.bf16.mxu0 %v17047_v47  ;;  %v16939_v32 = vpack.c.bf16 %v10234_v49, %v10230_v60  ;;  %v17067_v47 = vpack.c.bf16 %v10236_v63, %v10232_v45  ;;  %v16947_v16 = vpack.c.bf16 %v10250_v36, %v10246_v43  ;;  %v10270_v55 = vld [vmem:[#allocation11 + $0x2c8] sm:$0xff]  ;;  %v10272_v49 = vld [vmem:[#allocation11 + $0x2d8] sm:$0xff] }
0x38ed   :  { %v16955_v48 = vpack.c.bf16 %v10266_v38, %v10262_v21  ;;  %v10274_v60 = vld [vmem:[#allocation11 + $0x2e8] sm:$0xff]  ;;  %v10276_v45 = vld [vmem:[#allocation11 + $0x2f8] sm:$0xff] }
0x38ee   :  { %v16959_v61 = vpack.c.bf16 %v10274_v60, %v10270_v55  ;;  %v10282_v39 = vld [vmem:[#allocation11 + $0x328] sm:$0xff]  ;;  %v10280_v58 = vld [vmem:[#allocation11 + $0x318] sm:$0xff] }
0x38ef   :  { %16922 = vmatpush1.bf16.msra.mxu1 %v16921_v6  ;;  %17050 = vmatpush1.bf16.msra.mxu0 %v17049_v57  ;;  %v17069_v6 = vpack.c.bf16 %v10235_v59, %v10231_v4  ;;  %v10237_v57 = vld [vmem:[#allocation11 + $0x1c0] sm:$0xff]  ;;  %v10275_v4 = vld [vmem:[#allocation11 + $0x2f0] sm:$0xff]  ;;  %v10278_v59 = vld [vmem:[#allocation11 + $0x308] sm:$0xff] }
0x38f0   :  { %16924 = vmatprep.subr.bf16.mxu1 %v16923_v11  ;;  %17052 = vmatprep.subr.bf16.mxu0 %v17051_v31  ;;  %v17071_v11 = vpack.c.bf16 %v10244_v33, %v10240_v12  ;;  %v10239_v31 = vld [vmem:[#allocation11 + $0x1d0] sm:$0xff]  ;;  %v16945_v28 = vpack.c.bf16 %v10241_v8, %v10237_v57  ;;  %v10284_v12 = vld [vmem:[#allocation11 + $0x338] sm:$0xff]  ;;  %v10281_v57 = vld [vmem:[#allocation11 + $0x320] sm:$0xff]  ;;  %v16963_v8 = vpack.c.bf16 %v10282_v39, %v10278_v59 }
0x38f1   :  { %v10290_v43 = vld [vmem:[#allocation11 + $0x368] sm:$0xff]  ;;  %v10288_v36 = vld [vmem:[#allocation11 + $0x358] sm:$0xff] }
0x38f2   :  { %v10302_v38 = vld [vmem:[#allocation11 + $0x3c8] sm:$0xff] }
0x38f3   :  { %16926 = vmatpush1.bf16.msra.mxu1 %v16925_v56  ;;  %17054 = vmatpush1.bf16.msra.mxu0 %v17053_v62  ;;  %v17073_v56 = vpack.c.bf16 %v10243_v15, %v10239_v31  ;;  %v10245_v62 = vld [vmem:[#allocation11 + $0x200] sm:$0xff]  ;;  %v10283_v31 = vld [vmem:[#allocation11 + $0x330] sm:$0xff]  ;;  %v10286_v15 = vld [vmem:[#allocation11 + $0x348] sm:$0xff] }
0x38f4   :  { %16928 = vmatprep.subr.bf16.mxu1 %v16927_v13  ;;  %17056 = vmatprep.subr.bf16.mxu0 %v17055_v14  ;;  %v17075_v13 = vpack.c.bf16 %v10252_v18, %v10248_v5  ;;  %v10247_v14 = vld [vmem:[#allocation11 + $0x210] sm:$0xff]  ;;  %v16949_v25 = vpack.c.bf16 %v10249_v22, %v10245_v62  ;;  %v10292_v5 = vld [vmem:[#allocation11 + $0x378] sm:$0xff]  ;;  %v10289_v62 = vld [vmem:[#allocation11 + $0x360] sm:$0xff]  ;;  %v16967_v22 = vpack.c.bf16 %v10290_v43, %v10286_v15 }
0x38f5   :  { %v10310_v60 = vld [vmem:[#allocation11 + $0x408] sm:$0xff]  ;;  %v10315_v15 = vld [vmem:[#allocation11 + $0x430] sm:$0xff] }
0x38f7   :  { %16930 = vmatpush1.bf16.msra.mxu1 %v16929_v23  ;;  %17058 = vmatpush1.bf16.msra.mxu0 %v17057_v9  ;;  %v17077_v23 = vpack.c.bf16 %v10251_v24, %v10247_v14  ;;  %v10253_v9 = vld [vmem:[#allocation11 + $0x240] sm:$0xff]  ;;  %v10291_v14 = vld [vmem:[#allocation11 + $0x370] sm:$0xff]  ;;  %v10294_v24 = vld [vmem:[#allocation11 + $0x388] sm:$0xff] }
0x38f8   :  { %16932 = vmatprep.subr.bf16.mxu1 %v16931_v29  ;;  %17060 = vmatprep.subr.bf16.mxu0 %v17059_v27  ;;  %v17079_v29 = vpack.c.bf16 %v10260_v7, %v10256_v20  ;;  %v10255_v27 = vld [vmem:[#allocation11 + $0x250] sm:$0xff]  ;;  %v16953_v41 = vpack.c.bf16 %v10257_v17, %v10253_v9  ;;  %v10300_v20 = vld [vmem:[#allocation11 + $0x3b8] sm:$0xff]  ;;  %v10293_v17 = vld [vmem:[#allocation11 + $0x380] sm:$0xff] }
0x38f9   :  { %v17099_v9 = vpack.c.bf16 %v10300_v20, %v10296_v19  ;;  %v10323_v19 = vld [vmem:[#allocation11 + $0x470] sm:$0xff]  ;;  %v10326_v20 = vld [vmem:[#allocation11 + $0x488] sm:$0xff] }
0x38fb   :  { %16934 = vmatpush1.bf16.msra.mxu1 %v16933_v42  ;;  %17062 = vmatpush1.bf16.msra.mxu0 %v17061_v44  ;;  %v17081_v42 = vpack.c.bf16 %v10259_v30, %v10255_v27  ;;  %v10261_v44 = vld [vmem:[#allocation11 + $0x280] sm:$0xff]  ;;  %v10299_v30 = vld [vmem:[#allocation11 + $0x3b0] sm:$0xff] }
0x38fc   :  { %16936 = vmatprep.subr.bf16.mxu1 %v16935_v50  ;;  %17064 = vmatprep.subr.bf16.mxu0 %v17063_v51  ;;  %v17083_v50 = vpack.c.bf16 %v10268_v34, %v10264_v35  ;;  %v10263_v51 = vld [vmem:[#allocation11 + $0x290] sm:$0xff]  ;;  %v16957_v63 = vpack.c.bf16 %v10265_v46, %v10261_v44  ;;  %v10306_v35 = vld [vmem:[#allocation11 + $0x3e8] sm:$0xff]  ;;  %v10304_v34 = vld [vmem:[#allocation11 + $0x3d8] sm:$0xff] }
0x38fd   :  { %v10301_v44 = vld [vmem:[#allocation11 + $0x3c0] sm:$0xff] }
0x38fe   :  { %v10305_v46 = vld [vmem:[#allocation11 + $0x3e0] sm:$0xff] }
0x38ff   :  { %16938 = vmatpush1.bf16.msra.mxu1 %v16937_v53  ;;  %17066 = vmatpush1.bf16.msra.mxu0 %v17065_v54  ;;  %v17085_v53 = vpack.c.bf16 %v10267_v52, %v10263_v51  ;;  %v10269_v54 = vld [vmem:[#allocation11 + $0x2c0] sm:$0xff]  ;;  %v10303_v51 = vld [vmem:[#allocation11 + $0x3d0] sm:$0xff] }
0x3900   :  { %16940 = vmatprep.subr.bf16.mxu1 %v16939_v32  ;;  %17068 = vmatprep.subr.bf16.mxu0 %v17067_v47  ;;  %v17087_v32 = vpack.c.bf16 %v10276_v45, %v10272_v49  ;;  %v10271_v47 = vld [vmem:[#allocation11 + $0x2d0] sm:$0xff]  ;;  %v16961_v33 = vpack.c.bf16 %v10273_v3, %v10269_v54  ;;  %v10314_v49 = vld [vmem:[#allocation11 + $0x428] sm:$0xff]  ;;  %v10312_v45 = vld [vmem:[#allocation11 + $0x418] sm:$0xff]  ;;  %v20260_v3 = vshrl.u32 %v232_v37, 7 }
0x3901   :  { %v10307_v52 = vld [vmem:[#allocation11 + $0x3f0] sm:$0xff] }
0x3902   :  { %v17105_v55 = vpack.c.bf16 %v10307_v52, %v10303_v51 }
0x3903   :  { %16942 = vmatpush1.bf16.msra.mxu1 %v16941_v2  ;;  %17070 = vmatpush1.bf16.msra.mxu0 %v17069_v6  ;;  %v17089_v2 = vpack.c.bf16 %v10275_v4, %v10271_v47  ;;  %v10277_v6 = vld [vmem:[#allocation11 + $0x300] sm:$0xff]  ;;  %v20271_v47 = vsub.s32 1, %v20260_v3  ;;  %v9797_v4 = vsub.s32 3, %v20260_v3 }
0x3904   :  { %16944 = vmatprep.subr.bf16.mxu1 %v16943_v10  ;;  %17072 = vmatprep.subr.bf16.mxu0 %v17071_v11  ;;  %v17091_v10 = vpack.c.bf16 %v10284_v12, %v10280_v58  ;;  %v10279_v11 = vld [vmem:[#allocation11 + $0x310] sm:$0xff]  ;;  %v16965_v18 = vpack.c.bf16 %v10281_v57, %v10277_v6  ;;  %v10309_v57 = vld [vmem:[#allocation11 + $0x400] sm:$0xff] }
0x3907   :  { %16946 = vmatpush1.bf16.msra.mxu1 %v16945_v28  ;;  %17074 = vmatpush1.bf16.msra.mxu0 %v17073_v56  ;;  %v17093_v28 = vpack.c.bf16 %v10283_v31, %v10279_v11  ;;  %v10285_v56 = vld [vmem:[#allocation11 + $0x340] sm:$0xff]  ;;  %v10311_v31 = vld [vmem:[#allocation11 + $0x410] sm:$0xff] }
0x3908   :  { %16948 = vmatprep.subr.bf16.mxu1 %v16947_v16  ;;  %17076 = vmatprep.subr.bf16.mxu0 %v17075_v13  ;;  %v17095_v16 = vpack.c.bf16 %v10292_v5, %v10288_v36  ;;  %v10287_v13 = vld [vmem:[#allocation11 + $0x350] sm:$0xff]  ;;  %v16969_v7 = vpack.c.bf16 %v10289_v62, %v10285_v56  ;;  %v10313_v11 = vld [vmem:[#allocation11 + $0x420] sm:$0xff]  ;;  %v10318_v36 = vld [vmem:[#allocation11 + $0x448] sm:$0xff] }
0x3909   :  { %v10322_v5 = vld [vmem:[#allocation11 + $0x468] sm:$0xff]  ;;  %v10324_v56 = vld [vmem:[#allocation11 + $0x478] sm:$0xff] }
0x390b   :  { %16950 = vmatpush1.bf16.msra.mxu1 %v16949_v25  ;;  %17078 = vmatpush1.bf16.msra.mxu0 %v17077_v23  ;;  %v17097_v25 = vpack.c.bf16 %v10291_v14, %v10287_v13  ;;  %v16971_v23 = vpack.c.bf16 %v10298_v40, %v10294_v24  ;;  %v10317_v13 = vld [vmem:[#allocation11 + $0x440] sm:$0xff]  ;;  %v10319_v40 = vld [vmem:[#allocation11 + $0x450] sm:$0xff] }
0x390c   :  { %16952 = vmatprep.subr.bf16.mxu1 %v16951_v26  ;;  %17080 = vmatprep.subr.bf16.mxu0 %v17079_v29  ;;  %v10297_v26 = vld [vmem:[#allocation11 + $0x3a0] sm:$0xff]  ;;  %v10295_v29 = vld [vmem:[#allocation11 + $0x390] sm:$0xff] }
0x390d   :  { %v16973_v27 = vpack.c.bf16 %v10297_v26, %v10293_v17  ;;  %v17101_v21 = vpack.c.bf16 %v10299_v30, %v10295_v29  ;;  %v10321_v14 = vld [vmem:[#allocation11 + $0x460] sm:$0xff]  ;;  %v10328_v17 = vld [vmem:[#allocation11 + $0x498] sm:$0xff]  ;;  %v17113_v30 = vpack.c.bf16 %v10323_v19, %v10319_v40 }
0x390e   :  { %v10332_v26 = vld [vmem:[#allocation11 + $0x4b8] sm:$0xff] }
0x390f   :  { %16954 = vmatpush1.bf16.msra.mxu1 %v16953_v41  ;;  %17082 = vmatpush1.bf16.msra.mxu0 %v17081_v42  ;;  %v16975_v41 = vpack.c.bf16 %v10306_v35, %v10302_v38  ;;  %v10308_v42 = vld [vmem:[#allocation11 + $0x3f8] sm:$0xff]  ;;  %v10329_v38 = vld [vmem:[#allocation11 + $0x4a0] sm:$0xff] }
0x3910   :  { %16956 = vmatprep.subr.bf16.mxu1 %v16955_v48  ;;  %17084 = vmatprep.subr.bf16.mxu0 %v17083_v50  ;;  %v17103_v48 = vpack.c.bf16 %v10308_v42, %v10304_v34  ;;  %v16977_v50 = vpack.c.bf16 %v10305_v46, %v10301_v44  ;;  %v17115_v34 = vpack.c.bf16 %v10332_v26, %v10328_v17  ;;  %v10331_v42 = vld [vmem:[#allocation11 + $0x4b0] sm:$0xff]  ;;  %v10334_v44 = vld [vmem:[#allocation11 + $0x4c8] sm:$0xff]  ;;  %v10360_v40 = vld [vmem:[#allocation11 + $0x598] sm:$0xff] }
0x3911   :  { %v10338_v46 = vld [vmem:[#allocation11 + $0x4e8] sm:$0xff]  ;;  %v10364_v19 = vld [vmem:[#allocation11 + $0x5b8] sm:$0xff]  ;;  %v10359_v26 = vld [vmem:[#allocation11 + $0x590] sm:$0xff] }
0x3912   :  { %v17131_v17 = vpack.c.bf16 %v10364_v19, %v10360_v40  ;;  %v10391_v40 = vld [vmem:[#allocation11 + $0x690] sm:$0xff] }
0x3913   :  { %16958 = vmatpush1.bf16.msra.mxu1 %v16957_v63  ;;  %17086 = vmatpush1.bf16.msra.mxu0 %v17085_v53  ;;  %v16979_v63 = vpack.c.bf16 %v10314_v49, %v10310_v60  ;;  %v10316_v53 = vld [vmem:[#allocation11 + $0x438] sm:$0xff]  ;;  %v10337_v60 = vld [vmem:[#allocation11 + $0x4e0] sm:$0xff]  ;;  %v16991_v49 = vpack.c.bf16 %v10338_v46, %v10334_v44  ;;  %v10395_v19 = vld [vmem:[#allocation11 + $0x6b0] sm:$0xff] }
0x3914   :  { %16960 = vmatprep.subr.bf16.mxu1 %v16959_v61  ;;  %17088 = vmatprep.subr.bf16.mxu0 %v17087_v32  ;;  %v17107_v54 = vpack.c.bf16 %v10316_v53, %v10312_v45  ;;  %v20263_v61 = vsub.s32 0, %v20260_v3  ;;  %v20268_v32 = vld [vmem:[%s20378_s6] sm:$0xf]  ;;  %v10339_v53 = vld [vmem:[#allocation11 + $0x4f0] sm:$0xff] }
0x3915   :  { %v9790_v37 = vrot.slane %v20268_v32, %v20271_v47  ;;  %v9798_v39 = vrot.slane %v20268_v32, %v9797_v4 }
0x3916   :  { %v9786_v59 = vrot.slane %v20268_v32, %v20263_v61 }
0x3917   :  { %16962 = vmatpush1.bf16.msra.mxu1 %v16961_v33  ;;  %17090 = vmatpush1.bf16.msra.mxu0 %v17089_v2 }
0x3918   :  { %16964 = vmatprep.subr.bf16.mxu1 %v16963_v8  ;;  %17092 = vmatprep.subr.bf16.mxu0 %v17091_v10 }
0x391b   :  { %16966 = vmatpush1.bf16.msra.mxu1 %v16965_v18  ;;  %17094 = vmatpush1.bf16.msra.mxu0 %v17093_v28  ;;  %v10320_v28 = vld [vmem:[#allocation11 + $0x458] sm:$0xff] }
0x391c   :  { %16968 = vmatprep.subr.bf16.mxu1 %v16967_v22  ;;  %17096 = vmatprep.subr.bf16.mxu0 %v17095_v16  ;;  %v16981_v22 = vpack.c.bf16 %v10313_v11, %v10309_v57  ;;  %v17109_v16 = vpack.c.bf16 %v10315_v15, %v10311_v31  ;;  %v10347_v11 = vld [vmem:[#allocation11 + $0x530] sm:$0xff]  ;;  %v10350_v31 = vld [vmem:[#allocation11 + $0x548] sm:$0xff] }
0x391d   :  { %v10354_v15 = vld [vmem:[#allocation11 + $0x568] sm:$0xff] }
0x391f   :  { %16970 = vmatpush1.bf16.msra.mxu1 %v16969_v7  ;;  %17098 = vmatpush1.bf16.msra.mxu0 %v17097_v25  ;;  %v16983_v25 = vpack.c.bf16 %v10322_v5, %v10318_v36  ;;  %v10356_v36 = vld [vmem:[#allocation11 + $0x578] sm:$0xff] }
0x3920   :  { %16972 = vmatprep.subr.bf16.mxu1 %v16971_v23  ;;  %17100 = vmatprep.subr.bf16.mxu0 %v17099_v9  ;;  %v17111_v23 = vpack.c.bf16 %v10324_v56, %v10320_v28  ;;  %v10330_v9 = vld [vmem:[#allocation11 + $0x4a8] sm:$0xff]  ;;  %v10349_v28 = vld [vmem:[#allocation11 + $0x540] sm:$0xff] }
0x3921   :  { %v16987_v35 = vpack.c.bf16 %v10330_v9, %v10326_v20  ;;  %v10353_v56 = vld [vmem:[#allocation11 + $0x560] sm:$0xff] }
0x3922   :  { %v17001_v20 = vpack.c.bf16 %v10353_v56, %v10349_v28  ;;  %v10392_v28 = vld [vmem:[#allocation11 + $0x698] sm:$0xff] }
0x3923   :  { %16974 = vmatpush1.bf16.msra.mxu1 %v16973_v27  ;;  %17102 = vmatpush1.bf16.msra.mxu0 %v17101_v21  ;;  %v16985_v27 = vpack.c.bf16 %v10321_v14, %v10317_v13  ;;  %v10325_v21 = vld [vmem:[#allocation11 + $0x480] sm:$0xff]  ;;  %v10355_v13 = vld [vmem:[#allocation11 + $0x570] sm:$0xff]  ;;  %v10358_v14 = vld [vmem:[#allocation11 + $0x588] sm:$0xff] }
0x3924   :  { %16976 = vmatprep.subr.bf16.mxu1 %v16975_v41  ;;  %17104 = vmatprep.subr.bf16.mxu0 %v17103_v48  ;;  %v10327_v41 = vld [vmem:[#allocation11 + $0x490] sm:$0xff]  ;;  %v10336_v48 = vld [vmem:[#allocation11 + $0x4d8] sm:$0xff]  ;;  %v16989_v51 = vpack.c.bf16 %v10329_v38, %v10325_v21 }
0x3925   :  { %v17117_v52 = vpack.c.bf16 %v10331_v42, %v10327_v41  ;;  %v10368_v21 = vld [vmem:[#allocation11 + $0x5d8] sm:$0xff]  ;;  %v10365_v41 = vld [vmem:[#allocation11 + $0x5c0] sm:$0xff] }
0x3926   :  { %v10372_v38 = vld [vmem:[#allocation11 + $0x5f8] sm:$0xff]  ;;  %v10369_v42 = vld [vmem:[#allocation11 + $0x5e0] sm:$0xff] }
0x3927   :  { %16978 = vmatpush1.bf16.msra.mxu1 %v16977_v50  ;;  %17106 = vmatpush1.bf16.msra.mxu0 %v17105_v55  ;;  %v10340_v50 = vld [vmem:[#allocation11 + $0x4f8] sm:$0xff]  ;;  %v10333_v55 = vld [vmem:[#allocation11 + $0x4c0] sm:$0xff]  ;;  %v17135_v46 = vpack.c.bf16 %v10372_v38, %v10368_v21  ;;  %v10399_v21 = vld [vmem:[#allocation11 + $0x6d0] sm:$0xff] }
0x3928   :  { %16980 = vmatprep.subr.bf16.mxu1 %v16979_v63  ;;  %17108 = vmatprep.subr.bf16.mxu0 %v17107_v54  ;;  %v17119_v45 = vpack.c.bf16 %v10340_v50, %v10336_v48  ;;  %v10335_v63 = vld [vmem:[#allocation11 + $0x4d0] sm:$0xff]  ;;  %v10342_v54 = vld [vmem:[#allocation11 + $0x508] sm:$0xff]  ;;  %v10396_v56 = vld [vmem:[#allocation11 + $0x6b8] sm:$0xff] }
0x3929   :  { %v10367_v48 = vld [vmem:[#allocation11 + $0x5d0] sm:$0xff] }
0x392a   :  { %v10371_v50 = vld [vmem:[#allocation11 + $0x5f0] sm:$0xff] }
0x392b   :  { %v10403_v38 = vld [vmem:[#allocation11 + $0x6f0] sm:$0xff] }
0x39bd   :  { %v10089_v58 = vpop.f32.mrb[120].mxu1  ;;  %v20281_v12 = vpop.f32.mrb[128].mxu0 }
0x39be   :  { %v17467_v33 = vadd.f32 %v10089_v58, %v9786_v59  ;;  %v10091_v2 = vpop.f32.mrb[121].mxu1  ;;  %v10162_v6 = vpop.f32.mrb[129].mxu0  ;;  %v10346_v59 = vld [vmem:[#allocation11 + $0x528] sm:$0xff]  ;;  %v16993_v58 = vpack.c.bf16 %v10337_v60, %v10333_v55  ;;  %v10376_v55 = vld [vmem:[#allocation11 + $0x618] sm:$0xff] }
0x39bf   :  { %v17468_v8 = vadd.f32 %v10091_v2, %v9790_v37  ;;  %v17470_v10 = vadd.f32 %v10162_v6, %v9798_v39  ;;  %v10344_v37 = vld [vmem:[#allocation11 + $0x518] sm:$0xff]  ;;  %v10341_v2 = vld [vmem:[#allocation11 + $0x500] sm:$0xff]  ;;  %v16995_v57 = vpack.c.bf16 %v10346_v59, %v10342_v54 }
0x39c0   :  { %v10173_v43 = vmul.f32 0.01, %v17467_v33  ;;  %vm10169_vm3 = vcmp.gt.f32.partialorder %v17467_v33, 0.0  ;;  %v10348_v39 = vld [vmem:[#allocation11 + $0x538] sm:$0xff]  ;;  %v10345_v6 = vld [vmem:[#allocation11 + $0x520] sm:$0xff] }
0x39c1   :  { %v10174_v18 = vmul.f32 0.01, %v17468_v8  ;;  %vm10170_vm4 = vcmp.gt.f32.partialorder %v17468_v8, 0.0  ;;  %v10176_v62 = vmul.f32 0.01, %v17470_v10  ;;  %vm10172_vm5 = vcmp.gt.f32.partialorder %v17470_v10, 0.0 }
0x39c2   :  { %v10177_v7 = vsel %vm10169_vm3, %v17467_v33, %v10173_v43  ;;  %v17121_v33 = vpack.c.bf16 %v10339_v53, %v10335_v63  ;;  %v10352_v43 = vld [vmem:[#allocation11 + $0x558] sm:$0xff]  ;;  %v16997_v5 = vpack.c.bf16 %v10345_v6, %v10341_v2  ;;  %v10373_v63 = vld [vmem:[#allocation11 + $0x600] sm:$0xff] }
0x39c3   :  { %v10178_v24 = vsel %vm10170_vm4, %v17468_v8, %v10174_v18  ;;  %v10180_v29 = vsel %vm10172_vm5, %v17470_v10, %v10176_v62  ;;  %v17123_v8 = vpack.c.bf16 %v10348_v39, %v10344_v37  ;;  %v10343_v10 = vld [vmem:[#allocation11 + $0x510] sm:$0xff]  ;;  %v16999_v62 = vpack.c.bf16 %v10354_v15, %v10350_v31  ;;  %v10380_v60 = vld [vmem:[#allocation11 + $0x638] sm:$0xff]  ;;  %v10377_v53 = vld [vmem:[#allocation11 + $0x620] sm:$0xff] }
0x39c4   :  { %10523 = vmatprep.mubr.f32.mxu1 %v10178_v24  ;;  %10665 = vmatprep.mubr.f32.mxu0 %v10178_v24  ;;  %v17125_v18 = vpack.c.bf16 %v10347_v11, %v10343_v10  ;;  %v10362_v24 = vld [vmem:[#allocation11 + $0x5a8] sm:$0xff]  ;;  %v17139_v59 = vpack.c.bf16 %v10380_v60, %v10376_v55  ;;  %v10375_v37 = vld [vmem:[#allocation11 + $0x610] sm:$0xff]  ;;  %v10384_v2 = vld [vmem:[#allocation11 + $0x658] sm:$0xff] }
0x39c5   :  { %10524 = vmatmul.mubr.f32.vlgmr.msra.gmra.mrb[122].mxu1 %v10177_v7  ;;  %10666 = vmatmul.mubr.f32.vlgmr.msra.gmra.mrb[130].mxu0 %v10177_v7  ;;  %v17003_v9 = vpack.c.bf16 %v10362_v24, %v10358_v14  ;;  %v10379_v39 = vld [vmem:[#allocation11 + $0x630] sm:$0xff]  ;;  %v10388_v6 = vld [vmem:[#allocation11 + $0x678] sm:$0xff]  ;;  %v10381_v10 = vld [vmem:[#allocation11 + $0x640] sm:$0xff]  ;;  %v17147_v24 = vpack.c.bf16 %v10396_v56, %v10392_v28 }
0x39c6   :  { %16982 = vmatpush1.bf16.msra.mxu1 %v16981_v22  ;;  %17110 = vmatpush1.bf16.msra.mxu0 %v17109_v16  ;;  %v17127_v22 = vpack.c.bf16 %v10356_v36, %v10352_v43  ;;  %v10351_v16 = vld [vmem:[#allocation11 + $0x550] sm:$0xff]  ;;  %v10385_v11 = vld [vmem:[#allocation11 + $0x660] sm:$0xff]  ;;  %v17143_v15 = vpack.c.bf16 %v10388_v6, %v10384_v2 }
0x39c7   :  { %10594 = vmatprep.mubr.f32.mxu1 %v10180_v29  ;;  %10736 = vmatprep.mubr.f32.mxu0 %v10180_v29  ;;  %v17129_v7 = vpack.c.bf16 %v10355_v13, %v10351_v16  ;;  %v10363_v29 = vld [vmem:[#allocation11 + $0x5b0] sm:$0xff]  ;;  %v10389_v16 = vld [vmem:[#allocation11 + $0x680] sm:$0xff] }
0x39c8   :  { %16984 = vmatprep.subr.bf16.mxu1 %v16983_v25  ;;  %17112 = vmatprep.subr.bf16.mxu0 %v17111_v23  ;;  %v10357_v25 = vld [vmem:[#allocation11 + $0x580] sm:$0xff]  ;;  %v10383_v43 = vld [vmem:[#allocation11 + $0x650] sm:$0xff] }
0x39c9   :  { %v10361_v23 = vld [vmem:[#allocation11 + $0x5a0] sm:$0xff]  ;;  %v10387_v36 = vld [vmem:[#allocation11 + $0x670] sm:$0xff] }
0x39ca   :  { %16986 = vmatpush1.bf16.msra.mxu1 %v16985_v27  ;;  %17114 = vmatpush1.bf16.msra.mxu0 %v17113_v30  ;;  %v10366_v27 = vld [vmem:[#allocation11 + $0x5c8] sm:$0xff]  ;;  %v10393_v13 = vld [vmem:[#allocation11 + $0x6a0] sm:$0xff]  ;;  %v10407_v55 = vld [vmem:[#allocation11 + $0x710] sm:$0xff] }
0x39cb   :  { %16988 = vmatprep.subr.bf16.mxu1 %v16987_v35  ;;  %17116 = vmatprep.subr.bf16.mxu0 %v17115_v34  ;;  %v10370_v30 = vld [vmem:[#allocation11 + $0x5e8] sm:$0xff]  ;;  %v17005_v35 = vpack.c.bf16 %v10361_v23, %v10357_v25  ;;  %v17133_v34 = vpack.c.bf16 %v10363_v29, %v10359_v26  ;;  %v10400_v25 = vld [vmem:[#allocation11 + $0x6d8] sm:$0xff]  ;;  %v10397_v26 = vld [vmem:[#allocation11 + $0x6c0] sm:$0xff] }
0x39cc   :  { %v17007_v44 = vpack.c.bf16 %v10370_v30, %v10366_v27  ;;  %v10404_v23 = vld [vmem:[#allocation11 + $0x6f8] sm:$0xff]  ;;  %v10401_v29 = vld [vmem:[#allocation11 + $0x6e0] sm:$0xff]  ;;  %v10411_v60 = vld [vmem:[#allocation11 + $0x730] sm:$0xff] }
0x39cd   :  { %v17151_v30 = vpack.c.bf16 %v10404_v23, %v10400_v25  ;;  %v10415_v2 = vld [vmem:[#allocation11 + $0x750] sm:$0xff]  ;;  %v10433_v23 = vld [vmem:[#allocation11 + $0x7e0] sm:$0xff] }
0x39ce   :  { %16990 = vmatpush1.bf16.msra.mxu1 %v16989_v51  ;;  %17118 = vmatpush1.bf16.msra.mxu0 %v17117_v52  ;;  %v10374_v51 = vld [vmem:[#allocation11 + $0x608] sm:$0xff]  ;;  %v10419_v6 = vld [vmem:[#allocation11 + $0x770] sm:$0xff] }
0x39cf   :  { %16992 = vmatprep.subr.bf16.mxu1 %v16991_v49  ;;  %17120 = vmatprep.subr.bf16.mxu0 %v17119_v45  ;;  %v10378_v52 = vld [vmem:[#allocation11 + $0x628] sm:$0xff]  ;;  %v17009_v49 = vpack.c.bf16 %v10369_v42, %v10365_v41  ;;  %v17137_v45 = vpack.c.bf16 %v10371_v50, %v10367_v48  ;;  %v10408_v41 = vld [vmem:[#allocation11 + $0x718] sm:$0xff]  ;;  %v10405_v48 = vld [vmem:[#allocation11 + $0x700] sm:$0xff] }
0x39d0   :  { %v17011_v54 = vpack.c.bf16 %v10378_v52, %v10374_v51  ;;  %v10412_v42 = vld [vmem:[#allocation11 + $0x738] sm:$0xff]  ;;  %v10409_v50 = vld [vmem:[#allocation11 + $0x720] sm:$0xff]  ;;  %v10423_v56 = vld [vmem:[#allocation11 + $0x790] sm:$0xff] }
0x39d1   :  { %v17155_v52 = vpack.c.bf16 %v10412_v42, %v10408_v41  ;;  %v10760_v41 = vld [vmem:[#allocation13 + $0x28] sm:$0xff]  ;;  %v10762_v42 = vld [vmem:[#allocation13 + $0x38] sm:$0xff] }
0x39d2   :  { %16994 = vmatpush1.bf16.msra.mxu1 %v16993_v58  ;;  %17122 = vmatpush1.bf16.msra.mxu0 %v17121_v33  ;;  %v10382_v58 = vld [vmem:[#allocation11 + $0x648] sm:$0xff] }
0x39d3   :  { %16996 = vmatprep.subr.bf16.mxu1 %v16995_v57  ;;  %17124 = vmatprep.subr.bf16.mxu0 %v17123_v8  ;;  %v10386_v33 = vld [vmem:[#allocation11 + $0x668] sm:$0xff]  ;;  %v17013_v57 = vpack.c.bf16 %v10377_v53, %v10373_v63  ;;  %v17141_v8 = vpack.c.bf16 %v10379_v39, %v10375_v37  ;;  %v10416_v63 = vld [vmem:[#allocation11 + $0x758] sm:$0xff]  ;;  %v10413_v37 = vld [vmem:[#allocation11 + $0x740] sm:$0xff] }
0x39d4   :  { %v17015_v31 = vpack.c.bf16 %v10386_v33, %v10382_v58  ;;  %v10420_v53 = vld [vmem:[#allocation11 + $0x778] sm:$0xff]  ;;  %v10417_v39 = vld [vmem:[#allocation11 + $0x760] sm:$0xff] }
0x39d5   :  { %v17159_v33 = vpack.c.bf16 %v10420_v53, %v10416_v63  ;;  %v10768_v63 = vld [vmem:[#allocation13 + $0x68] sm:$0xff]  ;;  %v10770_v53 = vld [vmem:[#allocation13 + $0x78] sm:$0xff] }
0x39d6   :  { %16998 = vmatpush1.bf16.msra.mxu1 %v16997_v5  ;;  %17126 = vmatpush1.bf16.msra.mxu0 %v17125_v18  ;;  %v10390_v5 = vld [vmem:[#allocation11 + $0x688] sm:$0xff] }
0x39d7   :  { %17000 = vmatprep.subr.bf16.mxu1 %v16999_v62  ;;  %17128 = vmatprep.subr.bf16.mxu0 %v17127_v22  ;;  %v10394_v18 = vld [vmem:[#allocation11 + $0x6a8] sm:$0xff]  ;;  %v17017_v62 = vpack.c.bf16 %v10385_v11, %v10381_v10  ;;  %v17145_v22 = vpack.c.bf16 %v10387_v36, %v10383_v43  ;;  %v10424_v11 = vld [vmem:[#allocation11 + $0x798] sm:$0xff]  ;;  %v17161_v43 = vpack.c.bf16 %v10419_v6, %v10415_v2  ;;  %v10421_v36 = vld [vmem:[#allocation11 + $0x780] sm:$0xff] }
0x39d8   :  { %v17019_v14 = vpack.c.bf16 %v10394_v18, %v10390_v5  ;;  %v10426_v10 = vld [vmem:[#allocation11 + $0x7a8] sm:$0xff]  ;;  %v10425_v5 = vld [vmem:[#allocation11 + $0x7a0] sm:$0xff] }
0x39da   :  { %17002 = vmatpush1.bf16.msra.mxu1 %v17001_v20  ;;  %17130 = vmatpush1.bf16.msra.mxu0 %v17129_v7  ;;  %v10398_v20 = vld [vmem:[#allocation11 + $0x6c8] sm:$0xff] }
0x39db   :  { %17004 = vmatprep.subr.bf16.mxu1 %v17003_v9  ;;  %17132 = vmatprep.subr.bf16.mxu0 %v17131_v17  ;;  %v10402_v7 = vld [vmem:[#allocation11 + $0x6e8] sm:$0xff]  ;;  %v17021_v9 = vpack.c.bf16 %v10393_v13, %v10389_v16  ;;  %v17149_v17 = vpack.c.bf16 %v10395_v19, %v10391_v40  ;;  %v17037_v40 = vpack.c.bf16 %v10425_v5, %v10421_v36  ;;  %v10775_v36 = vld [vmem:[#allocation13 + $0xa0] sm:$0xff]  ;;  %v10777_v5 = vld [vmem:[#allocation13 + $0xb0] sm:$0xff] }
0x39dc   :  { %v17023_v27 = vpack.c.bf16 %v10402_v7, %v10398_v20  ;;  %v10434_v13 = vld [vmem:[#allocation11 + $0x7e8] sm:$0xff]  ;;  %v10429_v20 = vld [vmem:[#allocation11 + $0x7c0] sm:$0xff] }
0x39de   :  { %17006 = vmatpush1.bf16.msra.mxu1 %v17005_v35  ;;  %17134 = vmatpush1.bf16.msra.mxu0 %v17133_v34  ;;  %v10406_v35 = vld [vmem:[#allocation11 + $0x708] sm:$0xff] }
0x39df   :  { %17008 = vmatprep.subr.bf16.mxu1 %v17007_v44  ;;  %17136 = vmatprep.subr.bf16.mxu0 %v17135_v46  ;;  %v10410_v34 = vld [vmem:[#allocation11 + $0x728] sm:$0xff]  ;;  %v17025_v44 = vpack.c.bf16 %v10401_v29, %v10397_v26  ;;  %v17153_v46 = vpack.c.bf16 %v10403_v38, %v10399_v21  ;;  %v10755_v38 = vld [vmem:[#allocation13] sm:$0xff] }
0x39e0   :  { %v17027_v51 = vpack.c.bf16 %v10410_v34, %v10406_v35  ;;  %v10756_v29 = vld [vmem:[#allocation13 + $0x8] sm:$0xff]  ;;  %v10757_v35 = vld [vmem:[#allocation13 + $0x10] sm:$0xff] }
0x39e2   :  { %17010 = vmatpush1.bf16.msra.mxu1 %v17009_v49  ;;  %17138 = vmatpush1.bf16.msra.mxu0 %v17137_v45  ;;  %v10414_v49 = vld [vmem:[#allocation11 + $0x748] sm:$0xff] }
0x39e3   :  { %17012 = vmatprep.subr.bf16.mxu1 %v17011_v54  ;;  %17140 = vmatprep.subr.bf16.mxu0 %v17139_v59  ;;  %v10418_v45 = vld [vmem:[#allocation11 + $0x768] sm:$0xff]  ;;  %v17029_v54 = vpack.c.bf16 %v10409_v50, %v10405_v48  ;;  %v17157_v59 = vpack.c.bf16 %v10411_v60, %v10407_v55  ;;  %v10761_v48 = vld [vmem:[#allocation13 + $0x30] sm:$0xff] }
0x39e4   :  { %v17031_v58 = vpack.c.bf16 %v10418_v45, %v10414_v49  ;;  %v10763_v49 = vld [vmem:[#allocation13 + $0x40] sm:$0xff]  ;;  %v10765_v45 = vld [vmem:[#allocation13 + $0x50] sm:$0xff] }
0x39e6   :  { %17014 = vmatpush1.bf16.msra.mxu1 %v17013_v57  ;;  %17142 = vmatpush1.bf16.msra.mxu0 %v17141_v8  ;;  %v10422_v57 = vld [vmem:[#allocation11 + $0x788] sm:$0xff]  ;;  %v9793_v8 = vsub.s32 2, %v20260_v3 }
0x39e7   :  { %17016 = vmatprep.subr.bf16.mxu1 %v17015_v31  ;;  %17144 = vmatprep.subr.bf16.mxu0 %v17143_v15  ;;  %v10428_v31 = vld [vmem:[#allocation11 + $0x7b8] sm:$0xff]  ;;  %v17033_v15 = vpack.c.bf16 %v10417_v39, %v10413_v37  ;;  %v17035_v18 = vpack.c.bf16 %v10426_v10, %v10422_v57  ;;  %v10767_v37 = vld [vmem:[#allocation13 + $0x60] sm:$0xff]  ;;  %v10769_v39 = vld [vmem:[#allocation13 + $0x70] sm:$0xff] }
0x39e8   :  { %v17163_v28 = vpack.c.bf16 %v10428_v31, %v10424_v11  ;;  %v9794_v16 = vrot.slane %v20268_v32, %v9793_v8  ;;  %v17041_v32 = vpack.c.bf16 %v10433_v23, %v10429_v20  ;;  %v17185_v2 = vpack.c.bf16 %v10769_v39, %v10767_v37  ;;  %v10771_v57 = vld [vmem:[#allocation13 + $0x80] sm:$0xff]  ;;  %v10773_v10 = vld [vmem:[#allocation13 + $0x90] sm:$0xff]  ;;  %v10776_v11 = vld [vmem:[#allocation13 + $0xa8] sm:$0xff] }
0x39e9   :  { %v10778_v31 = vld [vmem:[#allocation13 + $0xb8] sm:$0xff]  ;;  %v10785_v20 = vld [vmem:[#allocation13 + $0xf0] sm:$0xff] }
0x39ea   :  { %17018 = vmatpush1.bf16.msra.mxu1 %v17017_v62  ;;  %17146 = vmatpush1.bf16.msra.mxu0 %v17145_v22  ;;  %v10427_v62 = vld [vmem:[#allocation11 + $0x7b0] sm:$0xff]  ;;  %v10430_v22 = vld [vmem:[#allocation11 + $0x7c8] sm:$0xff]  ;;  %v17469_v26 = vadd.f32 %v20281_v12, %v9794_v16  ;;  %v17175_v12 = vpack.c.bf16 %v10762_v42, %v10760_v41  ;;  %v10810_v37 = vld [vmem:[#allocation13 + $0x1b8] sm:$0xff] }
0x39eb   :  { %17020 = vmatprep.subr.bf16.mxu1 %v17019_v14  ;;  %17148 = vmatprep.subr.bf16.mxu0 %v17147_v24  ;;  %v10432_v14 = vld [vmem:[#allocation11 + $0x7d8] sm:$0xff]  ;;  %v17165_v19 = vpack.c.bf16 %v10427_v62, %v10423_v56  ;;  %v17039_v7 = vpack.c.bf16 %v10434_v13, %v10430_v22  ;;  %v17193_v56 = vpack.c.bf16 %v10777_v5, %v10775_v36  ;;  %v10779_v22 = vld [vmem:[#allocation13 + $0xc0] sm:$0xff]  ;;  %v10781_v16 = vld [vmem:[#allocation13 + $0xd0] sm:$0xff] }
0x39ec   :  { %v10436_v24 = vld [vmem:[#allocation11 + $0x7f8] sm:$0xff]  ;;  %v10175_v34 = vmul.f32 0.01, %v17469_v26  ;;  %vm10171_vm6 = vcmp.gt.f32.partialorder %v17469_v26, 0.0  ;;  %v10784_v13 = vld [vmem:[#allocation13 + $0xe8] sm:$0xff] }
0x39ed   :  { %v17167_v25 = vpack.c.bf16 %v10436_v24, %v10432_v14  ;;  %v10786_v14 = vld [vmem:[#allocation13 + $0xf8] sm:$0xff]  ;;  %v17197_v24 = vpack.c.bf16 %v10781_v16, %v10779_v22  ;;  %v10816_v36 = vld [vmem:[#allocation13 + $0x1e8] sm:$0xff] }
0x39ee   :  { %17022 = vmatpush1.bf16.msra.mxu1 %v17021_v9  ;;  %17150 = vmatpush1.bf16.msra.mxu0 %v17149_v17  ;;  %v10431_v9 = vld [vmem:[#allocation11 + $0x7d0] sm:$0xff]  ;;  %v10179_v50 = vsel %vm10171_vm6, %v17469_v26, %v10175_v34  ;;  %v10798_v34 = vld [vmem:[#allocation13 + $0x158] sm:$0xff]  ;;  %v10820_v22 = vld [vmem:[#allocation13 + $0x208] sm:$0xff] }
0x39ef   :  { %17024 = vmatprep.subr.bf16.mxu1 %v17023_v27  ;;  %17152 = vmatprep.subr.bf16.mxu0 %v17151_v30  ;;  %v10435_v17 = vld [vmem:[#allocation11 + $0x7f0] sm:$0xff]  ;;  %v10758_v27 = vld [vmem:[#allocation13 + $0x18] sm:$0xff] }
0x39f0   :  { %v17169_v30 = vpack.c.bf16 %v10435_v17, %v10431_v9  ;;  %v17171_v21 = vpack.c.bf16 %v10758_v27, %v10756_v29  ;;  %v10787_v17 = vld [vmem:[#allocation13 + $0x100] sm:$0xff]  ;;  %v10789_v26 = vld [vmem:[#allocation13 + $0x110] sm:$0xff]  ;;  %v10792_v29 = vld [vmem:[#allocation13 + $0x128] sm:$0xff] }
0x39f1   :  { %v10794_v27 = vld [vmem:[#allocation13 + $0x138] sm:$0xff] }
0x39f2   :  { %17026 = vmatpush1.bf16.msra.mxu1 %v17025_v44  ;;  %17154 = vmatpush1.bf16.msra.mxu0 %v17153_v46  ;;  %v17173_v44 = vpack.c.bf16 %v10757_v35, %v10755_v38  ;;  %v10759_v46 = vld [vmem:[#allocation13 + $0x20] sm:$0xff]  ;;  %v10793_v38 = vld [vmem:[#allocation13 + $0x130] sm:$0xff]  ;;  %v10796_v35 = vld [vmem:[#allocation13 + $0x148] sm:$0xff] }
0x39f3   :  { %17028 = vmatprep.subr.bf16.mxu1 %v17027_v51  ;;  %17156 = vmatprep.subr.bf16.mxu0 %v17155_v52  ;;  %v10764_v51 = vld [vmem:[#allocation13 + $0x48] sm:$0xff]  ;;  %v10766_v52 = vld [vmem:[#allocation13 + $0x58] sm:$0xff]  ;;  %v17177_v55 = vpack.c.bf16 %v10761_v48, %v10759_v46  ;;  %v17211_v42 = vpack.c.bf16 %v10798_v34, %v10796_v35 }
0x39f4   :  { %v17179_v60 = vpack.c.bf16 %v10766_v52, %v10764_v51  ;;  %v10800_v46 = vld [vmem:[#allocation13 + $0x168] sm:$0xff]  ;;  %v10802_v48 = vld [vmem:[#allocation13 + $0x178] sm:$0xff]  ;;  %v10799_v52 = vld [vmem:[#allocation13 + $0x160] sm:$0xff] }
0x39f5   :  { %v17215_v51 = vpack.c.bf16 %v10802_v48, %v10800_v46  ;;  %v10818_v5 = vld [vmem:[#allocation13 + $0x1f8] sm:$0xff]  ;;  %v11056_v35 = vld [vmem:[#allocation14 + $0x68] sm:$0xff] }
0x39f6   :  { %17030 = vmatpush1.bf16.msra.mxu1 %v17029_v54  ;;  %17158 = vmatpush1.bf16.msra.mxu0 %v17157_v59  ;;  %v17181_v54 = vpack.c.bf16 %v10765_v45, %v10763_v49  ;;  %v17183_v59 = vpack.c.bf16 %v10770_v53, %v10768_v63  ;;  %v10806_v49 = vld [vmem:[#allocation13 + $0x198] sm:$0xff]  ;;  %v10803_v53 = vld [vmem:[#allocation13 + $0x180] sm:$0xff]  ;;  %v11060_v46 = vld [vmem:[#allocation14 + $0x88] sm:$0xff] }
0x39f7   :  { %17032 = vmatprep.subr.bf16.mxu1 %v17031_v58  ;;  %17160 = vmatprep.subr.bf16.mxu0 %v17159_v33  ;;  %v10772_v58 = vld [vmem:[#allocation13 + $0x88] sm:$0xff]  ;;  %v10774_v33 = vld [vmem:[#allocation13 + $0x98] sm:$0xff] }
0x39f8   :  { %v17187_v6 = vpack.c.bf16 %v10774_v33, %v10772_v58  ;;  %v10807_v33 = vld [vmem:[#allocation13 + $0x1a0] sm:$0xff]  ;;  %v10822_v16 = vld [vmem:[#allocation13 + $0x218] sm:$0xff] }
0x39f9   :  { %v11058_v34 = vld [vmem:[#allocation14 + $0x78] sm:$0xff] }
0x39fa   :  { %17034 = vmatpush1.bf16.msra.mxu1 %v17033_v15  ;;  %17162 = vmatpush1.bf16.msra.mxu0 %v17161_v43  ;;  %v17189_v15 = vpack.c.bf16 %v10773_v10, %v10771_v57  ;;  %v17191_v43 = vpack.c.bf16 %v10778_v31, %v10776_v11  ;;  %v10814_v57 = vld [vmem:[#allocation13 + $0x1d8] sm:$0xff]  ;;  %v10811_v31 = vld [vmem:[#allocation13 + $0x1c0] sm:$0xff] }
0x39fb   :  { %17036 = vmatprep.subr.bf16.mxu1 %v17035_v18  ;;  %17164 = vmatprep.subr.bf16.mxu0 %v17163_v28  ;;  %v10780_v18 = vld [vmem:[#allocation13 + $0xc8] sm:$0xff]  ;;  %v10782_v28 = vld [vmem:[#allocation13 + $0xd8] sm:$0xff] }
0x39fc   :  { %v17195_v62 = vpack.c.bf16 %v10782_v28, %v10780_v18  ;;  %v17231_v18 = vpack.c.bf16 %v10818_v5, %v10816_v36  ;;  %v10815_v28 = vld [vmem:[#allocation13 + $0x1e0] sm:$0xff]  ;;  %v11062_v48 = vld [vmem:[#allocation14 + $0x98] sm:$0xff] }
0x39fd   :  { %v11078_v36 = vld [vmem:[#allocation14 + $0x118] sm:$0xff] }
0x39fe   :  { %17038 = vmatpush1.bf16.msra.mxu1 %v17037_v40  ;;  %17166 = vmatpush1.bf16.msra.mxu0 %v17165_v19  ;;  %v17199_v40 = vpack.c.bf16 %v10786_v14, %v10784_v13  ;;  %v10783_v19 = vld [vmem:[#allocation13 + $0xe0] sm:$0xff]  ;;  %v17235_v13 = vpack.c.bf16 %v10822_v16, %v10820_v22  ;;  %v11044_v14 = vld [vmem:[#allocation14 + $0x8] sm:$0xff]  ;;  %v11082_v22 = vld [vmem:[#allocation14 + $0x138] sm:$0xff] }
0x39ff   :  { %17040 = vmatprep.subr.bf16.mxu1 %v17039_v7  ;;  %17168 = vmatprep.subr.bf16.mxu0 %v17167_v25  ;;  %v10788_v7 = vld [vmem:[#allocation13 + $0x108] sm:$0xff]  ;;  %v10790_v25 = vld [vmem:[#allocation13 + $0x118] sm:$0xff]  ;;  %v17201_v23 = vpack.c.bf16 %v10785_v20, %v10783_v19  ;;  %v11045_v20 = vld [vmem:[#allocation14 + $0x10] sm:$0xff] }
0x3a00   :  { %v17203_v9 = vpack.c.bf16 %v10790_v25, %v10788_v7  ;;  %v11048_v7 = vld [vmem:[#allocation14 + $0x28] sm:$0xff]  ;;  %v11050_v25 = vld [vmem:[#allocation14 + $0x38] sm:$0xff] }
0x3a02   :  { %17042 = vmatpush1.bf16.msra.mxu1 %v17041_v32  ;;  %17170 = vmatpush1.bf16.msra.mxu0 %v17169_v30  ;;  %v17205_v32 = vpack.c.bf16 %v10789_v26, %v10787_v17  ;;  %v17207_v30 = vpack.c.bf16 %v10794_v27, %v10792_v29  ;;  %v11047_v17 = vld [vmem:[#allocation14 + $0x20] sm:$0xff]  ;;  %v11049_v26 = vld [vmem:[#allocation14 + $0x30] sm:$0xff]  ;;  %v11052_v29 = vld [vmem:[#allocation14 + $0x48] sm:$0xff] }
0x3a03   :  { %17172 = vmatprep.subr.bf16.mxu1 %v17171_v21  ;;  %v10791_v21 = vld [vmem:[#allocation13 + $0x120] sm:$0xff]  ;;  %v11054_v27 = vld [vmem:[#allocation14 + $0x58] sm:$0xff] }
0x3a04   :  { %v17209_v41 = vpack.c.bf16 %v10793_v38, %v10791_v21  ;;  %v11051_v21 = vld [vmem:[#allocation14 + $0x40] sm:$0xff]  ;;  %v11053_v38 = vld [vmem:[#allocation14 + $0x50] sm:$0xff] }
0x3a05   :  { %10595 = vmatmul.mubr.f32.vlgmr.msra.gmra.mrb[122].mxu1 %v10179_v50  ;;  %10737 = vmatmul.mubr.f32.vlgmr.msra.gmra.mrb[130].mxu0 %v10179_v50 }
0x3a06   :  { %17174 = vmatpush1.bf16.msra.mxu1 %v17173_v44  ;;  %v10795_v44 = vld [vmem:[#allocation13 + $0x140] sm:$0xff] }
0x3a07   :  { %17176 = vmatprep.subr.bf16.mxu1 %v17175_v12  ;;  %v10797_v12 = vld [vmem:[#allocation13 + $0x150] sm:$0xff] }
0x3a08   :  { %v17213_v50 = vpack.c.bf16 %v10797_v12, %v10795_v44  ;;  %v11055_v44 = vld [vmem:[#allocation14 + $0x60] sm:$0xff]  ;;  %v11057_v12 = vld [vmem:[#allocation14 + $0x70] sm:$0xff] }
0x3a0a   :  { %17178 = vmatpush1.bf16.msra.mxu1 %v17177_v55  ;;  %v10801_v55 = vld [vmem:[#allocation13 + $0x170] sm:$0xff] }
0x3a0b   :  { %17180 = vmatprep.subr.bf16.mxu1 %v17179_v60  ;;  %v10804_v60 = vld [vmem:[#allocation13 + $0x188] sm:$0xff]  ;;  %v17217_v45 = vpack.c.bf16 %v10801_v55, %v10799_v52  ;;  %v11059_v52 = vld [vmem:[#allocation14 + $0x80] sm:$0xff]  ;;  %v11061_v55 = vld [vmem:[#allocation14 + $0x90] sm:$0xff] }
0x3a0c   :  { %v17219_v63 = vpack.c.bf16 %v10806_v49, %v10804_v60  ;;  %v11064_v60 = vld [vmem:[#allocation14 + $0xa8] sm:$0xff]  ;;  %v11066_v49 = vld [vmem:[#allocation14 + $0xb8] sm:$0xff] }
0x3a0e   :  { %17182 = vmatpush1.bf16.msra.mxu1 %v17181_v54  ;;  %v10805_v54 = vld [vmem:[#allocation13 + $0x190] sm:$0xff] }
0x3a0f   :  { %17184 = vmatprep.subr.bf16.mxu1 %v17183_v59  ;;  %v10808_v59 = vld [vmem:[#allocation13 + $0x1a8] sm:$0xff]  ;;  %v17221_v39 = vpack.c.bf16 %v10805_v54, %v10803_v53  ;;  %v11063_v53 = vld [vmem:[#allocation14 + $0xa0] sm:$0xff]  ;;  %v11065_v54 = vld [vmem:[#allocation14 + $0xb0] sm:$0xff] }
0x3a10   :  { %v17223_v58 = vpack.c.bf16 %v10810_v37, %v10808_v59  ;;  %v11068_v59 = vld [vmem:[#allocation14 + $0xc8] sm:$0xff]  ;;  %v11070_v37 = vld [vmem:[#allocation14 + $0xd8] sm:$0xff] }
0x3a12   :  { %17186 = vmatpush1.bf16.msra.mxu1 %v17185_v2  ;;  %v10809_v2 = vld [vmem:[#allocation13 + $0x1b0] sm:$0xff] }
0x3a13   :  { %17188 = vmatprep.subr.bf16.mxu1 %v17187_v6  ;;  %v10812_v6 = vld [vmem:[#allocation13 + $0x1c8] sm:$0xff]  ;;  %v17225_v10 = vpack.c.bf16 %v10809_v2, %v10807_v33  ;;  %v11067_v33 = vld [vmem:[#allocation14 + $0xc0] sm:$0xff]  ;;  %v11069_v2 = vld [vmem:[#allocation14 + $0xd0] sm:$0xff] }
0x3a14   :  { %v17227_v11 = vpack.c.bf16 %v10814_v57, %v10812_v6  ;;  %v11072_v6 = vld [vmem:[#allocation14 + $0xe8] sm:$0xff]  ;;  %v11074_v57 = vld [vmem:[#allocation14 + $0xf8] sm:$0xff] }
0x3a16   :  { %17190 = vmatpush1.bf16.msra.mxu1 %v17189_v15  ;;  %v10813_v15 = vld [vmem:[#allocation13 + $0x1d0] sm:$0xff] }
0x3a17   :  { %17192 = vmatprep.subr.bf16.mxu1 %v17191_v43  ;;  %v17229_v43 = vpack.c.bf16 %v10813_v15, %v10811_v31  ;;  %v11071_v31 = vld [vmem:[#allocation14 + $0xe0] sm:$0xff]  ;;  %v11073_v15 = vld [vmem:[#allocation14 + $0xf0] sm:$0xff] }
0x3a18   :  { %v17329_v5 = vpack.c.bf16 %v11073_v15, %v11071_v31 }
0x3a1a   :  { %17194 = vmatpush1.bf16.msra.mxu1 %v17193_v56  ;;  %v10817_v56 = vld [vmem:[#allocation13 + $0x1f0] sm:$0xff] }
0x3a1b   :  { %17196 = vmatprep.subr.bf16.mxu1 %v17195_v62  ;;  %v17233_v62 = vpack.c.bf16 %v10817_v56, %v10815_v28  ;;  %v11075_v28 = vld [vmem:[#allocation14 + $0x100] sm:$0xff]  ;;  %v11077_v56 = vld [vmem:[#allocation14 + $0x110] sm:$0xff] }
0x3a1c   :  { %v17333_v16 = vpack.c.bf16 %v11077_v56, %v11075_v28  ;;  %v10830_v28 = vld [vmem:[#allocation13 + $0x258] sm:$0xff] }
0x3a1e   :  { %17198 = vmatpush1.bf16.msra.mxu1 %v17197_v24  ;;  %v11046_v24 = vld [vmem:[#allocation14 + $0x18] sm:$0xff] }
0x3a1f   :  { %17200 = vmatprep.subr.bf16.mxu1 %v17199_v40  ;;  %v11043_v40 = vld [vmem:[#allocation14] sm:$0xff]  ;;  %v17299_v19 = vpack.c.bf16 %v11046_v24, %v11044_v14  ;;  %v11081_v24 = vld [vmem:[#allocation14 + $0x130] sm:$0xff] }
0x3a20   :  { %v11079_v14 = vld [vmem:[#allocation14 + $0x120] sm:$0xff] }
0x3a21   :  { %17300 = vmatprep.subr.bf16.mxu0 %v17299_v19  ;;  %v11086_v19 = vld [vmem:[#allocation14 + $0x158] sm:$0xff] }
0x3a22   :  { %17202 = vmatpush1.bf16.msra.mxu1 %v17201_v23  ;;  %v17301_v23 = vpack.c.bf16 %v11045_v20, %v11043_v40  ;;  %v11084_v40 = vld [vmem:[#allocation14 + $0x148] sm:$0xff]  ;;  %v17337_v20 = vpack.c.bf16 %v11081_v24, %v11079_v14  ;;  %v10834_v24 = vld [vmem:[#allocation13 + $0x278] sm:$0xff] }
0x3a23   :  { %17204 = vmatprep.subr.bf16.mxu1 %v17203_v9  ;;  %v17303_v9 = vpack.c.bf16 %v11050_v25, %v11048_v7  ;;  %v17339_v7 = vpack.c.bf16 %v11086_v19, %v11084_v40  ;;  %v11083_v25 = vld [vmem:[#allocation14 + $0x140] sm:$0xff]  ;;  %v10832_v14 = vld [vmem:[#allocation13 + $0x268] sm:$0xff] }
0x3a24   :  { %17302 = vmatpush1.bf16.msra.mxu0 %v17301_v23  ;;  %v11085_v23 = vld [vmem:[#allocation14 + $0x150] sm:$0xff]  ;;  %v17247_v19 = vpack.c.bf16 %v10834_v24, %v10832_v14 }
0x3a25   :  { %17304 = vmatprep.subr.bf16.mxu0 %v17303_v9  ;;  %v11088_v9 = vld [vmem:[#allocation14 + $0x168] sm:$0xff] }
0x3a26   :  { %17206 = vmatpush1.bf16.msra.mxu1 %v17205_v32  ;;  %v17305_v32 = vpack.c.bf16 %v11049_v26, %v11047_v17  ;;  %v11090_v17 = vld [vmem:[#allocation14 + $0x178] sm:$0xff]  ;;  %v17341_v26 = vpack.c.bf16 %v11085_v23, %v11083_v25  ;;  %v10836_v25 = vld [vmem:[#allocation13 + $0x288] sm:$0xff] }
0x3a27   :  { %17208 = vmatprep.subr.bf16.mxu1 %v17207_v30  ;;  %v17307_v30 = vpack.c.bf16 %v11054_v27, %v11052_v29  ;;  %v17343_v29 = vpack.c.bf16 %v11090_v17, %v11088_v9  ;;  %v11087_v27 = vld [vmem:[#allocation14 + $0x160] sm:$0xff]  ;;  %v10838_v23 = vld [vmem:[#allocation13 + $0x298] sm:$0xff] }
0x3a28   :  { %17306 = vmatpush1.bf16.msra.mxu0 %v17305_v32  ;;  %v11089_v32 = vld [vmem:[#allocation14 + $0x170] sm:$0xff]  ;;  %v17251_v17 = vpack.c.bf16 %v10838_v23, %v10836_v25 }
0x3a29   :  { %17308 = vmatprep.subr.bf16.mxu0 %v17307_v30  ;;  %v11092_v30 = vld [vmem:[#allocation14 + $0x188] sm:$0xff] }
0x3a2a   :  { %17210 = vmatpush1.bf16.msra.mxu1 %v17209_v41  ;;  %v17309_v41 = vpack.c.bf16 %v11053_v38, %v11051_v21  ;;  %v11094_v21 = vld [vmem:[#allocation14 + $0x198] sm:$0xff]  ;;  %v17345_v38 = vpack.c.bf16 %v11089_v32, %v11087_v27  ;;  %v10840_v27 = vld [vmem:[#allocation13 + $0x2a8] sm:$0xff] }
0x3a2b   :  { %17212 = vmatprep.subr.bf16.mxu1 %v17211_v42  ;;  %v17311_v42 = vpack.c.bf16 %v11058_v34, %v11056_v35  ;;  %v17347_v35 = vpack.c.bf16 %v11094_v21, %v11092_v30  ;;  %v11091_v34 = vld [vmem:[#allocation14 + $0x180] sm:$0xff]  ;;  %v10842_v32 = vld [vmem:[#allocation13 + $0x2b8] sm:$0xff] }
0x3a2c   :  { %17310 = vmatpush1.bf16.msra.mxu0 %v17309_v41  ;;  %v11093_v41 = vld [vmem:[#allocation14 + $0x190] sm:$0xff]  ;;  %v17255_v21 = vpack.c.bf16 %v10842_v32, %v10840_v27 }
0x3a2d   :  { %17312 = vmatprep.subr.bf16.mxu0 %v17311_v42  ;;  %v11096_v42 = vld [vmem:[#allocation14 + $0x1a8] sm:$0xff] }
0x3a2e   :  { %17214 = vmatpush1.bf16.msra.mxu1 %v17213_v50  ;;  %v17313_v50 = vpack.c.bf16 %v11057_v12, %v11055_v44  ;;  %v11098_v44 = vld [vmem:[#allocation14 + $0x1b8] sm:$0xff]  ;;  %v17349_v12 = vpack.c.bf16 %v11093_v41, %v11091_v34  ;;  %v10844_v34 = vld [vmem:[#allocation13 + $0x2c8] sm:$0xff] }
0x3a2f   :  { %17216 = vmatprep.subr.bf16.mxu1 %v17215_v51  ;;  %v17315_v51 = vpack.c.bf16 %v11062_v48, %v11060_v46  ;;  %v17351_v46 = vpack.c.bf16 %v11098_v44, %v11096_v42  ;;  %v11095_v48 = vld [vmem:[#allocation14 + $0x1a0] sm:$0xff]  ;;  %v10846_v41 = vld [vmem:[#allocation13 + $0x2d8] sm:$0xff] }
0x3a30   :  { %17314 = vmatpush1.bf16.msra.mxu0 %v17313_v50  ;;  %v11097_v50 = vld [vmem:[#allocation14 + $0x1b0] sm:$0xff]  ;;  %v17259_v44 = vpack.c.bf16 %v10846_v41, %v10844_v34  ;;  %v10882_v34 = vld [vmem:[#allocation13 + $0x3f8] sm:$0xff] }
0x3a31   :  { %17316 = vmatprep.subr.bf16.mxu0 %v17315_v51  ;;  %v20293_v51 = vld [vmem:[%s20380_s8] sm:$0xf] }
0x3a32   :  { %17218 = vmatpush1.bf16.msra.mxu1 %v17217_v45  ;;  %v17317_v45 = vpack.c.bf16 %v11061_v55, %v11059_v52  ;;  %v17353_v52 = vpack.c.bf16 %v11097_v50, %v11095_v48  ;;  %v10442_v55 = vrot.slane %v20293_v51, %v20263_v61  ;;  %v10848_v48 = vld [vmem:[#allocation13 + $0x2e8] sm:$0xff]  ;;  %v10850_v50 = vld [vmem:[#allocation13 + $0x2f8] sm:$0xff] }
0x3a33   :  { %17220 = vmatprep.subr.bf16.mxu1 %v17219_v63  ;;  %v17319_v63 = vpack.c.bf16 %v11066_v49, %v11064_v60  ;;  %v10446_v60 = vrot.slane %v20293_v51, %v20271_v47  ;;  %v10454_v49 = vrot.slane %v20293_v51, %v9797_v4 }
0x3a34   :  { %17318 = vmatpush1.bf16.msra.mxu0 %v17317_v45 }
0x3a35   :  { %17320 = vmatprep.subr.bf16.mxu0 %v17319_v63 }
0x3a36   :  { %17222 = vmatpush1.bf16.msra.mxu1 %v17221_v39  ;;  %v17321_v39 = vpack.c.bf16 %v11065_v54, %v11063_v53 }
0x3a37   :  { %17224 = vmatprep.subr.bf16.mxu1 %v17223_v58  ;;  %v17323_v58 = vpack.c.bf16 %v11070_v37, %v11068_v59 }
0x3a38   :  { %17322 = vmatpush1.bf16.msra.mxu0 %v17321_v39 }
0x3a39   :  { %17324 = vmatprep.subr.bf16.mxu0 %v17323_v58  ;;  %v10819_v58 = vld [vmem:[#allocation13 + $0x200] sm:$0xff] }
0x3a3a   :  { %17226 = vmatpush1.bf16.msra.mxu1 %v17225_v10  ;;  %v17325_v10 = vpack.c.bf16 %v11069_v2, %v11067_v33  ;;  %v10821_v33 = vld [vmem:[#allocation13 + $0x210] sm:$0xff] }
0x3a3b   :  { %17228 = vmatprep.subr.bf16.mxu1 %v17227_v11  ;;  %v17327_v11 = vpack.c.bf16 %v11074_v57, %v11072_v6  ;;  %v10824_v6 = vld [vmem:[#allocation13 + $0x228] sm:$0xff]  ;;  %v10826_v57 = vld [vmem:[#allocation13 + $0x238] sm:$0xff]  ;;  %v17237_v31 = vpack.c.bf16 %v10821_v33, %v10819_v58 }
0x3a3c   :  { %17326 = vmatpush1.bf16.msra.mxu0 %v17325_v10  ;;  %v17239_v15 = vpack.c.bf16 %v10826_v57, %v10824_v6  ;;  %v10856_v58 = vld [vmem:[#allocation13 + $0x328] sm:$0xff]  ;;  %v10858_v33 = vld [vmem:[#allocation13 + $0x338] sm:$0xff]  ;;  %v10855_v57 = vld [vmem:[#allocation13 + $0x320] sm:$0xff] }
0x3a3d   :  { %17328 = vmatprep.subr.bf16.mxu0 %v17327_v11  ;;  %v17271_v6 = vpack.c.bf16 %v10858_v33, %v10856_v58  ;;  %v11213_v58 = vld [vmem:[#allocation16 + $0x88] sm:$0xff] }
0x3a3e   :  { %17230 = vmatpush1.bf16.msra.mxu1 %v17229_v43  ;;  %v11076_v43 = vld [vmem:[#allocation14 + $0x108] sm:$0xff] }
0x3a3f   :  { %17232 = vmatprep.subr.bf16.mxu1 %v17231_v18  ;;  %v17331_v18 = vpack.c.bf16 %v11078_v36, %v11076_v43  ;;  %v10823_v43 = vld [vmem:[#allocation13 + $0x220] sm:$0xff]  ;;  %v10825_v36 = vld [vmem:[#allocation13 + $0x230] sm:$0xff] }
0x3a40   :  { %17330 = vmatpush1.bf16.msra.mxu0 %v17329_v5 }
0x3a41   :  { %17332 = vmatprep.subr.bf16.mxu0 %v17331_v18  ;;  %v10828_v18 = vld [vmem:[#allocation13 + $0x248] sm:$0xff] }
0x3a42   :  { %17234 = vmatpush1.bf16.msra.mxu1 %v17233_v62  ;;  %v11080_v62 = vld [vmem:[#allocation14 + $0x128] sm:$0xff] }
0x3a43   :  { %17236 = vmatprep.subr.bf16.mxu1 %v17235_v13  ;;  %v17335_v13 = vpack.c.bf16 %v11082_v22, %v11080_v62  ;;  %v17241_v62 = vpack.c.bf16 %v10825_v36, %v10823_v43  ;;  %v17243_v22 = vpack.c.bf16 %v10830_v28, %v10828_v18  ;;  %v10859_v43 = vld [vmem:[#allocation13 + $0x340] sm:$0xff]  ;;  %v10861_v36 = vld [vmem:[#allocation13 + $0x350] sm:$0xff]  ;;  %v10866_v18 = vld [vmem:[#allocation13 + $0x378] sm:$0xff] }
0x3a44   :  { %17334 = vmatpush1.bf16.msra.mxu0 %v17333_v16  ;;  %v10827_v16 = vld [vmem:[#allocation13 + $0x240] sm:$0xff]  ;;  %v17277_v28 = vpack.c.bf16 %v10861_v36, %v10859_v43  ;;  %v11197_v43 = vld [vmem:[#allocation16 + $0x8] sm:$0xff] }
0x3a45   :  { %17336 = vmatprep.subr.bf16.mxu0 %v17335_v13  ;;  %v10829_v13 = vld [vmem:[#allocation13 + $0x250] sm:$0xff] }
0x3a46   :  { %v17245_v40 = vpack.c.bf16 %v10829_v13, %v10827_v16  ;;  %v10868_v16 = vld [vmem:[#allocation13 + $0x388] sm:$0xff]  ;;  %v10870_v13 = vld [vmem:[#allocation13 + $0x398] sm:$0xff] }
0x3a47   :  { %v17283_v24 = vpack.c.bf16 %v10870_v13, %v10868_v16  ;;  %v11198_v16 = vld [vmem:[#allocation16 + $0x10] sm:$0xff]  ;;  %v11199_v13 = vld [vmem:[#allocation16 + $0x18] sm:$0xff] }
0x3a48   :  { %17338 = vmatpush1.bf16.msra.mxu0 %v17337_v20  ;;  %v10831_v20 = vld [vmem:[#allocation13 + $0x260] sm:$0xff] }
0x3a49   :  { %17340 = vmatprep.subr.bf16.mxu0 %v17339_v7  ;;  %v10833_v7 = vld [vmem:[#allocation13 + $0x270] sm:$0xff] }
0x3a4a   :  { %v17249_v9 = vpack.c.bf16 %v10833_v7, %v10831_v20  ;;  %v10872_v20 = vld [vmem:[#allocation13 + $0x3a8] sm:$0xff]  ;;  %v10874_v7 = vld [vmem:[#allocation13 + $0x3b8] sm:$0xff] }
0x3a4b   :  { %v17287_v23 = vpack.c.bf16 %v10874_v7, %v10872_v20  ;;  %v11200_v7 = vld [vmem:[#allocation16 + $0x20] sm:$0xff] }
0x3a4c   :  { %17342 = vmatpush1.bf16.msra.mxu0 %v17341_v26  ;;  %v10835_v26 = vld [vmem:[#allocation13 + $0x280] sm:$0xff] }
0x3a4d   :  { %17344 = vmatprep.subr.bf16.mxu0 %v17343_v29  ;;  %v10837_v29 = vld [vmem:[#allocation13 + $0x290] sm:$0xff] }
0x3a4e   :  { %v17253_v30 = vpack.c.bf16 %v10837_v29, %v10835_v26  ;;  %v10876_v26 = vld [vmem:[#allocation13 + $0x3c8] sm:$0xff]  ;;  %v10878_v29 = vld [vmem:[#allocation13 + $0x3d8] sm:$0xff] }
0x3a4f   :  { %v17291_v32 = vpack.c.bf16 %v10878_v29, %v10876_v26  ;;  %v11202_v29 = vld [vmem:[#allocation16 + $0x30] sm:$0xff] }
0x3a50   :  { %17346 = vmatpush1.bf16.msra.mxu0 %v17345_v38  ;;  %v10839_v38 = vld [vmem:[#allocation13 + $0x2a0] sm:$0xff] }
0x3a51   :  { %17348 = vmatprep.subr.bf16.mxu0 %v17347_v35  ;;  %v10841_v35 = vld [vmem:[#allocation13 + $0x2b0] sm:$0xff] }
0x3a52   :  { %v17257_v42 = vpack.c.bf16 %v10841_v35, %v10839_v38  ;;  %v10450_v38 = vrot.slane %v20293_v51, %v9793_v8  ;;  %v10880_v35 = vld [vmem:[#allocation13 + $0x3e8] sm:$0xff]  ;;  %v11102_v51 = vld [vmem:[#allocation14 + $0x1d8] sm:$0xff] }
0x3a53   :  { %v11100_v8 = vld [vmem:[#allocation14 + $0x1c8] sm:$0xff] }
0x3a54   :  { %17350 = vmatpush1.bf16.msra.mxu0 %v17349_v12  ;;  %v10843_v12 = vld [vmem:[#allocation13 + $0x2c0] sm:$0xff] }
0x3a55   :  { %17352 = vmatprep.subr.bf16.mxu0 %v17351_v46  ;;  %v10845_v46 = vld [vmem:[#allocation13 + $0x2d0] sm:$0xff] }
0x3a58   :  { %17354 = vmatpush1.bf16.msra.mxu0 %v17353_v52  ;;  %v17261_v52 = vpack.c.bf16 %v10845_v46, %v10843_v12  ;;  %v10881_v12 = vld [vmem:[#allocation13 + $0x3f0] sm:$0xff] }
0x3ad8   :  { %v10596_v45 = vpop.f32.mrb[122].mxu1  ;;  %v20302_v63 = vpop.f32.mrb[130].mxu0 }
0x3ad9   :  { %v17471_v53 = vadd.f32 %v10596_v45, %v10442_v55  ;;  %v10598_v54 = vpop.f32.mrb[123].mxu1  ;;  %v10740_v59 = vpop.f32.mrb[131].mxu0  ;;  %v17263_v55 = vpack.c.bf16 %v10850_v50, %v10848_v48  ;;  %v10852_v45 = vld [vmem:[#allocation13 + $0x308] sm:$0xff]  ;;  %v17473_v46 = vadd.f32 %v20302_v63, %v10450_v38 }
0x3ada   :  { %v17472_v37 = vadd.f32 %v10598_v54, %v10446_v60  ;;  %v17474_v39 = vadd.f32 %v10740_v59, %v10454_v49  ;;  %v10847_v60 = vld [vmem:[#allocation13 + $0x2e0] sm:$0xff]  ;;  %v10849_v49 = vld [vmem:[#allocation13 + $0x2f0] sm:$0xff]  ;;  %v11104_v63 = vld [vmem:[#allocation14 + $0x1e8] sm:$0xff] }
0x3adb   :  { %v10747_v2 = vmul.f32 0.01, %v17471_v53  ;;  %vm10743_vm7 = vcmp.gt.f32.partialorder %v17471_v53, 0.0  ;;  %v17265_v54 = vpack.c.bf16 %v10849_v49, %v10847_v60  ;;  %v10749_v50 = vmul.f32 0.01, %v17473_v46  ;;  %v11101_v60 = vld [vmem:[#allocation14 + $0x1d0] sm:$0xff] }
0x3adc   :  { %v10748_v10 = vmul.f32 0.01, %v17472_v37  ;;  %v10750_v11 = vmul.f32 0.01, %v17474_v39  ;;  %vm10744_vm8 = vcmp.gt.f32.partialorder %v17472_v37, 0.0  ;;  %vm10746_vm9 = vcmp.gt.f32.partialorder %v17474_v39, 0.0 }
0x3add   :  { %v10751_v5 = vsel %vm10743_vm7, %v17471_v53, %v10747_v2  ;;  %v10854_v53 = vld [vmem:[#allocation13 + $0x318] sm:$0xff]  ;;  %vm10745_vm10 = vcmp.gt.f32.partialorder %v17473_v46, 0.0 }
0x3ade   :  { %v10752_v4 = vsel %vm10744_vm8, %v17472_v37, %v10748_v10  ;;  %v10754_v56 = vsel %vm10746_vm9, %v17474_v39, %v10750_v11  ;;  %v17267_v59 = vpack.c.bf16 %v10854_v53, %v10852_v45  ;;  %v10851_v37 = vld [vmem:[#allocation13 + $0x300] sm:$0xff]  ;;  %v10853_v39 = vld [vmem:[#allocation13 + $0x310] sm:$0xff]  ;;  %v10860_v11 = vld [vmem:[#allocation13 + $0x348] sm:$0xff]  ;;  %v10753_v3 = vsel %vm10745_vm10, %v17473_v46, %v10749_v50 }
0x3adf   :  { %10959 = vmatprep.mubr.f32.mxu1 %v10752_v4  ;;  %v17269_v2 = vpack.c.bf16 %v10853_v39, %v10851_v37  ;;  %v10857_v10 = vld [vmem:[#allocation13 + $0x330] sm:$0xff]  ;;  %v11106_v45 = vld [vmem:[#allocation14 + $0x1f8] sm:$0xff]  ;;  %v11212_v39 = vld [vmem:[#allocation16 + $0x80] sm:$0xff] }
0x3ae0   :  { %10960 = vmatmul.mubr.f32.vlgmr.msra.gmra.mrb[124].mxu1 %v10751_v5  ;;  %v17273_v4 = vpack.c.bf16 %v10857_v10, %v10855_v57  ;;  %v10864_v5 = vld [vmem:[#allocation13 + $0x368] sm:$0xff]  ;;  %v17359_v53 = vpack.c.bf16 %v11106_v45, %v11104_v63  ;;  %v17363_v33 = vpack.c.bf16 %v11213_v58, %v11212_v39  ;;  %v11206_v46 = vld [vmem:[#allocation16 + $0x50] sm:$0xff]  ;;  %v11227_v63 = vld [vmem:[#allocation16 + $0xf8] sm:$0xff] }
0x3ae1   :  { %17238 = vmatpush1.bf16.msra.mxu1 %v17237_v31  ;;  %11030 = vmatprep.mubr.f32.mxu1 %v10754_v56  ;;  %v10862_v31 = vld [vmem:[#allocation13 + $0x358] sm:$0xff]  ;;  %v17279_v56 = vpack.c.bf16 %v10866_v18, %v10864_v5  ;;  %v11214_v5 = vld [vmem:[#allocation16 + $0x90] sm:$0xff] }
0x3ae2   :  { %17240 = vmatprep.subr.bf16.mxu1 %v17239_v15  ;;  %v17275_v15 = vpack.c.bf16 %v10862_v31, %v10860_v11  ;;  %v11215_v18 = vld [vmem:[#allocation16 + $0x98] sm:$0xff] }
0x3ae5   :  { %17242 = vmatpush1.bf16.msra.mxu1 %v17241_v62  ;;  %v10863_v62 = vld [vmem:[#allocation13 + $0x360] sm:$0xff] }
0x3ae6   :  { %17244 = vmatprep.subr.bf16.mxu1 %v17243_v22  ;;  %v10865_v22 = vld [vmem:[#allocation13 + $0x370] sm:$0xff] }
0x3ae7   :  { %v17281_v14 = vpack.c.bf16 %v10865_v22, %v10863_v62  ;;  %v17367_v22 = vpack.c.bf16 %v11215_v18, %v11214_v5  ;;  %v11311_v5 = vld [vmem:[#allocation17 + $0x18] sm:$0xff] }
0x3ae9   :  { %17246 = vmatpush1.bf16.msra.mxu1 %v17245_v40  ;;  %v10867_v40 = vld [vmem:[#allocation13 + $0x380] sm:$0xff] }
0x3aea   :  { %17248 = vmatprep.subr.bf16.mxu1 %v17247_v19  ;;  %v10869_v19 = vld [vmem:[#allocation13 + $0x390] sm:$0xff] }
0x3aeb   :  { %v17285_v25 = vpack.c.bf16 %v10869_v19, %v10867_v40  ;;  %v11217_v40 = vld [vmem:[#allocation16 + $0xa8] sm:$0xff]  ;;  %v17369_v19 = vpack.c.bf16 %v11199_v13, %v11198_v16  ;;  %v11316_v13 = vld [vmem:[#allocation17 + $0x40] sm:$0xff] }
0x3aed   :  { %17250 = vmatpush1.bf16.msra.mxu1 %v17249_v9  ;;  %v10871_v9 = vld [vmem:[#allocation13 + $0x3a0] sm:$0xff] }
0x3aee   :  { %17252 = vmatprep.subr.bf16.mxu1 %v17251_v17  ;;  %v10873_v17 = vld [vmem:[#allocation13 + $0x3b0] sm:$0xff] }
0x3aef   :  { %v17289_v27 = vpack.c.bf16 %v10873_v17, %v10871_v9  ;;  %v11219_v9 = vld [vmem:[#allocation16 + $0xb8] sm:$0xff] }
0x3af1   :  { %17254 = vmatpush1.bf16.msra.mxu1 %v17253_v30  ;;  %v10875_v30 = vld [vmem:[#allocation13 + $0x3c0] sm:$0xff] }
0x3af2   :  { %17256 = vmatprep.subr.bf16.mxu1 %v17255_v21  ;;  %v10877_v21 = vld [vmem:[#allocation13 + $0x3d0] sm:$0xff] }
0x3af3   :  { %v17293_v41 = vpack.c.bf16 %v10877_v21, %v10875_v30  ;;  %v11221_v30 = vld [vmem:[#allocation16 + $0xc8] sm:$0xff] }
0x3af5   :  { %17258 = vmatpush1.bf16.msra.mxu1 %v17257_v42  ;;  %v17295_v42 = vpack.c.bf16 %v10882_v34, %v10880_v35  ;;  %v11204_v35 = vld [vmem:[#allocation16 + $0x40] sm:$0xff]  ;;  %v11205_v34 = vld [vmem:[#allocation16 + $0x48] sm:$0xff] }
0x3af6   :  { %17260 = vmatprep.subr.bf16.mxu1 %v17259_v44  ;;  %v10879_v44 = vld [vmem:[#allocation13 + $0x3e0] sm:$0xff] }
0x3af7   :  { %v17297_v48 = vpack.c.bf16 %v10881_v12, %v10879_v44  ;;  %v17381_v44 = vpack.c.bf16 %v11205_v34, %v11204_v35  ;;  %v11408_v35 = vld [vmem:[#allocation19 + $0x20] sm:$0xff]  ;;  %v11409_v34 = vld [vmem:[#allocation19 + $0x28] sm:$0xff] }
0x3af9   :  { %17262 = vmatpush1.bf16.msra.mxu1 %v17261_v52  ;;  %v17355_v52 = vpack.c.bf16 %v11102_v51, %v11100_v8  ;;  %v11225_v8 = vld [vmem:[#allocation16 + $0xe8] sm:$0xff] }
0x3afa   :  { %17264 = vmatprep.subr.bf16.mxu1 %v17263_v55  ;;  %v11099_v55 = vld [vmem:[#allocation14 + $0x1c0] sm:$0xff] }
0x3afb   :  { %v17357_v49 = vpack.c.bf16 %v11101_v60, %v11099_v55  ;;  %17356 = vmatprep.subr.bf16.mxu0 %v17355_v52  ;;  %v11208_v52 = vld [vmem:[#allocation16 + $0x60] sm:$0xff]  ;;  %v11209_v55 = vld [vmem:[#allocation16 + $0x68] sm:$0xff] }
0x3afc   :  { %v17389_v60 = vpack.c.bf16 %v11209_v55, %v11208_v52  ;;  %v11416_v52 = vld [vmem:[#allocation19 + $0x60] sm:$0xff]  ;;  %v11417_v55 = vld [vmem:[#allocation19 + $0x68] sm:$0xff] }
0x3afd   :  { %17266 = vmatpush1.bf16.msra.mxu1 %v17265_v54  ;;  %17358 = vmatpush1.bf16.msra.mxu0 %v17357_v49  ;;  %v11103_v54 = vld [vmem:[#allocation14 + $0x1e0] sm:$0xff]  ;;  %v11226_v49 = vld [vmem:[#allocation16 + $0xf0] sm:$0xff] }
0x3afe   :  { %17268 = vmatprep.subr.bf16.mxu1 %v17267_v59  ;;  %v11105_v59 = vld [vmem:[#allocation14 + $0x1f0] sm:$0xff]  ;;  %17360 = vmatprep.subr.bf16.mxu0 %v17359_v53  ;;  %v17391_v45 = vpack.c.bf16 %v11227_v63, %v11226_v49  ;;  %v11764_v63 = vld [vmem:[%s20386_s14] ss:$0 sm:$0xff] }
0x3aff   :  { %v17361_v37 = vpack.c.bf16 %v11105_v59, %v11103_v54  ;;  %v11210_v53 = vld [vmem:[#allocation16 + $0x70] sm:$0xff]  ;;  %v11211_v54 = vld [vmem:[#allocation16 + $0x78] sm:$0xff] }
0x3b00   :  { %v17393_v59 = vpack.c.bf16 %v11211_v54, %v11210_v53 }
0x3b01   :  { %17270 = vmatpush1.bf16.msra.mxu1 %v17269_v2  ;;  %17362 = vmatpush1.bf16.msra.mxu0 %v17361_v37  ;;  %v10883_v2 = vld [vmem:[%s20382_s10] sm:$0x3] }
0x3b02   :  { %17272 = vmatprep.subr.bf16.mxu1 %v17271_v6  ;;  %17364 = vmatprep.subr.bf16.mxu0 %v17363_v33  ;;  %v10888_v6 = vrot.slane %v10883_v2, %v20263_v61  ;;  %v10892_v57 = vrot.slane %v10883_v2, %v20271_v47  ;;  %v11107_v37 = vld [vmem:[%s20384_s12] sm:$0x3] }
0x3b03   :  { %v11112_v39 = vrot.slane %v11107_v37, %v20263_v61  ;;  %v11116_v58 = vrot.slane %v11107_v37, %v20271_v47  ;;  %v11312_v47 = vld [vmem:[#allocation17 + $0x20] sm:$0xff] }
0x3b05   :  { %17274 = vmatpush1.bf16.msra.mxu1 %v17273_v4 }
0x3b06   :  { %17276 = vmatprep.subr.bf16.mxu1 %v17275_v15  ;;  %v11196_v15 = vld [vmem:[#allocation16] sm:$0xff] }
0x3b09   :  { %17278 = vmatpush1.bf16.msra.mxu1 %v17277_v28 }
0x3b0a   :  { %17280 = vmatprep.subr.bf16.mxu1 %v17279_v56  ;;  %v17365_v56 = vpack.c.bf16 %v11197_v43, %v11196_v15 }
0x3b0d   :  { %17282 = vmatpush1.bf16.msra.mxu1 %v17281_v14 }
0x3b0e   :  { %17284 = vmatprep.subr.bf16.mxu1 %v17283_v24  ;;  %v11216_v24 = vld [vmem:[#allocation16 + $0xa0] sm:$0xff] }
0x3b0f   :  { %v17371_v20 = vpack.c.bf16 %v11217_v40, %v11216_v24  ;;  %v11318_v40 = vld [vmem:[#allocation17 + $0x50] sm:$0xff] }
0x3b11   :  { %17286 = vmatpush1.bf16.msra.mxu1 %v17285_v25  ;;  %v11201_v25 = vld [vmem:[#allocation16 + $0x28] sm:$0xff] }
0x3b12   :  { %17288 = vmatprep.subr.bf16.mxu1 %v17287_v23  ;;  %v11218_v23 = vld [vmem:[#allocation16 + $0xb0] sm:$0xff]  ;;  %v17373_v17 = vpack.c.bf16 %v11201_v25, %v11200_v7  ;;  %v11320_v7 = vld [vmem:[#allocation17 + $0x60] sm:$0xff]  ;;  %v11321_v25 = vld [vmem:[#allocation17 + $0x68] sm:$0xff] }
0x3b13   :  { %v17375_v26 = vpack.c.bf16 %v11219_v9, %v11218_v23  ;;  %v17414_v23 = vpack.c.bf16 %v11321_v25, %v11320_v7  ;;  %v11322_v9 = vld [vmem:[#allocation17 + $0x70] sm:$0xff] }
0x3b14   :  { %v11514_v25 = vld [vmem:[#allocation20 + $0x70] sm:$0xff] }
0x3b15   :  { %17290 = vmatpush1.bf16.msra.mxu1 %v17289_v27  ;;  %v11203_v27 = vld [vmem:[#allocation16 + $0x38] sm:$0xff] }
0x3b16   :  { %17292 = vmatprep.subr.bf16.mxu1 %v17291_v32  ;;  %v11220_v32 = vld [vmem:[#allocation16 + $0xc0] sm:$0xff]  ;;  %v17377_v21 = vpack.c.bf16 %v11203_v27, %v11202_v29  ;;  %v11405_v27 = vld [vmem:[#allocation19 + $0x8] sm:$0xff] }
0x3b17   :  { %v17379_v38 = vpack.c.bf16 %v11221_v30, %v11220_v32  ;;  %v11404_v29 = vld [vmem:[#allocation19] sm:$0xff]  ;;  %v11406_v32 = vld [vmem:[#allocation19 + $0x10] sm:$0xff] }
0x3b18   :  { %v17420_v30 = vpack.c.bf16 %v11405_v27, %v11404_v29 }
0x3b19   :  { %17294 = vmatpush1.bf16.msra.mxu1 %v17293_v41  ;;  %v11222_v41 = vld [vmem:[#allocation16 + $0xd0] sm:$0xff] }
0x3b1a   :  { %17296 = vmatprep.subr.bf16.mxu1 %v17295_v42  ;;  %v11223_v42 = vld [vmem:[#allocation16 + $0xd8] sm:$0xff] }
0x3b1b   :  { %v17383_v12 = vpack.c.bf16 %v11223_v42, %v11222_v41  ;;  %v17426_v41 = vpack.c.bf16 %v11409_v34, %v11408_v35  ;;  %v11410_v42 = vld [vmem:[#allocation19 + $0x30] sm:$0xff] }
0x3b1d   :  { %17298 = vmatpush1.bf16.msra.mxu1 %v17297_v48  ;;  %v11207_v48 = vld [vmem:[#allocation16 + $0x58] sm:$0xff] }
0x3b1e   :  { %17419 = vmatprep.subr.bf16.mxu1 %v17833_v0  ;;  %v17385_v50 = vpack.c.bf16 %v11207_v48, %v11206_v46  ;;  %v11412_v46 = vld [vmem:[#allocation19 + $0x40] sm:$0xff]  ;;  %v11413_v48 = vld [vmem:[#allocation19 + $0x48] sm:$0xff] }
0x3b20   :  { %11031 = vmatmul.mubr.f32.vlgmr.msra.gmra.mrb[124].mxu1 %v10753_v3  ;;  %v11224_v3 = vld [vmem:[#allocation16 + $0xe0] sm:$0xff] }
0x3b21   :  { %15325 = vmatprep.mubr.msk.f32.mxu1 %vm17834_vm0, %v17835_v1  ;;  %v17387_v51 = vpack.c.bf16 %v11225_v8, %v11224_v3  ;;  %17421 = vmatpush3.bf16.msra.mxu1 %v17420_v30  ;;  %v11414_v3 = vld [vmem:[#allocation19 + $0x50] sm:$0xff]  ;;  %v11415_v8 = vld [vmem:[#allocation19 + $0x58] sm:$0xff]  ;;  %v11767_v30 = vld [vmem:[%s20392_s20] ss:$0 sm:$0xff] }
0x3b22   :  { %17422 = vmatprep.subr.bf16.mxu1 %v17833_v0 }
0x3bf3   :  { %v11032_v10 = vpop.f32.mrb[124].mxu1 }
0x3bf4   :  { %v17475_v11 = vadd.f32 %v11032_v10, %v10888_v6  ;;  %v11034_v31 = vpop.f32.mrb[125].mxu1  ;;  %v11308_v10 = vld [vmem:[#allocation17] sm:$0xff] }
0x3bf5   :  { %v17476_v4 = vadd.f32 %v11034_v31, %v10892_v57 }
0x3bf6   :  { %v11039_v36 = vmul.f32 0.01, %v17475_v11  ;;  %vm11037_vm11 = vcmp.gt.f32.partialorder %v17475_v11, 0.0 }
0x3bf7   :  { %v11040_v28 = vmul.f32 0.01, %v17476_v4  ;;  %vm11038_vm12 = vcmp.gt.f32.partialorder %v17476_v4, 0.0 }
0x3bf8   :  { %v11041_v14 = vsel %vm11037_vm11, %v17475_v11, %v11039_v36  ;;  %v11309_v11 = vld [vmem:[#allocation17 + $0x8] sm:$0xff]  ;;  %v11310_v36 = vld [vmem:[#allocation17 + $0x10] sm:$0xff] }
0x3bf9   :  { %v11042_v62 = vsel %vm11038_vm12, %v17476_v4, %v11040_v28  ;;  %v17396_v15 = vpack.c.bf16 %v11309_v11, %v11308_v10  ;;  %v17399_v61 = vpack.c.bf16 %v11311_v5, %v11310_v36  ;;  %v11313_v28 = vld [vmem:[#allocation17 + $0x28] sm:$0xff]  ;;  %v11503_v11 = vld [vmem:[#allocation20 + $0x18] sm:$0xff] }
0x3bfa   :  { %11183 = vmatprep.mubr.f32.mxu0 %v11042_v62  ;;  %v11314_v62 = vld [vmem:[#allocation17 + $0x30] sm:$0xff]  ;;  %v11507_v36 = vld [vmem:[#allocation20 + $0x38] sm:$0xff] }
0x3bfb   :  { %11184 = vmatmul.mubr.f32.vlgmr.msra.gmra.mrb[132].mxu0 %v11041_v14  ;;  %v11317_v14 = vld [vmem:[#allocation17 + $0x48] sm:$0xff] }
0x3bfc   :  { %17366 = vmatpush3.bf16.msra.mxu0 %v17365_v56  ;;  %v17402_v56 = vpack.c.bf16 %v11313_v28, %v11312_v47  ;;  %v17408_v24 = vpack.c.bf16 %v11317_v14, %v11316_v13  ;;  %v11510_v28 = vld [vmem:[#allocation20 + $0x50] sm:$0xff]  ;;  %v11765_v14 = vld [vmem:[%s20388_s16] ss:$0 sm:$0xff] }
0x3bfd   :  { %17368 = vmatprep.subr.bf16.mxu0 %v17367_v22  ;;  %v11315_v22 = vld [vmem:[#allocation17 + $0x38] sm:$0xff] }
0x3bfe   :  { %v17405_v16 = vpack.c.bf16 %v11315_v22, %v11314_v62  ;;  %v11512_v22 = vld [vmem:[#allocation20 + $0x60] sm:$0xff] }
0x3c00   :  { %17370 = vmatpush3.bf16.msra.mxu0 %v17369_v19  ;;  %v11319_v19 = vld [vmem:[#allocation17 + $0x58] sm:$0xff] }
0x3c01   :  { %17372 = vmatprep.subr.bf16.mxu0 %v17371_v20  ;;  %v17411_v20 = vpack.c.bf16 %v11319_v19, %v11318_v40 }
0x3c04   :  { %17374 = vmatpush3.bf16.msra.mxu0 %v17373_v17  ;;  %v11323_v17 = vld [vmem:[#allocation17 + $0x78] sm:$0xff] }
0x3c05   :  { %17376 = vmatprep.subr.bf16.mxu0 %v17375_v26  ;;  %v17417_v26 = vpack.c.bf16 %v11323_v17, %v11322_v9  ;;  %v11766_v17 = vld [vmem:[%s20390_s18] ss:$0 sm:$0xff] }
0x3c08   :  { %17378 = vmatpush3.bf16.msra.mxu0 %v17377_v21  ;;  %v11407_v21 = vld [vmem:[#allocation19 + $0x18] sm:$0xff] }
0x3c09   :  { %17380 = vmatprep.subr.bf16.mxu0 %v17379_v38  ;;  %v17423_v38 = vpack.c.bf16 %v11407_v21, %v11406_v32 }
0x3c0b   :  { %17424 = vmatpush3.bf16.msra.mxu1 %v17423_v38 }
0x3c0c   :  { %17382 = vmatpush3.bf16.msra.mxu0 %v17381_v44  ;;  %17425 = vmatprep.subr.bf16.mxu1 %v17833_v0  ;;  %v11411_v44 = vld [vmem:[#allocation19 + $0x38] sm:$0xff] }
0x3c0d   :  { %17384 = vmatprep.subr.bf16.mxu0 %v17383_v12  ;;  %v17429_v12 = vpack.c.bf16 %v11411_v44, %v11410_v42 }
0x3c0f   :  { %17427 = vmatpush3.bf16.msra.mxu1 %v17426_v41 }
0x3c10   :  { %17386 = vmatpush3.bf16.msra.mxu0 %v17385_v50  ;;  %17428 = vmatprep.subr.bf16.mxu1 %v17833_v0  ;;  %v17432_v50 = vpack.c.bf16 %v11413_v48, %v11412_v46 }
0x3c11   :  { %17388 = vmatprep.subr.bf16.mxu0 %v17387_v51  ;;  %v17435_v51 = vpack.c.bf16 %v11415_v8, %v11414_v3 }
0x3c13   :  { %17430 = vmatpush3.bf16.msra.mxu1 %v17429_v12 }
0x3c14   :  { %17390 = vmatpush3.bf16.msra.mxu0 %v17389_v60  ;;  %17431 = vmatprep.subr.bf16.mxu1 %v17833_v0  ;;  %v17438_v60 = vpack.c.bf16 %v11417_v55, %v11416_v52 }
0x3c15   :  { %17392 = vmatprep.subr.bf16.mxu0 %v17391_v45 }
0x3c17   :  { %17433 = vmatpush3.bf16.msra.mxu1 %v17432_v50 }
0x3c18   :  { %17394 = vmatpush3.bf16.msra.mxu0 %v17393_v59  ;;  %17434 = vmatprep.subr.bf16.mxu1 %v17833_v0 }
0x3c19   :  { %17395 = vmatprep.subr.bf16.mxu0 %v17833_v0 }
0x3c1b   :  { %17436 = vmatpush3.bf16.msra.mxu1 %v17435_v51 }
0x3c1c   :  { %17437 = vmatprep.subr.bf16.mxu1 %v17833_v0 }
0x3c1f   :  { %17439 = vmatpush3.bf16.msra.mxu1 %v17438_v60 }
0x3c20   :  { %17440 = vmatprep.subr.bf16.mxu1 %v17833_v0 }
0x3cce   :  { %v11185_v33 = vpop.f32.mrb[132].mxu0 }
0x3ccf   :  { %v11186_v2 = vadd.f32 %v11185_v33, %v11112_v39  ;;  %v11187_v6 = vpop.f32.mrb[133].mxu0  ;;  %v11418_v39 = vld [vmem:[#allocation19 + $0x70] sm:$0xff] }
0x3cd0   :  { %v11188_v57 = vadd.f32 %v11187_v6, %v11116_v58  ;;  %v11419_v58 = vld [vmem:[#allocation19 + $0x78] sm:$0xff]  ;;  %v11501_v6 = vld [vmem:[#allocation20 + $0x8] sm:$0xff] }
0x3cd1   :  { %v11192_v31 = vmul.f32 0.01, %v11186_v2  ;;  %vm11190_vm13 = vcmp.gt.f32.partialorder %v11186_v2, 0.0  ;;  %v17441_v33 = vpack.c.bf16 %v11419_v58, %v11418_v39 }
0x3cd2   :  { %v11193_v4 = vmul.f32 0.01, %v11188_v57  ;;  %vm11191_vm14 = vcmp.gt.f32.partialorder %v11188_v57, 0.0 }
0x3cd3   :  { %v11194_v18 = vsel %vm11190_vm13, %v11186_v2, %v11192_v31  ;;  %17442 = vmatpush3.bf16.msra.mxu1 %v17441_v33  ;;  %v11500_v2 = vld [vmem:[#allocation20] sm:$0xff] }
0x3cd4   :  { %v11195_v43 = vsel %vm11191_vm14, %v11188_v57, %v11193_v4  ;;  %v11502_v57 = vld [vmem:[#allocation20 + $0x10] sm:$0xff]  ;;  %v17444_v10 = vpack.c.bf16 %v11501_v6, %v11500_v2  ;;  %v11504_v4 = vld [vmem:[#allocation20 + $0x20] sm:$0xff] }
0x3cd5   :  { %11299 = vmatprep.mubr.f32.mxu0 %v11195_v43  ;;  %v17447_v31 = vpack.c.bf16 %v11503_v11, %v11502_v57 }
0x3cd6   :  { %11300 = vmatmul.mubr.f32.vlgmr.msra.gmra.mrb[134].mxu0 %v11194_v18  ;;  %v11508_v18 = vld [vmem:[#allocation20 + $0x40] sm:$0xff] }
0x3cd7   :  { %17397 = vmatpush3.bf16.msra.mxu0 %v17396_v15  ;;  %15290 = vmatprep.mubr.msk.f32.mxu0 %vm17834_vm0, %v17835_v1  ;;  %v11505_v15 = vld [vmem:[#allocation20 + $0x28] sm:$0xff] }
0x3cd8   :  { %17398 = vmatprep.subr.bf16.mxu0 %v17833_v0  ;;  %v17450_v43 = vpack.c.bf16 %v11505_v15, %v11504_v4 }
0x3cdb   :  { %17400 = vmatpush3.bf16.msra.mxu0 %v17399_v61  ;;  %v11509_v61 = vld [vmem:[#allocation20 + $0x48] sm:$0xff] }
0x3cdc   :  { %17401 = vmatprep.subr.bf16.mxu0 %v17833_v0  ;;  %v17456_v47 = vpack.c.bf16 %v11509_v61, %v11508_v18 }
0x3cdf   :  { %17403 = vmatpush3.bf16.msra.mxu0 %v17402_v56  ;;  %v11511_v56 = vld [vmem:[#allocation20 + $0x58] sm:$0xff] }
0x3ce0   :  { %17404 = vmatprep.subr.bf16.mxu0 %v17833_v0  ;;  %v17459_v62 = vpack.c.bf16 %v11511_v56, %v11510_v28 }
0x3ce3   :  { %17406 = vmatpush3.bf16.msra.mxu0 %v17405_v16  ;;  %v11513_v16 = vld [vmem:[#allocation20 + $0x68] sm:$0xff] }
0x3ce4   :  { %17407 = vmatprep.subr.bf16.mxu0 %v17833_v0  ;;  %v17462_v13 = vpack.c.bf16 %v11513_v16, %v11512_v22 }
0x3ce7   :  { %17409 = vmatpush3.bf16.msra.mxu0 %v17408_v24 }
0x3ce8   :  { %17410 = vmatprep.subr.bf16.mxu0 %v17833_v0 }
0x3ceb   :  { %17412 = vmatpush3.bf16.msra.mxu0 %v17411_v20 }
0x3cec   :  { %17413 = vmatprep.subr.bf16.mxu0 %v17833_v0 }
0x3cef   :  { %17415 = vmatpush3.bf16.msra.mxu0 %v17414_v23  ;;  %v11515_v23 = vld [vmem:[#allocation20 + $0x78] sm:$0xff] }
0x3cf0   :  { %17416 = vmatprep.subr.bf16.mxu0 %v17833_v0  ;;  %v17465_v9 = vpack.c.bf16 %v11515_v23, %v11514_v25 }
0x3cf3   :  { %17418 = vmatpush3.bf16.msra.mxu0 %v17417_v26 }
0x3cf4   :  { %17443 = vmatprep.subr.bf16.mxu0 %v17833_v0 }
0x3da9   :  { %v12896_v49 = vpop.f32.mrb[134].mxu0 }
0x3daa   :  { %v12897_v45 = vpop.f32.mrb[135].mxu0 }
0x3dab   :  { %v12898_v53 = vadd.f32 %v12897_v45, %v12896_v49 }
0x3dad   :  { %v11302_v54 = vadd.f32 %v12898_v53, %v11764_v63 }
0x3daf   :  { %v11306_v59 = vmul.f32 0.01, %v11302_v54  ;;  %vm11305_vm15 = vcmp.gt.f32.partialorder %v11302_v54, 0.0 }
0x3db1   :  { %v11307_v37 = vsel %vm11305_vm15, %v11302_v54, %v11306_v59 }
0x3db2   :  { %15291 = vmatmul.mubr.f32.vlgmr.msra.gmra.mrb[136].mxu0 %v11307_v37 }
0x3db3   :  { %15360 = vmatprep.mubr.msk.f32.mxu0 %vm17834_vm0, %v17835_v1  ;;  %17445 = vmatpush3.bf16.msra.mxu0 %v17444_v10  ;;  %v11506_v1 = vld [vmem:[#allocation20 + $0x30] sm:$0xff] }
0x3db4   :  { %17446 = vmatprep.subr.bf16.mxu0 %v17833_v0  ;;  %v17453_v5 = vpack.c.bf16 %v11507_v36, %v11506_v1 }
0x3db7   :  { %17448 = vmatpush3.bf16.msra.mxu0 %v17447_v31 }
0x3db8   :  { %17449 = vmatprep.subr.bf16.mxu0 %v17833_v0 }
0x3dbb   :  { %17451 = vmatpush3.bf16.msra.mxu0 %v17450_v43 }
0x3dbc   :  { %17452 = vmatprep.subr.bf16.mxu0 %v17833_v0 }
0x3dbf   :  { %17454 = vmatpush3.bf16.msra.mxu0 %v17453_v5 }
0x3dc0   :  { %17455 = vmatprep.subr.bf16.mxu0 %v17833_v0 }
0x3dc3   :  { %17457 = vmatpush3.bf16.msra.mxu0 %v17456_v47 }
0x3dc4   :  { %17458 = vmatprep.subr.bf16.mxu0 %v17833_v0 }
0x3dc7   :  { %17460 = vmatpush3.bf16.msra.mxu0 %v17459_v62 }
0x3dc8   :  { %17461 = vmatprep.subr.bf16.mxu0 %v17833_v0 }
0x3dcb   :  { %17463 = vmatpush3.bf16.msra.mxu0 %v17462_v13 }
0x3dcc   :  { %17464 = vmatprep.subr.bf16.mxu0 %v17833_v0 }
0x3dcf   :  { %17466 = vmatpush3.bf16.msra.mxu0 %v17465_v9 }
0x3e85   :  { %v11397_v24 = vpop.f32.mrb[136].mxu0 }
0x3e86   :  { %v11398_v40 = vadd.f32 %v11765_v14, %v11397_v24  ;;  %v15292_v19 = vpop.f32.mrb[137].mxu0 }
0x3e88   :  { %vm11401_vm0 = vcmp.gt.f32.partialorder %v11398_v40, 0.0  ;;  %v11402_v20 = vmul.f32 0.01, %v11398_v40 }
0x3e8a   :  { %v11403_v7 = vsel %vm11401_vm0, %v11398_v40, %v11402_v20 }
0x3e8b   :  { %15326 = vmatmul.mubr.f32.vlgmr.msra.gmra.mrb[126].mxu1 %v11403_v7 }
0x3f5e   :  { %v11493_v0 = vpop.f32.mrb[126].mxu1 }
0x3f5f   :  { %v11494_v26 = vadd.f32 %v11766_v17, %v11493_v0  ;;  %v15327_v29 = vpop.f32.mrb[127].mxu1 }
0x3f61   :  { %vm11497_vm1 = vcmp.gt.f32.partialorder %v11494_v26, 0.0  ;;  %v11498_v27 = vmul.f32 0.01, %v11494_v26 }
0x3f63   :  { %v11499_v32 = vsel %vm11497_vm1, %v11494_v26, %v11498_v27 }
0x3f64   :  { %15361 = vmatmul.mubr.f32.vlgmr.msra.gmra.mrb[138].mxu0 %v11499_v32 }
0x4037   :  { %v11589_v21 = vpop.f32.mrb[138].mxu0 }
0x4038   :  { %v11590_v38 = vadd.f32 %v11767_v30, %v11589_v21  ;;  %v15362_v35 = vpop.f32.mrb[139].mxu0 }
0x403a   :  { %11593 = vst [vmem:[#allocation22] sm:$0xff] %v11590_v38 }
0x403b   :  { %17788 = shalt.err (!%p17785_p2)
}
0x403c   :  { %s20426_s4 = sld [smem:[#allocation37_spill]] }
0x4042   :  { %s17789_s13 = scalar_lea.hbm %s20426_s4, 128 }
0x4043   :  { %p17790_p3 = scmp.ne.s32.totalorder %s20426_s4, %s17789_s13  ;;  %p17793_p4 = scmp.lt.u32.totalorder %s17789_s13, %s20426_s4 }
0x4045   :  { %p17795_p5 = pnand %p17793_p4, %p17790_p3 }
0x4047   :  { %17798 = shalt.err (!%p17795_p5)
}
0x4048   :  { %11603 = dma.vmem_to_hbm [thread:$0]  %s11601_s28, 128, %s20426_s4, [#allocation4]  }
0x4049   :  { %17813 = dma.done.wait [#allocation4], 128  }
0x404a   :  { %17814 = vsyncadd [#allocation4], 4294967168 }
0x404b   :  { %11607 = vsyncpa [#allocation3], 1 }
0x404c   :  { %11608 = vsyncpa [#allocation6], 1 }
0x404d   :  { %11609 = vsyncpa [#allocation9], 1 }
0x404e   :  { %11610 = vsyncpa [#allocation12], 1 }
0x404f   :  { %11611 = vsyncpa [#allocation15], 1 }
0x4050   :  { %11612 = vsyncpa [#allocation18], 1 }
0x4051   :  { %11613 = vsyncpa [#allocation21], 1 }
0x4052   :  { %11614 = vsyncpa [#allocation4], 1 }

</bundles_post_ra>
